<compile_context>
chip_gen: v7x
topology: tpu7x:2x2x1
jax: 0.10.0
libtpu: 0.0.40
codegen_flags: <defaults>
</compile_context>

<pallas_src>
import functools
import math

import jax
import jax.numpy as jnp
from jax import lax
from jax.experimental import pallas as pl
from jax.experimental.pallas import tpu as pltpu

EMBED_DIM = 64
D_STATE = 16
EXPAND = 2
D_INNER = EXPAND * EMBED_DIM            # 128
DT_RANK = math.ceil(EMBED_DIM / 16)     # 4
MLP_EXPAND = 4
LN_EPS = 1e-5


# ----------------------------- in-kernel math --------------------------------
def _erf(x):
    # Abramowitz & Stegun 7.1.26 polynomial erf (|err| < 1.5e-7 ~ f32 noise),
    # avoids relying on a lax.erf Mosaic lowering.
    a1, a2, a3, a4, a5 = (0.254829592, -0.284496736, 1.421413741,
                          -1.453152027, 1.061405429)
    p_c = 0.3275911
    sgn = jnp.where(x >= 0.0, 1.0, -1.0)
    ax = jnp.abs(x)
    t = 1.0 / (1.0 + p_c * ax)
    poly = ((((a5 * t + a4) * t + a3) * t + a2) * t + a1) * t
    return sgn * (1.0 - poly * jnp.exp(-ax * ax))


def _gelu(x):
    # matches torch.nn.GELU() default (exact / erf form)
    return 0.5 * x * (1.0 + _erf(x * 0.7071067811865476))


def _softplus(x):
    # stable for all x; matches F.softplus(beta=1, threshold=20) to f32 eps,
    # without the compare/select pair of the thresholded form.
    return jnp.maximum(x, 0.0) + jnp.log(1.0 + jnp.exp(-jnp.abs(x)))


def _layernorm(x, g, b, eps):
    mu = jnp.mean(x, axis=-1, keepdims=True)
    var = jnp.mean((x - mu) ** 2, axis=-1, keepdims=True)
    return (x - mu) * lax.rsqrt(var + eps) * g + b


def _choose_tm(n):
    # biggest row tile (<=2048) that divides the token count
    for tm in (2048, 1024, 512, 384, 256, 128, 64, 32, 16, 8):
        if n % tm == 0:
            return tm
    raise ValueError(f"token count {n} must be a multiple of 8")


def _row_spec(tm, d):
    return pl.BlockSpec((tm, d), lambda i: (i, 0))


def _full_spec(shape):
    nd = len(shape)
    return pl.BlockSpec(shape, lambda i: (0,) * nd)


def _vmem_limit(bytes_needed):
    # explicit scoped-VMEM budget: computed footprint + margin, clamped so it
    # stays within v7x's 64 MiB physical VMEM.
    return int(min(64 << 20, max(32 << 20, bytes_needed + (4 << 20))))


# -------- kernel 1: LN1 + in_proj + GELU + folded x_proj (+softplus) ----------
def _pre_kernel(x_ref, g_ref, bln_ref, win_ref, bin_ref, wz_ref, bz_ref,
                t_ref, z_ref, *, eps, d_inner):
    xn = _layernorm(x_ref[...], g_ref[...], bln_ref[...], eps)
    t = _gelu(jnp.dot(xn, win_ref[...], preferred_element_type=jnp.float32)
              + bin_ref[...])
    t_ref[...] = t
    # one lane-dense (d_inner, 2*d_inner + 2*d_state) matmul: dt_projT/dt_projL
    # folded into x_proj plus the B|C columns -> single wide MXU op, single
    # lane-dense store (no separate (tm, 32) masked store).
    z = jnp.dot(t, wz_ref[...], preferred_element_type=jnp.float32) + bz_ref[...]
    lane = lax.broadcasted_iota(jnp.int32, z.shape, 1)
    z_ref[...] = jnp.where(lane < 2 * d_inner, _softplus(z), z)


def pre_block(x, ln_g, ln_b, w_in, b_in, w_z, b_z):
    n, d_model = x.shape
    d_inner = w_in.shape[1]
    d_z = w_z.shape[1]
    tm = _choose_tm(n)
    blk_bytes = 2 * tm * (d_model + d_inner + d_z) * 4
    w_bytes = (d_model * d_inner + d_inner * d_z + d_inner + d_z + 2 * d_model) * 4 * 2
    return pl.pallas_call(
        functools.partial(_pre_kernel, eps=LN_EPS, d_inner=d_inner),
        out_shape=(jax.ShapeDtypeStruct((n, d_inner), jnp.float32),
                   jax.ShapeDtypeStruct((n, d_z), jnp.float32)),
        grid=(n // tm,),
        in_specs=[_row_spec(tm, d_model),
                  _full_spec((1, d_model)), _full_spec((1, d_model)),
                  _full_spec(w_in.shape), _full_spec((1, d_inner)),
                  _full_spec(w_z.shape), _full_spec((1, d_z))],
        out_specs=(_row_spec(tm, d_inner), _row_spec(tm, d_z)),
        compiler_params=pltpu.CompilerParams(
            dimension_semantics=("parallel",),
            vmem_limit_bytes=_vmem_limit(blk_bytes + w_bytes)),
    )(x, ln_g.reshape(1, -1), ln_b.reshape(1, -1), w_in, b_in.reshape(1, -1),
      w_z, b_z.reshape(1, -1))


# ---- kernel 2: fused discretisation + 2-D wavefront scan + post epilogue -----
def _scan_kernel(z_ref, t_ref, xres_ref, at_ref, al_ref, d_ref, wout_ref,
                 bout_ref, o_ref, h_row, dal_scr, *, w_dim, d_state, d_inner):
    # h_row (previous image row's states) persists across the "arbitrary" axis.
    @pl.when(pl.program_id(1) == 0)
    def _():
        h_row[...] = jnp.zeros_like(h_row)

    z = z_ref[...]                                      # (b, w, 2*di + 2*ds)
    dt = z[:, :, :d_inner]
    dl = z[:, :, d_inner:2 * d_inner]
    bc = z[:, :, 2 * d_inner:]
    b_mat = bc[:, :, :d_state]
    c_mat = bc[:, :, d_state:]
    xv = t_ref[...]                                     # (b, w, d_inner)
    at = at_ref[...][None, None]                        # (1, 1, d_state, d_inner)
    al = al_ref[...][None, None]

    # Discretisation fused here (EUP exps + VPU products). The previous row's
    # state is folded IN PLACE into the source term
    #   u[j] = exp(deltaT.AT) * h_prev[j] + (deltaT + deltaL) * B (outer) x
    # (elementwise in h_prev[j]), so no separate u buffer is needed.
    dal_scr[...] = jnp.exp(dl[:, :, None, :] * al)
    h_row[...] = (jnp.exp(dt[:, :, None, :] * at) * h_row[...]
                  + ((dt + dl)[:, :, None, :]
                     * b_mat[:, :, :, None] * xv[:, :, None, :]))

    # TODO(synk): wavefront_scan_cuda source is unavailable; implementing the
    # natural 2-D recurrence h[i,j] = dAT*h[i-1,j] + dAL*h[i,j-1] + BXT + BXL
    # with zero boundary state.
    bsz_blk = xv.shape[0]
    h0 = jnp.zeros((bsz_blk, 1, d_state, d_inner), jnp.float32)
    if w_dim <= 32:
        # short row: full static unroll is fine
        h_left = h0
        for j in range(w_dim):
            h_left = dal_scr[:, pl.ds(j, 1)] * h_left + h_row[:, pl.ds(j, 1)]
            h_row[:, pl.ds(j, 1)] = h_left
    else:
        # realistic row lengths: partially-unrolled fori_loop keeps the dAL FMA
        # chain pipelined without exploding vreg live ranges / code size.
        def body(j, h_left):
            h_new = dal_scr[:, pl.ds(j, 1)] * h_left + h_row[:, pl.ds(j, 1)]
            h_row[:, pl.ds(j, 1)] = h_new
            return h_new
        lax.fori_loop(0, w_dim, body, h0, unroll=8)

    # y = C . h (XLU sublane reduction) + x * D, then the fused post epilogue:
    #   out = x_res + GELU(y) @ W_out + b_out
    # (the (n, d_inner) y stream never leaves VMEM; MXU is idle otherwise).
    y = (jnp.sum(c_mat[:, :, :, None] * h_row[...], axis=2)
         + xv * d_ref[...][None])
    g2 = _gelu(y).reshape(bsz_blk * w_dim, d_inner)
    o2 = jnp.dot(g2, wout_ref[...], preferred_element_type=jnp.float32)
    o_ref[...] = (xres_ref[...] + o2.reshape(bsz_blk, w_dim, -1)
                  + bout_ref[...][None])


def scan_post_block(z, t, x_res, at_t, al_t, d_vec, w_out, b_out,
                    bsz, h_dim, w_dim):
    hw = h_dim * w_dim
    d_inner = t.shape[-1]
    d_state = at_t.shape[0]
    d_model = w_out.shape[1]
    d_z = z.shape[-1]
    assert w_dim % 8 == 0, "row length must be a multiple of 8 (f32 sublane tile)"
    z3 = z.reshape(bsz, hw, d_z)
    t3 = t.reshape(bsz, hw, d_inner)
    x3 = x_res.reshape(bsz, hw, d_model)

    # Split the batch over a leading "parallel" grid axis: on v7x megacore the
    # serial wavefront is sharded across the 2 TensorCores; on single-TC
    # v5e/v6e this is just a sequential loop of 2 with identical numerics
    # (h_row is re-zeroed at program_id(1)==0 for every batch block).
    nb = 2 if (bsz % 2 == 0 and bsz >= 2) else 1
    bsz_blk = bsz // nb

    def row3(d):
        return pl.BlockSpec((bsz_blk, w_dim, d), lambda b, i: (b, i, 0))

    def full2(shape):
        return pl.BlockSpec(shape, lambda b, i: (0,) * len(shape))

    scratch_bytes = 2 * bsz_blk * w_dim * d_state * d_inner * 4
    blk_bytes = 2 * bsz_blk * w_dim * (d_z + d_inner + 2 * d_model) * 4
    w_bytes = (2 * d_state * d_inner + d_inner
               + d_inner * d_model + d_model) * 4 * 2

    out = pl.pallas_call(
        functools.partial(_scan_kernel, w_dim=w_dim, d_state=d_state,
                          d_inner=d_inner),
        out_shape=jax.ShapeDtypeStruct((bsz, hw, d_model), jnp.float32),
        grid=(nb, h_dim),
        in_specs=[row3(d_z), row3(d_inner), row3(d_model),
                  full2((d_state, d_inner)), full2((d_state, d_inner)),
                  full2((1, d_inner)), full2((d_inner, d_model)),
                  full2((1, d_model))],
        out_specs=row3(d_model),
        scratch_shapes=[pltpu.VMEM((bsz_blk, w_dim, d_state, d_inner), jnp.float32),
                        pltpu.VMEM((bsz_blk, w_dim, d_state, d_inner), jnp.float32)],
        compiler_params=pltpu.CompilerParams(
            dimension_semantics=("parallel", "arbitrary"),
            vmem_limit_bytes=_vmem_limit(scratch_bytes + blk_bytes + w_bytes)),
    )(z3, t3, x3, at_t, al_t, d_vec.reshape(1, d_inner), w_out,
      b_out.reshape(1, d_model))
    return out.reshape(bsz * hw, d_model)


# --------------- kernel 3: LN2 + fc1 + GELU + fc2 + residual add --------------
def _mlp_kernel(x_ref, g_ref, bln_ref, w1_ref, b1_ref, w2_ref, b2_ref, o_ref,
                *, eps):
    x = x_ref[...]
    h = _layernorm(x, g_ref[...], bln_ref[...], eps)
    h = _gelu(jnp.dot(h, w1_ref[...], preferred_element_type=jnp.float32)
              + b1_ref[...])
    o_ref[...] = (x + jnp.dot(h, w2_ref[...], preferred_element_type=jnp.float32)
                  + b2_ref[...])


def mlp_block(x, ln_g, ln_b, w1, b1, w2, b2):
    n, d_model = x.shape
    d_hidden = w1.shape[1]
    tm = _choose_tm(n)
    blk_bytes = 2 * tm * (2 * d_model + d_hidden) * 4
    w_bytes = (2 * d_model * d_hidden + d_hidden + 3 * d_model) * 4 * 2
    return pl.pallas_call(
        functools.partial(_mlp_kernel, eps=LN_EPS),
        out_shape=jax.ShapeDtypeStruct((n, d_model), jnp.float32),
        grid=(n // tm,),
        in_specs=[_row_spec(tm, d_model),
                  _full_spec((1, d_model)), _full_spec((1, d_model)),
                  _full_spec(w1.shape), _full_spec((1, d_hidden)),
                  _full_spec(w2.shape), _full_spec((1, d_model))],
        out_specs=_row_spec(tm, d_model),
        compiler_params=pltpu.CompilerParams(
            dimension_semantics=("parallel",),
            vmem_limit_bytes=_vmem_limit(blk_bytes + w_bytes)),
    )(x, ln_g.reshape(1, -1), ln_b.reshape(1, -1), w1, b1.reshape(1, -1),
      w2, b2.reshape(1, -1))


# ------------------------------- module forward --------------------------------
def _fold_m2d_params(p):
    # Exact fold of the K=dt_rank dt_proj matmuls into x_proj:
    #   dt_proj(x_proj(t)[:, :r]) == t @ (Wx_r @ Wdt) + (bx_r @ Wdt + bdt)
    # and concatenate the B|C columns so the pre kernel does ONE wide matmul.
    w_dt_t = p["x_proj_w"][:, :DT_RANK] @ p["dt_projT_w"]
    b_dt_t = p["x_proj_b"][:DT_RANK] @ p["dt_projT_w"] + p["dt_projT_b"]
    w_dt_l = p["x_proj_w"][:, DT_RANK:2 * DT_RANK] @ p["dt_projL_w"]
    b_dt_l = p["x_proj_b"][DT_RANK:2 * DT_RANK] @ p["dt_projL_w"] + p["dt_projL_b"]
    w_bc = p["x_proj_w"][:, 2 * DT_RANK:]                # (d_inner, 2*d_state)
    b_bc = p["x_proj_b"][2 * DT_RANK:]
    return dict(
        w_z=jnp.concatenate([w_dt_t, w_dt_l, w_bc], axis=1),   # (128, 288)
        b_z=jnp.concatenate([b_dt_t, b_dt_l, b_bc], axis=0),   # (288,)
        at_t=-jnp.exp(p["AT_log"]).T,                          # (d_state, d_inner)
        al_t=-jnp.exp(p["AL_log"]).T,
    )


def res_block(x, p):
    bsz, h_dim, w_dim, c = x.shape
    n = bsz * h_dim * w_dim
    x_flat = x.reshape(n, c)
    f = _fold_m2d_params(p)

    # ---- x = x + M2DBlock(norm1(x))   (drop_path / res_scale are Identity) ----
    t, z = pre_block(x_flat, p["ln1_g"], p["ln1_b"],
                     p["in_proj_w"], p["in_proj_b"], f["w_z"], f["b_z"])
    x_flat = scan_post_block(z, t, x_flat, f["at_t"], f["al_t"], p["D"],
                             p["out_proj_w"], p["out_proj_b"],
                             bsz, h_dim, w_dim)

    # ---- x = x + MLP(norm2(x)) ----
    # TODO(synk): MLP class source not provided; assuming Linear -> GELU -> Linear.
    x_flat = mlp_block(x_flat, p["ln2_g"], p["ln2_b"],
                       p["fc1_w"], p["fc1_b"], p["fc2_w"], p["fc2_b"])
    return x_flat.reshape(bsz, h_dim, w_dim, c)


# ------------------------------ parameter init ---------------------------------
def init_params(key):
    p = {}
    keys = iter(jax.random.split(key, 24))

    def linear_init(fan_in, fan_out):
        bound = 1.0 / math.sqrt(fan_in)
        w = jax.random.uniform(next(keys), (fan_in, fan_out), jnp.float32, -bound, bound)
        b = jax.random.uniform(next(keys), (fan_out,), jnp.float32, -bound, bound)
        return w, b  # stored (in, out) == torch weight.T

    p["ln1_g"] = jnp.ones((EMBED_DIM,), jnp.float32)
    p["ln1_b"] = jnp.zeros((EMBED_DIM,), jnp.float32)
    p["ln2_g"] = jnp.ones((EMBED_DIM,), jnp.float32)
    p["ln2_b"] = jnp.zeros((EMBED_DIM,), jnp.float32)

    p["in_proj_w"], p["in_proj_b"] = linear_init(EMBED_DIM, D_INNER)
    p["x_proj_w"], p["x_proj_b"] = linear_init(D_INNER, 2 * DT_RANK + 2 * D_STATE)
    p["out_proj_w"], p["out_proj_b"] = linear_init(D_INNER, EMBED_DIM)

    dt_init_std = DT_RANK ** (-0.5)
    dt_min, dt_max, dt_floor = 1e-3, 1e-1, 1e-4

    def dt_proj_init():
        w = jax.random.uniform(next(keys), (DT_RANK, D_INNER), jnp.float32,
                               -dt_init_std, dt_init_std)
        u = jax.random.uniform(next(keys), (D_INNER,), jnp.float32)
        dt = jnp.exp(u * (math.log(dt_max) - math.log(dt_min)) + math.log(dt_min))
        dt = jnp.maximum(dt, dt_floor)
        inv_dt = dt + jnp.log(-jnp.expm1(-dt))
        return w, inv_dt

    p["dt_projT_w"], p["dt_projT_b"] = dt_proj_init()
    p["dt_projL_w"], p["dt_projL_b"] = dt_proj_init()

    a = jnp.tile(jnp.arange(1, D_STATE + 1, dtype=jnp.float32), (D_INNER, 1))
    p["AT_log"] = jnp.log(a)
    p["AL_log"] = jnp.log(a)
    p["D"] = jnp.ones((D_INNER,), jnp.float32)

    p["fc1_w"], p["fc1_b"] = linear_init(EMBED_DIM, EMBED_DIM * MLP_EXPAND)
    p["fc2_w"], p["fc2_b"] = linear_init(EMBED_DIM * MLP_EXPAND, EMBED_DIM)
    return p


# ------------------------------------ main --------------------------------------
if __name__ == "__main__":
    key = jax.random.PRNGKey(0)
    k_param, k_x = jax.random.split(key)
    params = init_params(k_param)

    B, H, W = 2, 8, 8
    x = jax.random.normal(k_x, (B, H, W, EMBED_DIM), jnp.float32)

    fwd = jax.jit(res_block)
    out = fwd(x, params)
    jax.block_until_ready(out)

    assert out.shape == (B, H, W, EMBED_DIM)
    assert bool(jnp.all(jnp.isfinite(out)))
    print("KERNEL_OK")
</pallas_src>

<mosaic_0001>
module attributes {stable_mosaic.version = 11 : i64} {
  func.func @_pre_kernel(%arg0: i32, %arg1: memref<128x64xf32, #tpu.memory_space<vmem>>, %arg2: memref<1x64xf32, #tpu.memory_space<vmem>>, %arg3: memref<1x64xf32, #tpu.memory_space<vmem>>, %arg4: memref<64x128xf32, #tpu.memory_space<vmem>>, %arg5: memref<1x128xf32, #tpu.memory_space<vmem>>, %arg6: memref<128x288xf32, #tpu.memory_space<vmem>>, %arg7: memref<1x288xf32, #tpu.memory_space<vmem>>, %arg8: memref<128x128xf32, #tpu.memory_space<vmem>>, %arg9: memref<128x288xf32, #tpu.memory_space<vmem>>) attributes {dimension_semantics = [#tpu.dimension_semantics<parallel>], iteration_bounds = array<i64: 1>, scalar_prefetch = 0 : i64, scratch_operands = 0 : i64, tpu.core_type = #tpu.core_type<tc>, window_params = [{transform_indices = @transform_0, window_bounds = array<i64: 128, 64>}, {pipeline_mode = #tpu.pipeline_mode<synchronous>, transform_indices = @transform_1, window_bounds = array<i64: 1, 64>}, {pipeline_mode = #tpu.pipeline_mode<synchronous>, transform_indices = @transform_2, window_bounds = array<i64: 1, 64>}, {pipeline_mode = #tpu.pipeline_mode<synchronous>, transform_indices = @transform_3, window_bounds = array<i64: 64, 128>}, {pipeline_mode = #tpu.pipeline_mode<synchronous>, transform_indices = @transform_4, window_bounds = array<i64: 1, 128>}, {pipeline_mode = #tpu.pipeline_mode<synchronous>, transform_indices = @transform_5, window_bounds = array<i64: 128, 288>}, {pipeline_mode = #tpu.pipeline_mode<synchronous>, transform_indices = @transform_6, window_bounds = array<i64: 1, 288>}, {transform_indices = @transform_7, window_bounds = array<i64: 128, 128>}, {transform_indices = @transform_8, window_bounds = array<i64: 128, 288>}]} {
    %c0 = arith.constant 0 : index
    %c0_0 = arith.constant 0 : index
    %0 = vector.load %arg1[%c0, %c0_0] : memref<128x64xf32, #tpu.memory_space<vmem>>, vector<128x64xf32>
    %c0_1 = arith.constant 0 : index
    %c0_2 = arith.constant 0 : index
    %1 = vector.load %arg2[%c0_1, %c0_2] : memref<1x64xf32, #tpu.memory_space<vmem>>, vector<1x64xf32>
    %c0_3 = arith.constant 0 : index
    %c0_4 = arith.constant 0 : index
    %2 = vector.load %arg3[%c0_3, %c0_4] : memref<1x64xf32, #tpu.memory_space<vmem>>, vector<1x64xf32>
    %cst = arith.constant dense<0.000000e+00> : vector<128xf32>
    %3 = vector.multi_reduction <add>, %0, %cst [1] : vector<128x64xf32> to vector<128xf32>
    %4 = vector.shape_cast %3 : vector<128xf32> to vector<128x1xf32>
    %cst_5 = arith.constant 6.400000e+01 : f32
    %5 = vector.broadcast %cst_5 : f32 to vector<128x1xf32>
    %6 = arith.divf %4, %5 : vector<128x1xf32>
    %7 = vector.broadcast %6 : vector<128x1xf32> to vector<128x64xf32>
    %8 = arith.subf %0, %7 : vector<128x64xf32>
    %9 = arith.mulf %8, %8 : vector<128x64xf32>
    %cst_6 = arith.constant dense<0.000000e+00> : vector<128xf32>
    %10 = vector.multi_reduction <add>, %9, %cst_6 [1] : vector<128x64xf32> to vector<128xf32>
    %11 = vector.shape_cast %10 : vector<128xf32> to vector<128x1xf32>
    %cst_7 = arith.constant 6.400000e+01 : f32
    %12 = vector.broadcast %cst_7 : f32 to vector<128x1xf32>
    %13 = arith.divf %11, %12 : vector<128x1xf32>
    %14 = vector.broadcast %6 : vector<128x1xf32> to vector<128x64xf32>
    %15 = arith.subf %0, %14 : vector<128x64xf32>
    %cst_8 = arith.constant 9.99999974E-6 : f32
    %16 = vector.broadcast %cst_8 : f32 to vector<128x1xf32>
    %17 = arith.addf %13, %16 : vector<128x1xf32>
    %18 = math.rsqrt %17 : vector<128x1xf32>
    %19 = vector.broadcast %18 : vector<128x1xf32> to vector<128x64xf32>
    %20 = arith.mulf %15, %19 : vector<128x64xf32>
    %21 = vector.broadcast %1 : vector<1x64xf32> to vector<128x64xf32>
    %22 = arith.mulf %20, %21 : vector<128x64xf32>
    %23 = vector.broadcast %2 : vector<1x64xf32> to vector<128x64xf32>
    %24 = arith.addf %22, %23 : vector<128x64xf32>
    %c0_9 = arith.constant 0 : index
    %c0_10 = arith.constant 0 : index
    %25 = vector.load %arg4[%c0_9, %c0_10] : memref<64x128xf32, #tpu.memory_space<vmem>>, vector<64x128xf32>
    %cst_11 = arith.constant dense<0.000000e+00> : vector<128x128xf32>
    %26 = tpu.matmul %24, %25, %cst_11 {dimension_numbers = #tpu.dot_dimension_numbers<[1], [0], [0], [1], [0, 0, 1, 1], [], []>} : vector<128x64xf32>, vector<64x128xf32>, vector<128x128xf32> -> vector<128x128xf32>
    %c0_12 = arith.constant 0 : index
    %c0_13 = arith.constant 0 : index
    %27 = vector.load %arg5[%c0_12, %c0_13] : memref<1x128xf32, #tpu.memory_space<vmem>>, vector<1x128xf32>
    %28 = vector.broadcast %27 : vector<1x128xf32> to vector<128x128xf32>
    %29 = arith.addf %26, %28 : vector<128x128xf32>
    %cst_14 = arith.constant 5.000000e-01 : f32
    %30 = vector.broadcast %cst_14 : f32 to vector<128x128xf32>
    %31 = arith.mulf %30, %29 : vector<128x128xf32>
    %cst_15 = arith.constant 0.707106769 : f32
    %32 = vector.broadcast %cst_15 : f32 to vector<128x128xf32>
    %33 = arith.mulf %29, %32 : vector<128x128xf32>
    %cst_16 = arith.constant 0.000000e+00 : f32
    %34 = vector.broadcast %cst_16 : f32 to vector<128x128xf32>
    %35 = arith.cmpf oge, %33, %34 : vector<128x128xf32>
    %cst_17 = arith.constant 1.000000e+00 : f32
    %cst_18 = arith.constant -1.000000e+00 : f32
    %36 = vector.broadcast %cst_17 : f32 to vector<128x128xf32>
    %37 = vector.broadcast %cst_18 : f32 to vector<128x128xf32>
    %38 = arith.select %35, %36, %37 : vector<128x128xi1>, vector<128x128xf32>
    %39 = math.absf %33 : vector<128x128xf32>
    %cst_19 = arith.constant 0.327591091 : f32
    %40 = vector.broadcast %cst_19 : f32 to vector<128x128xf32>
    %41 = arith.mulf %40, %39 : vector<128x128xf32>
    %cst_20 = arith.constant 1.000000e+00 : f32
    %42 = vector.broadcast %cst_20 : f32 to vector<128x128xf32>
    %43 = arith.addf %42, %41 : vector<128x128xf32>
    %cst_21 = arith.constant 1.000000e+00 : f32
    %44 = vector.broadcast %cst_21 : f32 to vector<128x128xf32>
    %45 = arith.divf %44, %43 : vector<128x128xf32>
    %cst_22 = arith.constant 1.06140542 : f32
    %46 = vector.broadcast %cst_22 : f32 to vector<128x128xf32>
    %47 = arith.mulf %46, %45 : vector<128x128xf32>
    %cst_23 = arith.constant -1.45315206 : f32
    %48 = vector.broadcast %cst_23 : f32 to vector<128x128xf32>
    %49 = arith.addf %47, %48 : vector<128x128xf32>
    %50 = arith.mulf %49, %45 : vector<128x128xf32>
    %cst_24 = arith.constant 1.42141378 : f32
    %51 = vector.broadcast %cst_24 : f32 to vector<128x128xf32>
    %52 = arith.addf %50, %51 : vector<128x128xf32>
    %53 = arith.mulf %52, %45 : vector<128x128xf32>
    %cst_25 = arith.constant -0.284496725 : f32
    %54 = vector.broadcast %cst_25 : f32 to vector<128x128xf32>
    %55 = arith.addf %53, %54 : vector<128x128xf32>
    %56 = arith.mulf %55, %45 : vector<128x128xf32>
    %cst_26 = arith.constant 0.254829586 : f32
    %57 = vector.broadcast %cst_26 : f32 to vector<128x128xf32>
    %58 = arith.addf %56, %57 : vector<128x128xf32>
    %59 = arith.mulf %58, %45 : vector<128x128xf32>
    %cst_27 = arith.constant 0.000000e+00 : f32
    %60 = vector.broadcast %cst_27 : f32 to vector<128x128xf32>
    %61 = arith.subf %60, %39 : vector<128x128xf32>
    %62 = arith.mulf %61, %39 : vector<128x128xf32>
    %63 = math.exp %62 : vector<128x128xf32>
    %64 = arith.mulf %59, %63 : vector<128x128xf32>
    %cst_28 = arith.constant 1.000000e+00 : f32
    %65 = vector.broadcast %cst_28 : f32 to vector<128x128xf32>
    %66 = arith.subf %65, %64 : vector<128x128xf32>
    %67 = arith.mulf %38, %66 : vector<128x128xf32>
    %cst_29 = arith.constant 1.000000e+00 : f32
    %68 = vector.broadcast %cst_29 : f32 to vector<128x128xf32>
    %69 = arith.addf %68, %67 : vector<128x128xf32>
    %70 = arith.mulf %31, %69 : vector<128x128xf32>
    %c0_30 = arith.constant 0 : index
    %c0_31 = arith.constant 0 : index
    %71 = vector.load %arg8[%c0_30, %c0_31] : memref<128x128xf32, #tpu.memory_space<vmem>>, vector<128x128xf32>
    tpu.vector_store %arg8[%c0_30, %c0_31], %70 {strides = array<i32>} : memref<128x128xf32, #tpu.memory_space<vmem>>, vector<128x128xf32>,
    %c0_32 = arith.constant 0 : index
    %c0_33 = arith.constant 0 : index
    %72 = vector.load %arg6[%c0_32, %c0_33] : memref<128x288xf32, #tpu.memory_space<vmem>>, vector<128x288xf32>
    %cst_34 = arith.constant dense<0.000000e+00> : vector<128x288xf32>
    %73 = tpu.matmul %70, %72, %cst_34 {dimension_numbers = #tpu.dot_dimension_numbers<[1], [0], [0], [1], [0, 0, 1, 1], [], []>} : vector<128x128xf32>, vector<128x288xf32>, vector<128x288xf32> -> vector<128x288xf32>
    %c0_35 = arith.constant 0 : index
    %c0_36 = arith.constant 0 : index
    %74 = vector.load %arg7[%c0_35, %c0_36] : memref<1x288xf32, #tpu.memory_space<vmem>>, vector<1x288xf32>
    %75 = vector.broadcast %74 : vector<1x288xf32> to vector<128x288xf32>
    %76 = arith.addf %73, %75 : vector<128x288xf32>
    %77 = tpu.iota {dimensions = array<i32: 1>} : vector<128x288xi32>
    %c256_i32 = arith.constant 256 : i32
    %78 = vector.broadcast %c256_i32 : i32 to vector<128x288xi32>
    %79 = arith.cmpi slt, %77, %78 : vector<128x288xi32>
    %cst_37 = arith.constant 0.000000e+00 : f32
    %80 = vector.broadcast %cst_37 : f32 to vector<128x288xf32>
    %81 = arith.maximumf %76, %80 : vector<128x288xf32>
    %82 = math.absf %76 : vector<128x288xf32>
    %cst_38 = arith.constant 0.000000e+00 : f32
    %83 = vector.broadcast %cst_38 : f32 to vector<128x288xf32>
    %84 = arith.subf %83, %82 : vector<128x288xf32>
    %85 = math.exp %84 : vector<128x288xf32>
    %cst_39 = arith.constant 1.000000e+00 : f32
    %86 = vector.broadcast %cst_39 : f32 to vector<128x288xf32>
    %87 = arith.addf %86, %85 : vector<128x288xf32>
    %88 = math.log %87 : vector<128x288xf32>
    %89 = arith.addf %81, %88 : vector<128x288xf32>
    %90 = arith.select %79, %89, %76 : vector<128x288xi1>, vector<128x288xf32>
    %c0_40 = arith.constant 0 : index
    %c0_41 = arith.constant 0 : index
    %91 = vector.load %arg9[%c0_40, %c0_41] : memref<128x288xf32, #tpu.memory_space<vmem>>, vector<128x288xf32>
    tpu.vector_store %arg9[%c0_40, %c0_41], %90 {strides = array<i32>} : memref<128x288xf32, #tpu.memory_space<vmem>>, vector<128x288xf32>,
    return
  }
  func.func @transform_0(%arg0: i32) -> (i32, i32) {
    %c0_i32 = arith.constant 0 : i32
    %c0_i32_0 = arith.constant 0 : i32
    return %arg0, %c0_i32 : i32, i32
  }
  func.func @transform_1(%arg0: i32) -> (i32, i32) {
    %c0_i32 = arith.constant 0 : i32
    %c0_i32_0 = arith.constant 0 : i32
    %c0_i32_1 = arith.constant 0 : i32
    return %c0_i32, %c0_i32_0 : i32, i32
  }
  func.func @transform_2(%arg0: i32) -> (i32, i32) {
    %c0_i32 = arith.constant 0 : i32
    %c0_i32_0 = arith.constant 0 : i32
    %c0_i32_1 = arith.constant 0 : i32
    return %c0_i32, %c0_i32_0 : i32, i32
  }
  func.func @transform_3(%arg0: i32) -> (i32, i32) {
    %c0_i32 = arith.constant 0 : i32
    %c0_i32_0 = arith.constant 0 : i32
    %c0_i32_1 = arith.constant 0 : i32
    return %c0_i32, %c0_i32_0 : i32, i32
  }
  func.func @transform_4(%arg0: i32) -> (i32, i32) {
    %c0_i32 = arith.constant 0 : i32
    %c0_i32_0 = arith.constant 0 : i32
    %c0_i32_1 = arith.constant 0 : i32
    return %c0_i32, %c0_i32_0 : i32, i32
  }
  func.func @transform_5(%arg0: i32) -> (i32, i32) {
    %c0_i32 = arith.constant 0 : i32
    %c0_i32_0 = arith.constant 0 : i32
    %c0_i32_1 = arith.constant 0 : i32
    return %c0_i32, %c0_i32_0 : i32, i32
  }
  func.func @transform_6(%arg0: i32) -> (i32, i32) {
    %c0_i32 = arith.constant 0 : i32
    %c0_i32_0 = arith.constant 0 : i32
    %c0_i32_1 = arith.constant 0 : i32
    return %c0_i32, %c0_i32_0 : i32, i32
  }
  func.func @transform_7(%arg0: i32) -> (i32, i32) {
    %c0_i32 = arith.constant 0 : i32
    %c0_i32_0 = arith.constant 0 : i32
    return %arg0, %c0_i32 : i32, i32
  }
  func.func @transform_8(%arg0: i32) -> (i32, i32) {
    %c0_i32 = arith.constant 0 : i32
    %c0_i32_0 = arith.constant 0 : i32
    return %arg0, %c0_i32 : i32, i32
  }
}

module attributes {stable_mosaic.version = 11 : i64} {
  func.func @_scan_kernel(%arg0: i32, %arg1: i32, %arg2: memref<1x8x288xf32, #tpu.memory_space<vmem>>, %arg3: memref<1x8x128xf32, #tpu.memory_space<vmem>>, %arg4: memref<1x8x64xf32, #tpu.memory_space<vmem>>, %arg5: memref<16x128xf32, #tpu.memory_space<vmem>>, %arg6: memref<16x128xf32, #tpu.memory_space<vmem>>, %arg7: memref<1x128xf32, #tpu.memory_space<vmem>>, %arg8: memref<128x64xf32, #tpu.memory_space<vmem>>, %arg9: memref<1x64xf32, #tpu.memory_space<vmem>>, %arg10: memref<1x8x64xf32, #tpu.memory_space<vmem>>, %arg11: memref<1x8x16x128xf32, #tpu.memory_space<vmem>>, %arg12: memref<1x8x16x128xf32, #tpu.memory_space<vmem>>) attributes {dimension_semantics = [#tpu.dimension_semantics<parallel>, #tpu.dimension_semantics<arbitrary>], iteration_bounds = array<i64: 2, 8>, scalar_prefetch = 0 : i64, scratch_operands = 2 : i64, tpu.core_type = #tpu.core_type<tc>, window_params = [{transform_indices = @transform_0, window_bounds = array<i64: 1, 8, 288>}, {transform_indices = @transform_1, window_bounds = array<i64: 1, 8, 128>}, {transform_indices = @transform_2, window_bounds = array<i64: 1, 8, 64>}, {pipeline_mode = #tpu.pipeline_mode<synchronous>, transform_indices = @transform_3, window_bounds = array<i64: 16, 128>}, {pipeline_mode = #tpu.pipeline_mode<synchronous>, transform_indices = @transform_4, window_bounds = array<i64: 16, 128>}, {pipeline_mode = #tpu.pipeline_mode<synchronous>, transform_indices = @transform_5, window_bounds = array<i64: 1, 128>}, {pipeline_mode = #tpu.pipeline_mode<synchronous>, transform_indices = @transform_6, window_bounds = array<i64: 128, 64>}, {pipeline_mode = #tpu.pipeline_mode<synchronous>, transform_indices = @transform_7, window_bounds = array<i64: 1, 64>}, {transform_indices = @transform_8, window_bounds = array<i64: 1, 8, 64>}]} {
    %c0_i32 = arith.constant 0 : i32
    %0 = arith.cmpi eq, %arg1, %c0_i32 : i32
    %1 = arith.extui %0 : i1 to i32
    %c0_i32_0 = arith.constant 0 : i32
    %2 = arith.cmpi ne, %1, %c0_i32_0 : i32
    scf.if %2 {
      %cst_145 = arith.constant 0.000000e+00 : f32
      %141 = vector.broadcast %cst_145 : f32 to vector<1x8x16x128xf32>
      %c0_146 = arith.constant 0 : index
      %c0_147 = arith.constant 0 : index
      %c0_148 = arith.constant 0 : index
      %c0_149 = arith.constant 0 : index
      %142 = vector.load %arg11[%c0_146, %c0_147, %c0_148, %c0_149] : memref<1x8x16x128xf32, #tpu.memory_space<vmem>>, vector<1x8x16x128xf32>
      tpu.vector_store %arg11[%c0_146, %c0_147, %c0_148, %c0_149], %141 {strides = array<i32>} : memref<1x8x16x128xf32, #tpu.memory_space<vmem>>, vector<1x8x16x128xf32>,
    } else {
    }
    %c0 = arith.constant 0 : index
    %c0_1 = arith.constant 0 : index
    %c0_2 = arith.constant 0 : index
    %3 = vector.load %arg2[%c0, %c0_1, %c0_2] : memref<1x8x288xf32, #tpu.memory_space<vmem>>, vector<1x8x288xf32>
    %4 = vector.extract_strided_slice %3 {offsets = [0, 0, 0], sizes = [1, 8, 128], strides = [1, 1, 1]} : vector<1x8x288xf32> to vector<1x8x128xf32>
    %5 = vector.extract_strided_slice %3 {offsets = [0, 0, 128], sizes = [1, 8, 128], strides = [1, 1, 1]} : vector<1x8x288xf32> to vector<1x8x128xf32>
    %6 = vector.extract_strided_slice %3 {offsets = [0, 0, 256], sizes = [1, 8, 32], strides = [1, 1, 1]} : vector<1x8x288xf32> to vector<1x8x32xf32>
    %7 = vector.extract_strided_slice %6 {offsets = [0, 0, 0], sizes = [1, 8, 16], strides = [1, 1, 1]} : vector<1x8x32xf32> to vector<1x8x16xf32>
    %8 = vector.extract_strided_slice %6 {offsets = [0, 0, 16], sizes = [1, 8, 16], strides = [1, 1, 1]} : vector<1x8x32xf32> to vector<1x8x16xf32>
    %c0_3 = arith.constant 0 : index
    %c0_4 = arith.constant 0 : index
    %c0_5 = arith.constant 0 : index
    %9 = vector.load %arg3[%c0_3, %c0_4, %c0_5] : memref<1x8x128xf32, #tpu.memory_space<vmem>>, vector<1x8x128xf32>
    %c0_6 = arith.constant 0 : index
    %c0_7 = arith.constant 0 : index
    %10 = vector.load %arg5[%c0_6, %c0_7] : memref<16x128xf32, #tpu.memory_space<vmem>>, vector<16x128xf32>
    %11 = vector.shape_cast %10 : vector<16x128xf32> to vector<1x1x16x128xf32>
    %c0_8 = arith.constant 0 : index
    %c0_9 = arith.constant 0 : index
    %12 = vector.load %arg6[%c0_8, %c0_9] : memref<16x128xf32, #tpu.memory_space<vmem>>, vector<16x128xf32>
    %13 = vector.shape_cast %12 : vector<16x128xf32> to vector<1x1x16x128xf32>
    %14 = vector.shape_cast %5 : vector<1x8x128xf32> to vector<1x8x1x128xf32>
    %15 = vector.broadcast %14 : vector<1x8x1x128xf32> to vector<1x8x16x128xf32>
    %16 = vector.broadcast %13 : vector<1x1x16x128xf32> to vector<1x8x16x128xf32>
    %17 = arith.mulf %15, %16 : vector<1x8x16x128xf32>
    %18 = math.exp %17 : vector<1x8x16x128xf32>
    %c0_10 = arith.constant 0 : index
    %c0_11 = arith.constant 0 : index
    %c0_12 = arith.constant 0 : index
    %c0_13 = arith.constant 0 : index
    %19 = vector.load %arg12[%c0_10, %c0_11, %c0_12, %c0_13] : memref<1x8x16x128xf32, #tpu.memory_space<vmem>>, vector<1x8x16x128xf32>
    tpu.vector_store %arg12[%c0_10, %c0_11, %c0_12, %c0_13], %18 {strides = array<i32>} : memref<1x8x16x128xf32, #tpu.memory_space<vmem>>, vector<1x8x16x128xf32>,
    %20 = vector.shape_cast %4 : vector<1x8x128xf32> to vector<1x8x1x128xf32>
    %21 = vector.broadcast %20 : vector<1x8x1x128xf32> to vector<1x8x16x128xf32>
    %22 = vector.broadcast %11 : vector<1x1x16x128xf32> to vector<1x8x16x128xf32>
    %23 = arith.mulf %21, %22 : vector<1x8x16x128xf32>
    %24 = math.exp %23 : vector<1x8x16x128xf32>
    %c0_14 = arith.constant 0 : index
    %c0_15 = arith.constant 0 : index
    %c0_16 = arith.constant 0 : index
    %c0_17 = arith.constant 0 : index
    %25 = vector.load %arg11[%c0_14, %c0_15, %c0_16, %c0_17] : memref<1x8x16x128xf32, #tpu.memory_space<vmem>>, vector<1x8x16x128xf32>
    %26 = arith.mulf %24, %25 : vector<1x8x16x128xf32>
    %27 = arith.addf %4, %5 : vector<1x8x128xf32>
    %28 = vector.shape_cast %27 : vector<1x8x128xf32> to vector<1x8x1x128xf32>
    %29 = vector.shape_cast %7 : vector<1x8x16xf32> to vector<1x8x16x1xf32>
    %30 = vector.broadcast %28 : vector<1x8x1x128xf32> to vector<1x8x16x128xf32>
    %31 = vector.broadcast %29 : vector<1x8x16x1xf32> to vector<1x8x16x128xf32>
    %32 = arith.mulf %30, %31 : vector<1x8x16x128xf32>
    %33 = vector.shape_cast %9 : vector<1x8x128xf32> to vector<1x8x1x128xf32>
    %34 = vector.broadcast %33 : vector<1x8x1x128xf32> to vector<1x8x16x128xf32>
    %35 = arith.mulf %32, %34 : vector<1x8x16x128xf32>
    %36 = arith.addf %26, %35 : vector<1x8x16x128xf32>
    %c0_18 = arith.constant 0 : index
    %c0_19 = arith.constant 0 : index
    %c0_20 = arith.constant 0 : index
    %c0_21 = arith.constant 0 : index
    %37 = vector.load %arg11[%c0_18, %c0_19, %c0_20, %c0_21] : memref<1x8x16x128xf32, #tpu.memory_space<vmem>>, vector<1x8x16x128xf32>
    tpu.vector_store %arg11[%c0_18, %c0_19, %c0_20, %c0_21], %36 {strides = array<i32>} : memref<1x8x16x128xf32, #tpu.memory_space<vmem>>, vector<1x8x16x128xf32>,
    %cst = arith.constant 0.000000e+00 : f32
    %38 = vector.broadcast %cst : f32 to vector<1x1x16x128xf32>
    %c0_22 = arith.constant 0 : index
    %c0_23 = arith.constant 0 : index
    %c0_24 = arith.constant 0 : index
    %c0_25 = arith.constant 0 : index
    %39 = vector.load %arg12[%c0_22, %c0_23, %c0_24, %c0_25] : memref<1x8x16x128xf32, #tpu.memory_space<vmem>>, vector<1x1x16x128xf32>
    %40 = arith.mulf %39, %38 : vector<1x1x16x128xf32>
    %c0_26 = arith.constant 0 : index
    %c0_27 = arith.constant 0 : index
    %c0_28 = arith.constant 0 : index
    %c0_29 = arith.constant 0 : index
    %41 = vector.load %arg11[%c0_26, %c0_27, %c0_28, %c0_29] : memref<1x8x16x128xf32, #tpu.memory_space<vmem>>, vector<1x1x16x128xf32>
    %42 = arith.addf %40, %41 : vector<1x1x16x128xf32>
    %c0_30 = arith.constant 0 : index
    %c0_31 = arith.constant 0 : index
    %c0_32 = arith.constant 0 : index
    %c0_33 = arith.constant 0 : index
    %43 = vector.load %arg11[%c0_30, %c0_31, %c0_32, %c0_33] : memref<1x8x16x128xf32, #tpu.memory_space<vmem>>, vector<1x1x16x128xf32>
    tpu.vector_store %arg11[%c0_30, %c0_31, %c0_32, %c0_33], %42 {strides = array<i32>} : memref<1x8x16x128xf32, #tpu.memory_space<vmem>>, vector<1x1x16x128xf32>,
    %c0_34 = arith.constant 0 : index
    %c1 = arith.constant 1 : index
    %c0_35 = arith.constant 0 : index
    %c0_36 = arith.constant 0 : index
    %44 = vector.load %arg12[%c0_34, %c1, %c0_35, %c0_36] : memref<1x8x16x128xf32, #tpu.memory_space<vmem>>, vector<1x1x16x128xf32>
    %45 = arith.mulf %44, %42 : vector<1x1x16x128xf32>
    %c0_37 = arith.constant 0 : index
    %c1_38 = arith.constant 1 : index
    %c0_39 = arith.constant 0 : index
    %c0_40 = arith.constant 0 : index
    %46 = vector.load %arg11[%c0_37, %c1_38, %c0_39, %c0_40] : memref<1x8x16x128xf32, #tpu.memory_space<vmem>>, vector<1x1x16x128xf32>
    %47 = arith.addf %45, %46 : vector<1x1x16x128xf32>
    %c0_41 = arith.constant 0 : index
    %c1_42 = arith.constant 1 : index
    %c0_43 = arith.constant 0 : index
    %c0_44 = arith.constant 0 : index
    %48 = vector.load %arg11[%c0_41, %c1_42, %c0_43, %c0_44] : memref<1x8x16x128xf32, #tpu.memory_space<vmem>>, vector<1x1x16x128xf32>
    tpu.vector_store %arg11[%c0_41, %c1_42, %c0_43, %c0_44], %47 {strides = array<i32>} : memref<1x8x16x128xf32, #tpu.memory_space<vmem>>, vector<1x1x16x128xf32>,
    %c0_45 = arith.constant 0 : index
    %c2 = arith.constant 2 : index
    %c0_46 = arith.constant 0 : index
    %c0_47 = arith.constant 0 : index
    %49 = vector.load %arg12[%c0_45, %c2, %c0_46, %c0_47] : memref<1x8x16x128xf32, #tpu.memory_space<vmem>>, vector<1x1x16x128xf32>
    %50 = arith.mulf %49, %47 : vector<1x1x16x128xf32>
    %c0_48 = arith.constant 0 : index
    %c2_49 = arith.constant 2 : index
    %c0_50 = arith.constant 0 : index
    %c0_51 = arith.constant 0 : index
    %51 = vector.load %arg11[%c0_48, %c2_49, %c0_50, %c0_51] : memref<1x8x16x128xf32, #tpu.memory_space<vmem>>, vector<1x1x16x128xf32>
    %52 = arith.addf %50, %51 : vector<1x1x16x128xf32>
    %c0_52 = arith.constant 0 : index
    %c2_53 = arith.constant 2 : index
    %c0_54 = arith.constant 0 : index
    %c0_55 = arith.constant 0 : index
    %53 = vector.load %arg11[%c0_52, %c2_53, %c0_54, %c0_55] : memref<1x8x16x128xf32, #tpu.memory_space<vmem>>, vector<1x1x16x128xf32>
    tpu.vector_store %arg11[%c0_52, %c2_53, %c0_54, %c0_55], %52 {strides = array<i32>} : memref<1x8x16x128xf32, #tpu.memory_space<vmem>>, vector<1x1x16x128xf32>,
    %c0_56 = arith.constant 0 : index
    %c3 = arith.constant 3 : index
    %c0_57 = arith.constant 0 : index
    %c0_58 = arith.constant 0 : index
    %54 = vector.load %arg12[%c0_56, %c3, %c0_57, %c0_58] : memref<1x8x16x128xf32, #tpu.memory_space<vmem>>, vector<1x1x16x128xf32>
    %55 = arith.mulf %54, %52 : vector<1x1x16x128xf32>
    %c0_59 = arith.constant 0 : index
    %c3_60 = arith.constant 3 : index
    %c0_61 = arith.constant 0 : index
    %c0_62 = arith.constant 0 : index
    %56 = vector.load %arg11[%c0_59, %c3_60, %c0_61, %c0_62] : memref<1x8x16x128xf32, #tpu.memory_space<vmem>>, vector<1x1x16x128xf32>
    %57 = arith.addf %55, %56 : vector<1x1x16x128xf32>
    %c0_63 = arith.constant 0 : index
    %c3_64 = arith.constant 3 : index
    %c0_65 = arith.constant 0 : index
    %c0_66 = arith.constant 0 : index
    %58 = vector.load %arg11[%c0_63, %c3_64, %c0_65, %c0_66] : memref<1x8x16x128xf32, #tpu.memory_space<vmem>>, vector<1x1x16x128xf32>
    tpu.vector_store %arg11[%c0_63, %c3_64, %c0_65, %c0_66], %57 {strides = array<i32>} : memref<1x8x16x128xf32, #tpu.memory_space<vmem>>, vector<1x1x16x128xf32>,
    %c0_67 = arith.constant 0 : index
    %c4 = arith.constant 4 : index
    %c0_68 = arith.constant 0 : index
    %c0_69 = arith.constant 0 : index
    %59 = vector.load %arg12[%c0_67, %c4, %c0_68, %c0_69] : memref<1x8x16x128xf32, #tpu.memory_space<vmem>>, vector<1x1x16x128xf32>
    %60 = arith.mulf %59, %57 : vector<1x1x16x128xf32>
    %c0_70 = arith.constant 0 : index
    %c4_71 = arith.constant 4 : index
    %c0_72 = arith.constant 0 : index
    %c0_73 = arith.constant 0 : index
    %61 = vector.load %arg11[%c0_70, %c4_71, %c0_72, %c0_73] : memref<1x8x16x128xf32, #tpu.memory_space<vmem>>, vector<1x1x16x128xf32>
    %62 = arith.addf %60, %61 : vector<1x1x16x128xf32>
    %c0_74 = arith.constant 0 : index
    %c4_75 = arith.constant 4 : index
    %c0_76 = arith.constant 0 : index
    %c0_77 = arith.constant 0 : index
    %63 = vector.load %arg11[%c0_74, %c4_75, %c0_76, %c0_77] : memref<1x8x16x128xf32, #tpu.memory_space<vmem>>, vector<1x1x16x128xf32>
    tpu.vector_store %arg11[%c0_74, %c4_75, %c0_76, %c0_77], %62 {strides = array<i32>} : memref<1x8x16x128xf32, #tpu.memory_space<vmem>>, vector<1x1x16x128xf32>,
    %c0_78 = arith.constant 0 : index
    %c5 = arith.constant 5 : index
    %c0_79 = arith.constant 0 : index
    %c0_80 = arith.constant 0 : index
    %64 = vector.load %arg12[%c0_78, %c5, %c0_79, %c0_80] : memref<1x8x16x128xf32, #tpu.memory_space<vmem>>, vector<1x1x16x128xf32>
    %65 = arith.mulf %64, %62 : vector<1x1x16x128xf32>
    %c0_81 = arith.constant 0 : index
    %c5_82 = arith.constant 5 : index
    %c0_83 = arith.constant 0 : index
    %c0_84 = arith.constant 0 : index
    %66 = vector.load %arg11[%c0_81, %c5_82, %c0_83, %c0_84] : memref<1x8x16x128xf32, #tpu.memory_space<vmem>>, vector<1x1x16x128xf32>
    %67 = arith.addf %65, %66 : vector<1x1x16x128xf32>
    %c0_85 = arith.constant 0 : index
    %c5_86 = arith.constant 5 : index
    %c0_87 = arith.constant 0 : index
    %c0_88 = arith.constant 0 : index
    %68 = vector.load %arg11[%c0_85, %c5_86, %c0_87, %c0_88] : memref<1x8x16x128xf32, #tpu.memory_space<vmem>>, vector<1x1x16x128xf32>
    tpu.vector_store %arg11[%c0_85, %c5_86, %c0_87, %c0_88], %67 {strides = array<i32>} : memref<1x8x16x128xf32, #tpu.memory_space<vmem>>, vector<1x1x16x128xf32>,
    %c0_89 = arith.constant 0 : index
    %c6 = arith.constant 6 : index
    %c0_90 = arith.constant 0 : index
    %c0_91 = arith.constant 0 : index
    %69 = vector.load %arg12[%c0_89, %c6, %c0_90, %c0_91] : memref<1x8x16x128xf32, #tpu.memory_space<vmem>>, vector<1x1x16x128xf32>
    %70 = arith.mulf %69, %67 : vector<1x1x16x128xf32>
    %c0_92 = arith.constant 0 : index
    %c6_93 = arith.constant 6 : index
    %c0_94 = arith.constant 0 : index
    %c0_95 = arith.constant 0 : index
    %71 = vector.load %arg11[%c0_92, %c6_93, %c0_94, %c0_95] : memref<1x8x16x128xf32, #tpu.memory_space<vmem>>, vector<1x1x16x128xf32>
    %72 = arith.addf %70, %71 : vector<1x1x16x128xf32>
    %c0_96 = arith.constant 0 : index
    %c6_97 = arith.constant 6 : index
    %c0_98 = arith.constant 0 : index
    %c0_99 = arith.constant 0 : index
    %73 = vector.load %arg11[%c0_96, %c6_97, %c0_98, %c0_99] : memref<1x8x16x128xf32, #tpu.memory_space<vmem>>, vector<1x1x16x128xf32>
    tpu.vector_store %arg11[%c0_96, %c6_97, %c0_98, %c0_99], %72 {strides = array<i32>} : memref<1x8x16x128xf32, #tpu.memory_space<vmem>>, vector<1x1x16x128xf32>,
    %c0_100 = arith.constant 0 : index
    %c7 = arith.constant 7 : index
    %c0_101 = arith.constant 0 : index
    %c0_102 = arith.constant 0 : index
    %74 = vector.load %arg12[%c0_100, %c7, %c0_101, %c0_102] : memref<1x8x16x128xf32, #tpu.memory_space<vmem>>, vector<1x1x16x128xf32>
    %75 = arith.mulf %74, %72 : vector<1x1x16x128xf32>
    %c0_103 = arith.constant 0 : index
    %c7_104 = arith.constant 7 : index
    %c0_105 = arith.constant 0 : index
    %c0_106 = arith.constant 0 : index
    %76 = vector.load %arg11[%c0_103, %c7_104, %c0_105, %c0_106] : memref<1x8x16x128xf32, #tpu.memory_space<vmem>>, vector<1x1x16x128xf32>
    %77 = arith.addf %75, %76 : vector<1x1x16x128xf32>
    %c0_107 = arith.constant 0 : index
    %c7_108 = arith.constant 7 : index
    %c0_109 = arith.constant 0 : index
    %c0_110 = arith.constant 0 : index
    %78 = vector.load %arg11[%c0_107, %c7_108, %c0_109, %c0_110] : memref<1x8x16x128xf32, #tpu.memory_space<vmem>>, vector<1x1x16x128xf32>
    tpu.vector_store %arg11[%c0_107, %c7_108, %c0_109, %c0_110], %77 {strides = array<i32>} : memref<1x8x16x128xf32, #tpu.memory_space<vmem>>, vector<1x1x16x128xf32>,
    %79 = vector.shape_cast %8 : vector<1x8x16xf32> to vector<1x8x16x1xf32>
    %c0_111 = arith.constant 0 : index
    %c0_112 = arith.constant 0 : index
    %c0_113 = arith.constant 0 : index
    %c0_114 = arith.constant 0 : index
    %80 = vector.load %arg11[%c0_111, %c0_112, %c0_113, %c0_114] : memref<1x8x16x128xf32, #tpu.memory_space<vmem>>, vector<1x8x16x128xf32>
    %81 = vector.broadcast %79 : vector<1x8x16x1xf32> to vector<1x8x16x128xf32>
    %82 = arith.mulf %81, %80 : vector<1x8x16x128xf32>
    %cst_115 = arith.constant dense<0.000000e+00> : vector<1x8x128xf32>
    %83 = vector.multi_reduction <add>, %82, %cst_115 [2] : vector<1x8x16x128xf32> to vector<1x8x128xf32>
    %c0_116 = arith.constant 0 : index
    %c0_117 = arith.constant 0 : index
    %84 = vector.load %arg7[%c0_116, %c0_117] : memref<1x128xf32, #tpu.memory_space<vmem>>, vector<1x128xf32>
    %85 = vector.shape_cast %84 : vector<1x128xf32> to vector<1x1x128xf32>
    %86 = vector.broadcast %85 : vector<1x1x128xf32> to vector<1x8x128xf32>
    %87 = arith.mulf %9, %86 : vector<1x8x128xf32>
    %88 = arith.addf %83, %87 : vector<1x8x128xf32>
    %cst_118 = arith.constant 5.000000e-01 : f32
    %89 = vector.broadcast %cst_118 : f32 to vector<1x8x128xf32>
    %90 = arith.mulf %89, %88 : vector<1x8x128xf32>
    %cst_119 = arith.constant 0.707106769 : f32
    %91 = vector.broadcast %cst_119 : f32 to vector<1x8x128xf32>
    %92 = arith.mulf %88, %91 : vector<1x8x128xf32>
    %cst_120 = arith.constant 0.000000e+00 : f32
    %93 = vector.broadcast %cst_120 : f32 to vector<1x8x128xf32>
    %94 = arith.cmpf oge, %92, %93 : vector<1x8x128xf32>
    %cst_121 = arith.constant 1.000000e+00 : f32
    %cst_122 = arith.constant -1.000000e+00 : f32
    %95 = vector.broadcast %cst_121 : f32 to vector<1x8x128xf32>
    %96 = vector.broadcast %cst_122 : f32 to vector<1x8x128xf32>
    %97 = arith.select %94, %95, %96 : vector<1x8x128xi1>, vector<1x8x128xf32>
    %98 = math.absf %92 : vector<1x8x128xf32>
    %cst_123 = arith.constant 0.327591091 : f32
    %99 = vector.broadcast %cst_123 : f32 to vector<1x8x128xf32>
    %100 = arith.mulf %99, %98 : vector<1x8x128xf32>
    %cst_124 = arith.constant 1.000000e+00 : f32
    %101 = vector.broadcast %cst_124 : f32 to vector<1x8x128xf32>
    %102 = arith.addf %101, %100 : vector<1x8x128xf32>
    %cst_125 = arith.constant 1.000000e+00 : f32
    %103 = vector.broadcast %cst_125 : f32 to vector<1x8x128xf32>
    %104 = arith.divf %103, %102 : vector<1x8x128xf32>
    %cst_126 = arith.constant 1.06140542 : f32
    %105 = vector.broadcast %cst_126 : f32 to vector<1x8x128xf32>
    %106 = arith.mulf %105, %104 : vector<1x8x128xf32>
    %cst_127 = arith.constant -1.45315206 : f32
    %107 = vector.broadcast %cst_127 : f32 to vector<1x8x128xf32>
    %108 = arith.addf %106, %107 : vector<1x8x128xf32>
    %109 = arith.mulf %108, %104 : vector<1x8x128xf32>
    %cst_128 = arith.constant 1.42141378 : f32
    %110 = vector.broadcast %cst_128 : f32 to vector<1x8x128xf32>
    %111 = arith.addf %109, %110 : vector<1x8x128xf32>
    %112 = arith.mulf %111, %104 : vector<1x8x128xf32>
    %cst_129 = arith.constant -0.284496725 : f32
    %113 = vector.broadcast %cst_129 : f32 to vector<1x8x128xf32>
    %114 = arith.addf %112, %113 : vector<1x8x128xf32>
    %115 = arith.mulf %114, %104 : vector<1x8x128xf32>
    %cst_130 = arith.constant 0.254829586 : f32
    %116 = vector.broadcast %cst_130 : f32 to vector<1x8x128xf32>
    %117 = arith.addf %115, %116 : vector<1x8x128xf32>
    %118 = arith.mulf %117, %104 : vector<1x8x128xf32>
    %cst_131 = arith.constant 0.000000e+00 : f32
    %119 = vector.broadcast %cst_131 : f32 to vector<1x8x128xf32>
    %120 = arith.subf %119, %98 : vector<1x8x128xf32>
    %121 = arith.mulf %120, %98 : vector<1x8x128xf32>
    %122 = math.exp %121 : vector<1x8x128xf32>
    %123 = arith.mulf %118, %122 : vector<1x8x128xf32>
    %cst_132 = arith.constant 1.000000e+00 : f32
    %124 = vector.broadcast %cst_132 : f32 to vector<1x8x128xf32>
    %125 = arith.subf %124, %123 : vector<1x8x128xf32>
    %126 = arith.mulf %97, %125 : vector<1x8x128xf32>
    %cst_133 = arith.constant 1.000000e+00 : f32
    %127 = vector.broadcast %cst_133 : f32 to vector<1x8x128xf32>
    %128 = arith.addf %127, %126 : vector<1x8x128xf32>
    %129 = arith.mulf %90, %128 : vector<1x8x128xf32>
    %130 = vector.shape_cast %129 : vector<1x8x128xf32> to vector<8x128xf32>
    %c0_134 = arith.constant 0 : index
    %c0_135 = arith.constant 0 : index
    %131 = vector.load %arg8[%c0_134, %c0_135] : memref<128x64xf32, #tpu.memory_space<vmem>>, vector<128x64xf32>
    %cst_136 = arith.constant dense<0.000000e+00> : vector<8x64xf32>
    %132 = tpu.matmul %130, %131, %cst_136 {dimension_numbers = #tpu.dot_dimension_numbers<[1], [0], [0], [1], [0, 0, 1, 1], [], []>} : vector<8x128xf32>, vector<128x64xf32>, vector<8x64xf32> -> vector<8x64xf32>
    %c0_137 = arith.constant 0 : index
    %c0_138 = arith.constant 0 : index
    %c0_139 = arith.constant 0 : index
    %133 = vector.load %arg4[%c0_137, %c0_138, %c0_139] : memref<1x8x64xf32, #tpu.memory_space<vmem>>, vector<1x8x64xf32>
    %134 = vector.shape_cast %132 : vector<8x64xf32> to vector<1x8x64xf32>
    %135 = arith.addf %133, %134 : vector<1x8x64xf32>
    %c0_140 = arith.constant 0 : index
    %c0_141 = arith.constant 0 : index
    %136 = vector.load %arg9[%c0_140, %c0_141] : memref<1x64xf32, #tpu.memory_space<vmem>>, vector<1x64xf32>
    %137 = vector.shape_cast %136 : vector<1x64xf32> to vector<1x1x64xf32>
    %138 = vector.broadcast %137 : vector<1x1x64xf32> to vector<1x8x64xf32>
    %139 = arith.addf %135, %138 : vector<1x8x64xf32>
    %c0_142 = arith.constant 0 : index
    %c0_143 = arith.constant 0 : index
    %c0_144 = arith.constant 0 : index
    %140 = vector.load %arg10[%c0_142, %c0_143, %c0_144] : memref<1x8x64xf32, #tpu.memory_space<vmem>>, vector<1x8x64xf32>
    tpu.vector_store %arg10[%c0_142, %c0_143, %c0_144], %139 {strides = array<i32>} : memref<1x8x64xf32, #tpu.memory_space<vmem>>, vector<1x8x64xf32>,
    return
  }
  func.func @transform_0(%arg0: i32, %arg1: i32) -> (i32, i32, i32) {
    %c0_i32 = arith.constant 0 : i32
    %c0_i32_0 = arith.constant 0 : i32
    return %arg0, %arg1, %c0_i32 : i32, i32, i32
  }
  func.func @transform_1(%arg0: i32, %arg1: i32) -> (i32, i32, i32) {
    %c0_i32 = arith.constant 0 : i32
    %c0_i32_0 = arith.constant 0 : i32
    return %arg0, %arg1, %c0_i32 : i32, i32, i32
  }
  func.func @transform_2(%arg0: i32, %arg1: i32) -> (i32, i32, i32) {
    %c0_i32 = arith.constant 0 : i32
    %c0_i32_0 = arith.constant 0 : i32
    return %arg0, %arg1, %c0_i32 : i32, i32, i32
  }
  func.func @transform_3(%arg0: i32, %arg1: i32) -> (i32, i32) {
    %c0_i32 = arith.constant 0 : i32
    %c0_i32_0 = arith.constant 0 : i32
    %c0_i32_1 = arith.constant 0 : i32
    return %c0_i32, %c0_i32_0 : i32, i32
  }
  func.func @transform_4(%arg0: i32, %arg1: i32) -> (i32, i32) {
    %c0_i32 = arith.constant 0 : i32
    %c0_i32_0 = arith.constant 0 : i32
    %c0_i32_1 = arith.constant 0 : i32
    return %c0_i32, %c0_i32_0 : i32, i32
  }
  func.func @transform_5(%arg0: i32, %arg1: i32) -> (i32, i32) {
    %c0_i32 = arith.constant 0 : i32
    %c0_i32_0 = arith.constant 0 : i32
    %c0_i32_1 = arith.constant 0 : i32
    return %c0_i32, %c0_i32_0 : i32, i32
  }
  func.func @transform_6(%arg0: i32, %arg1: i32) -> (i32, i32) {
    %c0_i32 = arith.constant 0 : i32
    %c0_i32_0 = arith.constant 0 : i32
    %c0_i32_1 = arith.constant 0 : i32
    return %c0_i32, %c0_i32_0 : i32, i32
  }
  func.func @transform_7(%arg0: i32, %arg1: i32) -> (i32, i32) {
    %c0_i32 = arith.constant 0 : i32
    %c0_i32_0 = arith.constant 0 : i32
    %c0_i32_1 = arith.constant 0 : i32
    return %c0_i32, %c0_i32_0 : i32, i32
  }
  func.func @transform_8(%arg0: i32, %arg1: i32) -> (i32, i32, i32) {
    %c0_i32 = arith.constant 0 : i32
    %c0_i32_0 = arith.constant 0 : i32
    return %arg0, %arg1, %c0_i32 : i32, i32, i32
  }
}

module attributes {stable_mosaic.version = 11 : i64} {
  func.func @_mlp_kernel(%arg0: i32, %arg1: memref<128x64xf32, #tpu.memory_space<vmem>>, %arg2: memref<1x64xf32, #tpu.memory_space<vmem>>, %arg3: memref<1x64xf32, #tpu.memory_space<vmem>>, %arg4: memref<64x256xf32, #tpu.memory_space<vmem>>, %arg5: memref<1x256xf32, #tpu.memory_space<vmem>>, %arg6: memref<256x64xf32, #tpu.memory_space<vmem>>, %arg7: memref<1x64xf32, #tpu.memory_space<vmem>>, %arg8: memref<128x64xf32, #tpu.memory_space<vmem>>) attributes {dimension_semantics = [#tpu.dimension_semantics<parallel>], iteration_bounds = array<i64: 1>, scalar_prefetch = 0 : i64, scratch_operands = 0 : i64, tpu.core_type = #tpu.core_type<tc>, window_params = [{transform_indices = @transform_0, window_bounds = array<i64: 128, 64>}, {pipeline_mode = #tpu.pipeline_mode<synchronous>, transform_indices = @transform_1, window_bounds = array<i64: 1, 64>}, {pipeline_mode = #tpu.pipeline_mode<synchronous>, transform_indices = @transform_2, window_bounds = array<i64: 1, 64>}, {pipeline_mode = #tpu.pipeline_mode<synchronous>, transform_indices = @transform_3, window_bounds = array<i64: 64, 256>}, {pipeline_mode = #tpu.pipeline_mode<synchronous>, transform_indices = @transform_4, window_bounds = array<i64: 1, 256>}, {pipeline_mode = #tpu.pipeline_mode<synchronous>, transform_indices = @transform_5, window_bounds = array<i64: 256, 64>}, {pipeline_mode = #tpu.pipeline_mode<synchronous>, transform_indices = @transform_6, window_bounds = array<i64: 1, 64>}, {transform_indices = @transform_7, window_bounds = array<i64: 128, 64>}]} {
    %c0 = arith.constant 0 : index
    %c0_0 = arith.constant 0 : index
    %0 = vector.load %arg1[%c0, %c0_0] : memref<128x64xf32, #tpu.memory_space<vmem>>, vector<128x64xf32>
    %c0_1 = arith.constant 0 : index
    %c0_2 = arith.constant 0 : index
    %1 = vector.load %arg2[%c0_1, %c0_2] : memref<1x64xf32, #tpu.memory_space<vmem>>, vector<1x64xf32>
    %c0_3 = arith.constant 0 : index
    %c0_4 = arith.constant 0 : index
    %2 = vector.load %arg3[%c0_3, %c0_4] : memref<1x64xf32, #tpu.memory_space<vmem>>, vector<1x64xf32>
    %cst = arith.constant dense<0.000000e+00> : vector<128xf32>
    %3 = vector.multi_reduction <add>, %0, %cst [1] : vector<128x64xf32> to vector<128xf32>
    %4 = vector.shape_cast %3 : vector<128xf32> to vector<128x1xf32>
    %cst_5 = arith.constant 6.400000e+01 : f32
    %5 = vector.broadcast %cst_5 : f32 to vector<128x1xf32>
    %6 = arith.divf %4, %5 : vector<128x1xf32>
    %7 = vector.broadcast %6 : vector<128x1xf32> to vector<128x64xf32>
    %8 = arith.subf %0, %7 : vector<128x64xf32>
    %9 = arith.mulf %8, %8 : vector<128x64xf32>
    %cst_6 = arith.constant dense<0.000000e+00> : vector<128xf32>
    %10 = vector.multi_reduction <add>, %9, %cst_6 [1] : vector<128x64xf32> to vector<128xf32>
    %11 = vector.shape_cast %10 : vector<128xf32> to vector<128x1xf32>
    %cst_7 = arith.constant 6.400000e+01 : f32
    %12 = vector.broadcast %cst_7 : f32 to vector<128x1xf32>
    %13 = arith.divf %11, %12 : vector<128x1xf32>
    %14 = vector.broadcast %6 : vector<128x1xf32> to vector<128x64xf32>
    %15 = arith.subf %0, %14 : vector<128x64xf32>
    %cst_8 = arith.constant 9.99999974E-6 : f32
    %16 = vector.broadcast %cst_8 : f32 to vector<128x1xf32>
    %17 = arith.addf %13, %16 : vector<128x1xf32>
    %18 = math.rsqrt %17 : vector<128x1xf32>
    %19 = vector.broadcast %18 : vector<128x1xf32> to vector<128x64xf32>
    %20 = arith.mulf %15, %19 : vector<128x64xf32>
    %21 = vector.broadcast %1 : vector<1x64xf32> to vector<128x64xf32>
    %22 = arith.mulf %20, %21 : vector<128x64xf32>
    %23 = vector.broadcast %2 : vector<1x64xf32> to vector<128x64xf32>
    %24 = arith.addf %22, %23 : vector<128x64xf32>
    %c0_9 = arith.constant 0 : index
    %c0_10 = arith.constant 0 : index
    %25 = vector.load %arg4[%c0_9, %c0_10] : memref<64x256xf32, #tpu.memory_space<vmem>>, vector<64x256xf32>
    %cst_11 = arith.constant dense<0.000000e+00> : vector<128x256xf32>
    %26 = tpu.matmul %24, %25, %cst_11 {dimension_numbers = #tpu.dot_dimension_numbers<[1], [0], [0], [1], [0, 0, 1, 1], [], []>} : vector<128x64xf32>, vector<64x256xf32>, vector<128x256xf32> -> vector<128x256xf32>
    %c0_12 = arith.constant 0 : index
    %c0_13 = arith.constant 0 : index
    %27 = vector.load %arg5[%c0_12, %c0_13] : memref<1x256xf32, #tpu.memory_space<vmem>>, vector<1x256xf32>
    %28 = vector.broadcast %27 : vector<1x256xf32> to vector<128x256xf32>
    %29 = arith.addf %26, %28 : vector<128x256xf32>
    %cst_14 = arith.constant 5.000000e-01 : f32
    %30 = vector.broadcast %cst_14 : f32 to vector<128x256xf32>
    %31 = arith.mulf %30, %29 : vector<128x256xf32>
    %cst_15 = arith.constant 0.707106769 : f32
    %32 = vector.broadcast %cst_15 : f32 to vector<128x256xf32>
    %33 = arith.mulf %29, %32 : vector<128x256xf32>
    %cst_16 = arith.constant 0.000000e+00 : f32
    %34 = vector.broadcast %cst_16 : f32 to vector<128x256xf32>
    %35 = arith.cmpf oge, %33, %34 : vector<128x256xf32>
    %cst_17 = arith.constant 1.000000e+00 : f32
    %cst_18 = arith.constant -1.000000e+00 : f32
    %36 = vector.broadcast %cst_17 : f32 to vector<128x256xf32>
    %37 = vector.broadcast %cst_18 : f32 to vector<128x256xf32>
    %38 = arith.select %35, %36, %37 : vector<128x256xi1>, vector<128x256xf32>
    %39 = math.absf %33 : vector<128x256xf32>
    %cst_19 = arith.constant 0.327591091 : f32
    %40 = vector.broadcast %cst_19 : f32 to vector<128x256xf32>
    %41 = arith.mulf %40, %39 : vector<128x256xf32>
    %cst_20 = arith.constant 1.000000e+00 : f32
    %42 = vector.broadcast %cst_20 : f32 to vector<128x256xf32>
    %43 = arith.addf %42, %41 : vector<128x256xf32>
    %cst_21 = arith.constant 1.000000e+00 : f32
    %44 = vector.broadcast %cst_21 : f32 to vector<128x256xf32>
    %45 = arith.divf %44, %43 : vector<128x256xf32>
    %cst_22 = arith.constant 1.06140542 : f32
    %46 = vector.broadcast %cst_22 : f32 to vector<128x256xf32>
    %47 = arith.mulf %46, %45 : vector<128x256xf32>
    %cst_23 = arith.constant -1.45315206 : f32
    %48 = vector.broadcast %cst_23 : f32 to vector<128x256xf32>
    %49 = arith.addf %47, %48 : vector<128x256xf32>
    %50 = arith.mulf %49, %45 : vector<128x256xf32>
    %cst_24 = arith.constant 1.42141378 : f32
    %51 = vector.broadcast %cst_24 : f32 to vector<128x256xf32>
    %52 = arith.addf %50, %51 : vector<128x256xf32>
    %53 = arith.mulf %52, %45 : vector<128x256xf32>
    %cst_25 = arith.constant -0.284496725 : f32
    %54 = vector.broadcast %cst_25 : f32 to vector<128x256xf32>
    %55 = arith.addf %53, %54 : vector<128x256xf32>
    %56 = arith.mulf %55, %45 : vector<128x256xf32>
    %cst_26 = arith.constant 0.254829586 : f32
    %57 = vector.broadcast %cst_26 : f32 to vector<128x256xf32>
    %58 = arith.addf %56, %57 : vector<128x256xf32>
    %59 = arith.mulf %58, %45 : vector<128x256xf32>
    %cst_27 = arith.constant 0.000000e+00 : f32
    %60 = vector.broadcast %cst_27 : f32 to vector<128x256xf32>
    %61 = arith.subf %60, %39 : vector<128x256xf32>
    %62 = arith.mulf %61, %39 : vector<128x256xf32>
    %63 = math.exp %62 : vector<128x256xf32>
    %64 = arith.mulf %59, %63 : vector<128x256xf32>
    %cst_28 = arith.constant 1.000000e+00 : f32
    %65 = vector.broadcast %cst_28 : f32 to vector<128x256xf32>
    %66 = arith.subf %65, %64 : vector<128x256xf32>
    %67 = arith.mulf %38, %66 : vector<128x256xf32>
    %cst_29 = arith.constant 1.000000e+00 : f32
    %68 = vector.broadcast %cst_29 : f32 to vector<128x256xf32>
    %69 = arith.addf %68, %67 : vector<128x256xf32>
    %70 = arith.mulf %31, %69 : vector<128x256xf32>
    %c0_30 = arith.constant 0 : index
    %c0_31 = arith.constant 0 : index
    %71 = vector.load %arg6[%c0_30, %c0_31] : memref<256x64xf32, #tpu.memory_space<vmem>>, vector<256x64xf32>
    %cst_32 = arith.constant dense<0.000000e+00> : vector<128x64xf32>
    %72 = tpu.matmul %70, %71, %cst_32 {dimension_numbers = #tpu.dot_dimension_numbers<[1], [0], [0], [1], [0, 0, 1, 1], [], []>} : vector<128x256xf32>, vector<256x64xf32>, vector<128x64xf32> -> vector<128x64xf32>
    %73 = arith.addf %0, %72 : vector<128x64xf32>
    %c0_33 = arith.constant 0 : index
    %c0_34 = arith.constant 0 : index
    %74 = vector.load %arg7[%c0_33, %c0_34] : memref<1x64xf32, #tpu.memory_space<vmem>>, vector<1x64xf32>
    %75 = vector.broadcast %74 : vector<1x64xf32> to vector<128x64xf32>
    %76 = arith.addf %73, %75 : vector<128x64xf32>
    %c0_35 = arith.constant 0 : index
    %c0_36 = arith.constant 0 : index
    %77 = vector.load %arg8[%c0_35, %c0_36] : memref<128x64xf32, #tpu.memory_space<vmem>>, vector<128x64xf32>
    tpu.vector_store %arg8[%c0_35, %c0_36], %76 {strides = array<i32>} : memref<128x64xf32, #tpu.memory_space<vmem>>, vector<128x64xf32>,
    return
  }
  func.func @transform_0(%arg0: i32) -> (i32, i32) {
    %c0_i32 = arith.constant 0 : i32
    %c0_i32_0 = arith.constant 0 : i32
    return %arg0, %c0_i32 : i32, i32
  }
  func.func @transform_1(%arg0: i32) -> (i32, i32) {
    %c0_i32 = arith.constant 0 : i32
    %c0_i32_0 = arith.constant 0 : i32
    %c0_i32_1 = arith.constant 0 : i32
    return %c0_i32, %c0_i32_0 : i32, i32
  }
  func.func @transform_2(%arg0: i32) -> (i32, i32) {
    %c0_i32 = arith.constant 0 : i32
    %c0_i32_0 = arith.constant 0 : i32
    %c0_i32_1 = arith.constant 0 : i32
    return %c0_i32, %c0_i32_0 : i32, i32
  }
  func.func @transform_3(%arg0: i32) -> (i32, i32) {
    %c0_i32 = arith.constant 0 : i32
    %c0_i32_0 = arith.constant 0 : i32
    %c0_i32_1 = arith.constant 0 : i32
    return %c0_i32, %c0_i32_0 : i32, i32
  }
  func.func @transform_4(%arg0: i32) -> (i32, i32) {
    %c0_i32 = arith.constant 0 : i32
    %c0_i32_0 = arith.constant 0 : i32
    %c0_i32_1 = arith.constant 0 : i32
    return %c0_i32, %c0_i32_0 : i32, i32
  }
  func.func @transform_5(%arg0: i32) -> (i32, i32) {
    %c0_i32 = arith.constant 0 : i32
    %c0_i32_0 = arith.constant 0 : i32
    %c0_i32_1 = arith.constant 0 : i32
    return %c0_i32, %c0_i32_0 : i32, i32
  }
  func.func @transform_6(%arg0: i32) -> (i32, i32) {
    %c0_i32 = arith.constant 0 : i32
    %c0_i32_0 = arith.constant 0 : i32
    %c0_i32_1 = arith.constant 0 : i32
    return %c0_i32, %c0_i32_0 : i32, i32
  }
  func.func @transform_7(%arg0: i32) -> (i32, i32) {
    %c0_i32 = arith.constant 0 : i32
    %c0_i32_0 = arith.constant 0 : i32
    return %arg0, %c0_i32 : i32, i32
  }
}

</mosaic_0001>

<bundles_post_ra>
// kernel: res_block.4
= control target key start
LH: loop header
LB: loop body
LE: loop exit
PB: predicated region body
PF: predicated region fallthrough
CT: control target
= control target key end

     0   :  { %s2165_s27 = smov 0   ;;  %s2167_s28 = smov 0   ;;  %s2915_s0 = inlined_call_operand.vmem [shape: f32[2,64,288], index: 0, kind: input, shape index: {}]   ;;  %s2916_s1 = inlined_call_operand.vmem [shape: f32[2,64,128], index: 1, kind: input, shape index: {}]   ;;  %s2917_s2 = inlined_call_operand.vmem [shape: f32[2,64,64], index: 2, kind: input, shape index: {}]   ;;  %s2918_s3 = inlined_call_operand.vmem [shape: f32[16,128], index: 3, kind: input, shape index: {}]   ;;  %s2919_s4 = inlined_call_operand.vmem [shape: f32[16,128], index: 4, kind: input, shape index: {}]   ;;  %s2920_s5 = inlined_call_operand.vmem [shape: f32[1,128], index: 5, kind: input, shape index: {}]   ;;  %s2921_s6 = inlined_call_operand.vmem [shape: f32[128,64], index: 6, kind: input, shape index: {}]   ;;  %s2922_s7 = inlined_call_operand.vmem [shape: f32[1,64], index: 7, kind: input, shape index: {}]   ;;  %s2923_s8 = inlined_call_operand.vmem [shape: f32[2,64,64], index: 8, kind: output, shape index: {}]  }
   0x1   :  { %s2169_s29 = smov 0   ;;  %s2171_s30 = smov 0  }
   0x2   :  { %s2173_s9 = smov 0  }
   0x3 LB: > { %s27_s10 = sadd.s32 1, %s2104_s29  ;;  %s30_s11 = sadd.s32 1, %s2108_s30  ;;  %s2112_s9 = sphi %s2173_s9, %s18_s9   ;;  %s2108_s30 = sphi %s2171_s30, %s2929_s30   ;;  %s2104_s29 = sphi %s2169_s29, %s2928_s29   ;;  %s2100_s28 = sphi %s2167_s28, %s2927_s28   ;;  %s2096_s27 = sphi %s2165_s27, %s2926_s27  }
   0x4   : > { %p28_p0 = scmp.ge.s32.totalorder %s27_s10, 8  ;;  %p1838_p1 = scmp.ge.s32.totalorder %s2112_s9, 1 }
   0x5   : > { %p312_p2 = scmp.lt.s32.totalorder %s2112_s9, 17 }
   0x6   : > { %s2931_s10 = smov (%p28_p0, %s27_s10), 0  ;;  %s2933_s11 = smov (!%p28_p0, %s30_s11), %s2108_s30 }
   0x7   : > { %p313_p3 = pnand %p1838_p1, %p312_p2  ;;  %p32_p4 = scmp.ge.s32.totalorder %s2933_s11, 2 }
   0x8   : > { %p369_p5 = scmp.lt.s32.totalorder (!%p313_p3), %s2100_s28, 1  ;;  %p371_p6 = scmp.lt.s32.totalorder (!%p313_p3), %s2096_s27, 7 }
   0x9   : > { %s2935_s11 = smov (%p32_p4, %s2933_s11), 0  ;;  %316 = sbr.rel (%p313_p3) target bundleno = 504 (0x1f8), region = 52 }
   0xa   : > { %2924 = sst [smem:[#allocation4_spill]] %s2935_s11  ;;  %p1846_p7 = scmp.ne.s32.totalorder (!%p313_p3), %s2096_s27, 0 }
  0x10   : > { %s2937_s28 = smov (!%p369_p5, %s2100_s28), 1  ;;  %v2114_v0 = vmov (!%p1846_p7), 0.0  }
  0x11   : > { %s372_s12 = scalar_select %p371_p6, %s2096_s27, 7 }
  0x12   : > { %s1928_s13 = smul.u32 24, %s2937_s28  ;;  %s1840_s14 = sshll.u32 %s2937_s28, 3  ;;  %406 = vst [vmem:[#allocation2] sm:$0xff] (!%p1846_p7), %v2114_v0  ;;  %407 = vst [vmem:[#allocation2 + $0x8] sm:$0xff] (!%p1846_p7), %v2114_v0 }
  0x13   : > { %s1927_s15 = smul.u32 3, %s372_s12  ;;  %s383_s16 = sadd.s32 %s1840_s14, %s372_s12  ;;  %408 = vst [vmem:[#allocation2 + $0x10] sm:$0xff] (!%p1846_p7), %v2114_v0  ;;  %409 = vst [vmem:[#allocation2 + $0x18] sm:$0xff] (!%p1846_p7), %v2114_v0 }
  0x14   : > { %s2199_s17 = sshll.u32 %s383_s16, 3  ;;  %405 = sbr.rel (%p1846_p7) target bundleno = 27 (0x1b), region = 56  ;;  %410 = vst [vmem:[#allocation2 + $0x20] sm:$0xff] (!%p1846_p7), %v2114_v0  ;;  %411 = vst [vmem:[#allocation2 + $0x28] sm:$0xff] (!%p1846_p7), %v2114_v0 }
  0x15   : > { %s375_s18 = sadd.s32 %s1928_s13, %s1927_s15  ;;  %s385_s21 = scalar_lea.vmem %s2916_s1, %s2199_s17  ;;  %412 = vst [vmem:[#allocation2 + $0x30] sm:$0xff] (!%p1846_p7), %v2114_v0  ;;  %413 = vst [vmem:[#allocation2 + $0x38] sm:$0xff] (!%p1846_p7), %v2114_v0 }
  0x16   : > { %s1839_s22 = sshll.u32 %s375_s18, 3  ;;  %s393_s25 = scalar_lea.vmem %s2917_s2, %s2199_s17  ;;  %414 = vst [vmem:[#allocation2 + $0x40] sm:$0xff] (!%p1846_p7), %v2114_v0  ;;  %415 = vst [vmem:[#allocation2 + $0x48] sm:$0xff] (!%p1846_p7), %v2114_v0 }
  0x17   : > { %s377_s28 = scalar_lea.vmem %s2915_s0, %s1839_s22  ;;  %s401_s16 = scalar_lea.vmem %s2923_s8, %s2199_s17  ;;  %416 = vst [vmem:[#allocation2 + $0x50] sm:$0xff] (!%p1846_p7), %v2114_v0  ;;  %417 = vst [vmem:[#allocation2 + $0x58] sm:$0xff] (!%p1846_p7), %v2114_v0 }
  0x18   : > { %418 = vst [vmem:[#allocation2 + $0x60] sm:$0xff] (!%p1846_p7), %v2114_v0  ;;  %419 = vst [vmem:[#allocation2 + $0x68] sm:$0xff] (!%p1846_p7), %v2114_v0 }
  0x19   : > { %420 = vst [vmem:[#allocation2 + $0x70] sm:$0xff] (!%p1846_p7), %v2114_v0  ;;  %421 = vst [vmem:[#allocation2 + $0x78] sm:$0xff] (!%p1846_p7), %v2114_v0 }
  0x1b PF: > { %v435_v1 = vlaneseq  ;;  %v2115_v2 = vmov 1966171168   ;;  %v2219_v5 = vld [vmem:[%s377_s28 + $0x10] sm:$0xff]  ;;  %v2221_v7 = vld [vmem:[%s377_s28] sm:$0xff]  ;;  %v2223_v8 = vld [vmem:[%s377_s28 + $0x8] sm:$0xff]  ;;  %vm2117_vm0 = vmmov 0  }
  0x1c   : > { %v433_v3 = vunpack.c.l.s4 %v2115_v2  ;;  %v2231_v11 = vadd.f32 %v2223_v8, %v2221_v7  ;;  %v2242_v14 = vld [vmem:[%s385_s21] sm:$0xff]  ;;  %v431_v54 = vcombine.high %v2223_v8, %v2223_v8  ;;  %vm1606_vm4 = vcmask 1041409  }
  0x1d   : > { %v2217_v4 = vshrl.u32 %v435_v1, 7  ;;  %v950_v63 = vcombine.high %v2242_v14, %v2242_v14  ;;  %vm1609_vm5 = vcmask 1042434   ;;  %vm1612_vm7 = vcmask 1043459  }
  0x1e   : > { %v434_v6 = vunpack.c.0.s8 %v433_v3  ;;  %vm1615_vm11 = vcmask 1044484   ;;  %vm1618_vm12 = vcmask 1045509   ;;  %vm1621_vm14 = vcmask 1046534  }
  0x1f   : > { %v2226_v9 = vsub.s32 0, %v2217_v4  ;;  %v818_v10 = vsub.s32 1, %v2217_v4  ;;  %v829_v13 = vsub.s32 2, %v2217_v4  ;;  %v840_v30 = vsub.s32 3, %v2217_v4 }
  0x20   : > { %v2234_v12 = vsub.s32 %v434_v6, %v2217_v4  ;;  %v851_v42 = vsub.s32 4, %v2217_v4  ;;  %v862_v47 = vsub.s32 5, %v2217_v4  ;;  %v873_v62 = vsub.s32 6, %v2217_v4 }
  0x21   : > { %v2245_v15 = vrot.slane %v2219_v5, %v818_v10  ;;  %v2249_v16 = vrot.slane %v2219_v5, %v2226_v9  ;;  %v2260_v20 = vrot.slane %v2219_v5, %v829_v13  ;;  %v2303_v44 = vrot.slane %v2219_v5, %v840_v30 }
  0x22   : > { %v957_v17 = vrot.slane %v2242_v14, %v2234_v12  ;;  %v592_v18 = vrot.slane %v2221_v7, %v2234_v12  ;;  %v763_v19 = vrot.slane %v2231_v11, %v2234_v12  ;;  %v438_v21 = vrot.slane %v2223_v8, %v2234_v12 }
  0x23   : > { %821 = vbcast.lane.b32.xlu1 %v2245_v15, 256  ;;  %810 = vbcast.lane.b32.xlu0 %v2249_v16, 256  ;;  %v2306_v46 = vrot.slane %v2219_v5, %v851_v42  ;;  %v2334_v61 = vrot.slane %v2219_v5, %v862_v47  ;;  %v445_v1 = vrot.slane %v431_v54, %v2234_v12  ;;  %v884_v2 = vsub.s32 7, %v2217_v4 }
  0x24   : > { %v965_v22 = vcombine.high %v957_v17, %v957_v17  ;;  %v600_v23 = vcombine.high %v592_v18, %v592_v18  ;;  %v771_v24 = vcombine.high %v763_v19, %v763_v19  ;;  %v973_v25 = vrot.slane %v957_v17, %v2234_v12 }
  0x25   : > { %v446_v26 = vcombine.high %v438_v21, %v438_v21  ;;  %v454_v27 = vrot.slane %v438_v21, %v2234_v12  ;;  %v608_v28 = vrot.slane %v592_v18, %v2234_v12  ;;  %v779_v29 = vrot.slane %v763_v19, %v2234_v12 }
  0x26   : > { %v987_v31 = vrot.slane %v965_v22, %v2234_v12  ;;  %v622_v32 = vrot.slane %v600_v23, %v2234_v12  ;;  %v793_v33 = vrot.slane %v771_v24, %v2234_v12  ;;  %v2275_v34 = vrot.slane %v973_v25, %v2226_v9 }
  0x27   : > { %825 = vbcast.lane.b32.xlu1 %v2245_v15, 264  ;;  %814 = vbcast.lane.b32.xlu0 %v2249_v16, 264  ;;  %v468_v35 = vrot.slane %v446_v26, %v2234_v12  ;;  %v2279_v36 = vrot.slane %v454_v27, %v2226_v9  ;;  %v2282_v37 = vrot.slane %v608_v28, %v2226_v9  ;;  %vm1624_vm15 = vcmask 1047559  }
  0x28   : > { %v2285_v38 = vrot.slane %v987_v31, %v2226_v9  ;;  %v2288_v39 = vrot.slane %v622_v32, %v2226_v9  ;;  %v2291_v40 = vrot.slane %v793_v33, %v2226_v9  ;;  %v2294_v41 = vrot.slane %v779_v29, %v2226_v9 }
  0x29   : > { %v2298_v43 = vrot.slane %v468_v35, %v2226_v9  ;;  %v995_v45 = vcombine.high %v973_v25, %v973_v25  ;;  %v476_v49 = vcombine.high %v454_v27, %v454_v27  ;;  %v630_v50 = vcombine.high %v608_v28, %v608_v28 }
  0x2a   : > { %v801_v51 = vcombine.high %v779_v29, %v779_v29  ;;  %v997_v52 = vcombine.high %v987_v31, %v987_v31  ;;  %v478_v53 = vcombine.high %v468_v35, %v468_v35  ;;  %v632_v57 = vcombine.high %v622_v32, %v622_v32 }
  0x2b   : > { %836 = vbcast.lane.b32.xlu1 %v2260_v20, 264  ;;  %832 = vbcast.lane.b32.xlu0 %v2260_v20, 256  ;;  %v2312_v48 = vrot.slane %v995_v45, %v2226_v9  ;;  %v2317_v55 = vrot.slane %v476_v49, %v2226_v9  ;;  %v2320_v56 = vrot.slane %v630_v50, %v2226_v9 }
  0x2c   : > { %v2323_v58 = vrot.slane %v801_v51, %v2226_v9  ;;  %v2326_v59 = vrot.slane %v997_v52, %v2226_v9  ;;  %v2329_v60 = vrot.slane %v478_v53, %v2226_v9  ;;  %v2340_v0 = vrot.slane %v632_v57, %v2226_v9 }
  0x2d   : > { %v803_v3 = vcombine.high %v793_v33, %v793_v33  ;;  %v874_v6 = vrot.slane %v2219_v5, %v873_v62  ;;  %v964_v8 = vrot.slane %v950_v63, %v2234_v12  ;;  %v585_v10 = vcombine.high %v2221_v7, %v2221_v7 }
  0x2e   : > { %v461_v17 = vrot.slane %v445_v1, %v2234_v12  ;;  %v885_v18 = vrot.slane %v2219_v5, %v884_v2  ;;  %v756_v22 = vcombine.high %v2231_v11, %v2231_v11  ;;  %v447_v28 = vcombine.high %v445_v1, %v445_v1 }
  0x2f   : > { %847 = vbcast.lane.b32.xlu1 %v2303_v44, 264  ;;  %843 = vbcast.lane.b32.xlu0 %v2303_v44, 256  ;;  %v2351_v13 = vrot.slane %v803_v3, %v2226_v9  ;;  %v980_v4 = vrot.slane %v964_v8, %v2234_v12  ;;  %v599_v21 = vrot.slane %v585_v10, %v2234_v12 }
  0x30   : > { %v2357_v19 = vrot.slane %v461_v17, %v2226_v9  ;;  %v966_v7 = vcombine.high %v964_v8, %v964_v8  ;;  %v770_v5 = vrot.slane %v756_v22, %v2234_v12  ;;  %v475_v30 = vrot.slane %v447_v28, %v2234_v12  ;;  %v2448_v8 = vld [vmem:[%s2919_s4 + $0x8] sm:$0xff] }
  0x31   : > { %v2363_v23 = vrot.slane %v980_v4, %v2226_v9  ;;  %v615_v24 = vrot.slane %v599_v21, %v2234_v12  ;;  %v601_v31 = vcombine.high %v599_v21, %v599_v21  ;;  %v996_v33 = vcombine.high %v980_v4, %v980_v4 }
  0x32   : > { %v786_v26 = vrot.slane %v770_v5, %v2234_v12  ;;  %v994_v27 = vrot.slane %v966_v7, %v2234_v12  ;;  %v772_v32 = vcombine.high %v770_v5, %v770_v5  ;;  %v2382_v35 = vrot.slane %v475_v30, %v2226_v9 }
  0x33   : > { %858 = vbcast.lane.b32.xlu1 %v2306_v46, 264  ;;  %854 = vbcast.lane.b32.xlu0 %v2306_v46, 256  ;;  %v2368_v25 = vrot.slane %v615_v24, %v2226_v9  ;;  %v629_v42 = vrot.slane %v601_v31, %v2234_v12  ;;  %v477_v47 = vcombine.high %v461_v17, %v461_v17  ;;  %v1583_v31 = vld [vmem:[%s2921_s6 + $0x10] sm:$0xff] }
  0x34   : > { %v2373_v11 = vrot.slane %v786_v26, %v2226_v9  ;;  %v2376_v29 = vrot.slane %v994_v27, %v2226_v9  ;;  %v800_v45 = vrot.slane %v772_v32, %v2234_v12  ;;  %v2387_v49 = vrot.slane %v996_v33, %v2226_v9 }
  0x35   : > { %v631_v50 = vcombine.high %v615_v24, %v615_v24  ;;  %v2390_v51 = vrot.slane %v629_v42, %v2226_v9  ;;  %v802_v53 = vcombine.high %v786_v26, %v786_v26  ;;  %v998_v57 = vcombine.high %v994_v27, %v994_v27 }
  0x36   : > { %v2393_v52 = vrot.slane %v800_v45, %v2226_v9  ;;  %v479_v62 = vcombine.high %v475_v30, %v475_v30  ;;  %v633_v63 = vcombine.high %v629_v42, %v629_v42  ;;  %v521_v21 = vmul.f32 %v2279_v36, %v2448_v8  ;;  %v1582_v30 = vld [vmem:[%s2921_s6 + $0x8] sm:$0xff] }
  0x37   : > { %869 = vbcast.lane.b32.xlu1 %v2334_v61, 264  ;;  %865 = vbcast.lane.b32.xlu0 %v2334_v61, 256  ;;  %v2401_v12 = vrot.slane %v631_v50, %v2226_v9  ;;  %v2406_v54 = vrot.slane %v802_v53, %v2226_v9  ;;  %v2409_v1 = vrot.slane %v998_v57, %v2226_v9  ;;  %v2116_v33 = vmov 0.0|0.0  }
  0x38   : > { %v2414_v2 = vrot.slane %v479_v62, %v2226_v9  ;;  %v2417_v3 = vrot.slane %v633_v63, %v2226_v9  ;;  %v538_v27 = vmul.f32 1.442695, %v521_v21  ;;  %v523_v32 = vmul.f32 %v2298_v43, %v2448_v8  ;;  %1903 = vmatprep.subr.bf16.mxu0 %v2116_v33 }
  0x39   : > { %v525_v53 = vmul.f32 %v2317_v55, %v2448_v8 }
  0x3b   : > { %880 = vbcast.lane.b32.xlu1 %v874_v6, 264  ;;  %876 = vbcast.lane.b32.xlu0 %v874_v6, 256 }
  0x3f   : > { %891 = vbcast.lane.b32.xlu1 %v885_v18, 264  ;;  %887 = vbcast.lane.b32.xlu0 %v885_v18, 256 }
  0x43   : > { %1195 = vbcast.lane.b32.xlu1 %v2245_v15, 280  ;;  %1191 = vbcast.lane.b32.xlu0 %v2245_v15, 272  ;;  %v2398_v15 = vrot.slane %v477_v47, %v2226_v9  ;;  %v2118_v47 = vmov 0.0  }
  0x44   : > { %1900 = vmatprep.mubr.msk.f32.mxu0 %vm2117_vm0, %v2118_v47  ;;  %vm1707_vm0 = vcmask 523264  }
  0x47   : > { %1203 = vbcast.lane.b32.xlu1 %v2260_v20, 280  ;;  %1199 = vbcast.lane.b32.xlu0 %v2260_v20, 272  ;;  %v804_v20 = vcombine.high %v800_v45, %v800_v45  ;;  %v1584_v45 = vld [vmem:[%s2921_s6 + $0x18] sm:$0xff] }
  0x48   : > { %v1907_v62 = vpack.c.bf16 %v1584_v45, %v1583_v31  ;;  %v722_v31 = vld [vmem:[#allocation2] sm:$0xff] }
  0x4b   : > { %1187 = vbcast.lane.b32.xlu1 %v2249_v16, 280  ;;  %1183 = vbcast.lane.b32.xlu0 %v2249_v16, 272  ;;  %v2420_v16 = vrot.slane %v804_v20, %v2226_v9  ;;  %v2434_v9 = vld [vmem:[%s2918_s3] sm:$0xff] }
  0x4c   : > { %v674_v10 = vmul.f32 %v2282_v37, %v2434_v9  ;;  %v680_v20 = vmul.f32 %v2340_v0, %v2434_v9 }
  0x4e   : > { %v690_v7 = vmul.f32 1.442695, %v674_v10  ;;  %v542_v10 = vmul.f32 1.442695, %v523_v32 }
  0x4f   : > { %1211 = vbcast.lane.b32.xlu1 %v2303_v44, 280  ;;  %1207 = vbcast.lane.b32.xlu0 %v2303_v44, 272  ;;  %v2429_v44 = vld [vmem:[%s2919_s4] sm:$0xff] }
  0x50   : > { %v522_v5 = vmul.f32 %v2298_v43, %v2429_v44  ;;  %v524_v43 = vmul.f32 %v2317_v55, %v2429_v44  ;;  %v527_v55 = vmul.f32 %v2329_v60, %v2448_v8 }
  0x52   : > { %v540_v50 = vmul.f32 1.442695, %v522_v5  ;;  %v1587_v5 = vld [vmem:[%s2921_s6 + $0x30] sm:$0xff] }
  0x53   : > { %1219 = vbcast.lane.b32.xlu1 %v2306_v46, 280  ;;  %1215 = vbcast.lane.b32.xlu0 %v2306_v46, 272  ;;  %v520_v46 = vmul.f32 %v2279_v36, %v2429_v44 }
  0x55   : > { %v536_v17 = vmul.f32 1.442695, %v520_v46  ;;  %v1585_v46 = vld [vmem:[%s2921_s6 + $0x20] sm:$0xff] }
  0x57   : > { %1227 = vbcast.lane.b32.xlu1 %v2334_v61, 280  ;;  %1223 = vbcast.lane.b32.xlu0 %v2334_v61, 272  ;;  %v676_v61 = vmul.f32 %v2288_v39, %v2434_v9  ;;  %1978 = vpow2.f32 %v536_v17  ;;  %v546_v17 = vmul.f32 1.442695, %v525_v53 }
  0x59   : > { %v694_v4 = vmul.f32 1.442695, %v676_v61  ;;  %v1586_v61 = vld [vmem:[%s2921_s6 + $0x28] sm:$0xff] }
  0x5a   : > { %v1910_v21 = vpack.c.bf16 %v1586_v61, %v1585_v46  ;;  %v723_v61 = vld [vmem:[#allocation2 + $0x8] sm:$0xff] }
  0x5b   : > { %1235 = vbcast.lane.b32.xlu1 %v874_v6, 280  ;;  %1231 = vbcast.lane.b32.xlu0 %v874_v6, 272  ;;  %v2443_v6 = vld [vmem:[%s2918_s3 + $0x8] sm:$0xff]  ;;  %1980 = vpow2.f32 %v694_v4  ;;  %v529_v4 = vmul.f32 %v2357_v19, %v2448_v8 }
  0x5c   : > { %v675_v22 = vmul.f32 %v2282_v37, %v2443_v6  ;;  %v679_v24 = vmul.f32 %v2320_v56, %v2443_v6  ;;  %v681_v36 = vmul.f32 %v2340_v0, %v2443_v6  ;;  %v1581_v37 = vld [vmem:[%s2921_s6] sm:$0xff]  ;;  %1982 = vpow2.f32 %v690_v7 }
  0x5d   : > { %v1904_v42 = vpack.c.bf16 %v1582_v30, %v1581_v37  ;;  %v526_v0 = vmul.f32 %v2329_v60, %v2429_v44  ;;  %v702_v7 = vmul.f32 1.442695, %v680_v20  ;;  %v1588_v60 = vld [vmem:[%s2921_s6 + $0x38] sm:$0xff]  ;;  %v724_v30 = vld [vmem:[#allocation2 + $0x10] sm:$0xff]  ;;  %v554_v32 = vmul.f32 1.442695, %v529_v4 }
  0x5e   : > { %v692_v28 = vmul.f32 1.442695, %v675_v22  ;;  %v704_v63 = vmul.f32 1.442695, %v681_v36  ;;  %v682_v36 = vmul.f32 %v2368_v25, %v2434_v9 }
  0x5f   : > { %1243 = vbcast.lane.b32.xlu1 %v885_v18, 280  ;;  %1239 = vbcast.lane.b32.xlu0 %v885_v18, 272  ;;  %v677_v18 = vmul.f32 %v2288_v39, %v2443_v6  ;;  %v678_v39 = vmul.f32 %v2320_v56, %v2434_v9  ;;  %v700_v56 = vmul.f32 1.442695, %v679_v24  ;;  %v683_v24 = vmul.f32 %v2368_v25, %v2443_v6  ;;  %v1589_v25 = vld [vmem:[%s2921_s6 + $0x40] sm:$0xff] }
  0x60   : > { %1905 = vmatpush3.bf16.msra.mxu0 %v1904_v42  ;;  %v1913_v42 = vpack.c.bf16 %v1588_v60, %v1587_v5  ;;  %v1591_v5 = vld [vmem:[%s2921_s6 + $0x50] sm:$0xff] }
  0x61   : > { %v696_v26 = vmul.f32 1.442695, %v677_v18  ;;  %v698_v57 = vmul.f32 1.442695, %v678_v39  ;;  %1906 = vmatprep.subr.bf16.mxu0 %v2116_v33  ;;  %v544_v18 = vmul.f32 1.442695, %v524_v43  ;;  %v1979_v22 = vpop.eup %1978 }
  0x62   : > { %v548_v39 = vmul.f32 1.442695, %v526_v0  ;;  %v708_v47 = vmul.f32 1.442695, %v683_v24  ;;  %v2524_v43 = vmul.f32 0.0, %v1979_v22 }
  0x63   : > { %1984 = vpow2.f32 %v696_v26 }
  0x64   : > { %1986 = vpow2.f32 %v538_v27  ;;  %1908 = vmatpush3.bf16.msra.mxu0 %v1907_v62  ;;  %v550_v27 = vmul.f32 1.442695, %v527_v55 }
  0x65   : > { %1988 = vpow2.f32 %v692_v28  ;;  %1909 = vmatprep.subr.bf16.mxu0 %v2116_v33  ;;  %v1981_v26 = vpop.eup %1980  ;;  %v528_v28 = vmul.f32 %v2357_v19, %v2429_v44  ;;  %v530_v19 = vmul.f32 %v2382_v35, %v2429_v44 }
  0x66   : > { %1990 = vpow2.f32 %v700_v56  ;;  %v1983_v37 = vpop.eup %1982  ;;  %v531_v56 = vmul.f32 %v2382_v35, %v2448_v8  ;;  %v740_v20 = vmul.f32 %v1981_v26, %v724_v30 }
  0x67   : > { %1992 = vpow2.f32 %v540_v50  ;;  %v1590_v50 = vld [vmem:[%s2921_s6 + $0x48] sm:$0xff]  ;;  %v552_v62 = vmul.f32 1.442695, %v528_v28  ;;  %v738_v46 = vmul.f32 %v1983_v37, %v722_v31  ;;  %v556_v24 = vmul.f32 1.442695, %v530_v19 }
  0x68   : > { %1994 = vpow2.f32 %v698_v57  ;;  %1911 = vmatpush3.bf16.msra.mxu0 %v1910_v21  ;;  %v725_v57 = vld [vmem:[#allocation2 + $0x18] sm:$0xff]  ;;  %v558_v0 = vmul.f32 1.442695, %v531_v56  ;;  %v1916_v4 = vpack.c.bf16 %v1590_v50, %v1589_v25  ;;  %v687_v37 = vmul.f32 %v2401_v12, %v2443_v6 }
  0x69   : > { %1996 = vpow2.f32 %v704_v63  ;;  %1912 = vmatprep.subr.bf16.mxu0 %v2116_v33  ;;  %v685_v63 = vmul.f32 %v2390_v51, %v2443_v6  ;;  %v686_v19 = vmul.f32 %v2401_v12, %v2434_v9  ;;  %v1594_v12 = vld [vmem:[%s2921_s6 + $0x68] sm:$0xff] }
  0x6a   : > { %1998 = vpow2.f32 %v542_v10  ;;  %v706_v10 = vmul.f32 1.442695, %v682_v36 }
  0x6b   : > { %2000 = vpow2.f32 %v546_v17  ;;  %v727_v17 = vld [vmem:[#allocation2 + $0x28] sm:$0xff]  ;;  %v712_v36 = vmul.f32 1.442695, %v685_v63  ;;  %v1593_v63 = vld [vmem:[%s2921_s6 + $0x60] sm:$0xff] }
  0x6c   : > { %2002 = vpow2.f32 %v544_v18  ;;  %v684_v18 = vmul.f32 %v2390_v51, %v2434_v9  ;;  %1914 = vmatpush3.bf16.msra.mxu0 %v1913_v42  ;;  %v1592_v51 = vld [vmem:[%s2921_s6 + $0x58] sm:$0xff] }
  0x6d   : > { %v1985_v45 = vpop.eup %1984  ;;  %2004 = vpow2.f32 %v702_v7  ;;  %1915 = vmatprep.subr.bf16.mxu0 %v2116_v33  ;;  %v729_v42 = vld [vmem:[#allocation2 + $0x38] sm:$0xff]  ;;  %v1919_v25 = vpack.c.bf16 %v1592_v51, %v1591_v5 }
  0x6e   : > { %v1987_v53 = vpop.eup %1986  ;;  %2006 = vpow2.f32 %v550_v27  ;;  %v2532_v22 = vmul.f32 %v1985_v45, %v725_v57 }
  0x6f   : > { %v1989_v35 = vpop.eup %1988  ;;  %2008 = vpow2.f32 %v548_v39  ;;  %v2534_v7 = vmul.f32 0.0, %v1987_v53  ;;  %v726_v39 = vld [vmem:[#allocation2 + $0x20] sm:$0xff] }
  0x70   : > { %v1991_v55 = vpop.eup %1990  ;;  %2010 = vpow2.f32 %v554_v32  ;;  %v2543_v28 = vmul.f32 %v1989_v35, %v723_v61  ;;  %1917 = vmatpush3.bf16.msra.mxu0 %v1916_v4 }
  0x71   : > { %v2530_v21 = vpop.eup %1992  ;;  %2012 = vpow2.f32 %v708_v47  ;;  %v2549_v56 = vmul.f32 %v1991_v55, %v727_v17  ;;  %v710_v47 = vmul.f32 1.442695, %v684_v18  ;;  %1918 = vmatprep.subr.bf16.mxu0 %v2116_v33  ;;  %v533_v17 = vmul.f32 %v2398_v15, %v2448_v8 }
  0x72   : > { %v1995_v60 = vpop.eup %1994  ;;  %2014 = vpow2.f32 %v552_v62 }
  0x73   : > { %v1997_v30 = vpop.eup %1996  ;;  %2016 = vpow2.f32 %v706_v10  ;;  %v2559_v62 = vmul.f32 %v1995_v60, %v726_v39  ;;  %v728_v60 = vld [vmem:[#allocation2 + $0x30] sm:$0xff]  ;;  %v714_v39 = vmul.f32 1.442695, %v686_v19 }
  0x74   : > { %v2551_v45 = vpop.eup %1998  ;;  %2018 = vpow2.f32 %v558_v0  ;;  %v2570_v55 = vmul.f32 %v1997_v30, %v729_v42  ;;  %v716_v0 = vmul.f32 1.442695, %v687_v37  ;;  %1920 = vmatpush3.bf16.msra.mxu0 %v1919_v25 }
  0x75   : > { %v2555_v50 = vpop.eup %2000  ;;  %2020 = vpow2.f32 %v556_v24  ;;  %1921 = vmatprep.subr.bf16.mxu0 %v2116_v33 }
  0x76   : > { %v2568_v35 = vpop.eup %2002  ;;  %2022 = vpow2.f32 %v712_v36  ;;  %v1922_v36 = vpack.c.bf16 %v1594_v12, %v1593_v63 }
  0x77   : > { %v2005_v18 = vpop.eup %2004  ;;  %2024 = vpow2.f32 %v710_v47 }
  0x78   : > { %2026 = vpow2.f32 %v716_v0  ;;  %1923 = vmatpush3.bf16.msra.mxu0 %v1922_v36 }
  0x79   : > { %2028 = vpow2.f32 %v714_v39  ;;  %1924 = vmatprep.subr.bf16.mxu0 %v2116_v33 }
  0x95   : > { %v822_v26 = vpop.permute.xlu1 %821  ;;  %v811_v27 = vpop.permute.xlu0 %810 }
  0x96   : > { %v935_v31 = vmul.f32 %v2291_v40, %v822_v26  ;;  %v933_v32 = vmul.f32 %v2294_v41, %v811_v27  ;;  %v2576_v26 = vpop.eup %2006  ;;  %v532_v27 = vmul.f32 %v2398_v15, %v2429_v44  ;;  %v1595_v15 = vld [vmem:[%s2921_s6 + $0x70] sm:$0xff] }
  0x97   : > { %v2580_v30 = vpop.eup %2008 }
  0x98   : > { %v1041_v53 = vmul.f32 %v2285_v38, %v935_v31  ;;  %v1039_v57 = vmul.f32 %v2275_v34, %v933_v32  ;;  %v2596_v31 = vpop.eup %2010 }
  0x99   : > { %v826_v61 = vpop.permute.xlu1 %825  ;;  %v815_v10 = vpop.permute.xlu0 %814 }
  0x9a   : > { %v1057_v4 = vadd.f32 %v1041_v53, %v740_v20  ;;  %v1055_v24 = vadd.f32 %v1039_v57, %v738_v46  ;;  %v936_v5 = vmul.f32 %v2291_v40, %v826_v61  ;;  %v934_v51 = vmul.f32 %v2294_v41, %v815_v10  ;;  %v1596_v46 = vld [vmem:[%s2921_s6 + $0x78] sm:$0xff]  ;;  %v2013_v42 = vpop.eup %2012  ;;  %v731_v57 = vld [vmem:[#allocation2 + $0x48] sm:$0xff] }
  0x9b   : > { %v689_v41 = vmul.f32 %v2417_v3, %v2443_v6  ;;  %v688_v6 = vmul.f32 %v2417_v3, %v2434_v9  ;;  %v2610_v63 = vpop.eup %2014  ;;  %v560_v61 = vmul.f32 1.442695, %v532_v27  ;;  %v1925_v3 = vpack.c.bf16 %v1596_v46, %v1595_v15 }
  0x9c   : > { %v2583_v37 = vadd.f32 %v2524_v43, %v1055_v24  ;;  %v1042_v20 = vmul.f32 %v2285_v38, %v936_v5  ;;  %v1040_v40 = vmul.f32 %v2275_v34, %v934_v51  ;;  %v2598_v38 = vmul.f32 %v2005_v18, %v728_v60  ;;  %v2017_v9 = vpop.eup %2016 }
  0x9d   : > { %v837_v43 = vpop.permute.xlu1 %836  ;;  %v833_v32 = vpop.permute.xlu0 %832  ;;  %v2600_v34 = vmul.f32 1.442695, %v533_v17  ;;  %v720_v17 = vmul.f32 1.442695, %v689_v41  ;;  %v747_v5 = vmul.f32 %v2013_v42, %v731_v57  ;;  %v534_v51 = vmul.f32 %v2414_v2, %v2429_v44  ;;  %1926 = vmatpush3.bf16.msra.mxu0 %v1925_v3 }
  0x9e   : > { %1095 = vst [vmem:[#allocation2] sm:$0xff] %v2583_v37  ;;  %v1100_v47 = vmul.f32 %v2530_v21, %v2583_v37  ;;  %v1058_v19 = vadd.f32 %v1042_v20, %v2532_v22  ;;  %v1056_v25 = vadd.f32 %v1040_v40, %v2543_v28  ;;  %v938_v53 = vmul.f32 %v2323_v58, %v837_v43  ;;  %v730_v28 = vld [vmem:[#allocation2 + $0x40] sm:$0xff]  ;;  %v2620_v0 = vpop.eup %2018 }
  0x9f   : > { %v937_v12 = vmul.f32 %v2323_v58, %v833_v32  ;;  %v2625_v60 = vpop.eup %2020  ;;  %v746_v20 = vmul.f32 %v2017_v9, %v730_v28  ;;  %2030 = vpow2.f32 %v560_v61  ;;  %v564_v43 = vmul.f32 1.442695, %v534_v51 }
  0xa0   : > { %v2614_v10 = vadd.f32 %v2534_v7, %v1056_v25  ;;  %v1044_v21 = vmul.f32 %v2312_v48, %v938_v53  ;;  %v2617_v22 = vadd.f32 %v1100_v47, %v1057_v4  ;;  %v718_v7 = vmul.f32 1.442695, %v688_v6  ;;  %v2023_v39 = vpop.eup %2022  ;;  %v732_v25 = vld [vmem:[#allocation2 + $0x50] sm:$0xff] }
  0xa1   : > { %v1043_v58 = vmul.f32 %v2312_v48, %v937_v12  ;;  %v848_v18 = vpop.permute.xlu1 %847  ;;  %v844_v24 = vpop.permute.xlu0 %843  ;;  %2032 = vpow2.f32 %v720_v17 }
  0xa2   : > { %1096 = vst [vmem:[#allocation2 + $0x8] sm:$0xff] %v2614_v10  ;;  %v1101_v4 = vmul.f32 %v2551_v45, %v2614_v10  ;;  %v1060_v33 = vadd.f32 %v1044_v21, %v2549_v56  ;;  %1107 = vst [vmem:[#allocation2 + $0x10] sm:$0xff] %v2617_v22  ;;  %v1112_v48 = vmul.f32 %v2568_v35, %v2617_v22  ;;  %v2025_v41 = vpop.eup %2024  ;;  %2034 = vpow2.f32 %v718_v7  ;;  %v735_v21 = vld [vmem:[#allocation2 + $0x68] sm:$0xff] }
  0xa3   : > { %v940_v27 = vmul.f32 %v2351_v13, %v848_v18  ;;  %v1059_v44 = vadd.f32 %v1043_v58, %v2559_v62  ;;  %v939_v36 = vmul.f32 %v2351_v13, %v844_v24  ;;  %v535_v56 = vmul.f32 %v2414_v2, %v2448_v8  ;;  %v733_v8 = vld [vmem:[#allocation2 + $0x58] sm:$0xff]  ;;  %v2027_v42 = vpop.eup %2026 }
  0xa4   : > { %v2637_v40 = vadd.f32 %v1101_v4, %v1058_v19  ;;  %2036 = vpow2.f32 %v2600_v34  ;;  %v749_v61 = vmul.f32 %v2023_v39, %v733_v8  ;;  %v748_v17 = vmul.f32 %v2025_v41, %v732_v25 }
  0xa5   : > { %v1046_v45 = vmul.f32 %v2326_v59, %v940_v27  ;;  %v2642_v35 = vadd.f32 %v1112_v48, %v1059_v44  ;;  %v1045_v15 = vmul.f32 %v2326_v59, %v939_v36  ;;  %v859_v46 = vpop.permute.xlu1 %858  ;;  %v855_v62 = vpop.permute.xlu0 %854  ;;  %v566_v53 = vmul.f32 1.442695, %v535_v56  ;;  %v737_v36 = vld [vmem:[#allocation2 + $0x78] sm:$0xff] }
  0xa6   : > { %1108 = vst [vmem:[#allocation2 + $0x18] sm:$0xff] %v2637_v40  ;;  %v1113_v13 = vmul.f32 %v2555_v50, %v2637_v40  ;;  %v942_v6 = vmul.f32 %v2373_v11, %v859_v46  ;;  %v941_v2 = vmul.f32 %v2373_v11, %v855_v62  ;;  %v2029_v11 = vpop.eup %2028  ;;  %2038 = vpow2.f32 %v564_v43 }
  0xa7   : > { %v1062_v32 = vadd.f32 %v1046_v45, %v2570_v55  ;;  %1119 = vst [vmem:[#allocation2 + $0x20] sm:$0xff] %v2642_v35  ;;  %v1061_v59 = vadd.f32 %v1045_v15, %v2598_v38  ;;  %v1124_v47 = vmul.f32 %v2580_v30, %v2642_v35  ;;  %2040 = vpow2.f32 %v566_v53 }
  0xa8   : > { %v2656_v19 = vadd.f32 %v1113_v13, %v1060_v33  ;;  %v1048_v50 = vmul.f32 %v2363_v23, %v942_v6  ;;  %v1047_v55 = vmul.f32 %v2363_v23, %v941_v2  ;;  %v734_v23 = vld [vmem:[#allocation2 + $0x60] sm:$0xff]  ;;  %v751_v4 = vmul.f32 %v2027_v42, %v735_v21 }
  0xa9   : > { %v2660_v57 = vadd.f32 %v1124_v47, %v1061_v59  ;;  %v870_v12 = vpop.permute.xlu1 %869  ;;  %v866_v3 = vpop.permute.xlu0 %865  ;;  %v750_v48 = vmul.f32 %v2029_v11, %v734_v23 }
  0xaa   : > { %1120 = vst [vmem:[#allocation2 + $0x28] sm:$0xff] %v2656_v19  ;;  %v1125_v30 = vmul.f32 %v2576_v26, %v2656_v19  ;;  %v1064_v38 = vadd.f32 %v1048_v50, %v747_v5  ;;  %v1063_v34 = vadd.f32 %v1047_v55, %v746_v20  ;;  %v944_v9 = vmul.f32 %v2393_v52, %v870_v12  ;;  %v2031_v26 = vpop.eup %2030 }
  0xab   : > { %1131 = vst [vmem:[#allocation2 + $0x30] sm:$0xff] %v2660_v57  ;;  %v1136_v28 = vmul.f32 %v2610_v63, %v2660_v57  ;;  %v943_v58 = vmul.f32 %v2393_v52, %v866_v3  ;;  %v2033_v27 = vpop.eup %2032 }
  0xac   : > { %v2670_v18 = vadd.f32 %v1125_v30, %v1062_v32  ;;  %v1050_v24 = vmul.f32 %v2376_v29, %v944_v9  ;;  %v2035_v20 = vpop.eup %2034 }
  0xad   : > { %v2673_v5 = vadd.f32 %v1136_v28, %v1063_v34  ;;  %v1049_v51 = vmul.f32 %v2376_v29, %v943_v58  ;;  %v881_v7 = vpop.permute.xlu1 %880  ;;  %v877_v33 = vpop.permute.xlu0 %876  ;;  %v1847_v28 = vld [vmem:[%s2920_s5] ss:$0 sm:$0xff] }
  0xae   : > { %1132 = vst [vmem:[#allocation2 + $0x38] sm:$0xff] %v2670_v18  ;;  %v1137_v52 = vmul.f32 %v2596_v31, %v2670_v18  ;;  %v1066_v63 = vadd.f32 %v1050_v24, %v749_v61  ;;  %v946_v39 = vmul.f32 %v2406_v54, %v881_v7  ;;  %v945_v44 = vmul.f32 %v2406_v54, %v877_v33  ;;  %v736_v31 = vld [vmem:[#allocation2 + $0x70] sm:$0xff]  ;;  %v2037_v46 = vpop.eup %2036 }
  0xaf   : > { %1143 = vst [vmem:[#allocation2 + $0x40] sm:$0xff] %v2673_v5  ;;  %v1065_v29 = vadd.f32 %v1049_v51, %v748_v17  ;;  %v1148_v45 = vmul.f32 %v2625_v60, %v2673_v5  ;;  %v753_v54 = vmul.f32 %v2033_v27, %v737_v36  ;;  %v752_v42 = vmul.f32 %v2035_v20, %v736_v31 }
  0xb0   : > { %v2684_v56 = vadd.f32 %v1137_v52, %v1064_v38  ;;  %v1052_v41 = vmul.f32 %v2387_v49, %v946_v39  ;;  %v1051_v15 = vmul.f32 %v2387_v49, %v945_v44  ;;  %v2039_v8 = vpop.eup %2038  ;;  %v2724_v7 = vmul.f32 %v1847_v28, %v2242_v14 }
  0xb1   : > { %v2688_v62 = vadd.f32 %v1148_v45, %v1065_v29  ;;  %v892_v43 = vpop.permute.xlu1 %891  ;;  %v888_v13 = vpop.permute.xlu0 %887 }
  0xb2   : > { %1144 = vst [vmem:[#allocation2 + $0x48] sm:$0xff] %v2684_v56  ;;  %v1149_v32 = vmul.f32 %v2620_v0, %v2684_v56  ;;  %v1068_v6 = vadd.f32 %v1052_v41, %v751_v4  ;;  %v1067_v60 = vadd.f32 %v1051_v15, %v750_v48  ;;  %v948_v2 = vmul.f32 %v2420_v16, %v892_v43  ;;  %v2041_v11 = vpop.eup %2040 }
  0xb3   : > { %1155 = vst [vmem:[#allocation2 + $0x50] sm:$0xff] %v2688_v62  ;;  %v1160_v49 = vmul.f32 %v2031_v26, %v2688_v62  ;;  %v947_v59 = vmul.f32 %v2420_v16, %v888_v13  ;;  %v1342_v44 = vrot.slane %v2724_v7, 1 }
  0xb4   : > { %v2697_v47 = vadd.f32 %v1149_v32, %v1066_v63  ;;  %v1054_v50 = vmul.f32 %v2409_v1, %v948_v2 }
  0xb5   : > { %v2700_v55 = vadd.f32 %v1160_v49, %v1067_v60  ;;  %v1053_v0 = vmul.f32 %v2409_v1, %v947_v59  ;;  %v1196_v25 = vpop.permute.xlu1 %1195  ;;  %v1192_v53 = vpop.permute.xlu0 %1191 }
  0xb6   : > { %1156 = vst [vmem:[#allocation2 + $0x58] sm:$0xff] %v2697_v47  ;;  %v1161_v12 = vmul.f32 %v2037_v46, %v2697_v47  ;;  %v1070_v61 = vadd.f32 %v1054_v50, %v753_v54  ;;  %v1264_v3 = vmul.f32 %v1196_v25, %v2637_v40  ;;  %v1263_v16 = vmul.f32 %v1192_v53, %v2617_v22 }
  0xb7   : > { %1167 = vst [vmem:[#allocation2 + $0x60] sm:$0xff] %v2700_v55  ;;  %v1069_v30 = vadd.f32 %v1053_v0, %v752_v42  ;;  %v1172_v38 = vmul.f32 %v2039_v8, %v2700_v55 }
  0xb8   : > { %v2709_v34 = vadd.f32 %v1161_v12, %v1068_v6  ;;  %v1284_v1 = vadd.f32 %v1264_v3, %v1263_v16 }
  0xb9   : > { %v2711_v9 = vadd.f32 %v1172_v38, %v1069_v30  ;;  %v1204_v21 = vpop.permute.xlu1 %1203  ;;  %v1200_v23 = vpop.permute.xlu0 %1199 }
  0xba   : > { %1168 = vst [vmem:[#allocation2 + $0x68] sm:$0xff] %v2709_v34  ;;  %v1173_v22 = vmul.f32 %v2041_v11, %v2709_v34  ;;  %v1285_v40 = vrot.slane %v1284_v1, 4  ;;  %v1266_v17 = vmul.f32 %v1204_v21, %v2656_v19  ;;  %v1265_v58 = vmul.f32 %v1200_v23, %v2642_v35 }
  0xbb   : > { %1179 = vst [vmem:[#allocation2 + $0x70] sm:$0xff] %v2711_v9 }
  0xbc   : > { %v2721_v24 = vadd.f32 %v1173_v22, %v1070_v61  ;;  %v1286_v26 = vadd.f32 %v1285_v40, %v1284_v1  ;;  %v1291_v51 = vadd.f32 %v1266_v17, %v1265_v58  ;;  %v1344_v40 = vrot.slane %v2724_v7, 3 }
  0xbd   : > { %v1188_v4 = vpop.permute.xlu1 %1187  ;;  %v1184_v33 = vpop.permute.xlu0 %1183 }
  0xbe   : > { %1180 = vst [vmem:[#allocation2 + $0x78] sm:$0xff] %v2721_v24  ;;  %v1287_v48 = vrot.slane %v1286_v26, 2  ;;  %v1292_v27 = vrot.slane %v1291_v51, 4  ;;  %v1262_v52 = vmul.f32 %v1188_v4, %v2614_v10  ;;  %v1261_v19 = vmul.f32 %v1184_v33, %v2583_v37 }
  0xbf   : > { %v1343_v10 = vrot.slane %v2724_v7, 2 }
  0xc0   : > { %v1288_v35 = vadd.f32 %v1287_v48, %v1286_v26  ;;  %v1293_v63 = vadd.f32 %v1292_v27, %v1291_v51  ;;  %v1277_v39 = vadd.f32 %v1262_v52, %v1261_v19 }
  0xc1   : > { %v1212_v36 = vpop.permute.xlu1 %1211  ;;  %v1208_v20 = vpop.permute.xlu0 %1207 }
  0xc2   : > { %v1289_v29 = vrot.slane %v1288_v35, 1  ;;  %v1294_v14 = vrot.slane %v1293_v63, 2  ;;  %v1278_v45 = vrot.slane %v1277_v39, 4  ;;  %v1268_v41 = vmul.f32 %v1212_v36, %v2670_v18 }
  0xc3   : > { %v1267_v15 = vmul.f32 %v1208_v20, %v2660_v57 }
  0xc4   : > { %v1290_v31 = vadd.f32 %v1289_v29, %v1288_v35  ;;  %v1295_v46 = vadd.f32 %v1294_v14, %v1293_v63  ;;  %v1279_v43 = vadd.f32 %v1278_v45, %v1277_v39  ;;  %v1345_v35 = vrot.slane %v2724_v7, 4 }
  0xc5   : > { %v1298_v37 = vadd.f32 %v1268_v41, %v1267_v15  ;;  %v1220_v54 = vpop.permute.xlu1 %1219  ;;  %v1216_v13 = vpop.permute.xlu0 %1215 }
  0xc6   : > { %v2733_v32 = vadd.f32 %v1342_v44, %v1290_v31  ;;  %v1296_v6 = vrot.slane %v1295_v46, 1  ;;  %v1280_v60 = vrot.slane %v1279_v43, 2  ;;  %v1270_v2 = vmul.f32 %v1220_v54, %v2684_v56 }
  0xc7   : > { %v1299_v8 = vrot.slane %v1298_v37, 4  ;;  %v1269_v49 = vmul.f32 %v1216_v13, %v2673_v5 }
  0xc8   : > { %v2738_v18 = vmul.f32 0.70710677, %v2733_v32  ;;  %v1297_v57 = vadd.f32 %v1296_v6, %v1295_v46  ;;  %v1281_v42 = vadd.f32 %v1280_v60, %v1279_v43 }
  0xc9   : > { %v1300_v59 = vadd.f32 %v1299_v8, %v1298_v37  ;;  %v1305_v50 = vadd.f32 %v1270_v2, %v1269_v49  ;;  %v1228_v61 = vpop.permute.xlu1 %1227  ;;  %v1224_v3 = vpop.permute.xlu0 %1223 }
  0xca   : > { %v1398_v0 = vand.u32 2147483647, %v2738_v18  ;;  %v2741_v25 = vadd.f32 %v1343_v10, %v1297_v57  ;;  %v1282_v53 = vrot.slane %v1281_v42, 1  ;;  %v1272_v23 = vmul.f32 %v1228_v61, %v2697_v47 }
  0xcb   : > { %v1301_v11 = vrot.slane %v1300_v59, 2  ;;  %v1306_v12 = vrot.slane %v1305_v50, 4  ;;  %v1271_v28 = vmul.f32 %v1224_v3, %v2688_v62  ;;  %v1346_v57 = vrot.slane %v2724_v7, 5 }
  0xcc   : > { %v1406_v56 = vmul.f32 0.3275911, %v1398_v0  ;;  %v2744_v16 = vmul.f32 0.70710677, %v2741_v25  ;;  %v1283_v5 = vadd.f32 %v1282_v53, %v1281_v42  ;;  %v1510_v20 = vsub.f32 0.0, %v1398_v0 }
  0xcd   : > { %v1302_v30 = vadd.f32 %v1301_v11, %v1300_v59  ;;  %v1307_v38 = vadd.f32 %v1306_v12, %v1305_v50  ;;  %v1312_v27 = vadd.f32 %v1272_v23, %v1271_v28  ;;  %v1236_v19 = vpop.permute.xlu1 %1235  ;;  %v1232_v36 = vpop.permute.xlu0 %1231  ;;  %v1348_v23 = vrot.slane %v2724_v7, 7 }
  0xce   : > { %v1414_v1 = vadd.f32 1.0, %v1406_v56  ;;  %v1399_v21 = vand.u32 2147483647, %v2744_v16  ;;  %v2750_v22 = vadd.f32 %v2724_v7, %v1283_v5  ;;  %v1274_v45 = vmul.f32 %v1236_v19, %v2709_v34 }
  0xcf   : > { %v1303_v17 = vrot.slane %v1302_v30, 1  ;;  %v1308_v58 = vrot.slane %v1307_v38, 2  ;;  %v1313_v63 = vrot.slane %v1312_v27, 4  ;;  %v1273_v10 = vmul.f32 %v1232_v36, %v2700_v55 }
  0xd0   : > { %2042 = vrcp.f32 %v1414_v1  ;;  %v1407_v26 = vmul.f32 0.3275911, %v1399_v21  ;;  %v2754_v51 = vmul.f32 0.70710677, %v2750_v22  ;;  %v1511_v41 = vsub.f32 0.0, %v1399_v21 }
  0xd1   : > { %v1304_v4 = vadd.f32 %v1303_v17, %v1302_v30  ;;  %v1309_v33 = vadd.f32 %v1308_v58, %v1307_v38  ;;  %v1314_v14 = vadd.f32 %v1313_v63, %v1312_v27  ;;  %v1518_v13 = vmul.f32 %v1510_v20, %v1398_v0  ;;  %v1244_v53 = vpop.permute.xlu1 %1243  ;;  %v1240_v30 = vpop.permute.xlu0 %1239 }
  0xd2   : > { %v1415_v48 = vadd.f32 1.0, %v1407_v26  ;;  %v1397_v47 = vand.u32 2147483647, %v2754_v51  ;;  %v1319_v2 = vadd.f32 %v1274_v45, %v1273_v10  ;;  %v1519_v8 = vmul.f32 %v1511_v41, %v1399_v21 }
  0xd3   : > { %v2757_v52 = vadd.f32 %v1344_v40, %v1304_v4  ;;  %v1310_v62 = vrot.slane %v1309_v33, 1  ;;  %v1315_v43 = vrot.slane %v1314_v14, 2  ;;  %v1347_v0 = vrot.slane %v2724_v7, 6 }
  0xd4   : > { %2044 = vrcp.f32 %v1415_v48  ;;  %v1405_v39 = vmul.f32 0.3275911, %v1397_v47  ;;  %v1509_v42 = vsub.f32 0.0, %v1397_v47  ;;  %v1320_v50 = vrot.slane %v1319_v2, 4 }
  0xd5   : > { %v2761_v44 = vmul.f32 0.70710677, %v2757_v52  ;;  %v1311_v29 = vadd.f32 %v1310_v62, %v1309_v33  ;;  %v1316_v60 = vadd.f32 %v1315_v43, %v1314_v14  ;;  %v1527_v61 = vmul.f32 1.442695, %v1518_v13 }
  0xd6   : > { %v1413_v15 = vadd.f32 1.0, %v1405_v39  ;;  %v1321_v5 = vadd.f32 %v1320_v50, %v1319_v2  ;;  %v1276_v21 = vmul.f32 %v1244_v53, %v2721_v24  ;;  %v1529_v28 = vmul.f32 1.442695, %v1519_v8 }
  0xd7   : > { %v1400_v31 = vand.u32 2147483647, %v2761_v44  ;;  %v2765_v46 = vadd.f32 %v1345_v35, %v1311_v29  ;;  %v1317_v55 = vrot.slane %v1316_v60, 1  ;;  %v1517_v40 = vmul.f32 %v1509_v42, %v1397_v47 }
  0xd8   : > { %2046 = vrcp.f32 %v1413_v15  ;;  %v1322_v58 = vrot.slane %v1321_v5, 2  ;;  %vm1382_vm1 = vcmp.ge.f32.partialorder %v2738_v18, 0.0  ;;  %v1275_v33 = vmul.f32 %v1240_v30, %v2711_v9 }
  0xd9   : > { %v1408_v37 = vmul.f32 0.3275911, %v1400_v31  ;;  %v2771_v6 = vmul.f32 0.70710677, %v2765_v46  ;;  %v1318_v56 = vadd.f32 %v1317_v55, %v1316_v60  ;;  %v1512_v48 = vsub.f32 0.0, %v1400_v31 }
  0xda   : > { %v2768_v54 = vpop.eup %2042  ;;  %v1323_v35 = vadd.f32 %v1322_v58, %v1321_v5  ;;  %v1326_v63 = vadd.f32 %v1276_v21, %v1275_v33  ;;  %v1525_v36 = vmul.f32 1.442695, %v1517_v40  ;;  %vm1383_vm2 = vcmp.ge.f32.partialorder %v2744_v16, 0.0 }
  0xdb   : > { %v1438_v34 = vmul.f32 1.0614054, %v2768_v54  ;;  %v1416_v49 = vadd.f32 1.0, %v1408_v37  ;;  %v2776_v59 = vand.u32 2147483647, %v2771_v6  ;;  %v2786_v17 = vadd.f32 %v1346_v57, %v1318_v56 }
  0xdc   : > { %v1324_v14 = vrot.slane %v1323_v35, 1  ;;  %v1327_v45 = vrot.slane %v1326_v63, 4  ;;  %v1520_v15 = vmul.f32 %v1512_v48, %v1400_v31  ;;  %vm1381_vm3 = vcmp.ge.f32.partialorder %v2754_v51, 0.0 }
  0xdd   : > { %v1446_v11 = vadd.f32 -1.4531521, %v1438_v34  ;;  %2048 = vrcp.f32 %v1416_v49  ;;  %v1409_v3 = vmul.f32 0.3275911, %v2776_v59  ;;  %v2791_v62 = vmul.f32 0.70710677, %v2786_v17 }
  0xde   : > { %v2779_v12 = vpop.eup %2044  ;;  %2050 = vpow2.f32 %v1527_v61  ;;  %v1325_v60 = vadd.f32 %v1324_v14, %v1323_v35  ;;  %v1328_v2 = vadd.f32 %v1327_v45, %v1326_v63  ;;  %v1513_v48 = vsub.f32 0.0, %v2776_v59 }
  0xdf   : > { %v1454_v38 = vmul.f32 %v2768_v54, %v1446_v11  ;;  %v1439_v1 = vmul.f32 1.0614054, %v2779_v12  ;;  %v1417_v27 = vadd.f32 1.0, %v1409_v3  ;;  %2052 = vpow2.f32 %v1529_v28 }
  0xe0   : > { %v2799_v9 = vand.u32 2147483647, %v2791_v62  ;;  %v2808_v31 = vadd.f32 %v1347_v0, %v1325_v60  ;;  %v1329_v55 = vrot.slane %v1328_v2, 2  ;;  %v1531_v11 = vmul.f32 1.442695, %v1520_v15 }
  0xe1   : > { %v1462_v26 = vadd.f32 1.4214138, %v1454_v38  ;;  %v1447_v4 = vadd.f32 -1.4531521, %v1439_v1  ;;  %2054 = vrcp.f32 %v1417_v27  ;;  %v2816_v38 = vmul.f32 0.5, %v2733_v32 }
  0xe2   : > { %v2793_v24 = vpop.eup %2046  ;;  %v1410_v43 = vmul.f32 0.3275911, %v2799_v9  ;;  %2056 = vpow2.f32 %v1525_v36  ;;  %v2813_v56 = vmul.f32 0.70710677, %v2808_v31  ;;  %v1330_v5 = vadd.f32 %v1329_v55, %v1328_v2 }
  0xe3   : > { %v1470_v19 = vmul.f32 %v2768_v54, %v1462_v26  ;;  %v1455_v47 = vmul.f32 %v2779_v12, %v1447_v4  ;;  %v1437_v39 = vmul.f32 1.0614054, %v2793_v24  ;;  %v2119_v1 = vmov -1.0  }
  0xe4   : > { %v1418_v49 = vadd.f32 1.0, %v1410_v43  ;;  %v1390_v0 = vsel %vm1382_vm1, 1.0, %v2119_v1  ;;  %v2824_v58 = vand.u32 2147483647, %v2813_v56  ;;  %v1331_v26 = vrot.slane %v1330_v5, 1 }
  0xe5   : > { %v1478_v20 = vadd.f32 -0.28449672, %v1470_v19  ;;  %v1463_v29 = vadd.f32 1.4214138, %v1455_v47  ;;  %v1445_v41 = vadd.f32 -1.4531521, %v1437_v39 }
  0xe6   : > { %2058 = vrcp.f32 %v1418_v49  ;;  %v1411_v19 = vmul.f32 0.3275911, %v2824_v58  ;;  %v1367_v35 = vmul.f32 0.5, %v2741_v25  ;;  %v1332_v36 = vadd.f32 %v1331_v26, %v1330_v5 }
  0xe7   : > { %v2802_v10 = vpop.eup %2048  ;;  %v1486_v37 = vmul.f32 %v2768_v54, %v1478_v20  ;;  %v1471_v13 = vmul.f32 %v2779_v12, %v1463_v29  ;;  %v1453_v34 = vmul.f32 %v2793_v24, %v1445_v41  ;;  %2060 = vpow2.f32 %v1531_v11 }
  0xe8   : > { %v1440_v8 = vmul.f32 1.0614054, %v2802_v10  ;;  %v2051_v30 = vpop.eup %2050  ;;  %v1391_v16 = vsel %vm1383_vm2, 1.0, %v2119_v1  ;;  %v1514_v29 = vsub.f32 0.0, %v2799_v9  ;;  %v1419_v14 = vadd.f32 1.0, %v1411_v19 }
  0xe9   : > { %v1494_v57 = vadd.f32 0.2548296, %v1486_v37  ;;  %v1479_v42 = vadd.f32 -0.28449672, %v1471_v13  ;;  %v1461_v50 = vadd.f32 1.4214138, %v1453_v34  ;;  %v2053_v4 = vpop.eup %2052  ;;  %v2839_v43 = vadd.f32 %v1348_v23, %v1332_v36 }
  0xea   : > { %v1448_v53 = vadd.f32 -1.4531521, %v1440_v8  ;;  %v1521_v37 = vmul.f32 %v1513_v48, %v2776_v59  ;;  %2062 = vrcp.f32 %v1419_v14  ;;  %v1365_v23 = vmul.f32 0.5, %v2750_v22 }
  0xeb   : > { %v1502_v61 = vmul.f32 %v2768_v54, %v1494_v57  ;;  %v1487_v3 = vmul.f32 %v2779_v12, %v1479_v42  ;;  %v1469_v21 = vmul.f32 %v2793_v24, %v1461_v50  ;;  %v2830_v47 = vpop.eup %2054  ;;  %v2849_v8 = vmul.f32 0.70710677, %v2839_v43 }
  0xec   : > { %v1456_v28 = vmul.f32 %v2802_v10, %v1448_v53  ;;  %v2057_v45 = vpop.eup %2056  ;;  %v1441_v13 = vmul.f32 1.0614054, %v2830_v47  ;;  %v1522_v49 = vmul.f32 %v1514_v29, %v2799_v9  ;;  %v1389_v50 = vsel %vm1381_vm3, 1.0, %v2119_v1 }
  0xed   : > { %v1542_v54 = vmul.f32 %v2051_v30, %v1502_v61  ;;  %v1495_v40 = vadd.f32 0.2548296, %v1487_v3  ;;  %v1477_v32 = vadd.f32 -0.28449672, %v1469_v21  ;;  %v1404_v51 = vand.u32 2147483647, %v2849_v8 }
  0xee   : > { %v1464_v33 = vadd.f32 1.4214138, %v1456_v28  ;;  %v1533_v53 = vmul.f32 1.442695, %v1521_v37  ;;  %v1449_v11 = vadd.f32 -1.4531521, %v1441_v13 }
  0xef   : > { %v1550_v27 = vsub.f32 1.0, %v1542_v54  ;;  %v1503_v18 = vmul.f32 %v2779_v12, %v1495_v40  ;;  %v1485_v63 = vmul.f32 %v2793_v24, %v1477_v32  ;;  %vm1384_vm6 = vcmp.ge.f32.partialorder %v2761_v44, 0.0 }
  0xf0   : > { %v1472_v39 = vmul.f32 %v2802_v10, %v1464_v33  ;;  %v2843_v60 = vpop.eup %2058  ;;  %v1412_v9 = vmul.f32 0.3275911, %v1404_v51  ;;  %v1535_v5 = vmul.f32 1.442695, %v1522_v49  ;;  %v1515_v30 = vsub.f32 0.0, %v2824_v58 }
  0xf1   : > { %v1543_v20 = vmul.f32 %v2053_v4, %v1503_v18  ;;  %v1558_v12 = vmul.f32 %v1550_v27, %v1390_v0  ;;  %v1493_v41 = vadd.f32 0.2548296, %v1485_v63  ;;  %v1442_v59 = vmul.f32 1.0614054, %v2843_v60  ;;  %v2061_v3 = vpop.eup %2060 }
  0xf2   : > { %v1480_v15 = vadd.f32 -0.28449672, %v1472_v39  ;;  %v1457_v21 = vmul.f32 %v2830_v47, %v1449_v11  ;;  %v1420_v26 = vadd.f32 1.0, %v1412_v9  ;;  %2064 = vpow2.f32 %v1533_v53 }
  0xf3   : > { %v1551_v25 = vsub.f32 1.0, %v1543_v20  ;;  %v1501_v2 = vmul.f32 %v2793_v24, %v1493_v41  ;;  %v1566_v57 = vadd.f32 1.0, %v1558_v12  ;;  %v1450_v0 = vadd.f32 -1.4531521, %v1442_v59 }
  0xf4   : > { %v1488_v34 = vmul.f32 %v2802_v10, %v1480_v15  ;;  %v1465_v33 = vadd.f32 1.4214138, %v1457_v21  ;;  %2066 = vrcp.f32 %v1420_v26  ;;  %v2063_v18 = vpop.eup %2062  ;;  %v1523_v19 = vmul.f32 %v1515_v30, %v2824_v58 }
  0xf5   : > { %v1559_v7 = vmul.f32 %v1551_v25, %v1391_v16  ;;  %v1541_v42 = vmul.f32 %v2057_v45, %v1501_v2  ;;  %v1574_v28 = vmul.f32 %v1566_v57, %v2816_v38  ;;  %v1458_v32 = vmul.f32 %v2843_v60, %v1450_v0 }
  0xf6   : > { %v1496_v55 = vadd.f32 0.2548296, %v1488_v34  ;;  %2068 = vpow2.f32 %v1535_v5  ;;  %v1473_v63 = vmul.f32 %v2830_v47, %v1465_v33  ;;  %v1443_v16 = vmul.f32 1.0614054, %v2063_v18 }
  0xf7   : > { %v1567_v24 = vadd.f32 1.0, %v1559_v7  ;;  %v1549_v61 = vsub.f32 1.0, %v1541_v42  ;;  %v1466_v38 = vadd.f32 1.4214138, %v1458_v32  ;;  %v1605_v39 = vrot.slane %v1574_v28, 7 }
  0xf8   : > { %v1504_v22 = vmul.f32 %v2802_v10, %v1496_v55  ;;  %v1392_v10 = vsel %vm1384_vm6, 1.0, %v2119_v1  ;;  %v1481_v14 = vadd.f32 -0.28449672, %v1473_v63  ;;  %v1368_v44 = vmul.f32 0.5, %v2757_v52 }
  0xf9   : > { %v1557_v54 = vmul.f32 %v1549_v61, %v1389_v50  ;;  %v1575_v4 = vmul.f32 %v1567_v24, %v1367_v35  ;;  %v1474_v29 = vmul.f32 %v2843_v60, %v1466_v38  ;;  %v1451_v12 = vadd.f32 -1.4531521, %v1443_v16 }
  0xfa   : > { %v1544_v40 = vmul.f32 %v2061_v3, %v1504_v22  ;;  %v1537_v15 = vmul.f32 1.442695, %v1523_v19  ;;  %v1489_v58 = vmul.f32 %v2830_v47, %v1481_v14  ;;  %v1516_v2 = vsub.f32 0.0, %v1404_v51 }
  0xfb   : > { %v1565_v48 = vadd.f32 1.0, %v1557_v54  ;;  %v1608_v20 = vrot.slane %v1575_v4, 6  ;;  %v1482_v25 = vadd.f32 -0.28449672, %v1474_v29  ;;  %v1459_v34 = vmul.f32 %v2063_v18, %v1451_v12 }
  0xfc   : > { %v1552_v27 = vsub.f32 1.0, %v1544_v40  ;;  %v2065_v52 = vpop.eup %2064  ;;  %2070 = vpow2.f32 %v1537_v15  ;;  %v1524_v24 = vmul.f32 %v1516_v2, %v1404_v51  ;;  %vm1385_vm8 = vcmp.ge.f32.partialorder %v2771_v6, 0.0 }
  0xfd   : > { %v1573_v35 = vmul.f32 %v1565_v48, %v1365_v23  ;;  %v1490_v7 = vmul.f32 %v2843_v60, %v1482_v25  ;;  %v1497_v23 = vadd.f32 0.2548296, %v1489_v58  ;;  %v1467_v59 = vadd.f32 1.4214138, %v1459_v34 }
  0xfe   : > { %v1560_v36 = vmul.f32 %v1552_v27, %v1392_v10  ;;  %v2067_v55 = vpop.eup %2066  ;;  %vm1386_vm9 = vcmp.ge.f32.partialorder %v2791_v62, 0.0  ;;  %v1393_v21 = vsel %vm1385_vm8, 1.0, %v2119_v1  ;;  %v1369_v4 = vmul.f32 0.5, %v2765_v46 }
  0xff   : > { %v1607_v41 = vsel %vm1606_vm4, %v1605_v39, %v1573_v35  ;;  %v1498_v57 = vadd.f32 0.2548296, %v1490_v7  ;;  %v1505_v42 = vmul.f32 %v2830_v47, %v1497_v23  ;;  %v1475_v50 = vmul.f32 %v2063_v18, %v1467_v59 }
 0x100   : > { %v1568_v45 = vadd.f32 1.0, %v1560_v36  ;;  %v1610_v37 = vsel %vm1609_vm5, %v1608_v20, %v1607_v41  ;;  %v2069_v11 = vpop.eup %2068  ;;  %v1444_v61 = vmul.f32 1.0614054, %v2067_v55  ;;  %v1539_v47 = vmul.f32 1.442695, %v1524_v24 }
 0x101   : > { %v1506_v22 = vmul.f32 %v2843_v60, %v1498_v57  ;;  %v1545_v9 = vmul.f32 %v2065_v52, %v1505_v42  ;;  %v1483_v3 = vadd.f32 -0.28449672, %v1475_v50  ;;  %v1394_v26 = vsel %vm1386_vm9, 1.0, %v2119_v1 }
 0x102   : > { %v1576_v13 = vmul.f32 %v1568_v45, %v1368_v44  ;;  %v1452_v5 = vadd.f32 -1.4531521, %v1444_v61  ;;  %2072 = vpow2.f32 %v1539_v47  ;;  %v1370_v10 = vmul.f32 0.5, %v2786_v17 }
 0x103   : > { %v1546_v30 = vmul.f32 %v2069_v11, %v1506_v22  ;;  %v1553_v0 = vsub.f32 1.0, %v1545_v9  ;;  %v1491_v28 = vmul.f32 %v2063_v18, %v1483_v3  ;;  %vm1387_vm10 = vcmp.ge.f32.partialorder %v2813_v56, 0.0 }
 0x104   : > { %v1611_v49 = vrot.slane %v1576_v13, 5  ;;  %v1460_v51 = vmul.f32 %v2067_v55, %v1452_v5  ;;  %v1395_v46 = vsel %vm1387_vm10, 1.0, %v2119_v1  ;;  %v1371_v45 = vmul.f32 0.5, %v2808_v31 }
 0x105   : > { %v1554_v54 = vsub.f32 1.0, %v1546_v30  ;;  %v1561_v40 = vmul.f32 %v1553_v0, %v1393_v21  ;;  %v1499_v6 = vadd.f32 0.2548296, %v1491_v28  ;;  %vm1388_vm13 = vcmp.ge.f32.partialorder %v2849_v8, 0.0  ;;  %v1697_v8 = vld [vmem:[%s393_s25] sm:$0xff] }
 0x106   : > { %v1613_v53 = vsel %vm1612_vm7, %v1611_v49, %v1610_v37  ;;  %v1468_v60 = vadd.f32 1.4214138, %v1460_v51  ;;  %v2071_v48 = vpop.eup %2070  ;;  %v1396_v13 = vsel %vm1388_vm13, 1.0, %v2119_v1  ;;  %v1372_v7 = vmul.f32 0.5, %v2839_v43  ;;  %v1848_v1 = vld [vmem:[%s2922_s7] ss:$0 sm:$0xff] }
 0x107   : > { %v1562_v32 = vmul.f32 %v1554_v54, %v1394_v26  ;;  %v1569_v33 = vadd.f32 1.0, %v1561_v40  ;;  %v1507_v62 = vmul.f32 %v2063_v18, %v1499_v6 }
 0x108   : > { %v1476_v27 = vmul.f32 %v2067_v55, %v1468_v60 }
 0x109   : > { %v1570_v19 = vadd.f32 1.0, %v1562_v32  ;;  %v1577_v38 = vmul.f32 %v1569_v33, %v1369_v4  ;;  %v1547_v63 = vmul.f32 %v2071_v48, %v1507_v62 }
 0x10a   : > { %v1484_v39 = vadd.f32 -0.28449672, %v1476_v27 }
 0x10b   : > { %v1578_v35 = vmul.f32 %v1570_v19, %v1370_v10  ;;  %v1614_v36 = vrot.slane %v1577_v38, 4  ;;  %v1555_v16 = vsub.f32 1.0, %v1547_v63 }
 0x10c   : > { %v1492_v20 = vmul.f32 %v2067_v55, %v1484_v39  ;;  %v2073_v56 = vpop.eup %2072 }
 0x10d   : > { %v1616_v29 = vsel %vm1615_vm11, %v1614_v36, %v1613_v53  ;;  %v1617_v18 = vrot.slane %v1578_v35, 3  ;;  %v1563_v14 = vmul.f32 %v1555_v16, %v1395_v46 }
 0x10e   : > { %v1500_v44 = vadd.f32 0.2548296, %v1492_v20 }
 0x10f   : > { %v1619_v17 = vsel %vm1618_vm12, %v1617_v18, %v1616_v29  ;;  %v1571_v12 = vadd.f32 1.0, %v1563_v14 }
 0x110   : > { %v1508_v41 = vmul.f32 %v2067_v55, %v1500_v44 }
 0x111   : > { %v1579_v15 = vmul.f32 %v1571_v12, %v1371_v45 }
 0x112   : > { %v1548_v25 = vmul.f32 %v2073_v56, %v1508_v41 }
 0x113   : > { %v1620_v58 = vrot.slane %v1579_v15, 2 }
 0x114   : > { %v1556_v37 = vsub.f32 1.0, %v1548_v25 }
 0x115   : > { %v1622_v2 = vsel %vm1621_vm14, %v1620_v58, %v1619_v17 }
 0x116   : > { %v1564_v34 = vmul.f32 %v1556_v37, %v1396_v13 }
 0x118   : > { %v1572_v23 = vadd.f32 1.0, %v1564_v34 }
 0x11a   : > { %v1580_v31 = vmul.f32 %v1572_v23, %v1372_v7 }
 0x11c   : > { %v1623_v49 = vrot.slane %v1580_v31, 1 }
 0x11e   : > { %v1625_v59 = vsel %vm1624_vm15, %v1623_v49, %v1622_v2 }
 0x11f   : > { %1901 = vmatmul.mubr.f32.vlgmr.msra.gmra.mrb[0].mxu0 %v1625_v59 }
 0x1f2   : > { %v1693_v52 = vpop.f32.mrb[0].mxu0 }
 0x1f3   : > { %v1698_v57 = vadd.f32 %v1697_v8, %v1693_v52  ;;  %v1902_v42 = vpop.f32.mrb[1].mxu0 }
 0x1f5   : > { %v1706_v43 = vadd.f32 %v1848_v1, %v1698_v57 }
 0x1f7   : > { %1708 = vst.msk [vmem:[%s401_s16] sm:$0xff] %vm1707_vm0, %v1706_v43 }
 0x1f8 PF: > { %s18_s9 = sadd.s32 1, %s2112_s9   ;;  %s2925_s25 = sld [smem:[#allocation4_spill]] }
 0x1f9   : > { %p15_p8 = scmp.ge.s32.totalorder %s18_s9, 18   ;;  %s2926_s27 = smov %s2104_s29 }
 0x1fa   : > { %s2927_s28 = smov %s2108_s30  ;;  %s2928_s29 = smov %s2931_s10 }
 0x1fb   :  { %17 = sbr.rel (!%p15_p8) target bundleno = 3 (0x3), region = 106 }
 0x1fe   : > { %s2929_s30 = smov %s2925_s25 }

// kernel: res_block.5
= control target key start
LH: loop header
LB: loop body
LE: loop exit
PB: predicated region body
PF: predicated region fallthrough
CT: control target
= control target key end

     0   :  { %vm45_vm0 = vcmask 523264   ;;  %s3296_s0 = inlined_call_operand.vmem [shape: f32[128,64], index: 0, kind: input, shape index: {}]   ;;  %s3297_s1 = inlined_call_operand.vmem [shape: f32[1,64], index: 1, kind: input, shape index: {}]   ;;  %s3298_s2 = inlined_call_operand.vmem [shape: f32[1,64], index: 2, kind: input, shape index: {}]   ;;  %s3299_s3 = inlined_call_operand.vmem [shape: f32[64,256], index: 3, kind: input, shape index: {}]   ;;  %s3300_s4 = inlined_call_operand.vmem [shape: f32[1,256], index: 4, kind: input, shape index: {}]   ;;  %s3301_s5 = inlined_call_operand.vmem [shape: f32[256,64], index: 5, kind: input, shape index: {}]   ;;  %s3302_s6 = inlined_call_operand.vmem [shape: f32[1,64], index: 6, kind: input, shape index: {}]   ;;  %s3303_s7 = inlined_call_operand.hbm [shape: f32[128,64], index: 7, kind: output, shape index: {}]  }
   0x1   :  { %v27_v0 = vld [vmem:[%s3296_s0] sm:$0xff]  ;;  %v29_v1 = vld [vmem:[%s3296_s0 + $0x10] sm:$0xff]  ;;  %v28_v2 = vld [vmem:[%s3296_s0 + $0x8] sm:$0xff] }
   0x2   :  { %v46_v3 = vsel %vm45_vm0, %v27_v0, 0.0  ;;  %v52_v4 = vsel %vm45_vm0, %v29_v1, 0.0  ;;  %v30_v5 = vld [vmem:[%s3296_s0 + $0x18] sm:$0xff]  ;;  %v49_v6 = vsel %vm45_vm0, %v28_v2, 0.0  ;;  %v31_v8 = vld [vmem:[%s3296_s0 + $0x20] sm:$0xff]  ;;  %v32_v9 = vld [vmem:[%s3296_s0 + $0x28] sm:$0xff] }
   0x3   :  { %47 = vadd.xlane.f32.xlu0 %v46_v3  ;;  %53 = vadd.xlane.f32.xlu1 %v52_v4  ;;  %v55_v7 = vsel %vm45_vm0, %v30_v5, 0.0 }
   0x4   :  { %12 = vsyncpa [#allocation3], 0  ;;  %v58_v10 = vsel %vm45_vm0, %v31_v8, 0.0  ;;  %v61_v11 = vsel %vm45_vm0, %v32_v9, 0.0  ;;  %v2088_v12 = vld [vmem:[%s3296_s0 + $0x30] sm:$0xff]  ;;  %v2093_v13 = vld [vmem:[%s3296_s0 + $0x38] sm:$0xff] }
   0x5   :  { %v64_v14 = vsel %vm45_vm0, %v2088_v12, 0.0  ;;  %v67_v15 = vsel %vm45_vm0, %v2093_v13, 0.0  ;;  %v2102_v16 = vld [vmem:[%s3296_s0 + $0x40] sm:$0xff]  ;;  %v2107_v17 = vld [vmem:[%s3296_s0 + $0x48] sm:$0xff]  ;;  %v2116_v20 = vld [vmem:[%s3296_s0 + $0x50] sm:$0xff]  ;;  %s2018_s12 = smov [#allocation2]  }
   0x6   :  { %v70_v18 = vsel %vm45_vm0, %v2102_v16, 0.0  ;;  %v73_v19 = vsel %vm45_vm0, %v2107_v17, 0.0  ;;  %v2121_v21 = vld [vmem:[%s3296_s0 + $0x58] sm:$0xff]  ;;  %v76_v22 = vsel %vm45_vm0, %v2116_v20, 0.0  ;;  %v2130_v24 = vld [vmem:[%s3296_s0 + $0x60] sm:$0xff]  ;;  %v2135_v25 = vld [vmem:[%s3296_s0 + $0x68] sm:$0xff] }
   0x7   :  { %50 = vadd.xlane.f32.xlu0 %v49_v6  ;;  %56 = vadd.xlane.f32.xlu1 %v55_v7  ;;  %v79_v23 = vsel %vm45_vm0, %v2121_v21, 0.0  ;;  %v82_v26 = vsel %vm45_vm0, %v2130_v24, 0.0  ;;  %v85_v27 = vsel %vm45_vm0, %v2135_v25, 0.0  ;;  %v2144_v28 = vld [vmem:[%s3296_s0 + $0x70] sm:$0xff]  ;;  %v2149_v29 = vld [vmem:[%s3296_s0 + $0x78] sm:$0xff]  ;;  %s1637_s13 = sshll.u32 %s2018_s12, 4  ;;  %s1638_s13 = int_to_ptr.vmem [resolvable:$true] %s1637_s13 }
   0x8   :  { %v88_v30 = vsel %vm45_vm0, %v2144_v28, 0.0  ;;  %v91_v31 = vsel %vm45_vm0, %v2149_v29, 0.0  ;;  %s1992_s15 = scalar_lea.vmem %s1638_s13, 2048  ;;  %p1997_p1 = scmp.lt.s32.totalorder %s1638_s13, %s1638_s13 }
   0x9   :  { %p1993_p0 = scmp.ne.s32.totalorder %s1638_s13, %s1992_s15  ;;  %p1998_p2 = scmp.lt.s32.totalorder %s1992_s15, %s1992_s15 }
   0xb   :  { %59 = vadd.xlane.f32.xlu0 %v58_v10  ;;  %62 = vadd.xlane.f32.xlu1 %v61_v11  ;;  %p1999_p3 = por %p1998_p2, %p1997_p1 }
   0xd   :  { %p2000_p4 = pnand %p1999_p3, %p1993_p0 }
   0xf   :  { %65 = vadd.xlane.f32.xlu0 %v64_v14  ;;  %68 = vadd.xlane.f32.xlu1 %v67_v15 }
  0x13   :  { %71 = vadd.xlane.f32.xlu0 %v70_v18  ;;  %74 = vadd.xlane.f32.xlu1 %v73_v19 }
  0x17   :  { %77 = vadd.xlane.f32.xlu0 %v76_v22  ;;  %80 = vadd.xlane.f32.xlu1 %v79_v23 }
  0x1b   :  { %83 = vadd.xlane.f32.xlu0 %v82_v26  ;;  %86 = vadd.xlane.f32.xlu1 %v85_v27 }
  0x1f   :  { %89 = vadd.xlane.f32.xlu0 %v88_v30  ;;  %92 = vadd.xlane.f32.xlu1 %v91_v31 }
  0x90   :  { %v48_v32 = vpop.xlane.xlu0 %47  ;;  %v54_v33 = vpop.xlane.xlu1 %53 }
  0x91   :  { %v95_v34 = vmul.f32 0.015625, %v48_v32  ;;  %v97_v35 = vmul.f32 0.015625, %v54_v33 }
  0x93   :  { %v2155_v36 = vsub.f32 %v27_v0, %v95_v34  ;;  %v2157_v37 = vsub.f32 %v29_v1, %v97_v35  ;;  %v302_v35 = vld [vmem:[%s3299_s3 + $0x18] sm:$0xff] }
  0x94   :  { %v51_v38 = vpop.xlane.xlu0 %50  ;;  %v57_v39 = vpop.xlane.xlu1 %56 }
  0x95   :  { %v96_v40 = vmul.f32 0.015625, %v51_v38  ;;  %v98_v41 = vmul.f32 0.015625, %v57_v39  ;;  %v127_v42 = vmul.f32 %v2155_v36, %v2155_v36  ;;  %v129_v43 = vmul.f32 %v2157_v37, %v2157_v37  ;;  %v299_v39 = vld [vmem:[%s3299_s3] sm:$0xff] }
  0x97   :  { %v2163_v44 = vsub.f32 %v28_v2, %v96_v40  ;;  %v2165_v45 = vsub.f32 %v30_v5, %v98_v41  ;;  %v143_v46 = vsel %vm45_vm0, %v127_v42, 0.0  ;;  %v149_v49 = vsel %vm45_vm0, %v129_v43, 0.0  ;;  %v301_v40 = vld [vmem:[%s3299_s3 + $0x10] sm:$0xff] }
  0x98   :  { %144 = vadd.xlane.f32.xlu0 %v143_v46  ;;  %v60_v47 = vpop.xlane.xlu0 %59  ;;  %v63_v48 = vpop.xlane.xlu1 %62 }
  0x99   :  { %v99_v50 = vmul.f32 0.015625, %v60_v47  ;;  %v100_v51 = vmul.f32 0.015625, %v63_v48  ;;  %v128_v52 = vmul.f32 %v2163_v44, %v2163_v44  ;;  %v130_v53 = vmul.f32 %v2165_v45, %v2165_v45 }
  0x9b   :  { %v2173_v54 = vsub.f32 %v31_v8, %v99_v50  ;;  %v2175_v55 = vsub.f32 %v32_v9, %v100_v51  ;;  %v146_v56 = vsel %vm45_vm0, %v128_v52, 0.0  ;;  %v152_v59 = vsel %vm45_vm0, %v130_v53, 0.0  ;;  %v306_v53 = vld [vmem:[%s3299_s3 + $0x38] sm:$0xff] }
  0x9c   :  { %150 = vadd.xlane.f32.xlu0 %v149_v49  ;;  %147 = vadd.xlane.f32.xlu1 %v146_v56  ;;  %v66_v57 = vpop.xlane.xlu0 %65  ;;  %v69_v58 = vpop.xlane.xlu1 %68  ;;  %v1749_v49 = vpack.c.bf16 %v301_v40, %v299_v39 }
  0x9d   :  { %v101_v60 = vmul.f32 0.015625, %v66_v57  ;;  %v102_v61 = vmul.f32 0.015625, %v69_v58  ;;  %v131_v62 = vmul.f32 %v2173_v54, %v2173_v54  ;;  %v132_v63 = vmul.f32 %v2175_v55, %v2175_v55  ;;  %v303_v57 = vld [vmem:[%s3299_s3 + $0x20] sm:$0xff]  ;;  %v305_v58 = vld [vmem:[%s3299_s3 + $0x30] sm:$0xff] }
  0x9f   :  { %v2184_v0 = vsub.f32 %v2088_v12, %v101_v60  ;;  %v2187_v1 = vsub.f32 %v2093_v13, %v102_v61  ;;  %v155_v2 = vsel %vm45_vm0, %v131_v62, 0.0  ;;  %v158_v5 = vsel %vm45_vm0, %v132_v63, 0.0 }
  0xa0   :  { %153 = vadd.xlane.f32.xlu1 %v152_v59  ;;  %156 = vadd.xlane.f32.xlu0 %v155_v2  ;;  %v72_v3 = vpop.xlane.xlu0 %71  ;;  %v75_v4 = vpop.xlane.xlu1 %74  ;;  %v1753_v62 = vpack.c.bf16 %v305_v58, %v303_v57 }
  0xa1   :  { %v103_v6 = vmul.f32 0.015625, %v72_v3  ;;  %v104_v7 = vmul.f32 0.015625, %v75_v4  ;;  %v133_v8 = vmul.f32 %v2184_v0, %v2184_v0  ;;  %v134_v9 = vmul.f32 %v2187_v1, %v2187_v1 }
  0xa3   :  { %v2196_v10 = vsub.f32 %v2102_v16, %v103_v6  ;;  %v2199_v11 = vsub.f32 %v2107_v17, %v104_v7  ;;  %v161_v12 = vsel %vm45_vm0, %v133_v8, 0.0  ;;  %v164_v15 = vsel %vm45_vm0, %v134_v9, 0.0  ;;  %v309_v6 = vld [vmem:[%s3299_s3 + $0x50] sm:$0xff] }
  0xa4   :  { %159 = vadd.xlane.f32.xlu1 %v158_v5  ;;  %162 = vadd.xlane.f32.xlu0 %v161_v12  ;;  %v78_v13 = vpop.xlane.xlu0 %77  ;;  %v81_v14 = vpop.xlane.xlu1 %80  ;;  %v307_v5 = vld [vmem:[%s3299_s3 + $0x40] sm:$0xff]  ;;  %v312_v12 = vld [vmem:[%s3299_s3 + $0x68] sm:$0xff] }
  0xa5   :  { %v105_v18 = vmul.f32 0.015625, %v78_v13  ;;  %v106_v19 = vmul.f32 0.015625, %v81_v14  ;;  %v135_v22 = vmul.f32 %v2196_v10, %v2196_v10  ;;  %v136_v16 = vmul.f32 %v2199_v11, %v2199_v11  ;;  %v314_v13 = vld [vmem:[%s3299_s3 + $0x78] sm:$0xff] }
  0xa6   :  { %v1757_v8 = vpack.c.bf16 %v309_v6, %v307_v5  ;;  %v1759_v14 = vpack.c.bf16 %v314_v13, %v312_v12 }
  0xa7   :  { %v2208_v23 = vsub.f32 %v2116_v20, %v105_v18  ;;  %v2211_v17 = vsub.f32 %v2121_v21, %v106_v19  ;;  %v167_v26 = vsel %vm45_vm0, %v135_v22, 0.0  ;;  %v170_v31 = vsel %vm45_vm0, %v136_v16, 0.0  ;;  %v300_v21 = vld [vmem:[%s3299_s3 + $0x8] sm:$0xff]  ;;  %v313_v18 = vld [vmem:[%s3299_s3 + $0x70] sm:$0xff] }
  0xa8   :  { %165 = vadd.xlane.f32.xlu1 %v164_v15  ;;  %168 = vadd.xlane.f32.xlu0 %v167_v26  ;;  %v84_v27 = vpop.xlane.xlu0 %83  ;;  %v87_v30 = vpop.xlane.xlu1 %86  ;;  %v1747_v38 = vpack.c.bf16 %v302_v35, %v300_v21  ;;  %v311_v15 = vld [vmem:[%s3299_s3 + $0x60] sm:$0xff]  ;;  %v2016_v22 = vmov 0.0  }
  0xa9   :  { %v107_v32 = vmul.f32 0.015625, %v84_v27  ;;  %v108_v33 = vmul.f32 0.015625, %v87_v30  ;;  %v137_v34 = vmul.f32 %v2208_v23, %v2208_v23  ;;  %v138_v20 = vmul.f32 %v2211_v17, %v2211_v17  ;;  %439 = vmatprep.mubr.f32.mxu0 %v2016_v22 }
  0xaa   :  { %1748 = vmatprep.subr.bf16.mxu0 %v1747_v38  ;;  %v1761_v19 = vpack.c.bf16 %v313_v18, %v311_v15 }
  0xab   :  { %v2232_v41 = vsub.f32 %v2130_v24, %v107_v32  ;;  %v2235_v42 = vsub.f32 %v2135_v25, %v108_v33  ;;  %v173_v43 = vsel %vm45_vm0, %v137_v34, 0.0  ;;  %v176_v48 = vsel %vm45_vm0, %v138_v20, 0.0  ;;  %v304_v25 = vld [vmem:[%s3299_s3 + $0x28] sm:$0xff]  ;;  %1750 = vmatpush1.bf16.msra.mxu0 %v1749_v49 }
  0xac   :  { %171 = vadd.xlane.f32.xlu1 %v170_v31  ;;  %174 = vadd.xlane.f32.xlu0 %v173_v43  ;;  %v90_v46 = vpop.xlane.xlu0 %89  ;;  %v93_v47 = vpop.xlane.xlu1 %92  ;;  %v1751_v56 = vpack.c.bf16 %v306_v53, %v304_v25  ;;  %v2303_v53 = vld [vmem:[%s3298_s2] ss:$0 sm:$0xff] }
  0xad   :  { %v109_v50 = vmul.f32 0.015625, %v90_v46  ;;  %v110_v51 = vmul.f32 0.015625, %v93_v47  ;;  %v139_v52 = vmul.f32 %v2232_v41, %v2232_v41  ;;  %v140_v24 = vmul.f32 %v2235_v42, %v2235_v42 }
  0xae   :  { %1752 = vmatprep.subr.bf16.mxu0 %v1751_v56 }
  0xaf   :  { %v2256_v59 = vsub.f32 %v2144_v28, %v109_v50  ;;  %v2259_v60 = vsub.f32 %v2149_v29, %v110_v51  ;;  %v179_v61 = vsel %vm45_vm0, %v139_v52, 0.0  ;;  %v182_v63 = vsel %vm45_vm0, %v140_v24, 0.0  ;;  %v308_v28 = vld [vmem:[%s3299_s3 + $0x48] sm:$0xff]  ;;  %v310_v29 = vld [vmem:[%s3299_s3 + $0x58] sm:$0xff]  ;;  %1754 = vmatpush1.bf16.msra.mxu0 %v1753_v62  ;;  %v2297_v52 = vld [vmem:[%s3297_s1] ss:$0 sm:$0xff] }
  0xb0   :  { %177 = vadd.xlane.f32.xlu1 %v176_v48  ;;  %180 = vadd.xlane.f32.xlu0 %v179_v61  ;;  %v1755_v4 = vpack.c.bf16 %v310_v29, %v308_v28 }
  0xb1   :  { %v141_v2 = vmul.f32 %v2256_v59, %v2256_v59  ;;  %v142_v3 = vmul.f32 %v2259_v60, %v2259_v60 }
  0xb2   :  { %1756 = vmatprep.subr.bf16.mxu0 %v1755_v4 }
  0xb3   :  { %v185_v7 = vsel %vm45_vm0, %v141_v2, 0.0  ;;  %v188_v9 = vsel %vm45_vm0, %v142_v3, 0.0  ;;  %1758 = vmatpush1.bf16.msra.mxu0 %v1757_v8 }
  0xb4   :  { %183 = vadd.xlane.f32.xlu1 %v182_v63  ;;  %186 = vadd.xlane.f32.xlu0 %v185_v7 }
  0xb5   :  { %1760 = vmatprep.subr.bf16.mxu0 %v1759_v14 }
  0xb7   :  { %1762 = vmatpush1.bf16.msra.mxu0 %v1761_v19 }
  0xb8   :  { %189 = vadd.xlane.f32.xlu1 %v188_v9 }
 0x125   :  { %v145_v16 = vpop.xlane.xlu0 %144 }
 0x126   :  { %v191_v26 = vmul.f32 0.015625, %v145_v16 }
 0x128   :  { %v207_v27 = vadd.f32 1e-05, %v191_v26 }
 0x129   :  { %v148_v30 = vpop.xlane.xlu1 %147  ;;  %v151_v31 = vpop.xlane.xlu0 %150 }
 0x12a   :  { %1816 = vrsqrt.f32 %v207_v27  ;;  %v192_v32 = vmul.f32 0.015625, %v148_v30  ;;  %v193_v33 = vmul.f32 0.015625, %v151_v31 }
 0x12c   :  { %v208_v34 = vadd.f32 1e-05, %v192_v32  ;;  %v209_v20 = vadd.f32 1e-05, %v193_v33 }
 0x12d   :  { %v154_v21 = vpop.xlane.xlu1 %153  ;;  %v157_v35 = vpop.xlane.xlu0 %156 }
 0x12e   :  { %1818 = vrsqrt.f32 %v208_v34  ;;  %v194_v38 = vmul.f32 0.015625, %v154_v21  ;;  %v195_v39 = vmul.f32 0.015625, %v157_v35 }
 0x12f   :  { %1820 = vrsqrt.f32 %v209_v20 }
 0x130   :  { %v210_v40 = vadd.f32 1e-05, %v194_v38  ;;  %v211_v43 = vadd.f32 1e-05, %v195_v39 }
 0x131   :  { %v160_v46 = vpop.xlane.xlu1 %159  ;;  %v163_v47 = vpop.xlane.xlu0 %162 }
 0x132   :  { %1822 = vrsqrt.f32 %v210_v40  ;;  %v196_v48 = vmul.f32 0.015625, %v160_v46  ;;  %v197_v51 = vmul.f32 0.015625, %v163_v47 }
 0x133   :  { %1824 = vrsqrt.f32 %v211_v43 }
 0x134   :  { %v1817_v49 = vpop.eup %1816  ;;  %v212_v50 = vadd.f32 1e-05, %v196_v48  ;;  %v213_v58 = vadd.f32 1e-05, %v197_v51 }
 0x135   :  { %v166_v24 = vpop.xlane.xlu1 %165  ;;  %v239_v25 = vmul.f32 %v1817_v49, %v2155_v36  ;;  %v169_v63 = vpop.xlane.xlu0 %168 }
 0x136   :  { %1826 = vrsqrt.f32 %v212_v50  ;;  %v198_v61 = vmul.f32 0.015625, %v166_v24  ;;  %v199_v5 = vmul.f32 0.015625, %v169_v63 }
 0x137   :  { %v261_v56 = vmul.f32 %v2297_v52, %v239_v25  ;;  %1828 = vrsqrt.f32 %v213_v58 }
 0x138   :  { %v1819_v57 = vpop.eup %1818  ;;  %v214_v4 = vadd.f32 1e-05, %v198_v61 }
 0x139   :  { %v1821_v62 = vpop.eup %1820  ;;  %v283_v2 = vadd.f32 %v2303_v53, %v261_v56  ;;  %v240_v3 = vmul.f32 %v1819_v57, %v2163_v44  ;;  %v172_v6 = vpop.xlane.xlu1 %171 }
 0x13a   :  { %v241_v28 = vmul.f32 %v1821_v62, %v2157_v37  ;;  %1830 = vrsqrt.f32 %v214_v4  ;;  %v215_v37 = vadd.f32 1e-05, %v199_v5  ;;  %v200_v12 = vmul.f32 0.015625, %v172_v6  ;;  %v175_v13 = vpop.xlane.xlu0 %174 }
 0x13b   :  { %1650 = vmatmul.mubr.msk.f32.vlgmr.msra.gmra.mrb[0].mxu0 %vm45_vm0, %v283_v2  ;;  %v262_v36 = vmul.f32 %v2297_v52, %v240_v3  ;;  %v201_v16 = vmul.f32 0.015625, %v175_v13 }
 0x13c   :  { %v1823_v29 = vpop.eup %1822  ;;  %445 = vmatprep.mubr.f32.mxu0 %v2016_v22  ;;  %v263_v8 = vmul.f32 %v2297_v52, %v241_v28  ;;  %1832 = vrsqrt.f32 %v215_v37 }
 0x13d   :  { %v284_v7 = vadd.f32 %v2303_v53, %v262_v36  ;;  %v242_v9 = vmul.f32 %v1823_v29, %v2165_v45  ;;  %v1825_v44 = vpop.eup %1824  ;;  %v216_v45 = vadd.f32 1e-05, %v200_v12  ;;  %v178_v26 = vpop.xlane.xlu1 %177 }
 0x13e   :  { %v285_v14 = vadd.f32 %v2303_v53, %v263_v8  ;;  %v243_v18 = vmul.f32 %v1825_v44, %v2173_v54  ;;  %v217_v54 = vadd.f32 1e-05, %v201_v16  ;;  %v202_v33 = vmul.f32 0.015625, %v178_v26  ;;  %v181_v34 = vpop.xlane.xlu0 %180 }
 0x13f   :  { %1651 = vmatmul.mubr.msk.f32.gmra.mrb[2].mxu0 %vm45_vm0, %v284_v7  ;;  %v264_v15 = vmul.f32 %v2297_v52, %v242_v9  ;;  %1834 = vrsqrt.f32 %v216_v45  ;;  %v203_v39 = vmul.f32 0.015625, %v181_v34  ;;  %v1402_v34 = vld [vmem:[%s3301_s5 + $0x10] sm:$0xff] }
 0x140   :  { %451 = vmatprep.mubr.f32.mxu0 %v2016_v22  ;;  %v1827_v19 = vpop.eup %1826  ;;  %v265_v30 = vmul.f32 %v2297_v52, %v243_v18  ;;  %1836 = vrsqrt.f32 %v217_v54  ;;  %v1419_v54 = vld [vmem:[%s3301_s5 + $0x98] sm:$0xff] }
 0x141   :  { %v286_v27 = vadd.f32 %v2303_v53, %v264_v15  ;;  %v244_v31 = vmul.f32 %v1827_v19, %v2175_v55  ;;  %v1829_v32 = vpop.eup %1828  ;;  %v218_v55 = vadd.f32 1e-05, %v202_v33  ;;  %v184_v40 = vpop.xlane.xlu1 %183 }
 0x142   :  { %v287_v20 = vadd.f32 %v2303_v53, %v265_v30  ;;  %v245_v35 = vmul.f32 %v1829_v32, %v2184_v0  ;;  %v219_v0 = vadd.f32 1e-05, %v203_v39  ;;  %v204_v49 = vmul.f32 0.015625, %v184_v40  ;;  %v187_v50 = vpop.xlane.xlu0 %186  ;;  %v1417_v30 = vld [vmem:[%s3301_s5 + $0x88] sm:$0xff]  ;;  %v1418_v32 = vld [vmem:[%s3301_s5 + $0x90] sm:$0xff]  ;;  %v1404_v39 = vld [vmem:[%s3301_s5 + $0x20] sm:$0xff] }
 0x143   :  { %1652 = vmatmul.mubr.msk.f32.gmra.mrb[4].mxu0 %vm45_vm0, %v285_v14  ;;  %v266_v21 = vmul.f32 %v2297_v52, %v244_v31  ;;  %1838 = vrsqrt.f32 %v218_v55  ;;  %v205_v57 = vmul.f32 0.015625, %v187_v50  ;;  %v1767_v33 = vpack.c.bf16 %v1419_v54, %v1418_v32  ;;  %v1405_v40 = vld [vmem:[%s3301_s5 + $0x28] sm:$0xff] }
 0x144   :  { %457 = vmatprep.mubr.f32.mxu0 %v2016_v22  ;;  %v1831_v38 = vpop.eup %1830  ;;  %v267_v46 = vmul.f32 %v2297_v52, %v245_v35  ;;  %1840 = vrsqrt.f32 %v219_v0  ;;  %v1420_v35 = vld [vmem:[%s3301_s5 + $0xa0] sm:$0xff]  ;;  %v1406_v0 = vld [vmem:[%s3301_s5 + $0x30] sm:$0xff] }
 0x145   :  { %v288_v43 = vadd.f32 %v2303_v53, %v266_v21  ;;  %v246_v47 = vmul.f32 %v1831_v38, %v2187_v1  ;;  %v220_v1 = vadd.f32 1e-05, %v204_v49  ;;  %v190_v58 = vpop.xlane.xlu1 %189  ;;  %v1421_v38 = vld [vmem:[%s3301_s5 + $0xa8] sm:$0xff]  ;;  %v1407_v49 = vld [vmem:[%s3301_s5 + $0x38] sm:$0xff] }
 0x146   :  { %v1833_v48 = vpop.eup %1832  ;;  %v289_v51 = vadd.f32 %v2303_v53, %v267_v46  ;;  %v206_v3 = vmul.f32 0.015625, %v190_v58  ;;  %v1771_v55 = vpack.c.bf16 %v1421_v38, %v1420_v35  ;;  %v1422_v46 = vld [vmem:[%s3301_s5 + $0xb0] sm:$0xff]  ;;  %v1777_v50 = vpack.c.bf16 %v1407_v49, %v1406_v0 }
 0x147   :  { %1653 = vmatmul.mubr.msk.f32.gmra.mrb[6].mxu0 %vm45_vm0, %v286_v27  ;;  %v268_v24 = vmul.f32 %v2297_v52, %v246_v47  ;;  %v247_v25 = vmul.f32 %v1833_v48, %v2196_v10  ;;  %1842 = vrsqrt.f32 %v220_v1  ;;  %v221_v10 = vadd.f32 1e-05, %v205_v57  ;;  %v1423_v47 = vld [vmem:[%s3301_s5 + $0xb8] sm:$0xff]  ;;  %v1409_v1 = vld [vmem:[%s3301_s5 + $0x48] sm:$0xff]  ;;  %v1426_v58 = vld [vmem:[%s3301_s5 + $0xd0] sm:$0xff] }
 0x148   :  { %463 = vmatprep.mubr.f32.mxu0 %v2016_v22  ;;  %v222_v5 = vadd.f32 1e-05, %v206_v3  ;;  %v1775_v48 = vpack.c.bf16 %v1423_v47, %v1422_v46  ;;  %v1428_v3 = vld [vmem:[%s3301_s5 + $0xe0] sm:$0xff] }
 0x149   :  { %v1835_v56 = vpop.eup %1834  ;;  %v290_v61 = vadd.f32 %v2303_v53, %v268_v24  ;;  %v269_v62 = vmul.f32 %v2297_v52, %v247_v25  ;;  %1844 = vrsqrt.f32 %v221_v10  ;;  %v1425_v24 = vld [vmem:[%s3301_s5 + $0xc8] sm:$0xff] }
 0x14a   :  { %v248_v63 = vmul.f32 %v1835_v56, %v2199_v11  ;;  %v1837_v2 = vpop.eup %1836  ;;  %1846 = vrsqrt.f32 %v222_v5  ;;  %v1408_v56 = vld [vmem:[%s3301_s5 + $0x40] sm:$0xff] }
 0x14b   :  { %1654 = vmatmul.mubr.msk.f32.gmra.mrb[8].mxu0 %vm45_vm0, %v287_v20  ;;  %v291_v28 = vadd.f32 %v2303_v53, %v269_v62  ;;  %v249_v29 = vmul.f32 %v1837_v2, %v2208_v23  ;;  %v1403_v20 = vld [vmem:[%s3301_s5 + $0x18] sm:$0xff]  ;;  %v1781_v57 = vpack.c.bf16 %v1409_v1, %v1408_v56 }
 0x14c   :  { %469 = vmatprep.mubr.f32.mxu0 %v2016_v22  ;;  %v270_v36 = vmul.f32 %v2297_v52, %v248_v63  ;;  %v1769_v21 = vpack.c.bf16 %v1403_v20, %v1402_v34  ;;  %v1410_v63 = vld [vmem:[%s3301_s5 + $0x50] sm:$0xff]  ;;  %v1411_v2 = vld [vmem:[%s3301_s5 + $0x58] sm:$0xff] }
 0x14d   :  { %v1839_v4 = vpop.eup %1838  ;;  %v271_v6 = vmul.f32 %v2297_v52, %v249_v29  ;;  %v1785_v10 = vpack.c.bf16 %v1411_v2, %v1410_v63  ;;  %v1412_v29 = vld [vmem:[%s3301_s5 + $0x60] sm:$0xff] }
 0x14e   :  { %v292_v11 = vadd.f32 %v2303_v53, %v270_v36  ;;  %v250_v7 = vmul.f32 %v1839_v4, %v2211_v17  ;;  %v1841_v8 = vpop.eup %1840  ;;  %v1413_v4 = vld [vmem:[%s3301_s5 + $0x68] sm:$0xff] }
 0x14f   :  { %1655 = vmatmul.mubr.msk.f32.gmra.mrb[10].mxu0 %vm45_vm0, %v288_v43  ;;  %v293_v23 = vadd.f32 %v2303_v53, %v271_v6  ;;  %v251_v44 = vmul.f32 %v1841_v8, %v2232_v41  ;;  %v1773_v43 = vpack.c.bf16 %v1405_v40, %v1404_v39  ;;  %v1789_v5 = vpack.c.bf16 %v1413_v4, %v1412_v29  ;;  %v1431_v6 = vld [vmem:[%s3301_s5 + $0xf8] sm:$0xff]  ;;  %v1414_v8 = vld [vmem:[%s3301_s5 + $0x70] sm:$0xff] }
 0x150   :  { %475 = vmatprep.mubr.f32.mxu0 %v2016_v22  ;;  %v272_v9 = vmul.f32 %v2297_v52, %v250_v7 }
 0x151   :  { %v1843_v37 = vpop.eup %1842  ;;  %v273_v17 = vmul.f32 %v2297_v52, %v251_v44  ;;  %v317_v44 = vlaneseq }
 0x152   :  { %v294_v12 = vadd.f32 %v2303_v53, %v272_v9  ;;  %v252_v13 = vmul.f32 %v1843_v37, %v2235_v42 }
 0x153   :  { %1656 = vmatmul.mubr.msk.f32.gmra.mrb[12].mxu0 %vm45_vm0, %v289_v51  ;;  %v1845_v14 = vpop.eup %1844  ;;  %v295_v15 = vadd.f32 %v2303_v53, %v273_v17  ;;  %v1424_v51 = vld [vmem:[%s3301_s5 + $0xc0] sm:$0xff]  ;;  %v318_v37 = vshrl.u32 %v317_v44, 7 }
 0x154   :  { %481 = vmatprep.mubr.f32.mxu0 %v2016_v22  ;;  %v274_v41 = vmul.f32 %v2297_v52, %v252_v13  ;;  %v253_v18 = vmul.f32 %v1845_v14, %v2256_v59  ;;  %v1847_v19 = vpop.eup %1846  ;;  %v1779_v25 = vpack.c.bf16 %v1425_v24, %v1424_v51  ;;  %v315_v17 = vld [vmem:[%s3300_s4] sm:$0x3] }
 0x155   :  { %v254_v16 = vmul.f32 %v1847_v19, %v2259_v60  ;;  %v1416_v60 = vld [vmem:[%s3301_s5 + $0x80] sm:$0xff]  ;;  %v323_v13 = vsub.s32 1, %v318_v37 }
 0x156   :  { %v296_v45 = vadd.f32 %v2303_v53, %v274_v41  ;;  %v275_v42 = vmul.f32 %v2297_v52, %v253_v18  ;;  %v1763_v31 = vpack.c.bf16 %v1417_v30, %v1416_v60 }
 0x157   :  { %1657 = vmatmul.mubr.msk.f32.gmra.mrb[14].mxu0 %vm45_vm0, %v290_v61  ;;  %v276_v27 = vmul.f32 %v2297_v52, %v254_v16  ;;  %v1400_v52 = vld [vmem:[%s3301_s5] sm:$0xff]  ;;  %v1427_v61 = vld [vmem:[%s3301_s5 + $0xd8] sm:$0xff] }
 0x158   :  { %487 = vmatprep.mubr.f32.mxu0 %v2016_v22  ;;  %v297_v26 = vadd.f32 %v2303_v53, %v275_v42  ;;  %1764 = vmatprep.subr.bf16.mxu0 %v1763_v31  ;;  %v1783_v62 = vpack.c.bf16 %v1427_v61, %v1426_v58 }
 0x159   :  { %v298_v59 = vadd.f32 %v2303_v53, %v276_v27  ;;  %1795 = vmatprep.subr.bf16.mxu1 %v1763_v31 }
 0x15b   :  { %1658 = vmatmul.mubr.msk.f32.gmra.mrb[16].mxu0 %vm45_vm0, %v291_v28  ;;  %v1429_v28 = vld [vmem:[%s3301_s5 + $0xe8] sm:$0xff] }
 0x15c   :  { %493 = vmatprep.mubr.f32.mxu0 %v2016_v22  ;;  %v1787_v36 = vpack.c.bf16 %v1429_v28, %v1428_v3 }
 0x15f   :  { %1659 = vmatmul.mubr.msk.f32.gmra.mrb[18].mxu0 %vm45_vm0, %v292_v11  ;;  %v1430_v11 = vld [vmem:[%s3301_s5 + $0xf0] sm:$0xff] }
 0x160   :  { %499 = vmatprep.mubr.f32.mxu0 %v2016_v22  ;;  %v1791_v7 = vpack.c.bf16 %v1431_v6, %v1430_v11 }
 0x163   :  { %1660 = vmatmul.mubr.msk.f32.gmra.mrb[20].mxu0 %vm45_vm0, %v293_v23  ;;  %v1415_v23 = vld [vmem:[%s3301_s5 + $0x78] sm:$0xff] }
 0x164   :  { %505 = vmatprep.mubr.f32.mxu0 %v2016_v22  ;;  %v1793_v9 = vpack.c.bf16 %v1415_v23, %v1414_v8 }
 0x167   :  { %1661 = vmatmul.mubr.msk.f32.gmra.mrb[22].mxu0 %vm45_vm0, %v294_v12  ;;  %v319_v12 = vsub.s32 0, %v318_v37 }
 0x168   :  { %511 = vmatprep.mubr.f32.mxu0 %v2016_v22 }
 0x169   :  { %v2482_v14 = vrot.slane %v315_v17, %v319_v12 }
 0x16b   :  { %1662 = vmatmul.mubr.msk.f32.gmra.mrb[24].mxu0 %vm45_vm0, %v295_v15  ;;  %v2484_v15 = vrot.slane %v315_v17, %v323_v13 }
 0x16c   :  { %517 = vmatprep.mubr.f32.mxu0 %v2016_v22 }
 0x16f   :  { %1663 = vmatmul.mubr.msk.f32.gmra.mrb[26].mxu0 %vm45_vm0, %v296_v45 }
 0x170   :  { %523 = vmatprep.mubr.f32.mxu0 %v2016_v22 }
 0x173   :  { %1664 = vmatmul.mubr.msk.f32.gmra.mrb[28].mxu0 %vm45_vm0, %v297_v26 }
 0x174   :  { %529 = vmatprep.mubr.f32.mxu0 %v2016_v22  ;;  %v1401_v22 = vld [vmem:[%s3301_s5 + $0x8] sm:$0xff] }
 0x175   :  { %v1765_v53 = vpack.c.bf16 %v1401_v22, %v1400_v52 }
 0x177   :  { %1665 = vmatmul.mubr.msk.f32.gmra.mrb[30].mxu0 %vm45_vm0, %v298_v59  ;;  %1803 = vmatpush3.bf16.msra.mxu1 %v1765_v53 }
 0x178   :  { %1766 = vmatpush3.bf16.msra.mxu0 %v1765_v53  ;;  %1796 = vmatprep.subr.bf16.mxu1 %v1767_v33 }
 0x179   :  { %1768 = vmatprep.subr.bf16.mxu0 %v1767_v33 }
 0x17b   :  { %1804 = vmatpush3.bf16.msra.mxu1 %v1769_v21 }
 0x17c   :  { %1770 = vmatpush3.bf16.msra.mxu0 %v1769_v21  ;;  %1797 = vmatprep.subr.bf16.mxu1 %v1771_v55 }
 0x17d   :  { %1772 = vmatprep.subr.bf16.mxu0 %v1771_v55 }
 0x17f   :  { %1805 = vmatpush3.bf16.msra.mxu1 %v1773_v43 }
 0x180   :  { %1774 = vmatpush3.bf16.msra.mxu0 %v1773_v43  ;;  %1798 = vmatprep.subr.bf16.mxu1 %v1775_v48 }
 0x181   :  { %1776 = vmatprep.subr.bf16.mxu0 %v1775_v48 }
 0x183   :  { %1806 = vmatpush3.bf16.msra.mxu1 %v1777_v50 }
 0x184   :  { %1778 = vmatpush3.bf16.msra.mxu0 %v1777_v50  ;;  %1799 = vmatprep.subr.bf16.mxu1 %v1779_v25 }
 0x185   :  { %1780 = vmatprep.subr.bf16.mxu0 %v1779_v25 }
 0x187   :  { %1807 = vmatpush3.bf16.msra.mxu1 %v1781_v57 }
 0x188   :  { %1782 = vmatpush3.bf16.msra.mxu0 %v1781_v57  ;;  %1800 = vmatprep.subr.bf16.mxu1 %v1783_v62 }
 0x189   :  { %1784 = vmatprep.subr.bf16.mxu0 %v1783_v62  ;;  %v3304_v62 = vmov -1.0  }
 0x18b   :  { %1808 = vmatpush3.bf16.msra.mxu1 %v1785_v10 }
 0x18c   :  { %1786 = vmatpush3.bf16.msra.mxu0 %v1785_v10  ;;  %1801 = vmatprep.subr.bf16.mxu1 %v1787_v36 }
 0x18d   :  { %1788 = vmatprep.subr.bf16.mxu0 %v1787_v36 }
 0x18f   :  { %1809 = vmatpush3.bf16.msra.mxu1 %v1789_v5 }
 0x190   :  { %1790 = vmatpush3.bf16.msra.mxu0 %v1789_v5  ;;  %1802 = vmatprep.subr.bf16.mxu1 %v1791_v7 }
 0x191   :  { %1792 = vmatprep.subr.bf16.mxu0 %v1791_v7 }
 0x193   :  { %1810 = vmatpush3.bf16.msra.mxu1 %v1793_v9 }
 0x194   :  { %1794 = vmatpush3.bf16.msra.mxu0 %v1793_v9 }
 0x20e   :  { %v441_v41 = vpop.f32.mrb[0].mxu0 }
 0x20f   :  { %v442_v18 = vadd.f32 %v441_v41, %v2482_v14  ;;  %v443_v19 = vpop.f32.mrb[1].mxu0 }
 0x210   :  { %v444_v45 = vadd.f32 %v443_v19, %v2484_v15 }
 0x211   :  { %v568_v42 = vmul.f32 0.70710677, %v442_v18  ;;  %v2490_v38 = vmul.f32 0.5, %v442_v18 }
 0x212   :  { %v569_v16 = vmul.f32 0.70710677, %v444_v45  ;;  %v447_v26 = vpop.f32.mrb[2].mxu0  ;;  %v2492_v43 = vmul.f32 0.5, %v444_v45 }
 0x213   :  { %v664_v27 = vand.u32 2147483647, %v568_v42  ;;  %v448_v59 = vadd.f32 %v447_v26, %v2482_v14  ;;  %v449_v60 = vpop.f32.mrb[3].mxu0  ;;  %vm600_vm1 = vcmp.ge.f32.partialorder %v568_v42, 0.0 }
 0x214   :  { %v665_v30 = vand.u32 2147483647, %v569_v16  ;;  %v450_v31 = vadd.f32 %v449_v60, %v2484_v15  ;;  %vm601_vm2 = vcmp.ge.f32.partialorder %v569_v16, 0.0  ;;  %v2504_v63 = vsel %vm600_vm1, 1.0, %v3304_v62 }
 0x215   :  { %v696_v52 = vmul.f32 0.3275911, %v664_v27  ;;  %v1112_v22 = vsub.f32 0.0, %v664_v27  ;;  %v570_v53 = vmul.f32 0.70710677, %v448_v59  ;;  %v2510_v28 = vsel %vm601_vm2, 1.0, %v3304_v62 }
 0x216   :  { %v571_v54 = vmul.f32 0.70710677, %v450_v31  ;;  %v453_v33 = vpop.f32.mrb[4].mxu0  ;;  %v697_v34 = vmul.f32 0.3275911, %v665_v30  ;;  %v1113_v20 = vsub.f32 0.0, %v665_v30 }
 0x217   :  { %v728_v32 = vadd.f32 1.0, %v696_v52  ;;  %v666_v21 = vand.u32 2147483647, %v570_v53  ;;  %v455_v35 = vpop.f32.mrb[5].mxu0  ;;  %v1144_v55 = vmul.f32 %v1112_v22, %v664_v27  ;;  %v454_v47 = vadd.f32 %v453_v33, %v2482_v14 }
 0x218   :  { %v667_v46 = vand.u32 2147483647, %v571_v54  ;;  %v729_v0 = vadd.f32 1.0, %v697_v34  ;;  %v1145_v49 = vmul.f32 %v1113_v20, %v665_v30  ;;  %v2496_v50 = vadd.f32 %v455_v35, %v2484_v15 }
 0x219   :  { %1848 = vrcp.f32 %v728_v32  ;;  %v1114_v39 = vsub.f32 0.0, %v666_v21  ;;  %v698_v51 = vmul.f32 0.3275911, %v666_v21  ;;  %v572_v56 = vmul.f32 0.70710677, %v454_v47 }
 0x21a   :  { %v459_v40 = vpop.f32.mrb[6].mxu0  ;;  %v1115_v25 = vsub.f32 0.0, %v667_v46  ;;  %v1176_v1 = vmul.f32 1.442695, %v1144_v55  ;;  %vm602_vm3 = vcmp.ge.f32.partialorder %v570_v53, 0.0  ;;  %v2512_v29 = vmul.f32 0.5, %v448_v59 }
 0x21b   :  { %v461_v48 = vpop.f32.mrb[7].mxu0  ;;  %v1146_v24 = vmul.f32 %v1114_v39, %v666_v21  ;;  %v2499_v57 = vmul.f32 0.70710677, %v2496_v50  ;;  %v460_v58 = vadd.f32 %v459_v40, %v2482_v14  ;;  %v699_v2 = vmul.f32 0.3275911, %v667_v46 }
 0x21c   :  { %v668_v10 = vand.u32 2147483647, %v572_v56  ;;  %v1178_v36 = vmul.f32 1.442695, %v1145_v49  ;;  %v2514_v4 = vmul.f32 0.5, %v450_v31  ;;  %v2517_v5 = vsel %vm602_vm3, 1.0, %v3304_v62 }
 0x21d   :  { %v730_v11 = vadd.f32 1.0, %v698_v51  ;;  %v1180_v6 = vmul.f32 1.442695, %v1146_v24  ;;  %v1147_v7 = vmul.f32 %v1115_v25, %v667_v46  ;;  %1850 = vrcp.f32 %v729_v0 }
 0x21e   :  { %v465_v61 = vpop.f32.mrb[8].mxu0  ;;  %vm603_vm4 = vcmp.ge.f32.partialorder %v571_v54, 0.0  ;;  %v669_v8 = vand.u32 2147483647, %v2499_v57  ;;  %v574_v23 = vmul.f32 0.70710677, %v460_v58  ;;  %1852 = vpow2.f32 %v1176_v1 }
 0x21f   :  { %v2506_v3 = vpop.f32.mrb[9].mxu0  ;;  %v731_v37 = vadd.f32 1.0, %v699_v2  ;;  %v700_v12 = vmul.f32 0.3275911, %v668_v10  ;;  %v462_v17 = vadd.f32 %v461_v48, %v2484_v15  ;;  %1854 = vpow2.f32 %v1178_v36 }
 0x220   :  { %v1116_v18 = vsub.f32 0.0, %v668_v10  ;;  %v2527_v19 = vadd.f32 %v465_v61, %v2482_v14  ;;  %1856 = vrcp.f32 %v730_v11  ;;  %v2530_v45 = vsel %vm603_vm4, 1.0, %v3304_v62 }
 0x221   :  { %v1182_v42 = vmul.f32 1.442695, %v1147_v7  ;;  %v670_v16 = vand.u32 2147483647, %v574_v23  ;;  %1858 = vpow2.f32 %v1180_v6  ;;  %vm604_vm5 = vcmp.ge.f32.partialorder %v572_v56, 0.0 }
 0x222   :  { %v471_v9 = vpop.f32.mrb[10].mxu0  ;;  %v1117_v27 = vsub.f32 0.0, %v669_v8  ;;  %1860 = vrcp.f32 %v731_v37  ;;  %v732_v60 = vadd.f32 1.0, %v700_v12  ;;  %v701_v30 = vmul.f32 0.3275911, %v669_v8 }
 0x223   :  { %v2520_v44 = vpop.eup %1848  ;;  %v2523_v13 = vpop.f32.mrb[11].mxu0  ;;  %v2534_v31 = vmul.f32 0.70710677, %v462_v17  ;;  %v1148_v53 = vmul.f32 %v1116_v18, %v668_v10  ;;  %v1118_v32 = vsub.f32 0.0, %v670_v16  ;;  %v2540_v54 = vmul.f32 0.70710677, %v2527_v19 }
 0x224   :  { %v824_v41 = vmul.f32 1.0614054, %v2520_v44  ;;  %1862 = vpow2.f32 %v1182_v42  ;;  %v2542_v33 = vmul.f32 0.5, %v454_v47  ;;  %v2545_v34 = vsel %vm604_vm5, 1.0, %v3304_v62 }
 0x225   :  { %3319 = vst [vmem:[#allocation6_spill] sm:$0xff] %v2545_v34  ;;  %v671_v20 = vand.u32 2147483647, %v2534_v31  ;;  %v1149_v35 = vmul.f32 %v1117_v27, %v669_v8  ;;  %vm606_vm6 = vcmp.ge.f32.partialorder %v574_v23, 0.0  ;;  %v672_v55 = vand.u32 2147483647, %v2540_v54 }
 0x226   :  { %v856_v26 = vadd.f32 -1.4531521, %v824_v41  ;;  %v2532_v59 = vpop.f32.mrb[12].mxu0  ;;  %3318 = vst [vmem:[#allocation5_spill] sm:$0xff] %v2542_v33  ;;  %1864 = vrcp.f32 %v732_v60  ;;  %v733_v39 = vadd.f32 1.0, %v701_v30  ;;  %v2549_v40 = vmul.f32 0.5, %v460_v58 }
 0x227   :  { %v2536_v52 = vpop.f32.mrb[13].mxu0  ;;  %v702_v46 = vmul.f32 0.3275911, %v670_v16  ;;  %v2553_v0 = vpop.eup %1850  ;;  %v1184_v49 = vmul.f32 1.442695, %v1148_v53  ;;  %v1150_v51 = vmul.f32 %v1118_v32, %v670_v16  ;;  %v1119_v24 = vsub.f32 0.0, %v671_v20 }
 0x228   :  { %v888_v22 = vmul.f32 %v2520_v44, %v856_v26  ;;  %3320 = vst [vmem:[#allocation7_spill] sm:$0xff] %v2549_v40  ;;  %v1853_v56 = vpop.eup %1852  ;;  %v2559_v1 = vsel %vm606_vm6, 1.0, %v3304_v62  ;;  %v703_v61 = vmul.f32 0.3275911, %v671_v20  ;;  %v1120_v2 = vsub.f32 0.0, %v672_v55 }
 0x229   :  { %3321 = vst [vmem:[#allocation8_spill] sm:$0xff] %v2559_v1  ;;  %v2563_v58 = vadd.f32 %v2506_v3, %v2484_v15  ;;  %v2565_v10 = vpop.eup %1854  ;;  %v1186_v11 = vmul.f32 1.442695, %v1149_v35  ;;  %v2567_v6 = vmul.f32 0.5, %v462_v17  ;;  %v472_v7 = vadd.f32 %v471_v9, %v2482_v14 }
 0x22a   :  { %v920_v21 = vadd.f32 1.4214138, %v888_v22  ;;  %v2551_v48 = vpop.f32.mrb[14].mxu0  ;;  %v2572_v23 = vpop.eup %1856  ;;  %1866 = vrcp.f32 %v733_v39  ;;  %v734_v37 = vadd.f32 1.0, %v702_v46  ;;  %v704_v12 = vmul.f32 0.3275911, %v672_v55 }
 0x22b   :  { %v2556_v25 = vpop.f32.mrb[15].mxu0  ;;  %3322 = vst [vmem:[#allocation9_spill] sm:$0xff] %v2567_v6  ;;  %v577_v41 = vmul.f32 0.70710677, %v2563_v58  ;;  %v2577_v3 = vpop.eup %1858  ;;  %1868 = vpow2.f32 %v1184_v49  ;;  %v1188_v17 = vmul.f32 1.442695, %v1150_v51  ;;  %v1151_v16 = vmul.f32 %v1119_v24, %v671_v20 }
 0x22c   :  { %v952_v47 = vmul.f32 %v2520_v44, %v920_v21  ;;  %v2580_v26 = vpop.eup %1860  ;;  %v735_v9 = vadd.f32 1.0, %v703_v61  ;;  %v1152_v27 = vmul.f32 %v1120_v2, %v672_v55  ;;  %v2582_v30 = vmul.f32 0.70710677, %v472_v7 }
 0x22d   :  { %v673_v60 = vand.u32 2147483647, %v577_v41  ;;  %1870 = vpow2.f32 %v1186_v11  ;;  %vm607_vm7 = vcmp.ge.f32.partialorder %v2534_v31, 0.0  ;;  %v2587_v53 = vadd.f32 %v2523_v13, %v2484_v15 }
 0x22e   :  { %v984_v36 = vadd.f32 -0.28449672, %v952_v47  ;;  %v2570_v8 = vpop.f32.mrb[16].mxu0  ;;  %v2591_v21 = vpop.eup %1862  ;;  %1872 = vrcp.f32 %v734_v37  ;;  %v736_v20 = vadd.f32 1.0, %v704_v12  ;;  %v674_v55 = vand.u32 2147483647, %v2582_v30 }
 0x22f   :  { %v2575_v18 = vpop.f32.mrb[17].mxu0  ;;  %v1121_v35 = vsub.f32 0.0, %v673_v60  ;;  %1874 = vpow2.f32 %v1188_v17  ;;  %v1190_v46 = vmul.f32 1.442695, %v1151_v16  ;;  %v579_v47 = vmul.f32 0.70710677, %v2587_v53 }
 0x230   :  { %v1016_v42 = vmul.f32 %v2520_v44, %v984_v36  ;;  %v2598_v51 = vpop.eup %1864  ;;  %1876 = vrcp.f32 %v735_v9  ;;  %vm608_vm8 = vcmp.ge.f32.partialorder %v2540_v54, 0.0  ;;  %v1192_v13 = vmul.f32 1.442695, %v1152_v27 }
 0x231   :  { %v705_v24 = vmul.f32 0.3275911, %v673_v60  ;;  %v1122_v2 = vsub.f32 0.0, %v674_v55  ;;  %v675_v36 = vand.u32 2147483647, %v579_v47  ;;  %v2603_v11 = vadd.f32 %v2532_v59, %v2482_v14 }
 0x232   :  { %v1048_v22 = vadd.f32 0.2548296, %v1016_v42  ;;  %v2589_v32 = vpop.f32.mrb[18].mxu0  ;;  %v2610_v37 = vsel %vm607_vm7, 1.0, %v3304_v62  ;;  %v2613_v12 = vmul.f32 0.5, %v2527_v19  ;;  %1878 = vrcp.f32 %v736_v20 }
 0x233   :  { %v2596_v49 = vpop.f32.mrb[19].mxu0  ;;  %3323 = vst [vmem:[#allocation10_spill] sm:$0xff] %v2610_v37  ;;  %v1153_v54 = vmul.f32 %v1121_v35, %v673_v60  ;;  %1880 = vpow2.f32 %v1190_v46  ;;  %vm609_vm9 = vcmp.ge.f32.partialorder %v577_v41, 0.0  ;;  %v706_v59 = vmul.f32 0.3275911, %v674_v55 }
 0x234   :  { %v1080_v39 = vmul.f32 %v2520_v44, %v1048_v22  ;;  %3324 = vst [vmem:[#allocation11_spill] sm:$0xff] %v2613_v12  ;;  %v2620_v17 = vpop.eup %1866  ;;  %v737_v9 = vadd.f32 1.0, %v705_v24  ;;  %v1123_v31 = vsub.f32 0.0, %v675_v36  ;;  %v580_v27 = vmul.f32 0.70710677, %v2603_v11 }
 0x235   :  { %v2623_v22 = vpop.eup %1868  ;;  %1882 = vpow2.f32 %v1192_v13  ;;  %v2626_v19 = vmul.f32 0.5, %v2563_v58  ;;  %v2628_v60 = vmul.f32 0.5, %v472_v7  ;;  %v1154_v20 = vmul.f32 %v1122_v2, %v674_v55 }
 0x236   :  { %v1240_v61 = vmul.f32 %v1853_v56, %v1080_v39  ;;  %v2605_v44 = vpop.f32.mrb[20].mxu0  ;;  %v2618_v56 = vsel %vm608_vm8, 1.0, %v3304_v62  ;;  %3326 = vst [vmem:[#allocation13_spill] sm:$0xff] %v2623_v22  ;;  %v2633_v41 = vsel %vm609_vm9, 1.0, %v3304_v62  ;;  %v1194_v39 = vmul.f32 1.442695, %v1153_v54 }
 0x237   :  { %v2615_v42 = vpop.f32.mrb[21].mxu0  ;;  %3325 = vst [vmem:[#allocation12_spill] sm:$0xff] %v2618_v56  ;;  %3327 = vst [vmem:[#allocation14_spill] sm:$0xff] %v2626_v19  ;;  %v676_v46 = vand.u32 2147483647, %v580_v27  ;;  %v480_v24 = vadd.f32 %v2536_v52, %v2484_v15  ;;  %v2639_v12 = vpop.eup %1870  ;;  %vm610_vm10 = vcmp.ge.f32.partialorder %v2582_v30, 0.0  ;;  %1884 = vrcp.f32 %v737_v9 }
 0x238   :  { %v1272_v16 = vsub.f32 1.0, %v1240_v61  ;;  %3328 = vst [vmem:[#allocation15_spill] sm:$0xff] %v2628_v60  ;;  %3329 = vst [vmem:[#allocation16_spill] sm:$0xff] %v2633_v41  ;;  %v738_v58 = vadd.f32 1.0, %v706_v59  ;;  %vm611_vm11 = vcmp.ge.f32.partialorder %v579_v47, 0.0  ;;  %v2642_v55 = vpop.eup %1872  ;;  %v1155_v2 = vmul.f32 %v1123_v31, %v675_v36 }
 0x239   :  { %3330 = vst [vmem:[#allocation17_spill] sm:$0xff] %v2639_v12  ;;  %v707_v7 = vmul.f32 0.3275911, %v675_v36  ;;  %v581_v54 = vmul.f32 0.70710677, %v480_v24  ;;  %v2645_v62 = vpop.eup %1874  ;;  %v1124_v52 = vsub.f32 0.0, %v676_v46  ;;  %v484_v19 = vadd.f32 %v2551_v48, %v2482_v14 }
 0x23a   :  { %v2630_v35 = vpop.f32.mrb[22].mxu0  ;;  %v1304_v13 = vmul.f32 %v1272_v16, %v2504_v63  ;;  %3331 = vst [vmem:[#allocation18_spill] sm:$0xff] %v2645_v62  ;;  %v1196_v60 = vmul.f32 1.442695, %v1154_v20  ;;  %v486_v40 = vadd.f32 %v2556_v25, %v2484_v15  ;;  %v2653_v56 = vpop.eup %1876  ;;  %1886 = vpow2.f32 %v1194_v39 }
 0x23b   :  { %v2637_v61 = vpop.f32.mrb[23].mxu0  ;;  %v3332_v41 = vmov -1.0   ;;  %v2661_v36 = vmul.f32 0.5, %v2587_v53  ;;  %v677_v16 = vand.u32 2147483647, %v581_v54  ;;  %1888 = vrcp.f32 %v738_v58 }
 0x23c   :  { %v2658_v63 = vsel %vm610_vm10, 1.0, %v3332_v41  ;;  %v2667_v48 = vsel %vm611_vm11, 1.0, %v3332_v41  ;;  %v739_v25 = vadd.f32 1.0, %v707_v7  ;;  %v582_v31 = vmul.f32 0.70710677, %v484_v19  ;;  %v2669_v20 = vpop.eup %1878 }
 0x23d   :  { %3333 = vst [vmem:[#allocation19_spill] sm:$0xff] %v2658_v63  ;;  %3334 = vst [vmem:[#allocation20_spill] sm:$0xff] %v2661_v36  ;;  %v1336_v39 = vadd.f32 1.0, %v1304_v13  ;;  %v1198_v6 = vmul.f32 1.442695, %v1155_v2  ;;  %vm612_vm12 = vcmp.ge.f32.partialorder %v580_v27, 0.0  ;;  %v2671_v63 = vpop.eup %1880  ;;  %1890 = vpow2.f32 %v1196_v60 }
 0x23e   :  { %v2651_v59 = vpop.f32.mrb[24].mxu0  ;;  %3335 = vst [vmem:[#allocation21_spill] sm:$0xff] %v2667_v48  ;;  %3336 = vst [vmem:[#allocation22_spill] sm:$0xff] %v2669_v20  ;;  %v708_v30 = vmul.f32 0.3275911, %v676_v46  ;;  %v1156_v53 = vmul.f32 %v1124_v52, %v676_v46  ;;  %vm613_vm13 = vcmp.ge.f32.partialorder %v581_v54, 0.0  ;;  %v490_v7 = vadd.f32 %v2570_v8, %v2482_v14 }
 0x23f   :  { %v2663_v9 = vpop.f32.mrb[25].mxu0  ;;  %3337 = vst [vmem:[#allocation23_spill] sm:$0xff] %v2671_v63  ;;  %v678_v36 = vand.u32 2147483647, %v582_v31  ;;  %v583_v1 = vmul.f32 0.70710677, %v486_v40  ;;  %v2679_v13 = vpop.eup %1882  ;;  %1892 = vrcp.f32 %v739_v25  ;;  %v2689_v54 = vmul.f32 %v1336_v39, %v2490_v38 }
 0x240   :  { %v709_v47 = vmul.f32 0.3275911, %v677_v16  ;;  %v1125_v58 = vsub.f32 0.0, %v677_v16  ;;  %3338 = vst [vmem:[#allocation24_spill] sm:$0xff] %v2679_v13  ;;  %v2682_v2 = vmul.f32 0.5, %v2603_v11  ;;  %v2686_v60 = vsel %vm612_vm12, 1.0, %v3332_v41 }
 0x241   :  { %3340 = vst [vmem:[#allocation26_spill] sm:$0xff] %v2686_v60  ;;  %v679_v46 = vand.u32 2147483647, %v583_v1  ;;  %1894 = vpow2.f32 %v1198_v6  ;;  %v740_v52 = vadd.f32 1.0, %v708_v30  ;;  %v2691_v62 = vmul.f32 0.5, %v480_v24 }
 0x242   :  { %v2673_v37 = vpop.f32.mrb[26].mxu0  ;;  %3339 = vst [vmem:[#allocation25_spill] sm:$0xff] %v2682_v2  ;;  %v1200_v8 = vmul.f32 1.442695, %v1156_v53  ;;  %v2694_v63 = vsel %vm613_vm13, 1.0, %v3332_v41  ;;  %vm614_vm14 = vcmp.ge.f32.partialorder %v582_v31, 0.0  ;;  %v2698_v2 = vpop.eup %1884  ;;  %v1157_v60 = vmul.f32 %v1125_v58, %v677_v16 }
 0x243   :  { %v2677_v48 = vpop.f32.mrb[27].mxu0  ;;  %3341 = vst [vmem:[#allocation27_spill] sm:$0xff] %v2691_v62  ;;  %3342 = vst [vmem:[#allocation28_spill] sm:$0xff] %v2694_v63  ;;  %v1126_v25 = vsub.f32 0.0, %v678_v36  ;;  %v741_v27 = vadd.f32 1.0, %v709_v47  ;;  %v492_v38 = vadd.f32 %v2575_v18, %v2484_v15  ;;  %v2704_v24 = vmul.f32 0.5, %v484_v19 }
 0x244   :  { %3343 = vst [vmem:[#allocation29_spill] sm:$0xff] %v2698_v2  ;;  %v584_v13 = vmul.f32 0.70710677, %v490_v7  ;;  %v710_v39 = vmul.f32 0.3275911, %v678_v36  ;;  %v1127_v30 = vsub.f32 0.0, %v679_v46  ;;  %v496_v53 = vadd.f32 %v2589_v32, %v2482_v14  ;;  %v2708_v62 = vpop.eup %1886 }
 0x245   :  { %3344 = vst [vmem:[#allocation30_spill] sm:$0xff] %v2704_v24  ;;  %3345 = vst [vmem:[#allocation31_spill] sm:$0xff] %v2708_v62  ;;  %1896 = vrcp.f32 %v740_v52  ;;  %v2710_v63 = vmul.f32 0.5, %v486_v40  ;;  %v585_v16 = vmul.f32 0.70710677, %v492_v38  ;;  %v2712_v58 = vpop.eup %1888  ;;  %v2716_v18 = vsel %vm614_vm14, 1.0, %v3332_v41 }
 0x246   :  { %v2696_v11 = vpop.f32.mrb[28].mxu0  ;;  %v680_v47 = vand.u32 2147483647, %v584_v13  ;;  %3347 = vst [vmem:[#allocation33_spill] sm:$0xff] %v2712_v58  ;;  %1898 = vpow2.f32 %v1200_v8  ;;  %3348 = vst [vmem:[#allocation34_spill] sm:$0xff] %v2716_v18  ;;  %v1158_v19 = vmul.f32 %v1126_v25, %v678_v36  ;;  %vm615_vm15 = vcmp.ge.f32.partialorder %v583_v1, 0.0 }
 0x247   :  { %v2702_v6 = vpop.f32.mrb[29].mxu0  ;;  %3346 = vst [vmem:[#allocation32_spill] sm:$0xff] %v2710_v63  ;;  %1900 = vrcp.f32 %v741_v27  ;;  %v1202_v32 = vmul.f32 1.442695, %v1157_v60  ;;  %v711_v33 = vmul.f32 0.3275911, %v679_v46  ;;  %v2722_v40 = vpop.eup %1890  ;;  %v1159_v34 = vmul.f32 %v1127_v30, %v679_v46 }
 0x248   :  { %v1128_v62 = vsub.f32 0.0, %v680_v47  ;;  %3349 = vst [vmem:[#allocation35_spill] sm:$0xff] %v2722_v40  ;;  %v742_v63 = vadd.f32 1.0, %v710_v39  ;;  %v681_v58 = vand.u32 2147483647, %v585_v16  ;;  %v2725_v31 = vsel %vm615_vm15, 1.0, %v3332_v41 }
 0x249   :  { %v586_v8 = vmul.f32 0.70710677, %v496_v53  ;;  %3350 = vst [vmem:[#allocation36_spill] sm:$0xff] %v2725_v31  ;;  %v712_v18 = vmul.f32 0.3275911, %v680_v47  ;;  %v498_v1 = vadd.f32 %v2596_v49, %v2484_v15  ;;  %v502_v36 = vadd.f32 %v2605_v44, %v2482_v14  ;;  %v2731_v60 = vpop.eup %1892 }
 0x24a   :  { %v2718_v24 = vpop.f32.mrb[30].mxu0  ;;  %3351 = vst [vmem:[#allocation37_spill] sm:$0xff] %v2731_v60  ;;  %v1204_v25 = vmul.f32 1.442695, %v1158_v19  ;;  %v1160_v27 = vmul.f32 %v1128_v62, %v680_v47  ;;  %v1129_v22 = vsub.f32 0.0, %v681_v58  ;;  %1902 = vpow2.f32 %v1202_v32 }
 0x24b   :  { %v2720_v52 = vpop.f32.mrb[31].mxu0  ;;  %v682_v40 = vand.u32 2147483647, %v586_v8  ;;  %v2733_v39 = vpop.eup %1894  ;;  %v743_v46 = vadd.f32 1.0, %v711_v33  ;;  %v2735_v30 = vmul.f32 0.5, %v490_v7  ;;  %1904 = vrcp.f32 %v742_v63 }
 0x24c   :  { %v713_v31 = vmul.f32 0.3275911, %v681_v58  ;;  %v1206_v12 = vmul.f32 1.442695, %v1159_v34  ;;  %vm616_vm1 = vcmp.ge.f32.partialorder %v584_v13, 0.0  ;;  %v744_v20 = vadd.f32 1.0, %v712_v18 }
 0x24d   :  { %3352 = vst [vmem:[#allocation38_spill] sm:$0xff] %v2735_v30  ;;  %v1130_v49 = vsub.f32 0.0, %v682_v40  ;;  %v2737_v2 = vmul.f32 0.5, %v492_v38  ;;  %v587_v44 = vmul.f32 0.70710677, %v498_v1  ;;  %1906 = vpow2.f32 %v1204_v25 }
 0x24e   :  { %v588_v60 = vmul.f32 0.70710677, %v502_v36  ;;  %v1208_v62 = vmul.f32 1.442695, %v1160_v27  ;;  %vm617_vm2 = vcmp.ge.f32.partialorder %v585_v16, 0.0  ;;  %v1161_v47 = vmul.f32 %v1129_v22, %v681_v58 }
 0x24f   :  { %3353 = vst [vmem:[#allocation39_spill] sm:$0xff] %v2737_v2  ;;  %v2739_v19 = vpop.eup %1896  ;;  %1908 = vrcp.f32 %v743_v46  ;;  %v745_v33 = vadd.f32 1.0, %v713_v31  ;;  %v714_v7 = vmul.f32 0.3275911, %v682_v40  ;;  %v1162_v32 = vmul.f32 %v1130_v49, %v682_v40 }
 0x250   :  { %v2741_v30 = vpop.eup %1898  ;;  %1910 = vpow2.f32 %v1206_v12  ;;  %v2745_v34 = vsel %vm616_vm1, 1.0, %v3332_v41  ;;  %v2747_v63 = vmul.f32 0.5, %v496_v53  ;;  %v683_v38 = vand.u32 2147483647, %v587_v44 }
 0x251   :  { %3354 = vst [vmem:[#allocation40_spill] sm:$0xff] %v2741_v30  ;;  %3355 = vst [vmem:[#allocation41_spill] sm:$0xff] %v2745_v34  ;;  %v2749_v18 = vpop.eup %1900  ;;  %1912 = vrcp.f32 %v744_v20  ;;  %v2752_v22 = vsel %vm617_vm2, 1.0, %v3332_v41  ;;  %vm618_vm3 = vcmp.ge.f32.partialorder %v586_v8, 0.0  ;;  %v684_v16 = vand.u32 2147483647, %v588_v60 }
 0x252   :  { %3356 = vst [vmem:[#allocation42_spill] sm:$0xff] %v2747_v63  ;;  %3357 = vst [vmem:[#allocation43_spill] sm:$0xff] %v2752_v22  ;;  %1914 = vpow2.f32 %v1208_v62  ;;  %v1210_v58 = vmul.f32 1.442695, %v1161_v47  ;;  %v504_v12 = vadd.f32 %v2615_v42, %v2484_v15  ;;  %v508_v13 = vadd.f32 %v2630_v35, %v2482_v14 }
 0x253   :  { %1916 = vrcp.f32 %v745_v33  ;;  %v746_v53 = vadd.f32 1.0, %v714_v7  ;;  %v1212_v40 = vmul.f32 1.442695, %v1162_v32  ;;  %vm619_vm4 = vcmp.ge.f32.partialorder %v587_v44, 0.0 }
 0x254   :  { %v715_v31 = vmul.f32 0.3275911, %v683_v38  ;;  %v1131_v25 = vsub.f32 0.0, %v683_v38  ;;  %vm620_vm5 = vcmp.ge.f32.partialorder %v588_v60, 0.0  ;;  %v589_v20 = vmul.f32 0.70710677, %v504_v12  ;;  %v2758_v27 = vpop.eup %1902 }
 0x255   :  { %3358 = vst [vmem:[#allocation44_spill] sm:$0xff] %v2758_v27  ;;  %v716_v46 = vmul.f32 0.3275911, %v684_v16  ;;  %v1132_v49 = vsub.f32 0.0, %v684_v16  ;;  %v590_v62 = vmul.f32 0.70710677, %v508_v13  ;;  %v510_v47 = vadd.f32 %v2637_v61, %v2484_v15  ;;  %v2762_v42 = vpop.eup %1904 }
 0x256   :  { %1918 = vpow2.f32 %v1210_v58  ;;  %v2766_v35 = vsel %vm618_vm3, 1.0, %v3332_v41  ;;  %v2768_v33 = vmul.f32 0.5, %v498_v1  ;;  %v685_v7 = vand.u32 2147483647, %v589_v20 }
 0x257   :  { %3359 = vst [vmem:[#allocation45_spill] sm:$0xff] %v2766_v35  ;;  %1920 = vrcp.f32 %v746_v53  ;;  %v2772_v32 = vsel %vm619_vm4, 1.0, %v3332_v41  ;;  %v2774_v63 = vmul.f32 0.5, %v502_v36  ;;  %v686_v2 = vand.u32 2147483647, %v590_v62  ;;  %v2776_v34 = vpop.eup %1906 }
 0x258   :  { %3360 = vst [vmem:[#allocation46_spill] sm:$0xff] %v2768_v33  ;;  %3361 = vst [vmem:[#allocation47_spill] sm:$0xff] %v2772_v32  ;;  %1922 = vpow2.f32 %v1212_v40  ;;  %v747_v61 = vadd.f32 1.0, %v715_v31  ;;  %v1163_v58 = vmul.f32 %v1131_v25, %v683_v38  ;;  %v2780_v8 = vsel %vm620_vm5, 1.0, %v3332_v41 }
 0x259   :  { %3362 = vst [vmem:[#allocation48_spill] sm:$0xff] %v2774_v63  ;;  %3363 = vst [vmem:[#allocation49_spill] sm:$0xff] %v2776_v34  ;;  %v2782_v1 = vpop.eup %1908  ;;  %v748_v33 = vadd.f32 1.0, %v716_v46  ;;  %v1164_v53 = vmul.f32 %v1132_v49, %v684_v16  ;;  %v717_v35 = vmul.f32 0.3275911, %v685_v7  ;;  %v2786_v36 = vmul.f32 0.5, %v504_v12 }
 0x25a   :  { %3364 = vst [vmem:[#allocation50_spill] sm:$0xff] %v2780_v8  ;;  %v591_v44 = vmul.f32 0.70710677, %v510_v47  ;;  %v2784_v22 = vpop.eup %1910  ;;  %v1133_v63 = vsub.f32 0.0, %v685_v7  ;;  %v514_v40 = vadd.f32 %v2651_v59, %v2482_v14  ;;  %v516_v38 = vadd.f32 %v2663_v9, %v2484_v15 }
 0x25b   :  { %3365 = vst [vmem:[#allocation51_spill] sm:$0xff] %v2784_v22  ;;  %3366 = vst [vmem:[#allocation52_spill] sm:$0xff] %v2786_v36  ;;  %v2792_v60 = vpop.eup %1912  ;;  %v2794_v31 = vmul.f32 0.5, %v508_v13  ;;  %v1134_v25 = vsub.f32 0.0, %v686_v2  ;;  %v825_v16 = vmul.f32 1.0614054, %v2553_v0  ;;  %1924 = vrcp.f32 %v747_v61 }
 0x25c   :  { %v687_v46 = vand.u32 2147483647, %v591_v44  ;;  %v2797_v49 = vpop.eup %1914  ;;  %v1214_v12 = vmul.f32 1.442695, %v1163_v58  ;;  %v718_v36 = vmul.f32 0.3275911, %v686_v2  ;;  %v1165_v34 = vmul.f32 %v1133_v63, %v685_v7 }
 0x25d   :  { %3367 = vst [vmem:[#allocation53_spill] sm:$0xff] %v2794_v31  ;;  %3368 = vst [vmem:[#allocation54_spill] sm:$0xff] %v2797_v49  ;;  %v2799_v8 = vmul.f32 0.5, %v510_v47  ;;  %v2801_v32 = vpop.eup %1916  ;;  %v1216_v59 = vmul.f32 1.442695, %v1164_v53  ;;  %vm621_vm6 = vcmp.ge.f32.partialorder %v589_v20, 0.0  ;;  %1926 = vrcp.f32 %v748_v33 }
 0x25e   :  { %v749_v9 = vadd.f32 1.0, %v717_v35  ;;  %vm622_vm7 = vcmp.ge.f32.partialorder %v590_v62, 0.0  ;;  %v1135_v13 = vsub.f32 0.0, %v687_v46  ;;  %v592_v31 = vmul.f32 0.70710677, %v514_v40 }
 0x25f   :  { %3369 = vst [vmem:[#allocation55_spill] sm:$0xff] %v2799_v8  ;;  %v593_v22 = vmul.f32 0.70710677, %v516_v38  ;;  %v1166_v30 = vmul.f32 %v1134_v25, %v686_v2  ;;  %vm623_vm8 = vcmp.ge.f32.partialorder %v591_v44, 0.0  ;;  %v857_v27 = vadd.f32 -1.4531521, %v825_v16 }
 0x260   :  { %v2803_v49 = vpop.eup %1918  ;;  %1928 = vpow2.f32 %v1214_v12  ;;  %v750_v61 = vadd.f32 1.0, %v718_v36  ;;  %v719_v47 = vmul.f32 0.3275911, %v687_v46  ;;  %v688_v58 = vand.u32 2147483647, %v592_v31 }
 0x261   :  { %v2805_v8 = vpop.eup %1920  ;;  %1930 = vpow2.f32 %v1216_v59  ;;  %v2809_v35 = vsel %vm621_vm6, 1.0, %v3332_v41  ;;  %v2813_v63 = vsel %vm622_vm7, 1.0, %v3332_v41  ;;  %v689_v2 = vand.u32 2147483647, %v593_v22 }
 0x262   :  { %3370 = vst [vmem:[#allocation56_spill] sm:$0xff] %v2809_v35  ;;  %3371 = vst [vmem:[#allocation57_spill] sm:$0xff] %v2813_v63  ;;  %v2815_v33 = vpop.eup %1922  ;;  %1932 = vrcp.f32 %v749_v9  ;;  %v1218_v7 = vmul.f32 1.442695, %v1165_v34  ;;  %v2818_v53 = vsel %vm623_vm8, 1.0, %v3332_v41  ;;  %v1167_v44 = vmul.f32 %v1135_v13, %v687_v46 }
 0x263   :  { %3372 = vst [vmem:[#allocation58_spill] sm:$0xff] %v2818_v53  ;;  %v1220_v36 = vmul.f32 1.442695, %v1166_v30  ;;  %v889_v25 = vmul.f32 %v2553_v0, %v857_v27  ;;  %v520_v20 = vadd.f32 %v2673_v37, %v2482_v14  ;;  %v522_v62 = vadd.f32 %v2677_v48, %v2484_v15 }
 0x264   :  { %1934 = vrcp.f32 %v750_v61  ;;  %v751_v16 = vadd.f32 1.0, %v719_v47  ;;  %vm624_vm9 = vcmp.ge.f32.partialorder %v592_v31, 0.0  ;;  %v720_v12 = vmul.f32 0.3275911, %v688_v58 }
 0x265   :  { %v1136_v59 = vsub.f32 0.0, %v688_v58  ;;  %v1137_v9 = vsub.f32 0.0, %v689_v2  ;;  %v921_v34 = vadd.f32 1.4214138, %v889_v25  ;;  %v2825_v63 = vmul.f32 0.70710677, %v520_v20  ;;  %v2827_v53 = vpop.eup %1924 }
 0x266   :  { %1936 = vpow2.f32 %v1218_v7  ;;  %v1222_v30 = vmul.f32 1.442695, %v1167_v44  ;;  %v2829_v27 = vmul.f32 0.5, %v514_v40  ;;  %v2831_v46 = vmul.f32 0.70710677, %v522_v62 }
 0x267   :  { %1938 = vpow2.f32 %v1220_v36  ;;  %vm625_vm10 = vcmp.ge.f32.partialorder %v593_v22, 0.0  ;;  %v721_v37 = vmul.f32 0.3275911, %v689_v2  ;;  %v953_v48 = vmul.f32 %v2553_v0, %v921_v34  ;;  %v2841_v7 = vpop.eup %1926 }
 0x268   :  { %3373 = vst [vmem:[#allocation59_spill] sm:$0xff] %v2829_v27  ;;  %1940 = vrcp.f32 %v751_v16  ;;  %v2836_v13 = vsel %vm624_vm9, 1.0, %v3332_v41  ;;  %v2838_v61 = vmul.f32 0.5, %v516_v38  ;;  %v690_v47 = vand.u32 2147483647, %v2825_v63 }
 0x269   :  { %3374 = vst [vmem:[#allocation60_spill] sm:$0xff] %v2836_v13  ;;  %v752_v40 = vadd.f32 1.0, %v720_v12  ;;  %v1168_v44 = vmul.f32 %v1136_v59, %v688_v58  ;;  %v1169_v25 = vmul.f32 %v1137_v9, %v689_v2  ;;  %v985_v27 = vadd.f32 -0.28449672, %v953_v48 }
 0x26a   :  { %3375 = vst [vmem:[#allocation61_spill] sm:$0xff] %v2838_v61  ;;  %v2843_v36 = vpop.eup %1928  ;;  %1942 = vpow2.f32 %v1222_v30  ;;  %v2846_v22 = vsel %vm625_vm10, 1.0, %v3332_v41  ;;  %v691_v31 = vand.u32 2147483647, %v2831_v46  ;;  %v827_v16 = vmul.f32 1.0614054, %v2580_v26 }
 0x26b   :  { %3376 = vst [vmem:[#allocation62_spill] sm:$0xff] %v2846_v22  ;;  %v2850_v38 = vpop.eup %1930  ;;  %v753_v34 = vadd.f32 1.0, %v721_v37  ;;  %v1017_v61 = vmul.f32 %v2553_v0, %v985_v27  ;;  %v2853_v13 = vmul.f32 0.5, %v520_v20  ;;  %v2857_v58 = vadd.f32 %v2696_v11, %v2482_v14 }
 0x26c   :  { %3377 = vst [vmem:[#allocation63_spill] sm:$0xff] %v2850_v38  ;;  %v2859_v2 = vpop.eup %1932  ;;  %v1138_v12 = vsub.f32 0.0, %v690_v47  ;;  %v2861_v59 = vmul.f32 0.5, %v522_v62  ;;  %v859_v9 = vadd.f32 -1.4531521, %v827_v16  ;;  %1944 = vrcp.f32 %v752_v40 }
 0x26d   :  { %3378 = vst [vmem:[#allocation64_spill] sm:$0xff] %v2853_v13  ;;  %3379 = vst [vmem:[#allocation65_spill] sm:$0xff] %v2857_v58  ;;  %v826_v30 = vmul.f32 1.0614054, %v2572_v23  ;;  %v1224_v48 = vmul.f32 1.442695, %v1168_v44  ;;  %v2873_v16 = vadd.f32 %v2702_v6, %v2484_v15  ;;  %1946 = vrcp.f32 %v753_v34 }
 0x26e   :  { %3380 = vst [vmem:[#allocation66_spill] sm:$0xff] %v2861_v59  ;;  %v1226_v22 = vmul.f32 1.442695, %v1169_v25  ;;  %v1049_v37 = vadd.f32 0.2548296, %v1017_v61  ;;  %v2864_v35 = vpop.eup %1934  ;;  %v891_v13 = vmul.f32 %v2580_v26, %v859_v9  ;;  %v1139_v62 = vsub.f32 0.0, %v691_v31 }
 0x26f   :  { %v722_v20 = vmul.f32 0.3275911, %v690_v47  ;;  %v723_v27 = vmul.f32 0.3275911, %v691_v31  ;;  %v2868_v11 = vmul.f32 0.70710677, %v2857_v58  ;;  %v1170_v61 = vmul.f32 %v1138_v12, %v690_v47 }
 0x270   :  { %v1081_v38 = vmul.f32 %v2553_v0, %v1049_v37  ;;  %v858_v59 = vadd.f32 -1.4531521, %v826_v30  ;;  %3382 = vst [vmem:[#allocation68_spill] sm:$0xff] %v2873_v16  ;;  %v2875_v40 = vpop.eup %1936  ;;  %vm626_vm11 = vcmp.ge.f32.partialorder %v2825_v63, 0.0  ;;  %v923_v44 = vadd.f32 1.4214138, %v891_v13 }
 0x271   :  { %3381 = vst [vmem:[#allocation67_spill] sm:$0xff] %v2868_v11  ;;  %v2878_v25 = vpop.eup %1938  ;;  %1948 = vpow2.f32 %v1224_v48  ;;  %v692_v0 = vand.u32 2147483647, %v2868_v11  ;;  %v754_v6 = vadd.f32 1.0, %v722_v20  ;;  %vm627_vm12 = vcmp.ge.f32.partialorder %v2831_v46, 0.0 }
 0x272   :  { %3383 = vst [vmem:[#allocation69_spill] sm:$0xff] %v2878_v25  ;;  %v1241_v9 = vmul.f32 %v2565_v10, %v1081_v38  ;;  %v890_v30 = vmul.f32 %v2572_v23, %v858_v59  ;;  %v2883_v37 = vpop.eup %1940  ;;  %v955_v34 = vmul.f32 %v2580_v26, %v923_v44  ;;  %v2888_v58 = vmul.f32 0.70710677, %v2873_v16 }
 0x273   :  { %v755_v47 = vadd.f32 1.0, %v723_v27  ;;  %v1171_v12 = vmul.f32 %v1139_v62, %v691_v31  ;;  %1950 = vpow2.f32 %v1226_v22  ;;  %v2895_v10 = vsel %vm626_vm11, 1.0, %v3332_v41 }
 0x274   :  { %v1273_v13 = vsub.f32 1.0, %v1241_v9  ;;  %v922_v48 = vadd.f32 1.4214138, %v890_v30  ;;  %v2890_v25 = vpop.eup %1942  ;;  %v1228_v38 = vmul.f32 1.442695, %v1170_v61  ;;  %1952 = vrcp.f32 %v754_v6 }
 0x275   :  { %v987_v59 = vadd.f32 -0.28449672, %v955_v34  ;;  %v724_v44 = vmul.f32 0.3275911, %v692_v0  ;;  %v693_v9 = vand.u32 2147483647, %v2888_v58  ;;  %1954 = vrcp.f32 %v755_v47 }
 0x276   :  { %v1305_v20 = vmul.f32 %v1273_v13, %v2510_v28  ;;  %v954_v16 = vmul.f32 %v2572_v23, %v922_v48  ;;  %v2903_v31 = vsel %vm627_vm12, 1.0, %v3332_v41  ;;  %v1140_v63 = vsub.f32 0.0, %v692_v0  ;;  %v2906_v27 = vpop.eup %1944 }
 0x277   :  { %v1019_v22 = vmul.f32 %v2580_v26, %v987_v59  ;;  %v1230_v61 = vmul.f32 1.442695, %v1171_v12  ;;  %v1141_v34 = vsub.f32 0.0, %v693_v9  ;;  %v829_v13 = vmul.f32 1.0614054, %v2620_v17  ;;  %v2915_v11 = vpop.eup %1946 }
 0x278   :  { %v1337_v62 = vadd.f32 1.0, %v1305_v20  ;;  %v986_v28 = vadd.f32 -0.28449672, %v954_v16  ;;  %v2911_v6 = vadd.f32 %v2718_v24, %v2482_v14  ;;  %1956 = vpow2.f32 %v1228_v38 }
 0x279   :  { %v1051_v30 = vadd.f32 0.2548296, %v1019_v22  ;;  %v756_v48 = vadd.f32 1.0, %v724_v44  ;;  %v1172_v12 = vmul.f32 %v1140_v63, %v692_v0  ;;  %v861_v16 = vadd.f32 -1.4531521, %v829_v13 }
 0x27a   :  { %3384 = vst [vmem:[#allocation70_spill] sm:$0xff] %v2911_v6  ;;  %v1369_v46 = vmul.f32 %v1337_v62, %v2492_v43  ;;  %v1018_v59 = vmul.f32 %v2572_v23, %v986_v28  ;;  %v2919_v20 = vmul.f32 0.70710677, %v2911_v6  ;;  %1958 = vpow2.f32 %v1230_v61 }
 0x27b   :  { %v1083_v47 = vmul.f32 %v2580_v26, %v1051_v30  ;;  %v2921_v22 = vpop.eup %1948  ;;  %v725_v24 = vmul.f32 0.3275911, %v693_v9  ;;  %v828_v43 = vmul.f32 1.0614054, %v2598_v51  ;;  %v1173_v44 = vmul.f32 %v1141_v34, %v693_v9 }
 0x27c   :  { %3385 = vst [vmem:[#allocation71_spill] sm:$0xff] %v2919_v20  ;;  %1496 = vmatprep.mubr.f32.mxu0 %v1369_v46  ;;  %v1050_v14 = vadd.f32 0.2548296, %v1018_v59  ;;  %v893_v26 = vmul.f32 %v2620_v17, %v861_v16  ;;  %v694_v0 = vand.u32 2147483647, %v2919_v20  ;;  %v2930_v62 = vmul.f32 0.5, %v2496_v50 }
 0x27d   :  { %1497 = vmatmul.mubr.f32.vlgmr.msra.gmra.mrb[32].mxu0 %v2689_v54  ;;  %v1243_v38 = vmul.f32 %v2591_v21, %v1083_v47  ;;  %vm605_vm13 = vcmp.ge.f32.partialorder %v2499_v57, 0.0  ;;  %v860_v61 = vadd.f32 -1.4531521, %v828_v43  ;;  %v2933_v28 = vpop.eup %1950  ;;  %1960 = vrcp.f32 %v756_v48 }
 0x27e   :  { %v1082_v63 = vmul.f32 %v2572_v23, %v1050_v14  ;;  %v1232_v54 = vmul.f32 1.442695, %v1172_v12  ;;  %v925_v13 = vadd.f32 1.4214138, %v893_v26  ;;  %v757_v9 = vadd.f32 1.0, %v725_v24  ;;  %v2941_v50 = vpop.eup %1952 }
 0x27f   :  { %v1275_v30 = vsub.f32 1.0, %v1243_v38  ;;  %v892_v34 = vmul.f32 %v2598_v51, %v860_v61  ;;  %v2939_v23 = vadd.f32 %v2720_v52, %v2484_v15  ;;  %v1234_v59 = vmul.f32 1.442695, %v1173_v44  ;;  %v2945_v48 = vpop.eup %1954 }
 0x280   :  { %v1242_v21 = vmul.f32 %v2577_v3, %v1082_v63  ;;  %v957_v47 = vmul.f32 %v2620_v17, %v925_v13  ;;  %v726_v16 = vmul.f32 0.3275911, %v694_v0  ;;  %v637_v3 = vsel %vm605_vm13, 1.0, %v3332_v41 }
 0x281   :  { %3386 = vst [vmem:[#allocation72_spill] sm:$0xff] %v2939_v23  ;;  %v1307_v46 = vmul.f32 %v1275_v30, %v2530_v45  ;;  %v924_v14 = vadd.f32 1.4214138, %v892_v34  ;;  %v2951_v24 = vmul.f32 0.70710677, %v2939_v23  ;;  %1962 = vpow2.f32 %v1232_v54 }
 0x282   :  { %v1274_v12 = vsub.f32 1.0, %v1242_v21  ;;  %v989_v52 = vadd.f32 -0.28449672, %v957_v47  ;;  %v831_v45 = vmul.f32 1.0614054, %v2653_v56  ;;  %v2954_v43 = vpop.eup %1956  ;;  %v1142_v44 = vsub.f32 0.0, %v694_v0 }
 0x283   :  { %3387 = vst [vmem:[#allocation73_spill] sm:$0xff] %v2951_v24  ;;  %v1339_v15 = vadd.f32 1.0, %v1307_v46  ;;  %v956_v26 = vmul.f32 %v2598_v51, %v924_v14  ;;  %v695_v63 = vand.u32 2147483647, %v2951_v24  ;;  %1964 = vrcp.f32 %v757_v9 }
 0x284   :  { %v1306_v38 = vmul.f32 %v1274_v12, %v2517_v5  ;;  %v1021_v61 = vmul.f32 %v2620_v17, %v989_v52  ;;  %v758_v30 = vadd.f32 1.0, %v726_v16  ;;  %v2961_v13 = vpop.eup %1958  ;;  %1966 = vpow2.f32 %v1234_v59 }
 0x285   :  { %v1371_v57 = vmul.f32 %v1339_v15, %v2514_v4  ;;  %v988_v21 = vadd.f32 -0.28449672, %v956_v26  ;;  %v727_v34 = vmul.f32 0.3275911, %v695_v63  ;;  %v1143_v46 = vsub.f32 0.0, %v695_v63  ;;  %v3388_v26 = vld [vmem:[#allocation29_spill] sm:$0xff] }
 0x286   :  { %v1338_v54 = vadd.f32 1.0, %v1306_v38  ;;  %v1053_v5 = vadd.f32 0.2548296, %v1021_v61  ;;  %v863_v47 = vadd.f32 -1.4531521, %v831_v45  ;;  %v2965_v6 = vmul.f32 %v1142_v44, %v694_v0  ;;  %v3390_v44 = vld [vmem:[#allocation17_spill] sm:$0xff] }
 0x287   :  { %1501 = vmatprep.mubr.f32.mxu0 %v1371_v57  ;;  %v830_v12 = vmul.f32 1.0614054, %v2642_v55  ;;  %v1020_v4 = vmul.f32 %v2598_v51, %v988_v21  ;;  %v759_v9 = vadd.f32 1.0, %v727_v34  ;;  %v2968_v16 = vpop.eup %1960  ;;  %v833_v59 = vmul.f32 1.0614054, %v3388_v26 }
 0x288   :  { %v1370_v14 = vmul.f32 %v1338_v54, %v2512_v29  ;;  %v1085_v15 = vmul.f32 %v2620_v17, %v1053_v5  ;;  %v895_v52 = vmul.f32 %v2653_v56, %v863_v47  ;;  %1968 = vrcp.f32 %v758_v30  ;;  %v3389_v29 = vld [vmem:[#allocation22_spill] sm:$0xff]  ;;  %v3391_v47 = vld [vmem:[#allocation37_spill] sm:$0xff] }
 0x289   :  { %v862_v38 = vadd.f32 -1.4531521, %v830_v12  ;;  %v1052_v45 = vadd.f32 0.2548296, %v1020_v4  ;;  %v2973_v57 = vmul.f32 %v1143_v46, %v695_v63  ;;  %v832_v0 = vmul.f32 1.0614054, %v3389_v29 }
 0x28a   :  { %1502 = vmatmul.mubr.f32.gmra.mrb[34].mxu0 %v1370_v14  ;;  %v1245_v61 = vmul.f32 %v3390_v44, %v1085_v15  ;;  %v927_v54 = vadd.f32 1.4214138, %v895_v52  ;;  %v865_v34 = vadd.f32 -1.4531521, %v833_v59  ;;  %1970 = vrcp.f32 %v759_v9  ;;  %v3393_v4 = vld [vmem:[#allocation13_spill] sm:$0xff] }
 0x28b   :  { %v894_v21 = vmul.f32 %v2642_v55, %v862_v38  ;;  %v1084_v17 = vmul.f32 %v2598_v51, %v1052_v45  ;;  %v864_v5 = vadd.f32 -1.4531521, %v832_v0  ;;  %v835_v12 = vmul.f32 1.0614054, %v3391_v47  ;;  %v2980_v23 = vpop.eup %1962  ;;  %v3394_v59 = vld [vmem:[#allocation33_spill] sm:$0xff] }
 0x28c   :  { %3392 = vst [vmem:[#allocation29_spill] sm:$0xff] %v2980_v23  ;;  %v1277_v30 = vsub.f32 1.0, %v1245_v61  ;;  %v959_v63 = vmul.f32 %v2653_v56, %v927_v54  ;;  %v897_v14 = vmul.f32 %v3388_v26, %v865_v34  ;;  %v834_v44 = vmul.f32 1.0614054, %v3394_v59  ;;  %v3395_v23 = vld [vmem:[#allocation6_spill] sm:$0xff] }
 0x28d   :  { %v926_v46 = vadd.f32 1.4214138, %v894_v21  ;;  %v1244_v15 = vmul.f32 %v3393_v4, %v1084_v17  ;;  %v896_v52 = vmul.f32 %v3389_v29, %v864_v5  ;;  %v867_v38 = vadd.f32 -1.4531521, %v835_v12  ;;  %v2987_v51 = vpop.eup %1964 }
 0x28e   :  { %v1309_v9 = vmul.f32 %v1277_v30, %v637_v3  ;;  %v991_v45 = vadd.f32 -0.28449672, %v959_v63  ;;  %v929_v20 = vadd.f32 1.4214138, %v897_v14  ;;  %v866_v21 = vadd.f32 -1.4531521, %v834_v44  ;;  %v2991_v34 = vpop.eup %1966 }
 0x28f   :  { %v958_v0 = vmul.f32 %v2642_v55, %v926_v46  ;;  %v1276_v61 = vsub.f32 1.0, %v1244_v15  ;;  %v928_v24 = vadd.f32 1.4214138, %v896_v52  ;;  %v899_v54 = vmul.f32 %v3391_v47, %v867_v38 }
 0x290   :  { %v1341_v17 = vadd.f32 1.0, %v1309_v9  ;;  %v1023_v5 = vmul.f32 %v2653_v56, %v991_v45  ;;  %v961_v4 = vmul.f32 %v3388_v26, %v929_v20  ;;  %v898_v63 = vmul.f32 %v3394_v59, %v866_v21 }
 0x291   :  { %v990_v12 = vadd.f32 -0.28449672, %v958_v0  ;;  %v1308_v41 = vmul.f32 %v1276_v61, %v3395_v23  ;;  %v960_v3 = vmul.f32 %v3389_v29, %v928_v24  ;;  %v931_v30 = vadd.f32 1.4214138, %v899_v54  ;;  %v3396_v54 = vld [vmem:[#allocation5_spill] sm:$0xff] }
 0x292   :  { %v1373_v46 = vmul.f32 %v1341_v17, %v2930_v62  ;;  %v1055_v14 = vadd.f32 0.2548296, %v1023_v5  ;;  %v993_v52 = vadd.f32 -0.28449672, %v961_v4  ;;  %v3000_v38 = vpop.eup %1968  ;;  %v930_v20 = vadd.f32 1.4214138, %v898_v63 }
 0x293   :  { %v1022_v15 = vmul.f32 %v2642_v55, %v990_v12  ;;  %v1340_v44 = vadd.f32 1.0, %v1308_v41  ;;  %v992_v9 = vadd.f32 -0.28449672, %v960_v3  ;;  %v963_v45 = vmul.f32 %v3391_v47, %v931_v30  ;;  %v3397_v12 = vld [vmem:[#allocation23_spill] sm:$0xff] }
 0x294   :  { %1506 = vmatprep.mubr.f32.mxu1 %v1373_v46  ;;  %v1087_v23 = vmul.f32 %v2653_v56, %v1055_v14  ;;  %v1025_v0 = vmul.f32 %v3388_v26, %v993_v52  ;;  %v837_v61 = vmul.f32 1.0614054, %v2749_v18  ;;  %v3006_v62 = vpop.eup %1970  ;;  %v962_v41 = vmul.f32 %v3394_v59, %v930_v20 }
 0x295   :  { %v1054_v24 = vadd.f32 0.2548296, %v1022_v15  ;;  %v1372_v21 = vmul.f32 %v1340_v44, %v3396_v54  ;;  %v1024_v17 = vmul.f32 %v3389_v29, %v992_v9  ;;  %v995_v5 = vadd.f32 -0.28449672, %v963_v45  ;;  %v3398_v44 = vld [vmem:[#allocation18_spill] sm:$0xff] }
 0x296   :  { %v1247_v4 = vmul.f32 %v3397_v12, %v1087_v23  ;;  %v1057_v30 = vadd.f32 0.2548296, %v1025_v0  ;;  %v869_v56 = vadd.f32 -1.4531521, %v837_v61  ;;  %v994_v14 = vadd.f32 -0.28449672, %v962_v41 }
 0x297   :  { %v1086_v3 = vmul.f32 %v2642_v55, %v1054_v24  ;;  %1507 = vmatmul.mubr.f32.vlgmr.msra.gmra.mrb[0].mxu1 %v1372_v21  ;;  %v1056_v63 = vadd.f32 0.2548296, %v1024_v17  ;;  %v1027_v46 = vmul.f32 %v3391_v47, %v995_v5  ;;  %v836_v15 = vmul.f32 1.0614054, %v2739_v19  ;;  %v3399_v0 = vld [vmem:[#allocation10_spill] sm:$0xff]  ;;  %v3400_v17 = vld [vmem:[#allocation31_spill] sm:$0xff] }
 0x298   :  { %v1279_v52 = vsub.f32 1.0, %v1247_v4  ;;  %v1089_v9 = vmul.f32 %v3388_v26, %v1057_v30  ;;  %v901_v45 = vmul.f32 %v2749_v18, %v869_v56  ;;  %v1026_v55 = vmul.f32 %v3394_v59, %v994_v14  ;;  %v3401_v12 = vld [vmem:[#allocation24_spill] sm:$0xff] }
 0x299   :  { %v1246_v54 = vmul.f32 %v3398_v44, %v1086_v3  ;;  %v1088_v20 = vmul.f32 %v3389_v29, %v1056_v63  ;;  %v1059_v23 = vadd.f32 0.2548296, %v1027_v46  ;;  %v868_v24 = vadd.f32 -1.4531521, %v836_v15  ;;  %v3402_v56 = vld [vmem:[#allocation8_spill] sm:$0xff] }
 0x29a   :  { %v1311_v61 = vmul.f32 %v1279_v52, %v3399_v0  ;;  %v1249_v5 = vmul.f32 %v3400_v17, %v1089_v9  ;;  %v933_v41 = vadd.f32 1.4214138, %v901_v45  ;;  %v1058_v44 = vadd.f32 0.2548296, %v1026_v55  ;;  %v3403_v9 = vld [vmem:[#allocation9_spill] sm:$0xff]  ;;  %v3404_v0 = vld [vmem:[#allocation16_spill] sm:$0xff] }
 0x29b   :  { %v1278_v21 = vsub.f32 1.0, %v1246_v54  ;;  %v1248_v4 = vmul.f32 %v3401_v12, %v1088_v20  ;;  %v1091_v3 = vmul.f32 %v3391_v47, %v1059_v23  ;;  %v900_v26 = vmul.f32 %v2739_v19, %v868_v24  ;;  %v3405_v55 = vld [vmem:[#allocation12_spill] sm:$0xff]  ;;  %v3406_v17 = vld [vmem:[#allocation35_spill] sm:$0xff] }
 0x29c   :  { %v1343_v30 = vadd.f32 1.0, %v1311_v61  ;;  %v1281_v63 = vsub.f32 1.0, %v1249_v5  ;;  %v965_v46 = vmul.f32 %v2749_v18, %v933_v41  ;;  %v1090_v52 = vmul.f32 %v3394_v59, %v1058_v44  ;;  %v3407_v41 = vld [vmem:[#allocation7_spill] sm:$0xff]  ;;  %v3408_v44 = vld [vmem:[#allocation21_spill] sm:$0xff] }
 0x29d   :  { %v1310_v29 = vmul.f32 %v1278_v21, %v3402_v56  ;;  %v1280_v14 = vsub.f32 1.0, %v1248_v4  ;;  %v1251_v15 = vmul.f32 %v2733_v39, %v1091_v3  ;;  %v932_v54 = vadd.f32 1.4214138, %v900_v26 }
 0x29e   :  { %v1375_v45 = vmul.f32 %v1343_v30, %v3403_v9  ;;  %v1313_v47 = vmul.f32 %v1281_v63, %v3404_v0  ;;  %v997_v23 = vadd.f32 -0.28449672, %v965_v46  ;;  %v1250_v21 = vmul.f32 %v3406_v17, %v1090_v52  ;;  %v3410_v52 = vld [vmem:[#allocation11_spill] sm:$0xff] }
 0x29f   :  { %v1342_v20 = vadd.f32 1.0, %v1310_v29  ;;  %v1312_v24 = vmul.f32 %v1280_v14, %v3405_v55  ;;  %v1283_v61 = vsub.f32 1.0, %v1251_v15  ;;  %v964_v5 = vmul.f32 %v2739_v19, %v932_v54  ;;  %v3409_v29 = vld [vmem:[#allocation14_spill] sm:$0xff] }
 0x2a0   :  { %1511 = vmatprep.mubr.f32.mxu1 %v1375_v45  ;;  %v1345_v39 = vadd.f32 1.0, %v1313_v47  ;;  %v1029_v59 = vmul.f32 %v2749_v18, %v997_v23  ;;  %v839_v4 = vmul.f32 1.0614054, %v2782_v1  ;;  %v1282_v30 = vsub.f32 1.0, %v1250_v21  ;;  %v3411_v45 = vld [vmem:[#allocation19_spill] sm:$0xff] }
 0x2a1   :  { %v1374_v12 = vmul.f32 %v1342_v20, %v3407_v41  ;;  %v1344_v3 = vadd.f32 1.0, %v1312_v24  ;;  %v1315_v26 = vmul.f32 %v1283_v61, %v3408_v44  ;;  %v996_v56 = vadd.f32 -0.28449672, %v964_v5  ;;  %v3412_v61 = vld [vmem:[#allocation20_spill] sm:$0xff] }
 0x2a2   :  { %v1377_v63 = vmul.f32 %v1345_v39, %v3409_v29  ;;  %v1061_v46 = vadd.f32 0.2548296, %v1029_v59  ;;  %v871_v14 = vadd.f32 -1.4531521, %v839_v4  ;;  %v838_v15 = vmul.f32 1.0614054, %v2762_v42 }
 0x2a3   :  { %1512 = vmatmul.mubr.f32.gmra.mrb[2].mxu1 %v1374_v12  ;;  %v1376_v54 = vmul.f32 %v1344_v3, %v3410_v52  ;;  %v1347_v9 = vadd.f32 1.0, %v1315_v26  ;;  %v1314_v20 = vmul.f32 %v1282_v30, %v3411_v45  ;;  %v1028_v0 = vmul.f32 %v2739_v19, %v996_v56  ;;  %v3413_v12 = vld [vmem:[#allocation44_spill] sm:$0xff] }
 0x2a4   :  { %1516 = vmatprep.mubr.f32.mxu1 %v1377_v63  ;;  %v1093_v47 = vmul.f32 %v2749_v18, %v1061_v46  ;;  %v903_v23 = vmul.f32 %v2782_v1, %v871_v14  ;;  %v870_v55 = vadd.f32 -1.4531521, %v838_v15  ;;  %v841_v24 = vmul.f32 1.0614054, %v2801_v32  ;;  %v3414_v18 = vld [vmem:[#allocation15_spill] sm:$0xff]  ;;  %v3415_v15 = vld [vmem:[#allocation40_spill] sm:$0xff] }
 0x2a5   :  { %v1379_v17 = vmul.f32 %v1347_v9, %v3412_v61  ;;  %v1346_v21 = vadd.f32 1.0, %v1314_v20  ;;  %v1060_v5 = vadd.f32 0.2548296, %v1028_v0  ;;  %v840_v41 = vmul.f32 1.0614054, %v2792_v60  ;;  %v3416_v20 = vld [vmem:[#allocation28_spill] sm:$0xff] }
 0x2a6   :  { %v1253_v39 = vmul.f32 %v3413_v12, %v1093_v47  ;;  %v935_v59 = vadd.f32 1.4214138, %v903_v23  ;;  %v902_v4 = vmul.f32 %v2762_v42, %v870_v55  ;;  %v873_v3 = vadd.f32 -1.4531521, %v841_v24 }
 0x2a7   :  { %1517 = vmatmul.mubr.f32.gmra.mrb[4].mxu1 %v1376_v54  ;;  %v1378_v44 = vmul.f32 %v1346_v21, %v3414_v18  ;;  %v1092_v26 = vmul.f32 %v2739_v19, %v1060_v5  ;;  %v872_v30 = vadd.f32 -1.4531521, %v840_v41  ;;  %v843_v56 = vmul.f32 1.0614054, %v2827_v53 }
 0x2a8   :  { %1521 = vmatprep.mubr.f32.mxu1 %v1379_v17  ;;  %v1285_v29 = vsub.f32 1.0, %v1253_v39  ;;  %v967_v63 = vmul.f32 %v2782_v1, %v935_v59  ;;  %v934_v46 = vadd.f32 1.4214138, %v902_v4  ;;  %v905_v14 = vmul.f32 %v2801_v32, %v873_v3  ;;  %v3417_v39 = vld [vmem:[#allocation26_spill] sm:$0xff] }
 0x2a9   :  { %v1252_v52 = vmul.f32 %v3415_v15, %v1092_v26  ;;  %v904_v54 = vmul.f32 %v2792_v60, %v872_v30  ;;  %v875_v9 = vadd.f32 -1.4531521, %v843_v56  ;;  %v842_v45 = vmul.f32 1.0614054, %v2805_v8 }
 0x2aa   :  { %v1317_v0 = vmul.f32 %v1285_v29, %v3416_v20  ;;  %v999_v19 = vadd.f32 -0.28449672, %v967_v63  ;;  %v966_v47 = vmul.f32 %v2762_v42, %v934_v46  ;;  %v937_v23 = vadd.f32 1.4214138, %v905_v14  ;;  %v3419_v20 = vld [vmem:[#allocation25_spill] sm:$0xff] }
 0x2ab   :  { %1522 = vmatmul.mubr.f32.gmra.mrb[6].mxu1 %v1378_v44  ;;  %v1284_v55 = vsub.f32 1.0, %v1252_v52  ;;  %v936_v24 = vadd.f32 1.4214138, %v904_v54  ;;  %v907_v61 = vmul.f32 %v2827_v53, %v875_v9  ;;  %v874_v17 = vadd.f32 -1.4531521, %v842_v45  ;;  %v3418_v44 = vld [vmem:[#allocation27_spill] sm:$0xff] }
 0x2ac   :  { %v1349_v21 = vadd.f32 1.0, %v1317_v0  ;;  %v1031_v5 = vmul.f32 %v2782_v1, %v999_v19  ;;  %v998_v41 = vadd.f32 -0.28449672, %v966_v47  ;;  %v969_v12 = vmul.f32 %v2801_v32, %v937_v23 }
 0x2ad   :  { %v1316_v59 = vmul.f32 %v1284_v55, %v3417_v39  ;;  %v968_v4 = vmul.f32 %v2792_v60, %v936_v24  ;;  %v939_v3 = vadd.f32 1.4214138, %v907_v61  ;;  %v906_v18 = vmul.f32 %v2805_v8, %v874_v17  ;;  %v3420_v55 = vld [vmem:[#allocation51_spill] sm:$0xff] }
 0x2ae   :  { %v1381_v26 = vmul.f32 %v1349_v21, %v3418_v44  ;;  %v1063_v30 = vadd.f32 0.2548296, %v1031_v5  ;;  %v1030_v56 = vmul.f32 %v2762_v42, %v998_v41  ;;  %v1001_v29 = vadd.f32 -0.28449672, %v969_v12 }
 0x2af   :  { %v1348_v63 = vadd.f32 1.0, %v1316_v59  ;;  %v1000_v46 = vadd.f32 -0.28449672, %v968_v4  ;;  %v971_v14 = vmul.f32 %v2827_v53, %v939_v3  ;;  %v938_v15 = vadd.f32 1.4214138, %v906_v18  ;;  %v3421_v59 = vld [vmem:[#allocation49_spill] sm:$0xff] }
 0x2b0   :  { %1526 = vmatprep.mubr.f32.mxu1 %v1381_v26  ;;  %v1095_v52 = vmul.f32 %v2782_v1, %v1063_v30  ;;  %v1062_v54 = vadd.f32 0.2548296, %v1030_v56  ;;  %v1033_v9 = vmul.f32 %v2801_v32, %v1001_v29  ;;  %v845_v45 = vmul.f32 1.0614054, %v2859_v2  ;;  %v3422_v56 = vld [vmem:[#allocation36_spill] sm:$0xff] }
 0x2b1   :  { %v1380_v0 = vmul.f32 %v1348_v63, %v3419_v20  ;;  %v1032_v19 = vmul.f32 %v2792_v60, %v1000_v46  ;;  %v1003_v47 = vadd.f32 -0.28449672, %v971_v14  ;;  %v970_v23 = vmul.f32 %v2805_v8, %v938_v15  ;;  %v3423_v15 = vld [vmem:[#allocation54_spill] sm:$0xff] }
 0x2b2   :  { %v1255_v24 = vmul.f32 %v3420_v55, %v1095_v52  ;;  %v1094_v61 = vmul.f32 %v2762_v42, %v1062_v54  ;;  %v1065_v17 = vadd.f32 0.2548296, %v1033_v9  ;;  %v877_v21 = vadd.f32 -1.4531521, %v845_v45  ;;  %v3424_v20 = vld [vmem:[#allocation34_spill] sm:$0xff] }
 0x2b3   :  { %1527 = vmatmul.mubr.f32.gmra.mrb[8].mxu1 %v1380_v0  ;;  %v1064_v1 = vadd.f32 0.2548296, %v1032_v19  ;;  %v1035_v5 = vmul.f32 %v2827_v53, %v1003_v47  ;;  %v1002_v41 = vadd.f32 -0.28449672, %v970_v23  ;;  %v844_v12 = vmul.f32 1.0614054, %v2841_v7 }
 0x2b4   :  { %v1287_v39 = vsub.f32 1.0, %v1255_v24  ;;  %v1254_v4 = vmul.f32 %v3421_v59, %v1094_v61  ;;  %v1097_v3 = vmul.f32 %v2801_v32, %v1065_v17  ;;  %v909_v18 = vmul.f32 %v2859_v2, %v877_v21  ;;  %v3425_v24 = vld [vmem:[#allocation32_spill] sm:$0xff]  ;;  %v3426_v21 = vld [vmem:[#allocation43_spill] sm:$0xff] }
 0x2b5   :  { %v1096_v44 = vmul.f32 %v2792_v60, %v1064_v1  ;;  %v1067_v26 = vadd.f32 0.2548296, %v1035_v5  ;;  %v1034_v42 = vmul.f32 %v2805_v8, %v1002_v41  ;;  %v876_v30 = vadd.f32 -1.4531521, %v844_v12  ;;  %v3427_v5 = vld [vmem:[#allocation41_spill] sm:$0xff] }
 0x2b6   :  { %v1319_v29 = vmul.f32 %v1287_v39, %v3422_v56  ;;  %v1286_v63 = vsub.f32 1.0, %v1254_v4  ;;  %v1257_v46 = vmul.f32 %v2803_v49, %v1097_v3  ;;  %v941_v14 = vadd.f32 1.4214138, %v909_v18  ;;  %v3428_v4 = vld [vmem:[#allocation30_spill] sm:$0xff] }
 0x2b7   :  { %v1256_v52 = vmul.f32 %v3423_v15, %v1096_v44  ;;  %v1099_v54 = vmul.f32 %v2827_v53, %v1067_v26  ;;  %v1066_v9 = vadd.f32 0.2548296, %v1034_v42  ;;  %v908_v32 = vmul.f32 %v2841_v7, %v876_v30  ;;  %v3429_v26 = vld [vmem:[#allocation47_spill] sm:$0xff]  ;;  %v3431_v15 = vld [vmem:[#allocation38_spill] sm:$0xff] }
 0x2b8   :  { %v1351_v45 = vadd.f32 1.0, %v1319_v29  ;;  %v1318_v60 = vmul.f32 %v1286_v63, %v3424_v20  ;;  %v1289_v0 = vsub.f32 1.0, %v1257_v46  ;;  %v973_v19 = vmul.f32 %v2859_v2, %v941_v14  ;;  %v3430_v29 = vld [vmem:[#allocation39_spill] sm:$0xff] }
 0x2b9   :  { %v1288_v47 = vsub.f32 1.0, %v1256_v52  ;;  %v1259_v23 = vmul.f32 %v2843_v36, %v1099_v54  ;;  %v1098_v55 = vmul.f32 %v2805_v8, %v1066_v9  ;;  %v940_v49 = vadd.f32 1.4214138, %v908_v32  ;;  %v3432_v9 = vld [vmem:[#allocation45_spill] sm:$0xff] }
 0x2ba   :  { %v1383_v61 = vmul.f32 %v1351_v45, %v3425_v24  ;;  %v1350_v17 = vadd.f32 1.0, %v1318_v60  ;;  %v1321_v53 = vmul.f32 %v1289_v0, %v3426_v21  ;;  %v1005_v1 = vadd.f32 -0.28449672, %v973_v19 }
 0x2bb   :  { %v1320_v41 = vmul.f32 %v1288_v47, %v3427_v5  ;;  %v1291_v12 = vsub.f32 1.0, %v1259_v23  ;;  %v1258_v39 = vmul.f32 %v2815_v33, %v1098_v55  ;;  %v972_v59 = vmul.f32 %v2841_v7, %v940_v49  ;;  %v3433_v47 = vld [vmem:[#allocation46_spill] sm:$0xff] }
 0x2bc   :  { %1531 = vmatprep.mubr.f32.mxu1 %v1383_v61  ;;  %v1382_v3 = vmul.f32 %v1350_v17, %v3428_v4  ;;  %v1353_v36 = vadd.f32 1.0, %v1321_v53  ;;  %v1037_v8 = vmul.f32 %v2859_v2, %v1005_v1  ;;  %v847_v18 = vmul.f32 1.0614054, %v2883_v37 }
 0x2bd   :  { %v1352_v44 = vadd.f32 1.0, %v1320_v41  ;;  %v1323_v42 = vmul.f32 %v1291_v12, %v3429_v26  ;;  %v1290_v30 = vsub.f32 1.0, %v1258_v39  ;;  %v1004_v56 = vadd.f32 -0.28449672, %v972_v59  ;;  %v3436_v26 = vld [vmem:[#allocation56_spill] sm:$0xff] }
 0x2be   :  { %1532 = vmatmul.mubr.f32.gmra.mrb[10].mxu1 %v1382_v3  ;;  %v1385_v63 = vmul.f32 %v1353_v36, %v3430_v29  ;;  %v1069_v46 = vadd.f32 0.2548296, %v1037_v8  ;;  %v879_v33 = vadd.f32 -1.4531521, %v847_v18  ;;  %v846_v14 = vmul.f32 1.0614054, %v2864_v35 }
 0x2bf   :  { %v1384_v52 = vmul.f32 %v1352_v44, %v3431_v15  ;;  %v1355_v54 = vadd.f32 1.0, %v1323_v42  ;;  %v1322_v32 = vmul.f32 %v1290_v30, %v3432_v9  ;;  %v1036_v45 = vmul.f32 %v2841_v7, %v1004_v56  ;;  %v3435_v36 = vld [vmem:[#allocation63_spill] sm:$0xff]  ;;  %v3437_v9 = vld [vmem:[#allocation50_spill] sm:$0xff] }
 0x2c0   :  { %1536 = vmatprep.mubr.f32.mxu1 %v1385_v63  ;;  %v1101_v20 = vmul.f32 %v2859_v2, %v1069_v46  ;;  %v911_v60 = vmul.f32 %v2883_v37, %v879_v33  ;;  %v878_v0 = vadd.f32 -1.4531521, %v846_v14  ;;  %v849_v19 = vmul.f32 1.0614054, %v2915_v11  ;;  %v3434_v2 = vld [vmem:[#allocation42_spill] sm:$0xff] }
 0x2c1   :  { %v1387_v23 = vmul.f32 %v1355_v54, %v3433_v47  ;;  %v1354_v55 = vadd.f32 1.0, %v1322_v32  ;;  %v1068_v49 = vadd.f32 0.2548296, %v1036_v45  ;;  %v848_v24 = vmul.f32 1.0614054, %v2906_v27 }
 0x2c2   :  { %1537 = vmatmul.mubr.f32.gmra.mrb[12].mxu1 %v1384_v52  ;;  %v1261_v61 = vmul.f32 %v2875_v40, %v1101_v20  ;;  %v943_v17 = vadd.f32 1.4214138, %v911_v60  ;;  %v910_v21 = vmul.f32 %v2864_v35, %v878_v0  ;;  %v881_v53 = vadd.f32 -1.4531521, %v849_v19  ;;  %v3438_v0 = vld [vmem:[#allocation52_spill] sm:$0xff] }
 0x2c3   :  { %1541 = vmatprep.mubr.f32.mxu1 %v1387_v23  ;;  %v1386_v1 = vmul.f32 %v1354_v55, %v3434_v2  ;;  %v1100_v5 = vmul.f32 %v2841_v7, %v1068_v49  ;;  %v880_v41 = vadd.f32 -1.4531521, %v848_v24  ;;  %v851_v12 = vmul.f32 1.0614054, %v2945_v48 }
 0x2c4   :  { %v1293_v39 = vsub.f32 1.0, %v1261_v61  ;;  %v975_v59 = vmul.f32 %v2883_v37, %v943_v17  ;;  %v942_v4 = vadd.f32 1.4214138, %v910_v21  ;;  %v913_v3 = vmul.f32 %v2915_v11, %v881_v53 }
 0x2c5   :  { %v1260_v40 = vmul.f32 %v3435_v36, %v1100_v5  ;;  %v912_v8 = vmul.f32 %v2906_v27, %v880_v41  ;;  %v883_v18 = vadd.f32 -1.4531521, %v851_v12  ;;  %v850_v44 = vmul.f32 1.0614054, %v2941_v50  ;;  %v3439_v5 = vld [vmem:[#allocation48_spill] sm:$0xff] }
 0x2c6   :  { %1542 = vmatmul.mubr.f32.gmra.mrb[14].mxu1 %v1386_v1  ;;  %v1325_v42 = vmul.f32 %v1293_v39, %v3436_v26  ;;  %v1007_v7 = vadd.f32 -0.28449672, %v975_v59  ;;  %v974_v30 = vmul.f32 %v2864_v35, %v942_v4  ;;  %v945_v56 = vadd.f32 1.4214138, %v913_v3 }
 0x2c7   :  { %v1292_v29 = vsub.f32 1.0, %v1260_v40  ;;  %v944_v63 = vadd.f32 1.4214138, %v912_v8  ;;  %v915_v46 = vmul.f32 %v2945_v48, %v883_v18  ;;  %v882_v33 = vadd.f32 -1.4531521, %v850_v44 }
 0x2c8   :  { %v1357_v14 = vadd.f32 1.0, %v1325_v42  ;;  %v1039_v15 = vmul.f32 %v2883_v37, %v1007_v7  ;;  %v1006_v52 = vadd.f32 -0.28449672, %v974_v30  ;;  %v977_v54 = vmul.f32 %v2915_v11, %v945_v56  ;;  %v3440_v42 = vld [vmem:[#allocation69_spill] sm:$0xff] }
 0x2c9   :  { %v1324_v32 = vmul.f32 %v1292_v29, %v3437_v9  ;;  %v976_v45 = vmul.f32 %v2906_v27, %v944_v63  ;;  %v947_v20 = vadd.f32 1.4214138, %v915_v46  ;;  %v914_v60 = vmul.f32 %v2941_v50, %v882_v33  ;;  %v3441_v46 = vld [vmem:[#allocation58_spill] sm:$0xff] }
 0x2ca   :  { %v1389_v19 = vmul.f32 %v1357_v14, %v3438_v0  ;;  %v1071_v47 = vadd.f32 0.2548296, %v1039_v15  ;;  %v1038_v23 = vmul.f32 %v2864_v35, %v1006_v52  ;;  %v1009_v55 = vadd.f32 -0.28449672, %v977_v54 }
 0x2cb   :  { %v1356_v49 = vadd.f32 1.0, %v1324_v32  ;;  %v1008_v24 = vadd.f32 -0.28449672, %v976_v45  ;;  %v979_v61 = vmul.f32 %v2945_v48, %v947_v20  ;;  %v946_v17 = vadd.f32 1.4214138, %v914_v60  ;;  %v3442_v20 = vld [vmem:[#allocation57_spill] sm:$0xff] }
 0x2cc   :  { %1546 = vmatprep.mubr.f32.mxu1 %v1389_v19  ;;  %v1103_v21 = vmul.f32 %v2883_v37, %v1071_v47  ;;  %v1070_v53 = vadd.f32 0.2548296, %v1038_v23  ;;  %v1041_v2 = vmul.f32 %v2915_v11, %v1009_v55  ;;  %v853_v1 = vmul.f32 1.0614054, %v2987_v51  ;;  %v3443_v55 = vld [vmem:[#allocation55_spill] sm:$0xff] }
 0x2cd   :  { %v1388_v41 = vmul.f32 %v1356_v49, %v3439_v5  ;;  %v1040_v12 = vmul.f32 %v2906_v27, %v1008_v24  ;;  %v1011_v39 = vadd.f32 -0.28449672, %v979_v61  ;;  %v978_v59 = vmul.f32 %v2941_v50, %v946_v17  ;;  %v3444_v24 = vld [vmem:[#allocation62_spill] sm:$0xff]  ;;  %v3445_v17 = vld [vmem:[#allocation60_spill] sm:$0xff]  ;;  %v3446_v5 = vld [vmem:[#allocation53_spill] sm:$0xff] }
 0x2ce   :  { %v1263_v4 = vmul.f32 %v2890_v25, %v1103_v21  ;;  %v1102_v3 = vmul.f32 %v2864_v35, %v1070_v53  ;;  %v1073_v36 = vadd.f32 0.2548296, %v1041_v2  ;;  %v885_v40 = vadd.f32 -1.4531521, %v853_v1 }
 0x2cf   :  { %1547 = vmatmul.mubr.f32.gmra.mrb[16].mxu1 %v1388_v41  ;;  %v1072_v37 = vadd.f32 0.2548296, %v1040_v12  ;;  %v1043_v8 = vmul.f32 %v2945_v48, %v1011_v39  ;;  %v1010_v18 = vadd.f32 -0.28449672, %v978_v59  ;;  %v852_v44 = vmul.f32 1.0614054, %v2968_v16 }
 0x2d0   :  { %v1295_v26 = vsub.f32 1.0, %v1263_v4  ;;  %v1262_v7 = vmul.f32 %v3440_v42, %v1102_v3  ;;  %v1105_v30 = vmul.f32 %v2915_v11, %v1073_v36  ;;  %v917_v56 = vmul.f32 %v2987_v51, %v885_v40  ;;  %v3447_v36 = vld [vmem:[#allocation61_spill] sm:$0xff] }
 0x2d1   :  { %v1104_v25 = vmul.f32 %v2906_v27, %v1072_v37  ;;  %v1075_v29 = vadd.f32 0.2548296, %v1043_v8  ;;  %v1042_v35 = vmul.f32 %v2941_v50, %v1010_v18  ;;  %v884_v63 = vadd.f32 -1.4531521, %v852_v44 }
 0x2d2   :  { %v1327_v33 = vmul.f32 %v1295_v26, %v3441_v46  ;;  %v1294_v14 = vsub.f32 1.0, %v1262_v7  ;;  %v1265_v15 = vmul.f32 %v2933_v28, %v1105_v30  ;;  %v949_v52 = vadd.f32 1.4214138, %v917_v56  ;;  %v3448_v7 = vld [vmem:[#allocation59_spill] sm:$0xff] }
 0x2d3   :  { %v1264_v54 = vmul.f32 %v2921_v22, %v1104_v25  ;;  %v1107_v9 = vmul.f32 %v2945_v48, %v1075_v29  ;;  %v1074_v32 = vadd.f32 0.2548296, %v1042_v35  ;;  %v916_v11 = vmul.f32 %v2968_v16, %v884_v63  ;;  %v3449_v35 = vld [vmem:[#allocation66_spill] sm:$0xff] }
 0x2d4   :  { %v1359_v45 = vadd.f32 1.0, %v1327_v33  ;;  %v1326_v27 = vmul.f32 %v1294_v14, %v3442_v20  ;;  %v1297_v60 = vsub.f32 1.0, %v1265_v15  ;;  %v981_v0 = vmul.f32 %v2987_v51, %v949_v52  ;;  %v3450_v15 = vld [vmem:[#allocation67_spill] sm:$0xff]  ;;  %v3451_v52 = vld [vmem:[#allocation64_spill] sm:$0xff] }
 0x2d5   :  { %v1296_v19 = vsub.f32 1.0, %v1264_v54  ;;  %v1267_v47 = vmul.f32 %v2961_v13, %v1107_v9  ;;  %v1106_v23 = vmul.f32 %v2941_v50, %v1074_v32  ;;  %v948_v28 = vadd.f32 1.4214138, %v916_v11 }
 0x2d6   :  { %v1391_v49 = vmul.f32 %v1359_v45, %v3443_v55  ;;  %v1358_v22 = vadd.f32 1.0, %v1326_v27  ;;  %v1329_v48 = vmul.f32 %v1297_v60, %v3444_v24  ;;  %v1013_v61 = vadd.f32 -0.28449672, %v981_v0  ;;  %v3453_v45 = vld [vmem:[#allocation29_spill] sm:$0xff] }
 0x2d7   :  { %v1328_v21 = vmul.f32 %v1296_v19, %v3445_v17  ;;  %v1299_v53 = vsub.f32 1.0, %v1267_v47  ;;  %v1266_v2 = vmul.f32 %v2954_v43, %v1106_v23  ;;  %v980_v1 = vmul.f32 %v2968_v16, %v948_v28 }
 0x2d8   :  { %1551 = vmatprep.mubr.f32.mxu1 %v1391_v49  ;;  %v1390_v41 = vmul.f32 %v1358_v22, %v3446_v5  ;;  %v1361_v13 = vadd.f32 1.0, %v1329_v48  ;;  %v1045_v50 = vmul.f32 %v2987_v51, %v1013_v61  ;;  %v855_v12 = vmul.f32 1.0614054, %v3006_v62  ;;  %v3455_v61 = vld [vmem:[#allocation65_spill] sm:$0xff] }
 0x2d9   :  { %v1360_v39 = vadd.f32 1.0, %v1328_v21  ;;  %v1331_v59 = vmul.f32 %v1299_v53, %v2903_v31  ;;  %v1298_v4 = vsub.f32 1.0, %v1266_v2  ;;  %v1012_v3 = vadd.f32 -0.28449672, %v980_v1 }
 0x2da   :  { %1552 = vmatmul.mubr.f32.gmra.mrb[18].mxu1 %v1390_v41  ;;  %v1393_v40 = vmul.f32 %v1361_v13, %v3447_v36  ;;  %v1077_v37 = vadd.f32 0.2548296, %v1045_v50  ;;  %v887_v43 = vadd.f32 -1.4531521, %v855_v12  ;;  %v854_v8 = vmul.f32 1.0614054, %v3000_v38 }
 0x2db   :  { %v1238_v18 = vmul.f32 1.442695, %v2973_v57  ;;  %v1363_v44 = vadd.f32 1.0, %v1331_v59  ;;  %v1330_v26 = vmul.f32 %v1298_v4, %v2895_v10  ;;  %v1044_v42 = vmul.f32 %v2968_v16, %v1012_v3  ;;  %v3456_v41 = vld [vmem:[#allocation73_spill] sm:$0xff] }
 0x2dc   :  { %1556 = vmatprep.mubr.f32.mxu1 %v1393_v40  ;;  %v1392_v30 = vmul.f32 %v1360_v39, %v3448_v7  ;;  %v1109_v31 = vmul.f32 %v2987_v51, %v1077_v37  ;;  %v919_v56 = vmul.f32 %v3006_v62, %v887_v43  ;;  %v886_v25 = vadd.f32 -1.4531521, %v854_v8  ;;  %v3457_v39 = vld [vmem:[#allocation71_spill] sm:$0xff]  ;;  %v3458_v37 = vld [vmem:[#allocation72_spill] sm:$0xff] }
 0x2dd   :  { %v1236_v29 = vmul.f32 1.442695, %v2965_v6  ;;  %v1395_v63 = vmul.f32 %v1363_v44, %v3449_v35  ;;  %v1362_v46 = vadd.f32 1.0, %v1330_v26  ;;  %v1076_v33 = vadd.f32 0.2548296, %v1044_v42  ;;  %v3459_v44 = vld [vmem:[#allocation70_spill] sm:$0xff] }
 0x2de   :  { %vm629_vm14 = vcmp.ge.f32.partialorder %v2888_v58, 0.0  ;;  %1557 = vmatmul.mubr.f32.gmra.mrb[20].mxu1 %v1392_v30  ;;  %v1269_v10 = vmul.f32 %v2991_v34, %v1109_v31  ;;  %v951_v57 = vadd.f32 1.4214138, %v919_v56  ;;  %v918_v14 = vmul.f32 %v3000_v38, %v886_v25  ;;  %v3202_v25 = vld [vmem:[%s3302_s6] ss:$0 sm:$0xff] }
 0x2df   :  { %vm628_vm15 = vcmp.ge.f32.partialorder %v3450_v15, 0.0  ;;  %1972 = vpow2.f32 %v1238_v18  ;;  %1561 = vmatprep.mubr.f32.mxu1 %v1395_v63  ;;  %v1108_v51 = vmul.f32 %v2968_v16, %v1076_v33  ;;  %v1394_v6 = vmul.f32 %v1362_v46, %v3451_v52  ;;  %v3454_v16 = vld [vmem:[#allocation68_spill] sm:$0xff] }
 0x2e0   :  { %v1301_v54 = vsub.f32 1.0, %v1269_v10  ;;  %v983_v9 = vmul.f32 %v3006_v62, %v951_v57  ;;  %v950_v32 = vadd.f32 1.4214138, %v918_v14  ;;  %v3452_v11 = vmov -1.0   ;;  %v1977_v57 = vld [vmem:[%s3296_s0 + $0x8] sm:$0xff] }
 0x2e1   :  { %v661_v58 = vsel %vm629_vm14, 1.0, %v3452_v11  ;;  %1974 = vpow2.f32 %v1236_v29  ;;  %v1268_v34 = vmul.f32 %v3453_v45, %v1108_v51  ;;  %v660_v0 = vsel %vm628_vm15, 1.0, %v3452_v11  ;;  %v1976_v29 = vld [vmem:[%s3296_s0] sm:$0xff] }
 0x2e2   :  { %1562 = vmatmul.mubr.f32.gmra.mrb[22].mxu1 %v1394_v6  ;;  %v1333_v20 = vmul.f32 %v1301_v54, %v661_v58  ;;  %v1015_v27 = vadd.f32 -0.28449672, %v983_v9  ;;  %v982_v60 = vmul.f32 %v3000_v38, %v950_v32  ;;  %v565_v47 = vmul.f32 0.5, %v3454_v16  ;;  %v1978_v54 = vld [vmem:[%s3296_s0 + $0x10] sm:$0xff]  ;;  %v1980_v16 = vld [vmem:[%s3296_s0 + $0x20] sm:$0xff] }
 0x2e3   :  { %v1300_v19 = vsub.f32 1.0, %v1268_v34  ;;  %v564_v17 = vmul.f32 0.5, %v3455_v61  ;;  %vm631_vm1 = vcmp.ge.f32.partialorder %v3456_v41, 0.0  ;;  %vm630_vm2 = vcmp.ge.f32.partialorder %v3457_v39, 0.0  ;;  %v1979_v34 = vld [vmem:[%s3296_s0 + $0x18] sm:$0xff] }
 0x2e4   :  { %v1365_v23 = vadd.f32 1.0, %v1333_v20  ;;  %v1047_v28 = vmul.f32 %v3006_v62, %v1015_v27  ;;  %v1014_v55 = vadd.f32 -0.28449672, %v982_v60  ;;  %v663_v3 = vsel %vm631_vm1, 1.0, %v3452_v11 }
 0x2e5   :  { %v1332_v49 = vmul.f32 %v1300_v19, %v660_v0  ;;  %v567_v43 = vmul.f32 0.5, %v3458_v37  ;;  %v566_v26 = vmul.f32 0.5, %v3459_v44 }
 0x2e6   :  { %v1397_v22 = vmul.f32 %v1365_v23, %v565_v47  ;;  %v1079_v24 = vadd.f32 0.2548296, %v1047_v28  ;;  %v1046_v48 = vmul.f32 %v3000_v38, %v1014_v55 }
 0x2e7   :  { %v1364_v21 = vadd.f32 1.0, %v1332_v49 }
 0x2e8   :  { %1566 = vmatprep.mubr.f32.mxu1 %v1397_v22  ;;  %v1111_v53 = vmul.f32 %v3006_v62, %v1079_v24  ;;  %v1078_v2 = vadd.f32 0.2548296, %v1046_v48  ;;  %v662_v62 = vsel %vm630_vm2, 1.0, %v3452_v11  ;;  %v1981_v22 = vld [vmem:[%s3296_s0 + $0x28] sm:$0xff] }
 0x2e9   :  { %v1973_v1 = vpop.eup %1972  ;;  %v1396_v5 = vmul.f32 %v1364_v21, %v564_v17 }
 0x2ea   :  { %v1271_v13 = vmul.f32 %v1973_v1, %v1111_v53  ;;  %v1110_v50 = vmul.f32 %v3000_v38, %v1078_v2  ;;  %v1982_v53 = vld [vmem:[%s3296_s0 + $0x30] sm:$0xff] }
 0x2eb   :  { %v1975_v12 = vpop.eup %1974  ;;  %1567 = vmatmul.mubr.f32.gmra.mrb[24].mxu1 %v1396_v5 }
 0x2ec   :  { %v1303_v59 = vsub.f32 1.0, %v1271_v13  ;;  %v1270_v4 = vmul.f32 %v1975_v12, %v1110_v50  ;;  %v1983_v50 = vld [vmem:[%s3296_s0 + $0x38] sm:$0xff] }
 0x2ee   :  { %v1335_v36 = vmul.f32 %v1303_v59, %v663_v3  ;;  %v1302_v40 = vsub.f32 1.0, %v1270_v4 }
 0x2f0   :  { %v1367_v8 = vadd.f32 1.0, %v1335_v36  ;;  %v1334_v18 = vmul.f32 %v1302_v40, %v662_v62  ;;  %v1984_v36 = vld [vmem:[%s3296_s0 + $0x40] sm:$0xff] }
 0x2f2   :  { %v1399_v42 = vmul.f32 %v1367_v8, %v567_v43  ;;  %v1366_v38 = vadd.f32 1.0, %v1334_v18  ;;  %v1985_v18 = vld [vmem:[%s3296_s0 + $0x48] sm:$0xff] }
 0x2f4   :  { %1571 = vmatprep.mubr.f32.mxu1 %v1399_v42  ;;  %v1398_v7 = vmul.f32 %v1366_v38, %v566_v26 }
 0x2f6   :  { %1572 = vmatmul.mubr.f32.gmra.mrb[26].mxu1 %v1398_v7 }
 0x350   :  { %v1699_v30 = vpop.f32.mrb[32].mxu0 }
 0x351   :  { %v1700_v31 = vpop.f32.mrb[33].mxu0 }
 0x352   :  { %v1701_v56 = vadd.f32 %v1700_v31, %v1699_v30  ;;  %v1986_v30 = vld [vmem:[%s3296_s0 + $0x50] sm:$0xff] }
 0x354   :  { %v1577_v35 = vadd.f32 %v1976_v29, %v1701_v56 }
 0x356   :  { %v1600_v63 = vadd.f32 %v3202_v25, %v1577_v35 }
 0x358   :  { %1616 = vst.msk [vmem:[#allocation2] sm:$0xff] %vm45_vm0, %v1600_v63 }
 0x35d   :  { %v1702_v46 = vpop.f32.mrb[34].mxu0 }
 0x35e   :  { %v1703_v33 = vpop.f32.mrb[35].mxu0 }
 0x35f   :  { %v1704_v10 = vadd.f32 %v1703_v33, %v1702_v46  ;;  %v1987_v46 = vld [vmem:[%s3296_s0 + $0x58] sm:$0xff] }
 0x361   :  { %v1578_v14 = vadd.f32 %v1977_v57, %v1704_v10 }
 0x363   :  { %v1601_v15 = vadd.f32 %v3202_v25, %v1578_v14 }
 0x365   :  { %1617 = vst.msk [vmem:[#allocation2 + $0x8] sm:$0xff] %vm45_vm0, %v1601_v15 }
 0x36a   :  { %v1705_v51 = vpop.f32.mrb[0].mxu1 }
 0x36b   :  { %v1706_v52 = vpop.f32.mrb[1].mxu1 }
 0x36c   :  { %v1707_v6 = vadd.f32 %v1706_v52, %v1705_v51  ;;  %v1988_v51 = vld [vmem:[%s3296_s0 + $0x60] sm:$0xff] }
 0x36e   :  { %v1579_v9 = vadd.f32 %v1978_v54, %v1707_v6 }
 0x370   :  { %v1602_v32 = vadd.f32 %v3202_v25, %v1579_v9 }
 0x372   :  { %1618 = vst.msk [vmem:[#allocation2 + $0x10] sm:$0xff] %vm45_vm0, %v1602_v32 }
 0x376   :  { %v1708_v11 = vpop.f32.mrb[2].mxu1 }
 0x377   :  { %v1709_v58 = vpop.f32.mrb[3].mxu1 }
 0x378   :  { %v1710_v45 = vadd.f32 %v1709_v58, %v1708_v11  ;;  %v1989_v11 = vld [vmem:[%s3296_s0 + $0x68] sm:$0xff] }
 0x37a   :  { %v1580_v20 = vadd.f32 %v1979_v34, %v1710_v45  ;;  %v1711_v27 = vpop.f32.mrb[4].mxu1 }
 0x37b   :  { %v1712_v60 = vpop.f32.mrb[5].mxu1 }
 0x37c   :  { %v1603_v0 = vadd.f32 %v3202_v25, %v1580_v20  ;;  %v1713_v19 = vadd.f32 %v1712_v60, %v1711_v27  ;;  %v1990_v60 = vld [vmem:[%s3296_s0 + $0x70] sm:$0xff] }
 0x37e   :  { %1619 = vst.msk [vmem:[#allocation2 + $0x18] sm:$0xff] %vm45_vm0, %v1603_v0  ;;  %v1581_v47 = vadd.f32 %v1980_v16, %v1713_v19  ;;  %v1714_v23 = vpop.f32.mrb[6].mxu1 }
 0x37f   :  { %v1715_v28 = vpop.f32.mrb[7].mxu1 }
 0x380   :  { %v1604_v55 = vadd.f32 %v3202_v25, %v1581_v47  ;;  %v1716_v49 = vadd.f32 %v1715_v28, %v1714_v23  ;;  %v1991_v28 = vld [vmem:[%s3296_s0 + $0x78] sm:$0xff] }
 0x382   :  { %1620 = vst.msk [vmem:[#allocation2 + $0x20] sm:$0xff] %vm45_vm0, %v1604_v55  ;;  %v1582_v24 = vadd.f32 %v1981_v22, %v1716_v49 }
 0x384   :  { %v1605_v48 = vadd.f32 %v3202_v25, %v1582_v24 }
 0x386   :  { %1621 = vst.msk [vmem:[#allocation2 + $0x28] sm:$0xff] %vm45_vm0, %v1605_v48  ;;  %v1717_v61 = vpop.f32.mrb[8].mxu1 }
 0x387   :  { %v1718_v17 = vpop.f32.mrb[9].mxu1 }
 0x388   :  { %v1719_v21 = vadd.f32 %v1718_v17, %v1717_v61 }
 0x38a   :  { %v1583_v2 = vadd.f32 %v1982_v53, %v1719_v21 }
 0x38c   :  { %v1606_v1 = vadd.f32 %v3202_v25, %v1583_v2 }
 0x38e   :  { %1622 = vst.msk [vmem:[#allocation2 + $0x30] sm:$0xff] %vm45_vm0, %v1606_v1 }
 0x391   :  { %v1720_v5 = vpop.f32.mrb[10].mxu1 }
 0x392   :  { %v1721_v41 = vpop.f32.mrb[11].mxu1 }
 0x393   :  { %v1722_v13 = vadd.f32 %v1721_v41, %v1720_v5 }
 0x395   :  { %v1584_v12 = vadd.f32 %v1983_v50, %v1722_v13  ;;  %v1723_v39 = vpop.f32.mrb[12].mxu1 }
 0x396   :  { %v1724_v59 = vpop.f32.mrb[13].mxu1 }
 0x397   :  { %v1607_v4 = vadd.f32 %v3202_v25, %v1584_v12  ;;  %v1725_v3 = vadd.f32 %v1724_v59, %v1723_v39 }
 0x399   :  { %1623 = vst.msk [vmem:[#allocation2 + $0x38] sm:$0xff] %vm45_vm0, %v1607_v4  ;;  %v1585_v40 = vadd.f32 %v1984_v36, %v1725_v3  ;;  %v1726_v62 = vpop.f32.mrb[14].mxu1 }
 0x39a   :  { %v1727_v37 = vpop.f32.mrb[15].mxu1 }
 0x39b   :  { %v1608_v43 = vadd.f32 %v3202_v25, %v1585_v40  ;;  %v1728_v8 = vadd.f32 %v1727_v37, %v1726_v62 }
 0x39d   :  { %1624 = vst.msk [vmem:[#allocation2 + $0x40] sm:$0xff] %vm45_vm0, %v1608_v43  ;;  %v1586_v44 = vadd.f32 %v1985_v18, %v1728_v8 }
 0x39f   :  { %v1609_v26 = vadd.f32 %v3202_v25, %v1586_v44 }
 0x3a1   :  { %1625 = vst.msk [vmem:[#allocation2 + $0x48] sm:$0xff] %vm45_vm0, %v1609_v26 }
 0x3a2   :  { %v1729_v42 = vpop.f32.mrb[16].mxu1 }
 0x3a3   :  { %v1730_v38 = vpop.f32.mrb[17].mxu1 }
 0x3a4   :  { %v1731_v7 = vadd.f32 %v1730_v38, %v1729_v42 }
 0x3a6   :  { %v1587_v31 = vadd.f32 %v1986_v30, %v1731_v7 }
 0x3a8   :  { %v1610_v56 = vadd.f32 %v3202_v25, %v1587_v31 }
 0x3aa   :  { %1626 = vst.msk [vmem:[#allocation2 + $0x50] sm:$0xff] %vm45_vm0, %v1610_v56 }
 0x3ad   :  { %v1732_v29 = vpop.f32.mrb[18].mxu1 }
 0x3ae   :  { %v1733_v35 = vpop.f32.mrb[19].mxu1 }
 0x3af   :  { %v1734_v63 = vadd.f32 %v1733_v35, %v1732_v29 }
 0x3b1   :  { %v1588_v33 = vadd.f32 %v1987_v46, %v1734_v63  ;;  %v1735_v10 = vpop.f32.mrb[20].mxu1 }
 0x3b2   :  { %v1736_v57 = vpop.f32.mrb[21].mxu1 }
 0x3b3   :  { %v1611_v14 = vadd.f32 %v3202_v25, %v1588_v33  ;;  %v1737_v15 = vadd.f32 %v1736_v57, %v1735_v10 }
 0x3b5   :  { %1627 = vst.msk [vmem:[#allocation2 + $0x58] sm:$0xff] %vm45_vm0, %v1611_v14  ;;  %v1589_v52 = vadd.f32 %v1988_v51, %v1737_v15  ;;  %v1738_v6 = vpop.f32.mrb[22].mxu1 }
 0x3b6   :  { %v1739_v54 = vpop.f32.mrb[23].mxu1 }
 0x3b7   :  { %v1612_v9 = vadd.f32 %v3202_v25, %v1589_v52  ;;  %v1740_v32 = vadd.f32 %v1739_v54, %v1738_v6 }
 0x3b9   :  { %1628 = vst.msk [vmem:[#allocation2 + $0x60] sm:$0xff] %vm45_vm0, %v1612_v9  ;;  %v1590_v58 = vadd.f32 %v1989_v11, %v1740_v32 }
 0x3bb   :  { %v1613_v45 = vadd.f32 %v3202_v25, %v1590_v58 }
 0x3bd   :  { %1629 = vst.msk [vmem:[#allocation2 + $0x68] sm:$0xff] %vm45_vm0, %v1613_v45 }
 0x3be   :  { %v1741_v34 = vpop.f32.mrb[24].mxu1 }
 0x3bf   :  { %v1742_v20 = vpop.f32.mrb[25].mxu1 }
 0x3c0   :  { %v1743_v27 = vadd.f32 %v1742_v20, %v1741_v34 }
 0x3c2   :  { %v1591_v0 = vadd.f32 %v1990_v60, %v1743_v27 }
 0x3c4   :  { %v1614_v19 = vadd.f32 %v3202_v25, %v1591_v0 }
 0x3c6   :  { %1630 = vst.msk [vmem:[#allocation2 + $0x70] sm:$0xff] %vm45_vm0, %v1614_v19 }
 0x3c9   :  { %v1744_v16 = vpop.f32.mrb[26].mxu1 }
 0x3ca   :  { %v1745_v47 = vpop.f32.mrb[27].mxu1 }
 0x3cb   :  { %v1746_v23 = vadd.f32 %v1745_v47, %v1744_v16 }
 0x3cd   :  { %v1592_v55 = vadd.f32 %v1991_v28, %v1746_v23 }
 0x3cf   :  { %v1615_v49 = vadd.f32 %v3202_v25, %v1592_v55 }
 0x3d1   :  { %1631 = vst.msk [vmem:[#allocation2 + $0x78] sm:$0xff] %vm45_vm0, %v1615_v49 }
 0x3d2   :  { %2003 = shalt.err (!%p2000_p4)
}
 0x3d3   :  { %s2004_s18 = scalar_lea.hbm %s3303_s7, 2048 }
 0x3d4   :  { %p2005_p5 = scmp.ne.s32.totalorder %s3303_s7, %s2004_s18  ;;  %p2008_p6 = scmp.lt.u32.totalorder %s2004_s18, %s3303_s7 }
 0x3d6   :  { %p2010_p7 = pnand %p2008_p6, %p2005_p5 }
 0x3d8   :  { %2013 = shalt.err (!%p2010_p7)
}
 0x3d9   :  { %s2019_s21 = smov 128   ;;  %s2020_s1 = smov 8  }
 0x3da   :  { %1643 = dma.vmem_to_hbm [thread:$0]  %s1638_s13, 2048, %s3303_s7, [#allocation3], %s2019_s21, %s2019_s21, %s2020_s1  }
 0x3db   :  { %2014 = dma.done.wait [#allocation3], 2048  }
 0x3dc   :  { %2015 = vsyncadd [#allocation3], 4294965248 }
 0x3dd   :  { %1647 = vsyncpa [#allocation3], 1 }

// kernel: res_block.3
= control target key start
LH: loop header
LB: loop body
LE: loop exit
PB: predicated region body
PF: predicated region fallthrough
CT: control target
= control target key end

     0   :  { %vm46_vm0 = vcmask 523264   ;;  %s3624_s0 = inlined_call_operand.vmem [shape: f32[128,64], index: 0, kind: input, shape index: {}]   ;;  %s3625_s3 = inlined_call_operand.vmem [shape: f32[64,128], index: 3, kind: input, shape index: {}]   ;;  %s3626_s1 = inlined_call_operand.vmem [shape: f32[1,64], index: 1, kind: input, shape index: {}]   ;;  %s3627_s2 = inlined_call_operand.vmem [shape: f32[1,64], index: 2, kind: input, shape index: {}]   ;;  %s3628_s5 = inlined_call_operand.vmem [shape: f32[128,288], index: 5, kind: input, shape index: {}]   ;;  %s3629_s4 = inlined_call_operand.vmem [shape: f32[1,128], index: 4, kind: input, shape index: {}]   ;;  %s3630_s7 = inlined_call_operand.vmem [shape: f32[128,128], index: 7, kind: output, shape index: {0}]   ;;  %s3631_s6 = inlined_call_operand.vmem [shape: f32[1,288], index: 6, kind: input, shape index: {}]   ;;  %s3632_s8 = inlined_call_operand.vmem [shape: f32[128,288], index: 8, kind: output, shape index: {1}]  }
   0x1   :  { %v28_v0 = vld [vmem:[%s3624_s0] sm:$0xff]  ;;  %v30_v1 = vld [vmem:[%s3624_s0 + $0x10] sm:$0xff]  ;;  %v29_v2 = vld [vmem:[%s3624_s0 + $0x8] sm:$0xff] }
   0x2   :  { %v47_v3 = vsel %vm46_vm0, %v28_v0, 0.0  ;;  %v53_v4 = vsel %vm46_vm0, %v30_v1, 0.0  ;;  %v31_v5 = vld [vmem:[%s3624_s0 + $0x18] sm:$0xff]  ;;  %v50_v6 = vsel %vm46_vm0, %v29_v2, 0.0  ;;  %v32_v8 = vld [vmem:[%s3624_s0 + $0x20] sm:$0xff]  ;;  %v33_v9 = vld [vmem:[%s3624_s0 + $0x28] sm:$0xff] }
   0x3   :  { %48 = vadd.xlane.f32.xlu0 %v47_v3  ;;  %54 = vadd.xlane.f32.xlu1 %v53_v4  ;;  %v56_v7 = vsel %vm46_vm0, %v31_v5, 0.0  ;;  %v59_v10 = vsel %vm46_vm0, %v32_v8, 0.0  ;;  %v62_v11 = vsel %vm46_vm0, %v33_v9, 0.0  ;;  %v2422_v12 = vld [vmem:[%s3624_s0 + $0x30] sm:$0xff]  ;;  %v2427_v13 = vld [vmem:[%s3624_s0 + $0x38] sm:$0xff]  ;;  %v2436_v16 = vld [vmem:[%s3624_s0 + $0x40] sm:$0xff] }
   0x4   :  { %v65_v14 = vsel %vm46_vm0, %v2422_v12, 0.0  ;;  %v68_v15 = vsel %vm46_vm0, %v2427_v13, 0.0  ;;  %v2441_v17 = vld [vmem:[%s3624_s0 + $0x48] sm:$0xff]  ;;  %v71_v18 = vsel %vm46_vm0, %v2436_v16, 0.0  ;;  %v2450_v20 = vld [vmem:[%s3624_s0 + $0x50] sm:$0xff]  ;;  %v2455_v21 = vld [vmem:[%s3624_s0 + $0x58] sm:$0xff] }
   0x5   :  { %v74_v19 = vsel %vm46_vm0, %v2441_v17, 0.0  ;;  %v77_v22 = vsel %vm46_vm0, %v2450_v20, 0.0  ;;  %v80_v23 = vsel %vm46_vm0, %v2455_v21, 0.0  ;;  %v2464_v24 = vld [vmem:[%s3624_s0 + $0x60] sm:$0xff]  ;;  %v2469_v25 = vld [vmem:[%s3624_s0 + $0x68] sm:$0xff]  ;;  %v2478_v28 = vld [vmem:[%s3624_s0 + $0x70] sm:$0xff] }
   0x6   :  { %v83_v26 = vsel %vm46_vm0, %v2464_v24, 0.0  ;;  %v86_v27 = vsel %vm46_vm0, %v2469_v25, 0.0  ;;  %v2483_v29 = vld [vmem:[%s3624_s0 + $0x78] sm:$0xff]  ;;  %v89_v30 = vsel %vm46_vm0, %v2478_v28, 0.0 }
   0x7   :  { %51 = vadd.xlane.f32.xlu0 %v50_v6  ;;  %57 = vadd.xlane.f32.xlu1 %v56_v7  ;;  %v92_v31 = vsel %vm46_vm0, %v2483_v29, 0.0 }
   0xb   :  { %60 = vadd.xlane.f32.xlu0 %v59_v10  ;;  %63 = vadd.xlane.f32.xlu1 %v62_v11 }
   0xf   :  { %66 = vadd.xlane.f32.xlu0 %v65_v14  ;;  %69 = vadd.xlane.f32.xlu1 %v68_v15 }
  0x13   :  { %72 = vadd.xlane.f32.xlu0 %v71_v18  ;;  %75 = vadd.xlane.f32.xlu1 %v74_v19 }
  0x17   :  { %78 = vadd.xlane.f32.xlu0 %v77_v22  ;;  %81 = vadd.xlane.f32.xlu1 %v80_v23 }
  0x1b   :  { %84 = vadd.xlane.f32.xlu0 %v83_v26  ;;  %87 = vadd.xlane.f32.xlu1 %v86_v27 }
  0x1f   :  { %90 = vadd.xlane.f32.xlu0 %v89_v30  ;;  %93 = vadd.xlane.f32.xlu1 %v92_v31 }
  0x90   :  { %v49_v32 = vpop.xlane.xlu0 %48  ;;  %v55_v33 = vpop.xlane.xlu1 %54 }
  0x91   :  { %v96_v34 = vmul.f32 0.015625, %v49_v32  ;;  %v98_v35 = vmul.f32 0.015625, %v55_v33 }
  0x93   :  { %v2489_v36 = vsub.f32 %v28_v0, %v96_v34  ;;  %v2491_v37 = vsub.f32 %v30_v1, %v98_v35 }
  0x94   :  { %v52_v38 = vpop.xlane.xlu0 %51  ;;  %v58_v39 = vpop.xlane.xlu1 %57 }
  0x95   :  { %v97_v40 = vmul.f32 0.015625, %v52_v38  ;;  %v99_v41 = vmul.f32 0.015625, %v58_v39  ;;  %v128_v42 = vmul.f32 %v2489_v36, %v2489_v36  ;;  %v130_v43 = vmul.f32 %v2491_v37, %v2491_v37 }
  0x97   :  { %v2497_v44 = vsub.f32 %v29_v2, %v97_v40  ;;  %v2499_v45 = vsub.f32 %v31_v5, %v99_v41  ;;  %v144_v46 = vsel %vm46_vm0, %v128_v42, 0.0  ;;  %v150_v49 = vsel %vm46_vm0, %v130_v43, 0.0 }
  0x98   :  { %145 = vadd.xlane.f32.xlu0 %v144_v46  ;;  %v61_v47 = vpop.xlane.xlu0 %60  ;;  %v64_v48 = vpop.xlane.xlu1 %63 }
  0x99   :  { %v100_v50 = vmul.f32 0.015625, %v61_v47  ;;  %v101_v51 = vmul.f32 0.015625, %v64_v48  ;;  %v129_v52 = vmul.f32 %v2497_v44, %v2497_v44  ;;  %v131_v53 = vmul.f32 %v2499_v45, %v2499_v45  ;;  %v301_v47 = vld [vmem:[%s3625_s3 + $0x8] sm:$0xff] }
  0x9b   :  { %v2507_v54 = vsub.f32 %v32_v8, %v100_v50  ;;  %v2509_v55 = vsub.f32 %v33_v9, %v101_v51  ;;  %v147_v56 = vsel %vm46_vm0, %v129_v52, 0.0  ;;  %v153_v59 = vsel %vm46_vm0, %v131_v53, 0.0 }
  0x9c   :  { %151 = vadd.xlane.f32.xlu0 %v150_v49  ;;  %148 = vadd.xlane.f32.xlu1 %v147_v56  ;;  %v67_v57 = vpop.xlane.xlu0 %66  ;;  %v70_v58 = vpop.xlane.xlu1 %69 }
  0x9d   :  { %v102_v60 = vmul.f32 0.015625, %v67_v57  ;;  %v103_v61 = vmul.f32 0.015625, %v70_v58  ;;  %v132_v62 = vmul.f32 %v2507_v54, %v2507_v54  ;;  %v133_v63 = vmul.f32 %v2509_v55, %v2509_v55 }
  0x9f   :  { %v2518_v0 = vsub.f32 %v2422_v12, %v102_v60  ;;  %v2521_v1 = vsub.f32 %v2427_v13, %v103_v61  ;;  %v156_v2 = vsel %vm46_vm0, %v132_v62, 0.0  ;;  %v159_v5 = vsel %vm46_vm0, %v133_v63, 0.0  ;;  %v304_v60 = vld [vmem:[%s3625_s3 + $0x20] sm:$0xff]  ;;  %v305_v61 = vld [vmem:[%s3625_s3 + $0x28] sm:$0xff]  ;;  %v306_v63 = vld [vmem:[%s3625_s3 + $0x30] sm:$0xff] }
  0xa0   :  { %154 = vadd.xlane.f32.xlu1 %v153_v59  ;;  %157 = vadd.xlane.f32.xlu0 %v156_v2  ;;  %v73_v3 = vpop.xlane.xlu0 %72  ;;  %v76_v4 = vpop.xlane.xlu1 %75  ;;  %v2050_v62 = vpack.c.bf16 %v305_v61, %v304_v60  ;;  %v307_v2 = vld [vmem:[%s3625_s3 + $0x38] sm:$0xff] }
  0xa1   :  { %v104_v6 = vmul.f32 0.015625, %v73_v3  ;;  %v105_v7 = vmul.f32 0.015625, %v76_v4  ;;  %v134_v8 = vmul.f32 %v2518_v0, %v2518_v0  ;;  %v135_v9 = vmul.f32 %v2521_v1, %v2521_v1 }
  0xa2   :  { %v2054_v3 = vpack.c.bf16 %v307_v2, %v306_v63 }
  0xa3   :  { %v2530_v10 = vsub.f32 %v2436_v16, %v104_v6  ;;  %v2533_v11 = vsub.f32 %v2441_v17, %v105_v7  ;;  %v162_v12 = vsel %vm46_vm0, %v134_v8, 0.0  ;;  %v165_v15 = vsel %vm46_vm0, %v135_v9, 0.0 }
  0xa4   :  { %160 = vadd.xlane.f32.xlu1 %v159_v5  ;;  %163 = vadd.xlane.f32.xlu0 %v162_v12  ;;  %v79_v13 = vpop.xlane.xlu0 %78  ;;  %v82_v14 = vpop.xlane.xlu1 %81 }
  0xa5   :  { %v106_v18 = vmul.f32 0.015625, %v79_v13  ;;  %v107_v19 = vmul.f32 0.015625, %v82_v14  ;;  %v136_v22 = vmul.f32 %v2530_v10, %v2530_v10  ;;  %v137_v16 = vmul.f32 %v2533_v11, %v2533_v11 }
  0xa7   :  { %v2542_v23 = vsub.f32 %v2450_v20, %v106_v18  ;;  %v2545_v17 = vsub.f32 %v2455_v21, %v107_v19  ;;  %v168_v26 = vsel %vm46_vm0, %v136_v22, 0.0  ;;  %v171_v31 = vsel %vm46_vm0, %v137_v16, 0.0 }
  0xa8   :  { %166 = vadd.xlane.f32.xlu1 %v165_v15  ;;  %169 = vadd.xlane.f32.xlu0 %v168_v26  ;;  %v85_v27 = vpop.xlane.xlu0 %84  ;;  %v88_v30 = vpop.xlane.xlu1 %87 }
  0xa9   :  { %v108_v32 = vmul.f32 0.015625, %v85_v27  ;;  %v109_v33 = vmul.f32 0.015625, %v88_v30  ;;  %v138_v34 = vmul.f32 %v2542_v23, %v2542_v23  ;;  %v139_v20 = vmul.f32 %v2545_v17, %v2545_v17 }
  0xab   :  { %v2554_v35 = vsub.f32 %v2464_v24, %v108_v32  ;;  %v2557_v21 = vsub.f32 %v2469_v25, %v109_v33  ;;  %v174_v38 = vsel %vm46_vm0, %v138_v34, 0.0  ;;  %v177_v41 = vsel %vm46_vm0, %v139_v20, 0.0  ;;  %v300_v25 = vld [vmem:[%s3625_s3] sm:$0xff] }
  0xac   :  { %172 = vadd.xlane.f32.xlu1 %v171_v31  ;;  %175 = vadd.xlane.f32.xlu0 %v174_v38  ;;  %v91_v39 = vpop.xlane.xlu0 %90  ;;  %v94_v40 = vpop.xlane.xlu1 %93  ;;  %v2042_v48 = vpack.c.bf16 %v301_v47, %v300_v25  ;;  %v2606_v38 = vld [vmem:[%s3626_s1] ss:$0 sm:$0xff] }
  0xad   :  { %v110_v42 = vmul.f32 0.015625, %v91_v39  ;;  %v111_v43 = vmul.f32 0.015625, %v94_v40  ;;  %v140_v46 = vmul.f32 %v2554_v35, %v2554_v35  ;;  %v141_v24 = vmul.f32 %v2557_v21, %v2557_v21 }
  0xae   :  { %2043 = vmatprep.subr.bf16.mxu0 %v2042_v48 }
  0xaf   :  { %v2572_v49 = vsub.f32 %v2478_v28, %v110_v42  ;;  %v2575_v50 = vsub.f32 %v2483_v29, %v111_v43  ;;  %v180_v51 = vsel %vm46_vm0, %v140_v46, 0.0  ;;  %v183_v52 = vsel %vm46_vm0, %v141_v24, 0.0  ;;  %v302_v28 = vld [vmem:[%s3625_s3 + $0x10] sm:$0xff]  ;;  %v303_v29 = vld [vmem:[%s3625_s3 + $0x18] sm:$0xff]  ;;  %2045 = vmatpush3.bf16.msra.mxu0 %v2042_v48  ;;  %v2612_v46 = vld [vmem:[%s3627_s2] ss:$0 sm:$0xff] }
  0xb0   :  { %178 = vadd.xlane.f32.xlu1 %v177_v41  ;;  %181 = vadd.xlane.f32.xlu0 %v180_v51  ;;  %v2046_v57 = vpack.c.bf16 %v303_v29, %v302_v28 }
  0xb1   :  { %v142_v53 = vmul.f32 %v2572_v49, %v2572_v49  ;;  %v143_v56 = vmul.f32 %v2575_v50, %v2575_v50 }
  0xb2   :  { %2047 = vmatprep.subr.bf16.mxu0 %v2046_v57 }
  0xb3   :  { %v186_v58 = vsel %vm46_vm0, %v142_v53, 0.0  ;;  %v189_v59 = vsel %vm46_vm0, %v143_v56, 0.0  ;;  %2049 = vmatpush3.bf16.msra.mxu0 %v2046_v57 }
  0xb4   :  { %184 = vadd.xlane.f32.xlu1 %v183_v52  ;;  %187 = vadd.xlane.f32.xlu0 %v186_v58 }
  0xb5   :  { %2051 = vmatprep.subr.bf16.mxu0 %v2050_v62 }
  0xb7   :  { %2053 = vmatpush3.bf16.msra.mxu0 %v2050_v62 }
  0xb8   :  { %190 = vadd.xlane.f32.xlu1 %v189_v59  ;;  %2055 = vmatprep.subr.bf16.mxu0 %v2054_v3 }
  0xbb   :  { %2057 = vmatpush3.bf16.msra.mxu0 %v2054_v3 }
 0x125   :  { %v146_v4 = vpop.xlane.xlu0 %145 }
 0x126   :  { %v192_v5 = vmul.f32 0.015625, %v146_v4 }
 0x128   :  { %v208_v6 = vadd.f32 1e-05, %v192_v5 }
 0x129   :  { %v149_v7 = vpop.xlane.xlu1 %148  ;;  %v152_v8 = vpop.xlane.xlu0 %151 }
 0x12a   :  { %2124 = vrsqrt.f32 %v208_v6  ;;  %v193_v9 = vmul.f32 0.015625, %v149_v7  ;;  %v194_v12 = vmul.f32 0.015625, %v152_v8 }
 0x12c   :  { %v209_v13 = vadd.f32 1e-05, %v193_v9  ;;  %v210_v14 = vadd.f32 1e-05, %v194_v12 }
 0x12d   :  { %v155_v15 = vpop.xlane.xlu1 %154  ;;  %v158_v18 = vpop.xlane.xlu0 %157 }
 0x12e   :  { %2126 = vrsqrt.f32 %v209_v13  ;;  %v195_v19 = vmul.f32 0.015625, %v155_v15  ;;  %v196_v22 = vmul.f32 0.015625, %v158_v18 }
 0x12f   :  { %2128 = vrsqrt.f32 %v210_v14 }
 0x130   :  { %v211_v16 = vadd.f32 1e-05, %v195_v19  ;;  %v212_v26 = vadd.f32 1e-05, %v196_v22 }
 0x131   :  { %v161_v27 = vpop.xlane.xlu1 %160  ;;  %v164_v30 = vpop.xlane.xlu0 %163 }
 0x132   :  { %2130 = vrsqrt.f32 %v211_v16  ;;  %v197_v31 = vmul.f32 0.015625, %v161_v27  ;;  %v198_v32 = vmul.f32 0.015625, %v164_v30 }
 0x133   :  { %2132 = vrsqrt.f32 %v212_v26 }
 0x134   :  { %v2125_v33 = vpop.eup %2124  ;;  %v213_v34 = vadd.f32 1e-05, %v197_v31  ;;  %v214_v20 = vadd.f32 1e-05, %v198_v32 }
 0x135   :  { %v167_v39 = vpop.xlane.xlu1 %166  ;;  %v170_v40 = vpop.xlane.xlu0 %169  ;;  %v240_v41 = vmul.f32 %v2125_v33, %v2489_v36 }
 0x136   :  { %2134 = vrsqrt.f32 %v213_v34  ;;  %v199_v42 = vmul.f32 0.015625, %v167_v39  ;;  %v200_v43 = vmul.f32 0.015625, %v170_v40 }
 0x137   :  { %2136 = vrsqrt.f32 %v214_v20  ;;  %v262_v24 = vmul.f32 %v2606_v38, %v240_v41 }
 0x138   :  { %v2127_v25 = vpop.eup %2126  ;;  %v215_v47 = vadd.f32 1e-05, %v199_v42  ;;  %v216_v48 = vadd.f32 1e-05, %v200_v43 }
 0x139   :  { %v2129_v51 = vpop.eup %2128  ;;  %v173_v52 = vpop.xlane.xlu1 %172  ;;  %v284_v56 = vadd.f32 %v2612_v46, %v262_v24  ;;  %v241_v36 = vmul.f32 %v2127_v25, %v2497_v44 }
 0x13a   :  { %v176_v53 = vpop.xlane.xlu0 %175  ;;  %2138 = vrsqrt.f32 %v215_v47  ;;  %v201_v28 = vmul.f32 0.015625, %v173_v52  ;;  %v242_v57 = vmul.f32 %v2129_v51, %v2491_v37 }
 0x13b   :  { %v202_v29 = vmul.f32 0.015625, %v176_v53  ;;  %2140 = vrsqrt.f32 %v216_v48  ;;  %1962 = vmatprep.mubr.msk.f32.mxu0 %vm46_vm0, %v284_v56  ;;  %v263_v58 = vmul.f32 %v2606_v38, %v241_v36 }
 0x13c   :  { %v2131_v59 = vpop.eup %2130  ;;  %v217_v60 = vadd.f32 1e-05, %v201_v28  ;;  %v264_v62 = vmul.f32 %v2606_v38, %v242_v57 }
 0x13d   :  { %v218_v61 = vadd.f32 1e-05, %v202_v29  ;;  %v2133_v63 = vpop.eup %2132  ;;  %v179_v2 = vpop.xlane.xlu1 %178  ;;  %v285_v44 = vadd.f32 %v2612_v46, %v263_v58  ;;  %v243_v4 = vmul.f32 %v2131_v59, %v2499_v45 }
 0x13e   :  { %v182_v3 = vpop.xlane.xlu0 %181  ;;  %2142 = vrsqrt.f32 %v217_v60  ;;  %v203_v5 = vmul.f32 0.015625, %v179_v2  ;;  %v286_v6 = vadd.f32 %v2612_v46, %v264_v62  ;;  %v244_v8 = vmul.f32 %v2133_v63, %v2507_v54 }
 0x13f   :  { %v204_v37 = vmul.f32 0.015625, %v182_v3  ;;  %2144 = vrsqrt.f32 %v218_v61  ;;  %1963 = vmatmul.mubr.msk.f32.vlgmr.msra.gmra.mrb[0].mxu0 %vm46_vm0, %v285_v44  ;;  %v265_v7 = vmul.f32 %v2606_v38, %v243_v4 }
 0x140   :  { %v2135_v9 = vpop.eup %2134  ;;  %v219_v12 = vadd.f32 1e-05, %v203_v5  ;;  %1965 = vmatprep.mubr.msk.f32.mxu0 %vm46_vm0, %v286_v6  ;;  %v266_v19 = vmul.f32 %v2606_v38, %v244_v8  ;;  %v957_v6 = vld [vmem:[%s3628_s5 + $0x8] sm:$0xff]  ;;  %v956_v8 = vld [vmem:[%s3628_s5] sm:$0xff] }
 0x141   :  { %v220_v13 = vadd.f32 1e-05, %v204_v37  ;;  %v2137_v14 = vpop.eup %2136  ;;  %v185_v15 = vpop.xlane.xlu1 %184  ;;  %v287_v18 = vadd.f32 %v2612_v46, %v265_v7  ;;  %v245_v22 = vmul.f32 %v2135_v9, %v2509_v55 }
 0x142   :  { %v188_v45 = vpop.xlane.xlu0 %187  ;;  %2146 = vrsqrt.f32 %v219_v12  ;;  %v205_v16 = vmul.f32 0.015625, %v185_v15  ;;  %v246_v27 = vmul.f32 %v2137_v14, %v2518_v0  ;;  %v288_v54 = vadd.f32 %v2612_v46, %v266_v19  ;;  %v961_v12 = vld [vmem:[%s3628_s5 + $0x28] sm:$0xff]  ;;  %v963_v14 = vld [vmem:[%s3628_s5 + $0x38] sm:$0xff]  ;;  %v966_v15 = vld [vmem:[%s3628_s5 + $0x50] sm:$0xff] }
 0x143   :  { %v206_v26 = vmul.f32 0.015625, %v188_v45  ;;  %2148 = vrsqrt.f32 %v220_v13  ;;  %1966 = vmatmul.mubr.msk.f32.gmra.mrb[2].mxu0 %vm46_vm0, %v287_v18  ;;  %v267_v30 = vmul.f32 %v2606_v38, %v245_v22  ;;  %v2062_v45 = vpack.c.bf16 %v966_v15, %v963_v14  ;;  %v962_v18 = vld [vmem:[%s3628_s5 + $0x30] sm:$0xff]  ;;  %v965_v19 = vld [vmem:[%s3628_s5 + $0x48] sm:$0xff]  ;;  %v964_v22 = vld [vmem:[%s3628_s5 + $0x40] sm:$0xff] }
 0x144   :  { %v2139_v31 = vpop.eup %2138  ;;  %v221_v32 = vadd.f32 1e-05, %v205_v16  ;;  %v268_v34 = vmul.f32 %v2606_v38, %v246_v27  ;;  %1968 = vmatprep.mubr.msk.f32.mxu0 %vm46_vm0, %v288_v54  ;;  %v2064_v16 = vpack.c.bf16 %v965_v19, %v962_v18  ;;  %v969_v54 = vld [vmem:[%s3628_s5 + $0x68] sm:$0xff]  ;;  %v2825_v14 = vld [vmem:[%s3629_s4] ss:$0 sm:$0xff] }
 0x145   :  { %v222_v33 = vadd.f32 1e-05, %v206_v26  ;;  %v2141_v20 = vpop.eup %2140  ;;  %v191_v55 = vpop.xlane.xlu1 %190  ;;  %v289_v39 = vadd.f32 %v2612_v46, %v267_v30  ;;  %v247_v0 = vmul.f32 %v2139_v31, %v2521_v1  ;;  %v967_v26 = vld [vmem:[%s3628_s5 + $0x58] sm:$0xff]  ;;  %v972_v30 = vld [vmem:[%s3628_s5 + $0x80] sm:$0xff] }
 0x146   :  { %2150 = vrsqrt.f32 %v221_v32  ;;  %v207_v40 = vmul.f32 0.015625, %v191_v55  ;;  %v290_v41 = vadd.f32 %v2612_v46, %v268_v34  ;;  %v248_v42 = vmul.f32 %v2141_v20, %v2530_v10  ;;  %v968_v32 = vld [vmem:[%s3628_s5 + $0x60] sm:$0xff]  ;;  %v970_v34 = vld [vmem:[%s3628_s5 + $0x70] sm:$0xff]  ;;  %v973_v55 = vld [vmem:[%s3628_s5 + $0x88] sm:$0xff] }
 0x147   :  { %2152 = vrsqrt.f32 %v222_v33  ;;  %1969 = vmatmul.mubr.msk.f32.gmra.mrb[4].mxu0 %vm46_vm0, %v289_v39  ;;  %v269_v43 = vmul.f32 %v2606_v38, %v247_v0  ;;  %v2094_v27 = vpack.c.bf16 %v967_v26, %v964_v22  ;;  %v2066_v31 = vpack.c.bf16 %v972_v30, %v969_v54  ;;  %v971_v33 = vld [vmem:[%s3628_s5 + $0x78] sm:$0xff] }
 0x148   :  { %v2143_v24 = vpop.eup %2142  ;;  %v223_v25 = vadd.f32 1e-05, %v207_v40  ;;  %1971 = vmatprep.mubr.msk.f32.mxu0 %vm46_vm0, %v290_v41  ;;  %v270_v47 = vmul.f32 %v2606_v38, %v248_v42  ;;  %v2068_v20 = vpack.c.bf16 %v971_v33, %v968_v32  ;;  %v2098_v39 = vpack.c.bf16 %v973_v55, %v970_v34  ;;  %v975_v0 = vld [vmem:[%s3628_s5 + $0x98] sm:$0xff]  ;;  %v978_v40 = vld [vmem:[%s3628_s5 + $0xb0] sm:$0xff] }
 0x149   :  { %v2145_v48 = vpop.eup %2144  ;;  %v291_v1 = vadd.f32 %v2612_v46, %v269_v43  ;;  %v249_v51 = vmul.f32 %v2143_v24, %v2533_v11  ;;  %v2070_v41 = vpack.c.bf16 %v978_v40, %v975_v0  ;;  %v974_v42 = vld [vmem:[%s3628_s5 + $0x90] sm:$0xff]  ;;  %v977_v43 = vld [vmem:[%s3628_s5 + $0xa8] sm:$0xff]  ;;  %v976_v24 = vld [vmem:[%s3628_s5 + $0xa0] sm:$0xff] }
 0x14a   :  { %2154 = vrsqrt.f32 %v223_v25  ;;  %v292_v52 = vadd.f32 %v2612_v46, %v270_v47  ;;  %v250_v10 = vmul.f32 %v2145_v48, %v2542_v23  ;;  %v2072_v25 = vpack.c.bf16 %v977_v43, %v974_v42  ;;  %v979_v47 = vld [vmem:[%s3628_s5 + $0xb8] sm:$0xff] }
 0x14b   :  { %1972 = vmatmul.mubr.msk.f32.gmra.mrb[6].mxu0 %vm46_vm0, %v291_v1  ;;  %v271_v53 = vmul.f32 %v2606_v38, %v249_v51  ;;  %v2102_v48 = vpack.c.bf16 %v979_v47, %v976_v24  ;;  %v981_v1 = vld [vmem:[%s3628_s5 + $0xc8] sm:$0xff]  ;;  %v984_v51 = vld [vmem:[%s3628_s5 + $0xe0] sm:$0xff] }
 0x14c   :  { %v2147_v56 = vpop.eup %2146  ;;  %1974 = vmatprep.mubr.msk.f32.mxu0 %vm46_vm0, %v292_v52  ;;  %v272_v36 = vmul.f32 %v2606_v38, %v250_v10  ;;  %v2074_v52 = vpack.c.bf16 %v984_v51, %v981_v1  ;;  %v980_v10 = vld [vmem:[%s3628_s5 + $0xc0] sm:$0xff] }
 0x14d   :  { %v2149_v28 = vpop.eup %2148  ;;  %v293_v29 = vadd.f32 %v2612_v46, %v271_v53  ;;  %v251_v57 = vmul.f32 %v2147_v56, %v2545_v17  ;;  %v983_v53 = vld [vmem:[%s3628_s5 + $0xd8] sm:$0xff]  ;;  %v982_v56 = vld [vmem:[%s3628_s5 + $0xd0] sm:$0xff] }
 0x14e   :  { %v294_v11 = vadd.f32 %v2612_v46, %v272_v36  ;;  %v252_v58 = vmul.f32 %v2149_v28, %v2554_v35  ;;  %v2076_v36 = vpack.c.bf16 %v983_v53, %v980_v10  ;;  %v985_v28 = vld [vmem:[%s3628_s5 + $0xe8] sm:$0xff] }
 0x14f   :  { %1975 = vmatmul.mubr.msk.f32.gmra.mrb[8].mxu0 %vm46_vm0, %v293_v29  ;;  %v273_v23 = vmul.f32 %v2606_v38, %v251_v57  ;;  %v2106_v29 = vpack.c.bf16 %v985_v28, %v982_v56  ;;  %v987_v57 = vld [vmem:[%s3628_s5 + $0xf8] sm:$0xff] }
 0x150   :  { %v2151_v59 = vpop.eup %2150  ;;  %1977 = vmatprep.mubr.msk.f32.mxu0 %vm46_vm0, %v294_v11  ;;  %v274_v60 = vmul.f32 %v2606_v38, %v252_v58  ;;  %v990_v11 = vld [vmem:[%s3628_s5 + $0x110] sm:$0xff] }
 0x151   :  { %v2153_v61 = vpop.eup %2152  ;;  %v295_v62 = vadd.f32 %v2612_v46, %v273_v23  ;;  %v253_v63 = vmul.f32 %v2151_v59, %v2557_v21  ;;  %v2078_v58 = vpack.c.bf16 %v990_v11, %v987_v57  ;;  %v986_v23 = vld [vmem:[%s3628_s5 + $0xf0] sm:$0xff]  ;;  %v989_v59 = vld [vmem:[%s3628_s5 + $0x108] sm:$0xff] }
 0x152   :  { %v296_v17 = vadd.f32 %v2612_v46, %v274_v60  ;;  %v254_v2 = vmul.f32 %v2153_v61, %v2572_v49  ;;  %v988_v60 = vld [vmem:[%s3628_s5 + $0x100] sm:$0xff]  ;;  %v2080_v61 = vpack.c.bf16 %v989_v59, %v986_v23 }
 0x153   :  { %1978 = vmatmul.mubr.msk.f32.gmra.mrb[10].mxu0 %vm46_vm0, %v295_v62  ;;  %v275_v35 = vmul.f32 %v2606_v38, %v253_v63  ;;  %v991_v62 = vld [vmem:[%s3628_s5 + $0x118] sm:$0xff] }
 0x154   :  { %v2155_v3 = vpop.eup %2154  ;;  %1980 = vmatprep.mubr.msk.f32.mxu0 %vm46_vm0, %v296_v17  ;;  %v276_v44 = vmul.f32 %v2606_v38, %v254_v2  ;;  %v2110_v63 = vpack.c.bf16 %v991_v62, %v988_v60  ;;  %v993_v17 = vld [vmem:[%s3628_s5 + $0x128] sm:$0xff]  ;;  %v996_v2 = vld [vmem:[%s3628_s5 + $0x140] sm:$0xff]  ;;  %v3639_v60 = vmov -1.0  }
 0x155   :  { %v297_v4 = vadd.f32 %v2612_v46, %v275_v35  ;;  %v255_v5 = vmul.f32 %v2155_v3, %v2575_v50  ;;  %v960_v50 = vld [vmem:[%s3628_s5 + $0x20] sm:$0xff]  ;;  %v2082_v35 = vpack.c.bf16 %v996_v2, %v993_v17 }
 0x156   :  { %v298_v37 = vadd.f32 %v2612_v46, %v276_v44  ;;  %v2058_v7 = vpack.c.bf16 %v960_v50, %v957_v6  ;;  %v992_v3 = vld [vmem:[%s3628_s5 + $0x120] sm:$0xff]  ;;  %v995_v44 = vld [vmem:[%s3628_s5 + $0x138] sm:$0xff] }
 0x157   :  { %1981 = vmatmul.mubr.msk.f32.gmra.mrb[12].mxu0 %vm46_vm0, %v297_v4  ;;  %v277_v21 = vmul.f32 %v2606_v38, %v255_v5  ;;  %v959_v38 = vld [vmem:[%s3628_s5 + $0x18] sm:$0xff]  ;;  %v994_v4 = vld [vmem:[%s3628_s5 + $0x130] sm:$0xff]  ;;  %v2084_v5 = vpack.c.bf16 %v995_v44, %v992_v3 }
 0x158   :  { %1983 = vmatprep.mubr.msk.f32.mxu0 %vm46_vm0, %v298_v37  ;;  %2059 = vmatprep.subr.bf16.mxu1 %v2058_v7  ;;  %v2060_v9 = vpack.c.bf16 %v959_v38, %v956_v8  ;;  %v997_v37 = vld [vmem:[%s3628_s5 + $0x148] sm:$0xff]  ;;  %v998_v7 = vld [vmem:[%s3628_s5 + $0x150] sm:$0xff]  ;;  %v1000_v38 = vld [vmem:[%s3628_s5 + $0x160] sm:$0xff] }
 0x159   :  { %v299_v49 = vadd.f32 %v2612_v46, %v277_v21  ;;  %v958_v46 = vld [vmem:[%s3628_s5 + $0x10] sm:$0xff]  ;;  %v999_v21 = vld [vmem:[%s3628_s5 + $0x158] sm:$0xff]  ;;  %v2114_v6 = vpack.c.bf16 %v997_v37, %v994_v4  ;;  %v1001_v8 = vld [vmem:[%s3628_s5 + $0x168] sm:$0xff] }
 0x15a   :  { %v2090_v13 = vpack.c.bf16 %v961_v12, %v958_v46  ;;  %2061 = vmatpush1.bf16.msra.mxu1 %v2060_v9  ;;  %v3633_v46 = vmov 0.0   ;;  %v2088_v9 = vpack.c.bf16 %v1001_v8, %v998_v7  ;;  %v1003_v12 = vld [vmem:[%s3628_s5 + $0x178] sm:$0xff] }
 0x15b   :  { %1984 = vmatmul.mubr.msk.f32.gmra.mrb[14].mxu0 %vm46_vm0, %v299_v49  ;;  %2063 = vmatprep.subr.bf16.mxu1 %v2062_v45  ;;  %v1002_v49 = vld [vmem:[%s3628_s5 + $0x170] sm:$0xff] }
 0x15c   :  { %2091 = vmatprep.subr.bf16.mxu0 %v2090_v13  ;;  %v2086_v50 = vpack.c.bf16 %v1002_v49, %v999_v21  ;;  %1085 = vmatprep.mubr.f32.mxu1 %v3633_v46 }
 0x15d   :  { %2093 = vmatpush3.bf16.msra.mxu0 %v2090_v13  ;;  %v2118_v13 = vpack.c.bf16 %v1003_v12, %v1000_v38 }
 0x15e   :  { %2065 = vmatpush1.bf16.msra.mxu1 %v2064_v16  ;;  %2095 = vmatprep.subr.bf16.mxu0 %v2094_v27 }
 0x15f   :  { %2067 = vmatprep.subr.bf16.mxu1 %v2066_v31 }
 0x161   :  { %2097 = vmatpush3.bf16.msra.mxu0 %v2094_v27 }
 0x162   :  { %2069 = vmatpush1.bf16.msra.mxu1 %v2068_v20  ;;  %2099 = vmatprep.subr.bf16.mxu0 %v2098_v39 }
 0x163   :  { %2071 = vmatprep.subr.bf16.mxu1 %v2070_v41 }
 0x165   :  { %2101 = vmatpush3.bf16.msra.mxu0 %v2098_v39 }
 0x166   :  { %2073 = vmatpush1.bf16.msra.mxu1 %v2072_v25  ;;  %2103 = vmatprep.subr.bf16.mxu0 %v2102_v48 }
 0x167   :  { %2075 = vmatprep.subr.bf16.mxu1 %v2074_v52 }
 0x169   :  { %2105 = vmatpush3.bf16.msra.mxu0 %v2102_v48 }
 0x16a   :  { %2077 = vmatpush1.bf16.msra.mxu1 %v2076_v36  ;;  %2107 = vmatprep.subr.bf16.mxu0 %v2106_v29 }
 0x16b   :  { %2079 = vmatprep.subr.bf16.mxu1 %v2078_v58 }
 0x16d   :  { %2109 = vmatpush3.bf16.msra.mxu0 %v2106_v29 }
 0x16e   :  { %2081 = vmatpush1.bf16.msra.mxu1 %v2080_v61  ;;  %2111 = vmatprep.subr.bf16.mxu0 %v2110_v63 }
 0x16f   :  { %2083 = vmatprep.subr.bf16.mxu1 %v2082_v35 }
 0x171   :  { %2113 = vmatpush3.bf16.msra.mxu0 %v2110_v63 }
 0x172   :  { %2085 = vmatpush1.bf16.msra.mxu1 %v2084_v5  ;;  %2115 = vmatprep.subr.bf16.mxu0 %v2114_v6 }
 0x173   :  { %2087 = vmatprep.subr.bf16.mxu1 %v2086_v50 }
 0x175   :  { %2117 = vmatpush3.bf16.msra.mxu0 %v2114_v6 }
 0x176   :  { %2119 = vmatprep.subr.bf16.mxu0 %v2118_v13  ;;  %2089 = vmatpush1.bf16.msra.mxu1 %v2088_v9 }
 0x179   :  { %2121 = vmatpush3.bf16.msra.mxu0 %v2118_v13 }
 0x212   :  { %v1964_v15 = vpop.f32.mrb[0].mxu0 }
 0x213   :  { %v435_v45 = vadd.f32 %v1964_v15, %v2825_v14  ;;  %v429_v18 = vpop.f32.mrb[1].mxu0 }
 0x214   :  { %v430_v19 = vadd.f32 %v2825_v14, %v429_v18 }
 0x215   :  { %v525_v22 = vmul.f32 0.70710677, %v435_v45  ;;  %v2831_v47 = vmul.f32 0.5, %v435_v45 }
 0x216   :  { %v524_v16 = vmul.f32 0.70710677, %v430_v19  ;;  %v1967_v26 = vpop.f32.mrb[2].mxu0  ;;  %v2833_v48 = vmul.f32 0.5, %v430_v19 }
 0x217   :  { %v573_v27 = vand.u32 2147483647, %v525_v22  ;;  %v445_v54 = vadd.f32 %v1967_v26, %v2825_v14  ;;  %v439_v30 = vpop.f32.mrb[3].mxu0  ;;  %vm541_vm1 = vcmp.ge.f32.partialorder %v525_v22, 0.0 }
 0x218   :  { %v572_v31 = vand.u32 2147483647, %v524_v16  ;;  %v440_v32 = vadd.f32 %v2825_v14, %v439_v30  ;;  %vm540_vm2 = vcmp.ge.f32.partialorder %v524_v16, 0.0  ;;  %v2843_v61 = vsel %vm541_vm1, 1.0, %v3639_v60 }
 0x219   :  { %v589_v33 = vmul.f32 0.3275911, %v573_v27  ;;  %v797_v34 = vsub.f32 0.0, %v573_v27  ;;  %v527_v55 = vmul.f32 0.70710677, %v445_v54  ;;  %v2847_v62 = vsel %vm540_vm2, 1.0, %v3639_v60 }
 0x21a   :  { %v796_v20 = vsub.f32 0.0, %v572_v31  ;;  %v526_v0 = vmul.f32 0.70710677, %v440_v32  ;;  %v1970_v40 = vpop.f32.mrb[4].mxu0  ;;  %v588_v42 = vmul.f32 0.3275911, %v572_v31 }
 0x21b   :  { %v605_v39 = vadd.f32 1.0, %v589_v33  ;;  %v813_v41 = vmul.f32 %v797_v34, %v573_v27  ;;  %v575_v43 = vand.u32 2147483647, %v527_v55  ;;  %v449_v24 = vpop.f32.mrb[5].mxu0  ;;  %v455_v52 = vadd.f32 %v1970_v40, %v2825_v14 }
 0x21c   :  { %v812_v25 = vmul.f32 %v796_v20, %v572_v31  ;;  %v574_v51 = vand.u32 2147483647, %v526_v0  ;;  %v604_v56 = vadd.f32 1.0, %v588_v42  ;;  %v450_v28 = vadd.f32 %v2825_v14, %v449_v24 }
 0x21d   :  { %2156 = vrcp.f32 %v605_v39  ;;  %v830_v53 = vmul.f32 1.442695, %v813_v41  ;;  %v799_v36 = vsub.f32 0.0, %v575_v43  ;;  %vm543_vm3 = vcmp.ge.f32.partialorder %v527_v55, 0.0 }
 0x21e   :  { %v1973_v1 = vpop.f32.mrb[6].mxu0  ;;  %v828_v29 = vmul.f32 1.442695, %v812_v25  ;;  %vm542_vm4 = vcmp.ge.f32.partialorder %v526_v0, 0.0  ;;  %v2837_v57 = vmul.f32 0.70710677, %v455_v52  ;;  %2158 = vrcp.f32 %v604_v56 }
 0x21f   :  { %v459_v10 = vpop.f32.mrb[7].mxu0  ;;  %v591_v11 = vmul.f32 0.3275911, %v575_v43  ;;  %v798_v58 = vsub.f32 0.0, %v574_v51  ;;  %v2839_v23 = vmul.f32 0.70710677, %v450_v28  ;;  %v815_v35 = vmul.f32 %v799_v36, %v575_v43 }
 0x220   :  { %v2849_v63 = vmul.f32 0.5, %v445_v54  ;;  %v577_v17 = vand.u32 2147483647, %v2837_v57  ;;  %v2852_v3 = vmul.f32 0.5, %v440_v32  ;;  %2160 = vpow2.f32 %v830_v53 }
 0x221   :  { %v576_v44 = vand.u32 2147483647, %v2839_v23  ;;  %v2857_v4 = vsel %vm543_vm3, 1.0, %v3639_v60  ;;  %v2861_v5 = vsel %vm542_vm4, 1.0, %v3639_v60  ;;  %v590_v37 = vmul.f32 0.3275911, %v574_v51 }
 0x222   :  { %v1976_v59 = vpop.f32.mrb[8].mxu0  ;;  %2162 = vpow2.f32 %v828_v29  ;;  %v607_v21 = vadd.f32 1.0, %v591_v11  ;;  %v814_v49 = vmul.f32 %v798_v58, %v574_v51  ;;  %v465_v6 = vadd.f32 %v1973_v1, %v2825_v14 }
 0x223   :  { %v469_v2 = vpop.f32.mrb[9].mxu0  ;;  %v2866_v8 = vmul.f32 0.5, %v455_v52  ;;  %v593_v38 = vmul.f32 0.3275911, %v577_v17  ;;  %v801_v9 = vsub.f32 0.0, %v577_v17  ;;  %v460_v12 = vadd.f32 %v2825_v14, %v459_v10 }
 0x224   :  { %v834_v45 = vmul.f32 1.442695, %v815_v35  ;;  %v2872_v18 = vmul.f32 0.5, %v450_v28  ;;  %v800_v19 = vsub.f32 0.0, %v576_v44  ;;  %v606_v22 = vadd.f32 1.0, %v590_v37 }
 0x225   :  { %vm545_vm5 = vcmp.ge.f32.partialorder %v2837_v57, 0.0  ;;  %v592_v16 = vmul.f32 0.3275911, %v576_v44  ;;  %v531_v26 = vmul.f32 0.70710677, %v465_v6  ;;  %2164 = vrcp.f32 %v607_v21 }
 0x226   :  { %v1979_v50 = vpop.f32.mrb[10].mxu0  ;;  %v832_v54 = vmul.f32 1.442695, %v814_v49  ;;  %v2875_v30 = vmul.f32 0.70710677, %v460_v12  ;;  %v609_v31 = vadd.f32 1.0, %v593_v38  ;;  %v817_v32 = vmul.f32 %v801_v9, %v577_v17 }
 0x227   :  { %v2864_v7 = vpop.eup %2156  ;;  %v2869_v13 = vpop.f32.mrb[11].mxu0  ;;  %v579_v33 = vand.u32 2147483647, %v531_v26  ;;  %v2878_v34 = vadd.f32 %v1976_v59, %v2825_v14  ;;  %2166 = vpow2.f32 %v834_v45  ;;  %vm544_vm6 = vcmp.ge.f32.partialorder %v2839_v23, 0.0 }
 0x228   :  { %v653_v15 = vmul.f32 1.0614054, %v2864_v7  ;;  %v816_v39 = vmul.f32 %v800_v19, %v576_v44  ;;  %2168 = vrcp.f32 %v606_v22  ;;  %v608_v40 = vadd.f32 1.0, %v592_v16  ;;  %v2883_v43 = vpop.eup %2158 }
 0x229   :  { %v595_v41 = vmul.f32 0.3275911, %v579_v33  ;;  %v578_v42 = vand.u32 2147483647, %v2875_v30  ;;  %2170 = vpow2.f32 %v832_v54  ;;  %v803_v25 = vsub.f32 0.0, %v579_v33 }
 0x22a   :  { %v669_v27 = vadd.f32 -1.4531521, %v653_v15  ;;  %v1982_v20 = vpop.f32.mrb[12].mxu0  ;;  %v2886_v1 = vmul.f32 0.70710677, %v2878_v34  ;;  %v2161_v52 = vpop.eup %2160  ;;  %v2893_v10 = vsel %vm545_vm5, 1.0, %v3639_v60  ;;  %2172 = vrcp.f32 %v609_v31 }
 0x22b   :  { %v489_v0 = vpop.f32.mrb[13].mxu0  ;;  %v838_v53 = vmul.f32 1.442695, %v817_v32  ;;  %v2896_v56 = vadd.f32 %v2825_v14, %v469_v2  ;;  %v836_v11 = vmul.f32 1.442695, %v816_v39  ;;  %v802_v58 = vsub.f32 0.0, %v578_v42 }
 0x22c   :  { %v685_v55 = vmul.f32 %v2864_v7, %v669_v27  ;;  %v2900_v28 = vpop.eup %2162  ;;  %v581_v59 = vand.u32 2147483647, %v2886_v1  ;;  %v2907_v57 = vsel %vm544_vm6, 1.0, %v3639_v60  ;;  %2174 = vrcp.f32 %v608_v40 }
 0x22d   :  { %v2909_v17 = vmul.f32 0.5, %v465_v6  ;;  %vm547_vm7 = vcmp.ge.f32.partialorder %v531_v26, 0.0  ;;  %v611_v35 = vadd.f32 1.0, %v595_v41  ;;  %v819_v44 = vmul.f32 %v803_v25, %v579_v33 }
 0x22e   :  { %v701_v24 = vadd.f32 1.4214138, %v685_v55  ;;  %v2888_v51 = vpop.f32.mrb[14].mxu0  ;;  %v594_v37 = vmul.f32 0.3275911, %v578_v42  ;;  %2176 = vpow2.f32 %v838_v53  ;;  %v805_v21 = vsub.f32 0.0, %v581_v59 }
 0x22f   :  { %v2898_v36 = vpop.f32.mrb[15].mxu0  ;;  %v2912_v49 = vmul.f32 0.70710677, %v2896_v56  ;;  %v2915_v38 = vadd.f32 %v1979_v50, %v2825_v14  ;;  %v2917_v9 = vpop.eup %2164  ;;  %2178 = vpow2.f32 %v836_v11  ;;  %v2920_v6 = vmul.f32 0.5, %v460_v12 }
 0x230   :  { %v717_v29 = vmul.f32 %v2864_v7, %v701_v24  ;;  %v818_v15 = vmul.f32 %v802_v58, %v578_v42  ;;  %v2923_v45 = vsel %vm547_vm7, 1.0, %v3639_v60  ;;  %vm546_vm8 = vcmp.ge.f32.partialorder %v2875_v30, 0.0 }
 0x231   :  { %3645 = vst [vmem:[#allocation2_spill] sm:$0xff] %v2915_v38  ;;  %v597_v19 = vmul.f32 0.3275911, %v581_v59  ;;  %v580_v22 = vand.u32 2147483647, %v2912_v49  ;;  %v2927_v16 = vpop.eup %2166  ;;  %2180 = vrcp.f32 %v611_v35  ;;  %v610_v27 = vadd.f32 1.0, %v594_v37 }
 0x232   :  { %v733_v2 = vadd.f32 -0.28449672, %v717_v29  ;;  %v842_v26 = vmul.f32 1.442695, %v819_v44  ;;  %v2929_v54 = vpop.eup %2168  ;;  %v821_v31 = vmul.f32 %v805_v21, %v581_v59  ;;  %v535_v32 = vmul.f32 0.70710677, %v2915_v38 }
 0x233   :  { %v804_v12 = vsub.f32 0.0, %v580_v22  ;;  %v2934_v33 = vadd.f32 %v2825_v14, %v2869_v13  ;;  %v2936_v55 = vpop.eup %2170  ;;  %v840_v40 = vmul.f32 1.442695, %v818_v15  ;;  %v2940_v41 = vadd.f32 %v1982_v20, %v2825_v14 }
 0x234   :  { %v749_v23 = vmul.f32 %v2864_v7, %v733_v2  ;;  %v2943_v42 = vadd.f32 %v2825_v14, %v489_v0  ;;  %v2945_v24 = vpop.eup %2172  ;;  %v613_v25 = vadd.f32 1.0, %v597_v19  ;;  %v596_v53 = vmul.f32 0.3275911, %v580_v22 }
 0x235   :  { %3646 = vst [vmem:[#allocation3_spill] sm:$0xff] %v2934_v33  ;;  %3647 = vst [vmem:[#allocation4_spill] sm:$0xff] %v2940_v41  ;;  %vm551_vm9 = vcmp.ge.f32.partialorder %v535_v32, 0.0  ;;  %v583_v29 = vand.u32 2147483647, %v535_v32  ;;  %2182 = vpow2.f32 %v842_v26  ;;  %v820_v0 = vmul.f32 %v804_v12, %v580_v22 }
 0x236   :  { %v765_v50 = vadd.f32 0.2548296, %v749_v23  ;;  %3648 = vst [vmem:[#allocation5_spill] sm:$0xff] %v2943_v42  ;;  %v2948_v13 = vsel %vm551_vm9, 1.0, %v3639_v60  ;;  %v2953_v58 = vpop.eup %2174  ;;  %2184 = vrcp.f32 %v610_v27  ;;  %v846_v20 = vmul.f32 1.442695, %v821_v31 }
 0x237   :  { %3649 = vst [vmem:[#allocation6_spill] sm:$0xff] %v2948_v13  ;;  %v807_v59 = vsub.f32 0.0, %v583_v29  ;;  %2186 = vpow2.f32 %v840_v40  ;;  %v599_v35 = vmul.f32 0.3275911, %v583_v29  ;;  %v2964_v21 = vmul.f32 0.5, %v2878_v34 }
 0x238   :  { %v781_v39 = vmul.f32 %v2864_v7, %v765_v50  ;;  %v2951_v7 = vmul.f32 0.70710677, %v2934_v33  ;;  %v2956_v37 = vpop.eup %2176  ;;  %2188 = vrcp.f32 %v613_v25  ;;  %v612_v23 = vadd.f32 1.0, %v596_v53 }
 0x239   :  { %3651 = vst [vmem:[#allocation8_spill] sm:$0xff] %v2964_v21  ;;  %v2966_v15 = vpop.eup %2178  ;;  %v823_v22 = vmul.f32 %v807_v59, %v583_v29  ;;  %v537_v26 = vmul.f32 0.70710677, %v2940_v41  ;;  %2190 = vpow2.f32 %v846_v20  ;;  %vm548_vm10 = vcmp.ge.f32.partialorder %v2912_v49, 0.0 }
 0x23a   :  { %v861_v11 = vmul.f32 %v2161_v52, %v781_v39  ;;  %3650 = vst [vmem:[#allocation7_spill] sm:$0xff] %v2951_v7  ;;  %v582_v44 = vand.u32 2147483647, %v2951_v7  ;;  %v2961_v52 = vsel %vm546_vm8, 1.0, %v3639_v60  ;;  %v844_v27 = vmul.f32 1.442695, %v820_v0 }
 0x23b   :  { %v536_v30 = vmul.f32 0.70710677, %v2943_v42  ;;  %v2972_v31 = vpop.eup %2180  ;;  %v615_v12 = vadd.f32 1.0, %v599_v35  ;;  %vm553_vm11 = vcmp.ge.f32.partialorder %v537_v26, 0.0  ;;  %2192 = vrcp.f32 %v612_v23 }
 0x23c   :  { %v877_v2 = vsub.f32 1.0, %v861_v11  ;;  %v806_v50 = vsub.f32 0.0, %v582_v44  ;;  %v598_v32 = vmul.f32 0.3275911, %v582_v44  ;;  %v2975_v40 = vsel %vm553_vm11, 1.0, %v3639_v60 }
 0x23d   :  { %3652 = vst [vmem:[#allocation9_spill] sm:$0xff] %v2975_v40  ;;  %vm552_vm12 = vcmp.ge.f32.partialorder %v536_v30, 0.0  ;;  %v850_v53 = vmul.f32 1.442695, %v823_v22  ;;  %v584_v0 = vand.u32 2147483647, %v536_v30  ;;  %v2985_v59 = vadd.f32 %v2888_v51, %v2825_v14 }
 0x23e   :  { %v893_v19 = vmul.f32 %v877_v2, %v2843_v61  ;;  %v822_v39 = vmul.f32 %v806_v50, %v582_v44  ;;  %v585_v61 = vand.u32 2147483647, %v537_v26  ;;  %v2981_v29 = vsel %vm552_vm12, 1.0, %v3639_v60 }
 0x23f   :  { %3653 = vst [vmem:[#allocation10_spill] sm:$0xff] %v2981_v29  ;;  %3654 = vst [vmem:[#allocation11_spill] sm:$0xff] %v2985_v59  ;;  %v2987_v2 = vpop.eup %2182  ;;  %v2999_v35 = vsel %vm548_vm10, 1.0, %v3639_v60  ;;  %2194 = vpow2.f32 %v844_v27  ;;  %v3003_v51 = vadd.f32 %v2825_v14, %v2898_v36  ;;  %v614_v23 = vadd.f32 1.0, %v598_v32 }
 0x240   :  { %v909_v34 = vadd.f32 1.0, %v893_v19  ;;  %v601_v11 = vmul.f32 0.3275911, %v585_v61  ;;  %v809_v20 = vsub.f32 0.0, %v585_v61  ;;  %v3005_v44 = vpop.eup %2184  ;;  %2196 = vrcp.f32 %v615_v12 }
 0x241   :  { %3655 = vst [vmem:[#allocation12_spill] sm:$0xff] %v3003_v51  ;;  %v848_v19 = vmul.f32 1.442695, %v822_v39  ;;  %v600_v22 = vmul.f32 0.3275911, %v584_v0  ;;  %v3007_v50 = vpop.eup %2186  ;;  %2198 = vpow2.f32 %v850_v53  ;;  %vm549_vm15 = vcmp.ge.f32.partialorder %v2886_v1, 0.0 }
 0x242   :  { %v2978_v25 = vmul.f32 %v909_v34, %v2831_v47  ;;  %v2994_v47 = vmul.f32 0.5, %v2896_v56  ;;  %v808_v56 = vsub.f32 0.0, %v584_v0  ;;  %v539_v26 = vmul.f32 0.70710677, %v2985_v59  ;;  %v3011_v30 = vpop.eup %2188 }
 0x243   :  { %v538_v49 = vmul.f32 0.70710677, %v3003_v51  ;;  %v617_v27 = vadd.f32 1.0, %v601_v11  ;;  %v825_v34 = vmul.f32 %v809_v20, %v585_v61  ;;  %v652_v14 = vmul.f32 1.0614054, %v2883_v43  ;;  %v3015_v39 = vpop.eup %2190 }
 0x244   :  { %941 = vst [vmem:[%s3630_s7 + $0x8] sm:$0xff] %v2978_v25  ;;  %v654_v36 = vmul.f32 1.0614054, %v2929_v54  ;;  %vm555_vm13 = vcmp.ge.f32.partialorder %v539_v26, 0.0  ;;  %v587_v12 = vand.u32 2147483647, %v539_v26  ;;  %2200 = vrcp.f32 %v614_v23 }
 0x245   :  { %vm554_vm14 = vcmp.ge.f32.partialorder %v538_v49, 0.0  ;;  %v586_v32 = vand.u32 2147483647, %v538_v49  ;;  %3656 = vst [vmem:[#allocation13_spill] sm:$0xff] %v3015_v39  ;;  %v616_v53 = vadd.f32 1.0, %v600_v22  ;;  %v3018_v46 = vsel %vm555_vm13, 1.0, %v3639_v60  ;;  %v3023_v42 = vpop.eup %2192 }
 0x246   :  { %3657 = vst [vmem:[#allocation14_spill] sm:$0xff] %v3018_v46  ;;  %v3021_v59 = vsel %vm554_vm14, 1.0, %v3639_v60  ;;  %v824_v11 = vmul.f32 %v808_v56, %v584_v0  ;;  %v603_v61 = vmul.f32 0.3275911, %v587_v12  ;;  %v811_v20 = vsub.f32 0.0, %v587_v12 }
 0x247   :  { %3658 = vst [vmem:[#allocation15_spill] sm:$0xff] %v3021_v59  ;;  %v602_v51 = vmul.f32 0.3275911, %v586_v32  ;;  %2202 = vpow2.f32 %v848_v19  ;;  %v810_v41 = vsub.f32 0.0, %v586_v32  ;;  %v668_v40 = vadd.f32 -1.4531521, %v652_v14 }
 0x248   :  { %v670_v26 = vadd.f32 -1.4531521, %v654_v36  ;;  %2204 = vrcp.f32 %v617_v27  ;;  %v3025_v49 = vmul.f32 1.442695, %v825_v34  ;;  %v827_v23 = vmul.f32 %v811_v20, %v587_v12 }
 0x249   :  { %v655_v22 = vmul.f32 1.0614054, %v2917_v9  ;;  %v826_v46 = vmul.f32 %v810_v41, %v586_v32  ;;  %v684_v60 = vmul.f32 %v2883_v43, %v668_v40  ;;  %v656_v56 = vmul.f32 1.0614054, %v2953_v58  ;;  %v3031_v59 = vpop.eup %2194 }
 0x24a   :  { %v686_v0 = vmul.f32 %v2929_v54, %v670_v26  ;;  %2206 = vrcp.f32 %v616_v53  ;;  %v3033_v19 = vmul.f32 1.442695, %v824_v11  ;;  %v657_v27 = vmul.f32 1.0614054, %v2945_v24  ;;  %v3036_v34 = vpop.eup %2196 }
 0x24b   :  { %v671_v14 = vadd.f32 -1.4531521, %v655_v22  ;;  %v619_v36 = vadd.f32 1.0, %v603_v61  ;;  %v618_v12 = vadd.f32 1.0, %v602_v51  ;;  %v700_v20 = vadd.f32 1.4214138, %v684_v60  ;;  %v3038_v32 = vpop.eup %2198 }
 0x24c   :  { %v702_v41 = vadd.f32 1.4214138, %v686_v0  ;;  %3659 = vst [vmem:[#allocation16_spill] sm:$0xff] %v3038_v32  ;;  %v3040_v40 = vmul.f32 1.442695, %v827_v23  ;;  %vm1816_vm1 = vcmask 261120  }
 0x24d   :  { %v687_v26 = vmul.f32 %v2917_v9, %v671_v14  ;;  %v672_v29 = vadd.f32 -1.4531521, %v656_v56  ;;  %v673_v21 = vadd.f32 -1.4531521, %v657_v27  ;;  %v3043_v53 = vmul.f32 1.442695, %v826_v46 }
 0x24e   :  { %3660 = vst [vmem:[#allocation17_spill] sm:$0xff] %v3040_v40  ;;  %v716_v11 = vmul.f32 %v2883_v43, %v700_v20  ;;  %v718_v22 = vmul.f32 %v2929_v54, %v702_v41  ;;  %v658_v33 = vmul.f32 1.0614054, %v3005_v44  ;;  %v659_v23 = vmul.f32 1.0614054, %v2972_v31  ;;  %v3051_v0 = vpop.eup %2200 }
 0x24f   :  { %v703_v61 = vadd.f32 1.4214138, %v687_v26  ;;  %v688_v60 = vmul.f32 %v2953_v58, %v672_v29  ;;  %v689_v51 = vmul.f32 %v2945_v24, %v673_v21  ;;  %2208 = vrcp.f32 %v619_v36 }
 0x250   :  { %v732_v56 = vadd.f32 -0.28449672, %v716_v11  ;;  %v734_v14 = vadd.f32 -0.28449672, %v718_v22  ;;  %v674_v46 = vadd.f32 -1.4531521, %v658_v33  ;;  %2210 = vrcp.f32 %v618_v12 }
 0x251   :  { %v719_v27 = vmul.f32 %v2917_v9, %v703_v61  ;;  %v704_v20 = vadd.f32 1.4214138, %v688_v60  ;;  %v705_v13 = vadd.f32 1.4214138, %v689_v51  ;;  %v675_v41 = vadd.f32 -1.4531521, %v659_v23  ;;  %v3054_v38 = vpop.eup %2202 }
 0x252   :  { %3661 = vst [vmem:[#allocation18_spill] sm:$0xff] %v3054_v38  ;;  %v748_v26 = vmul.f32 %v2883_v43, %v732_v56  ;;  %v750_v29 = vmul.f32 %v2929_v54, %v734_v14  ;;  %v690_v21 = vmul.f32 %v3005_v44, %v674_v46  ;;  %v660_v32 = vmul.f32 1.0614054, %v3023_v42  ;;  %v3060_v39 = vpop.eup %2204 }
 0x253   :  { %v735_v36 = vadd.f32 -0.28449672, %v719_v27  ;;  %v720_v33 = vmul.f32 %v2953_v58, %v704_v20  ;;  %v721_v11 = vmul.f32 %v2945_v24, %v705_v13  ;;  %v691_v22 = vmul.f32 %v2972_v31, %v675_v41 }
 0x254   :  { %v764_v61 = vadd.f32 0.2548296, %v748_v26  ;;  %v766_v60 = vadd.f32 0.2548296, %v750_v29  ;;  %v706_v51 = vadd.f32 1.4214138, %v690_v21  ;;  %v3065_v23 = vpop.eup %2206  ;;  %2212 = vpow2.f32 %v3025_v49 }
 0x255   :  { %v751_v56 = vmul.f32 %v2917_v9, %v735_v36  ;;  %v736_v14 = vadd.f32 -0.28449672, %v720_v33  ;;  %v737_v46 = vadd.f32 -0.28449672, %v721_v11  ;;  %v707_v38 = vadd.f32 1.4214138, %v691_v22 }
 0x256   :  { %v780_v7 = vmul.f32 %v2883_v43, %v764_v61  ;;  %v782_v27 = vmul.f32 %v2929_v54, %v766_v60  ;;  %v722_v20 = vmul.f32 %v3005_v44, %v706_v51  ;;  %v676_v13 = vadd.f32 -1.4531521, %v660_v32 }
 0x257   :  { %v767_v40 = vadd.f32 0.2548296, %v751_v56  ;;  %v752_v12 = vmul.f32 %v2953_v58, %v736_v14  ;;  %v753_v41 = vmul.f32 %v2945_v24, %v737_v46  ;;  %v723_v26 = vmul.f32 %v2972_v31, %v707_v38 }
 0x258   :  { %v860_v29 = vmul.f32 %v2900_v28, %v780_v7  ;;  %v862_v21 = vmul.f32 %v2936_v55, %v782_v27  ;;  %v738_v36 = vadd.f32 -0.28449672, %v722_v20  ;;  %v692_v33 = vmul.f32 %v3023_v42, %v676_v13 }
 0x259   :  { %v783_v43 = vmul.f32 %v2917_v9, %v767_v40  ;;  %v768_v54 = vadd.f32 0.2548296, %v752_v12  ;;  %v769_v11 = vadd.f32 0.2548296, %v753_v41  ;;  %v739_v22 = vadd.f32 -0.28449672, %v723_v26  ;;  %v3078_v32 = vpop.eup %2208 }
 0x25a   :  { %v876_v61 = vsub.f32 1.0, %v860_v29  ;;  %v878_v60 = vsub.f32 1.0, %v862_v21  ;;  %v754_v51 = vmul.f32 %v3005_v44, %v738_v36  ;;  %v708_v56 = vadd.f32 1.4214138, %v692_v33 }
 0x25b   :  { %v863_v38 = vmul.f32 %v2927_v16, %v783_v43  ;;  %v784_v28 = vmul.f32 %v2953_v58, %v768_v54  ;;  %v785_v55 = vmul.f32 %v2945_v24, %v769_v11  ;;  %v755_v7 = vmul.f32 %v2972_v31, %v739_v22  ;;  %v3090_v16 = vpop.eup %2210 }
 0x25c   :  { %v892_v9 = vmul.f32 %v876_v61, %v2847_v62  ;;  %v894_v40 = vmul.f32 %v878_v60, %v2861_v5  ;;  %v770_v14 = vadd.f32 0.2548296, %v754_v51  ;;  %v724_v46 = vmul.f32 %v3023_v42, %v708_v56 }
 0x25d   :  { %v879_v27 = vsub.f32 1.0, %v863_v38  ;;  %v864_v20 = vmul.f32 %v2966_v15, %v784_v28  ;;  %v865_v13 = vmul.f32 %v2956_v37, %v785_v55  ;;  %v771_v12 = vadd.f32 0.2548296, %v755_v7 }
 0x25e   :  { %v908_v58 = vadd.f32 1.0, %v892_v9  ;;  %v910_v41 = vadd.f32 1.0, %v894_v40  ;;  %v786_v24 = vmul.f32 %v3005_v44, %v770_v14  ;;  %v740_v26 = vadd.f32 -0.28449672, %v724_v46 }
 0x25f   :  { %v895_v62 = vmul.f32 %v879_v27, %v2857_v4  ;;  %v880_v29 = vsub.f32 1.0, %v864_v20  ;;  %v881_v5 = vsub.f32 1.0, %v865_v13  ;;  %v787_v21 = vmul.f32 %v2972_v31, %v771_v12 }
 0x260   :  { %v924_v36 = vmul.f32 %v908_v58, %v2833_v48  ;;  %v926_v15 = vmul.f32 %v910_v41, %v2852_v3  ;;  %v866_v37 = vmul.f32 %v3007_v50, %v786_v24  ;;  %v756_v33 = vmul.f32 %v3023_v42, %v740_v26  ;;  %v3167_v41 = vpop.eup %2212 }
 0x261   :  { %v911_v43 = vadd.f32 1.0, %v895_v62  ;;  %v896_v54 = vmul.f32 %v880_v29, %v2907_v57  ;;  %v897_v44 = vmul.f32 %v881_v5, %v2893_v10  ;;  %v867_v11 = vmul.f32 %v2987_v2, %v787_v21 }
 0x262   :  { %940 = vst [vmem:[%s3630_s7] sm:$0xff] %v924_v36  ;;  %1086 = vmatmul.mubr.f32.vlgmr.msra.gmra.mrb[0].mxu1 %v924_v36  ;;  %2018 = vmatprep.mubr.f32.mxu0 %v924_v36  ;;  %942 = vst [vmem:[%s3630_s7 + $0x10] sm:$0xff] %v926_v15  ;;  %v882_v48 = vsub.f32 1.0, %v866_v37  ;;  %v772_v3 = vadd.f32 0.2548296, %v756_v33  ;;  %v661_v4 = vmul.f32 1.0614054, %v3011_v30  ;;  %2214 = vpow2.f32 %v3033_v19 }
 0x263   :  { %2019 = vmatmul.mubr.f32.vlgmr.msra.gmra.mrb[16].mxu0 %v2978_v25  ;;  %v3662_v10 = vmov 0.0   ;;  %v927_v57 = vmul.f32 %v911_v43, %v2849_v63  ;;  %v912_v31 = vadd.f32 1.0, %v896_v54  ;;  %v913_v2 = vadd.f32 1.0, %v897_v44 }
 0x264   :  { %1091 = vmatprep.mubr.f32.mxu1 %v3662_v10  ;;  %v883_v50 = vsub.f32 1.0, %v867_v11  ;;  %2021 = vmatprep.mubr.f32.mxu0 %v926_v15  ;;  %v898_v49 = vmul.f32 %v882_v48, %v2961_v52  ;;  %v788_v22 = vmul.f32 %v3023_v42, %v772_v3  ;;  %v677_v61 = vadd.f32 -1.4531521, %v661_v4 }
 0x265   :  { %v662_v60 = vmul.f32 1.0614054, %v3051_v0  ;;  %943 = vst [vmem:[%s3630_s7 + $0x18] sm:$0xff] %v927_v57  ;;  %v3120_v51 = vmul.f32 %v912_v31, %v2872_v18  ;;  %v3123_v63 = vmul.f32 %v913_v2, %v2866_v8  ;;  %v663_v38 = vmul.f32 1.0614054, %v3036_v34 }
 0x266   :  { %v899_v56 = vmul.f32 %v883_v50, %v2923_v45  ;;  %1092 = vmatmul.mubr.f32.gmra.mrb[2].mxu1 %v2978_v25  ;;  %v914_v42 = vadd.f32 1.0, %v898_v49  ;;  %v868_v52 = vmul.f32 %v3031_v59, %v788_v22  ;;  %v693_v28 = vmul.f32 %v3011_v30, %v677_v61  ;;  %v3663_v61 = vld [vmem:[#allocation17_spill] sm:$0xff] }
 0x267   :  { %v678_v55 = vadd.f32 -1.4531521, %v662_v60  ;;  %2022 = vmatmul.mubr.f32.gmra.mrb[18].mxu0 %v927_v57  ;;  %1097 = vmatprep.mubr.f32.mxu1 %v3662_v10  ;;  %944 = vst [vmem:[%s3630_s7 + $0x20] sm:$0xff] %v3120_v51  ;;  %945 = vst [vmem:[%s3630_s7 + $0x28] sm:$0xff] %v3123_v63  ;;  %v679_v18 = vadd.f32 -1.4531521, %v663_v38  ;;  %2216 = vpow2.f32 %v3043_v53 }
 0x268   :  { %v915_v8 = vadd.f32 1.0, %v899_v56  ;;  %v664_v45 = vmul.f32 1.0614054, %v3065_v23  ;;  %2024 = vmatprep.mubr.f32.mxu0 %v3120_v51  ;;  %v3143_v25 = vmul.f32 %v914_v42, %v2920_v6  ;;  %v884_v59 = vsub.f32 1.0, %v868_v52 }
 0x269   :  { %v709_v19 = vadd.f32 1.4214138, %v693_v28  ;;  %v694_v7 = vmul.f32 %v3051_v0, %v678_v55  ;;  %v695_v40 = vmul.f32 %v3036_v34, %v679_v18  ;;  %v665_v46 = vmul.f32 1.0614054, %v3060_v39  ;;  %v3664_v55 = vld [vmem:[#allocation7_spill] sm:$0xff] }
 0x26a   :  { %v3147_v9 = vmul.f32 %v915_v8, %v2909_v17  ;;  %v680_v14 = vadd.f32 -1.4531521, %v664_v45  ;;  %1098 = vmatmul.mubr.f32.gmra.mrb[4].mxu1 %v926_v15  ;;  %946 = vst [vmem:[%s3630_s7 + $0x30] sm:$0xff] %v3143_v25  ;;  %v900_v6 = vmul.f32 %v884_v59, %v2999_v35  ;;  %v666_v13 = vmul.f32 1.0614054, %v3090_v16  ;;  %v3665_v8 = vld [vmem:[#allocation13_spill] sm:$0xff] }
 0x26b   :  { %v725_v27 = vmul.f32 %v3011_v30, %v709_v19  ;;  %v710_v20 = vadd.f32 1.4214138, %v694_v7  ;;  %2025 = vmatmul.mubr.f32.gmra.mrb[20].mxu0 %v3123_v63  ;;  %1103 = vmatprep.mubr.f32.mxu1 %v3662_v10  ;;  %v711_v17 = vadd.f32 1.4214138, %v695_v40  ;;  %v681_v35 = vadd.f32 -1.4531521, %v665_v46 }
 0x26c   :  { %947 = vst [vmem:[%s3630_s7 + $0x38] sm:$0xff] %v3147_v9  ;;  %v696_v12 = vmul.f32 %v3065_v23, %v680_v14  ;;  %v667_v58 = vmul.f32 1.0614054, %v3078_v32  ;;  %2027 = vmatprep.mubr.f32.mxu0 %v3143_v25  ;;  %v916_v24 = vadd.f32 1.0, %v900_v6  ;;  %v682_v29 = vadd.f32 -1.4531521, %v666_v13  ;;  %v2215_v31 = vpop.eup %2214 }
 0x26d   :  { %v741_v26 = vadd.f32 -0.28449672, %v725_v27  ;;  %v726_v62 = vmul.f32 %v3051_v0, %v710_v20  ;;  %v727_v5 = vmul.f32 %v3036_v34, %v711_v17  ;;  %v697_v36 = vmul.f32 %v3060_v39, %v681_v35  ;;  %v3667_v6 = vld [vmem:[#allocation18_spill] sm:$0xff]  ;;  %v3668_v13 = vld [vmem:[#allocation16_spill] sm:$0xff] }
 0x26e   :  { %v712_v21 = vadd.f32 1.4214138, %v696_v12  ;;  %v683_v15 = vadd.f32 -1.4531521, %v667_v58  ;;  %1104 = vmatmul.mubr.f32.gmra.mrb[6].mxu1 %v927_v57  ;;  %v3174_v37 = vmul.f32 %v916_v24, %v2994_v47  ;;  %v698_v54 = vmul.f32 %v3090_v16, %v682_v29 }
 0x26f   :  { %v757_v33 = vmul.f32 %v3011_v30, %v741_v26  ;;  %v742_v43 = vadd.f32 -0.28449672, %v726_v62  ;;  %2028 = vmatmul.mubr.f32.gmra.mrb[22].mxu0 %v3147_v9  ;;  %1109 = vmatprep.mubr.f32.mxu1 %v3662_v10  ;;  %v743_v44 = vadd.f32 -0.28449672, %v727_v5  ;;  %v713_v48 = vadd.f32 1.4214138, %v697_v36 }
 0x270   :  { %v728_v11 = vmul.f32 %v3065_v23, %v712_v21  ;;  %v699_v3 = vmul.f32 %v3078_v32, %v683_v15  ;;  %948 = vst [vmem:[%s3630_s7 + $0x40] sm:$0xff] %v3174_v37  ;;  %2030 = vmatprep.mubr.f32.mxu0 %v3174_v37  ;;  %v714_v57 = vadd.f32 1.4214138, %v698_v54  ;;  %2218 = vpow2.f32 %v3663_v61  ;;  %v3669_v21 = vld [vmem:[#allocation2_spill] sm:$0xff]  ;;  %v3674_v61 = vld [vmem:[#allocation5_spill] sm:$0xff] }
 0x271   :  { %v773_v47 = vadd.f32 0.2548296, %v757_v33  ;;  %v758_v4 = vmul.f32 %v3051_v0, %v742_v43  ;;  %v759_v2 = vmul.f32 %v3036_v34, %v743_v44  ;;  %v729_v49 = vmul.f32 %v3060_v39, %v713_v48  ;;  %v2217_v5 = vpop.eup %2216  ;;  %v3670_v43 = vld [vmem:[#allocation6_spill] sm:$0xff] }
 0x272   :  { %v744_v50 = vadd.f32 -0.28449672, %v728_v11  ;;  %v715_v22 = vadd.f32 1.4214138, %v699_v3  ;;  %1110 = vmatmul.mubr.f32.gmra.mrb[8].mxu1 %v3120_v51  ;;  %v730_v56 = vmul.f32 %v3090_v16, %v714_v57  ;;  %vm550_vm0 = vcmp.ge.f32.partialorder %v3664_v55, 0.0  ;;  %v3671_v3 = vld [vmem:[#allocation3_spill] sm:$0xff] }
 0x273   :  { %v789_v53 = vmul.f32 %v3011_v30, %v773_v47  ;;  %v774_v60 = vadd.f32 0.2548296, %v758_v4  ;;  %1115 = vmatprep.mubr.f32.mxu1 %v3662_v10  ;;  %v775_v38 = vadd.f32 0.2548296, %v759_v2  ;;  %v745_v52 = vadd.f32 -0.28449672, %v729_v49 }
 0x274   :  { %v760_v42 = vmul.f32 %v3065_v23, %v744_v50  ;;  %v731_v28 = vmul.f32 %v3078_v32, %v715_v22  ;;  %v746_v51 = vadd.f32 -0.28449672, %v730_v56  ;;  %v3666_v40 = vmov -1.0   ;;  %v3672_v4 = vld [vmem:[#allocation8_spill] sm:$0xff] }
 0x275   :  { %v869_v18 = vmul.f32 %v3665_v8, %v789_v53  ;;  %v790_v45 = vmul.f32 %v3051_v0, %v774_v60  ;;  %v791_v30 = vmul.f32 %v3036_v34, %v775_v38  ;;  %v761_v19 = vmul.f32 %v3060_v39, %v745_v52  ;;  %v3675_v38 = vld [vmem:[#allocation9_spill] sm:$0xff]  ;;  %v3677_v8 = vld [vmem:[#allocation4_spill] sm:$0xff] }
 0x276   :  { %v776_v59 = vadd.f32 0.2548296, %v760_v42  ;;  %v747_v7 = vadd.f32 -0.28449672, %v731_v28  ;;  %v565_v14 = vsel %vm549_vm15, 1.0, %v3666_v40  ;;  %1116 = vmatmul.mubr.f32.gmra.mrb[10].mxu1 %v3123_v63  ;;  %v762_v20 = vmul.f32 %v3090_v16, %v746_v51  ;;  %v3676_v28 = vld [vmem:[#allocation15_spill] sm:$0xff] }
 0x277   :  { %v885_v46 = vsub.f32 1.0, %v869_v18  ;;  %v870_v27 = vmul.f32 %v3667_v6, %v790_v45  ;;  %v871_v0 = vmul.f32 %v3668_v13, %v791_v30  ;;  %1121 = vmatprep.mubr.f32.mxu1 %v3662_v10  ;;  %v777_v17 = vadd.f32 0.2548296, %v761_v19  ;;  %v3678_v51 = vld [vmem:[#allocation14_spill] sm:$0xff] }
 0x278   :  { %v792_v34 = vmul.f32 %v3065_v23, %v776_v59  ;;  %v763_v12 = vmul.f32 %v3078_v32, %v747_v7  ;;  %v566_v1 = vsel %vm550_vm0, 1.0, %v3666_v40  ;;  %v778_v63 = vadd.f32 0.2548296, %v762_v20  ;;  %v3679_v59 = vld [vmem:[#allocation12_spill] sm:$0xff]  ;;  %v3680_v40 = vld [vmem:[#allocation11_spill] sm:$0xff] }
 0x279   :  { %v901_v35 = vmul.f32 %v885_v46, %v565_v14  ;;  %v886_v58 = vsub.f32 1.0, %v870_v27  ;;  %v887_v24 = vsub.f32 1.0, %v871_v0  ;;  %v793_v62 = vmul.f32 %v3060_v39, %v777_v17 }
 0x27a   :  { %v872_v26 = vmul.f32 %v2215_v31, %v792_v34  ;;  %v779_v29 = vadd.f32 0.2548296, %v763_v12  ;;  %v519_v36 = vmul.f32 0.5, %v3669_v21  ;;  %1122 = vmatmul.mubr.f32.gmra.mrb[12].mxu1 %v3143_v25  ;;  %v794_v33 = vmul.f32 %v3090_v16, %v778_v63  ;;  %v2219_v39 = vpop.eup %2218  ;;  %v3673_v25 = vld [vmem:[#allocation10_spill] sm:$0xff] }
 0x27b   :  { %v917_v15 = vadd.f32 1.0, %v901_v35  ;;  %v902_v23 = vmul.f32 %v886_v58, %v566_v1  ;;  %v903_v54 = vmul.f32 %v887_v24, %v3670_v43  ;;  %v873_v11 = vmul.f32 %v3167_v41, %v793_v62  ;;  %1127 = vmatprep.mubr.f32.mxu1 %v3662_v10  ;;  %v1004_v34 = vld [vmem:[%s3631_s6] sm:$0x7] }
 0x27c   :  { %v888_v44 = vsub.f32 1.0, %v872_v26  ;;  %v795_v48 = vmul.f32 %v3078_v32, %v779_v29  ;;  %v518_v47 = vmul.f32 0.5, %v3671_v3  ;;  %v874_v2 = vmul.f32 %v2217_v5, %v794_v33 }
 0x27d   :  { %v933_v57 = vmul.f32 %v917_v15, %v3672_v4  ;;  %v918_v31 = vadd.f32 1.0, %v902_v23  ;;  %v919_v50 = vadd.f32 1.0, %v903_v54  ;;  %v889_v16 = vsub.f32 1.0, %v873_v11 }
 0x27e   :  { %v904_v49 = vmul.f32 %v888_v44, %v3673_v25  ;;  %v875_v22 = vmul.f32 %v2219_v39, %v795_v48  ;;  %v520_v53 = vmul.f32 0.5, %v3674_v61  ;;  %1128 = vmatmul.mubr.f32.gmra.mrb[14].mxu1 %v3147_v9  ;;  %v890_v41 = vsub.f32 1.0, %v874_v2 }
 0x27f   :  { %949 = vst [vmem:[%s3630_s7 + $0x48] sm:$0xff] %v933_v57  ;;  %2031 = vmatmul.mubr.f32.gmra.mrb[24].mxu0 %v933_v57  ;;  %v934_v32 = vmul.f32 %v918_v31, %v518_v47  ;;  %v935_v60 = vmul.f32 %v919_v50, %v519_v36  ;;  %v905_v42 = vmul.f32 %v889_v16, %v3675_v38  ;;  %v521_v18 = vmul.f32 0.5, %v3677_v8 }
 0x280   :  { %v920_v56 = vadd.f32 1.0, %v904_v49  ;;  %v891_v52 = vsub.f32 1.0, %v875_v22  ;;  %1133 = vmatprep.mubr.f32.mxu1 %v3662_v10  ;;  %v906_v55 = vmul.f32 %v890_v41, %v3676_v28  ;;  %v522_v19 = vmul.f32 0.5, %v3679_v59 }
 0x281   :  { %950 = vst [vmem:[%s3630_s7 + $0x50] sm:$0xff] %v934_v32  ;;  %2033 = vmatprep.mubr.f32.mxu0 %v934_v32  ;;  %951 = vst [vmem:[%s3630_s7 + $0x58] sm:$0xff] %v935_v60  ;;  %v921_v45 = vadd.f32 1.0, %v905_v42  ;;  %v523_v14 = vmul.f32 0.5, %v3680_v40 }
 0x282   :  { %v936_v9 = vmul.f32 %v920_v56, %v520_v53  ;;  %v907_v30 = vmul.f32 %v891_v52, %v3678_v51  ;;  %v922_v7 = vadd.f32 1.0, %v906_v55  ;;  %1134 = vmatmul.mubr.f32.gmra.mrb[16].mxu1 %v3174_v37  ;;  %v1006_v37 = vlaneseq }
 0x283   :  { %2034 = vmatmul.mubr.f32.gmra.mrb[26].mxu0 %v935_v60  ;;  %v937_v46 = vmul.f32 %v921_v45, %v521_v18  ;;  %1139 = vmatprep.mubr.f32.mxu1 %v3662_v10 }
 0x284   :  { %952 = vst [vmem:[%s3630_s7 + $0x60] sm:$0xff] %v936_v9  ;;  %2036 = vmatprep.mubr.f32.mxu0 %v936_v9  ;;  %v923_v6 = vadd.f32 1.0, %v907_v30  ;;  %v938_v27 = vmul.f32 %v922_v7, %v522_v19  ;;  %v1007_v13 = vshrl.u32 %v1006_v37, 7 }
 0x285   :  { %953 = vst [vmem:[%s3630_s7 + $0x68] sm:$0xff] %v937_v46 }
 0x286   :  { %v939_v20 = vmul.f32 %v923_v6, %v523_v14  ;;  %954 = vst [vmem:[%s3630_s7 + $0x70] sm:$0xff] %v938_v27  ;;  %1140 = vmatmul.mubr.f32.gmra.mrb[18].mxu1 %v933_v57  ;;  %v1008_v0 = vsub.s32 0, %v1007_v13  ;;  %v1012_v17 = vsub.s32 1, %v1007_v13  ;;  %v1016_v12 = vsub.s32 2, %v1007_v13 }
 0x287   :  { %2037 = vmatmul.mubr.f32.gmra.mrb[28].mxu0 %v937_v46  ;;  %1145 = vmatprep.mubr.f32.mxu1 %v3662_v10 }
 0x288   :  { %2039 = vmatprep.mubr.f32.mxu0 %v938_v27  ;;  %955 = vst [vmem:[%s3630_s7 + $0x78] sm:$0xff] %v939_v20  ;;  %v3268_v1 = vrot.slane %v1004_v34, %v1008_v0  ;;  %v3270_v35 = vrot.slane %v1004_v34, %v1012_v17  ;;  %v3272_v58 = vrot.slane %v1004_v34, %v1016_v12 }
 0x28a   :  { %1146 = vmatmul.mubr.f32.gmra.mrb[20].mxu1 %v934_v32 }
 0x28b   :  { %2040 = vmatmul.mubr.f32.gmra.mrb[30].mxu0 %v939_v20  ;;  %1151 = vmatprep.mubr.f32.mxu1 %v3662_v10 }
 0x28e   :  { %1152 = vmatmul.mubr.f32.gmra.mrb[22].mxu1 %v935_v60 }
 0x28f   :  { %1157 = vmatprep.mubr.f32.mxu1 %v3662_v10 }
 0x292   :  { %1158 = vmatmul.mubr.f32.gmra.mrb[24].mxu1 %v936_v9 }
 0x293   :  { %1163 = vmatprep.mubr.f32.mxu1 %v3662_v10 }
 0x296   :  { %1164 = vmatmul.mubr.f32.gmra.mrb[26].mxu1 %v937_v46 }
 0x297   :  { %1169 = vmatprep.mubr.f32.mxu1 %v3662_v10 }
 0x29a   :  { %1170 = vmatmul.mubr.f32.gmra.mrb[28].mxu1 %v938_v27 }
 0x29b   :  { %1175 = vmatprep.mubr.f32.mxu1 %v3662_v10 }
 0x29e   :  { %1176 = vmatmul.mubr.f32.gmra.mrb[30].mxu1 %v939_v20 }
 0x335   :  { %v1087_v63 = vpop.f32.mrb[0].mxu1 }
 0x336   :  { %v3275_v24 = vadd.f32 %v1087_v63, %v3268_v1  ;;  %v1089_v10 = vpop.f32.mrb[1].mxu1  ;;  %v2020_v26 = vpop.f32.mrb[16].mxu0 }
 0x337   :  { %v3278_v62 = vadd.f32 %v1089_v10, %v3270_v35  ;;  %v1254_v29 = vadd.f32 %v2020_v26, %v3272_v58  ;;  %v1248_v5 = vpop.f32.mrb[17].mxu0 }
 0x338   :  { %v1382_v21 = vand.u32 2147483647, %v3275_v24  ;;  %v1249_v36 = vadd.f32 %v1248_v5, %v3272_v58 }
 0x339   :  { %v1383_v15 = vand.u32 2147483647, %v3278_v62  ;;  %1820 = vst.msk [vmem:[%s3632_s8 + $0x28] sm:$0xff] %vm1816_vm1, %v1254_v29  ;;  %v1093_v23 = vpop.f32.mrb[2].mxu1 }
 0x33a   :  { %v1430_v33 = vsub.f32 0.0, %v1382_v21  ;;  %1817 = vst.msk [vmem:[%s3632_s8 + $0x10] sm:$0xff] %vm1816_vm1, %v1249_v36  ;;  %v3293_v43 = vadd.f32 %v1093_v23, %v3268_v1  ;;  %v1095_v54 = vpop.f32.mrb[3].mxu1  ;;  %v2023_v44 = vpop.f32.mrb[18].mxu0 }
 0x33b   :  { %v1431_v11 = vsub.f32 0.0, %v1383_v15  ;;  %v3296_v48 = vadd.f32 %v1095_v54, %v3270_v35  ;;  %v1264_v39 = vadd.f32 %v2023_v44, %v3272_v58  ;;  %v1258_v3 = vpop.f32.mrb[19].mxu0 }
 0x33c   :  { %v1478_v47 = vmul.f32 1.442695, %v1430_v33  ;;  %v1385_v4 = vand.u32 2147483647, %v3293_v43  ;;  %v1259_v57 = vadd.f32 %v1258_v3, %v3272_v58 }
 0x33d   :  { %v1480_v31 = vmul.f32 1.442695, %v1431_v11  ;;  %v1386_v2 = vand.u32 2147483647, %v3296_v48  ;;  %1826 = vst.msk [vmem:[%s3632_s8 + $0x58] sm:$0xff] %vm1816_vm1, %v1264_v39 }
 0x33e   :  { %v1099_v50 = vpop.f32.mrb[4].mxu1  ;;  %2220 = vpow2.f32 %v1478_v47  ;;  %v1433_v25 = vsub.f32 0.0, %v1385_v4  ;;  %1823 = vst.msk [vmem:[%s3632_s8 + $0x40] sm:$0xff] %vm1816_vm1, %v1259_v57  ;;  %v2026_v22 = vpop.f32.mrb[20].mxu0 }
 0x33f   :  { %v3311_v49 = vadd.f32 %v1099_v50, %v3268_v1  ;;  %v1101_v16 = vpop.f32.mrb[5].mxu1  ;;  %2222 = vpow2.f32 %v1480_v31  ;;  %v1434_v61 = vsub.f32 0.0, %v1386_v2  ;;  %v1274_v32 = vadd.f32 %v2026_v22, %v3272_v58  ;;  %v1268_v41 = vpop.f32.mrb[21].mxu0 }
 0x340   :  { %v3314_v53 = vadd.f32 %v1101_v16, %v3270_v35  ;;  %v1484_v60 = vmul.f32 1.442695, %v1433_v25  ;;  %v1269_v38 = vadd.f32 %v1268_v41, %v3272_v58  ;;  %v1334_v22 = vmax.f32 %v3275_v24, 0.0 }
 0x341   :  { %v1388_v56 = vand.u32 2147483647, %v3311_v49  ;;  %v1486_v42 = vmul.f32 1.442695, %v1434_v61  ;;  %1832 = vst.msk [vmem:[%s3632_s8 + $0x88] sm:$0xff] %vm1816_vm1, %v1274_v32 }
 0x342   :  { %v1389_v52 = vand.u32 2147483647, %v3314_v53  ;;  %v1105_v28 = vpop.f32.mrb[6].mxu1  ;;  %2224 = vpow2.f32 %v1484_v60  ;;  %1829 = vst.msk [vmem:[%s3632_s8 + $0x70] sm:$0xff] %vm1816_vm1, %v1269_v38  ;;  %v2029_v9 = vpop.f32.mrb[22].mxu0  ;;  %v1335_v60 = vmax.f32 %v3278_v62, 0.0 }
 0x343   :  { %v1436_v55 = vsub.f32 0.0, %v1388_v56  ;;  %v3329_v8 = vadd.f32 %v1105_v28, %v3268_v1  ;;  %v1107_v18 = vpop.f32.mrb[7].mxu1  ;;  %2226 = vpow2.f32 %v1486_v42  ;;  %v1284_v30 = vadd.f32 %v2029_v9, %v3272_v58  ;;  %v1278_v59 = vpop.f32.mrb[23].mxu0 }
 0x344   :  { %v1437_v45 = vsub.f32 0.0, %v1389_v52  ;;  %v3332_v51 = vadd.f32 %v1107_v18, %v3270_v35  ;;  %v1279_v40 = vadd.f32 %v1278_v59, %v3272_v58 }
 0x345   :  { %v1490_v19 = vmul.f32 1.442695, %v1436_v55  ;;  %v1391_v7 = vand.u32 2147483647, %v3329_v8  ;;  %1838 = vst.msk [vmem:[%s3632_s8 + $0xb8] sm:$0xff] %vm1816_vm1, %v1284_v30 }
 0x346   :  { %v1492_v14 = vmul.f32 1.442695, %v1437_v45  ;;  %v1392_v46 = vand.u32 2147483647, %v3332_v51  ;;  %v1111_v6 = vpop.f32.mrb[8].mxu1  ;;  %v1337_v45 = vmax.f32 %v3293_v43, 0.0 }
 0x347   :  { %2228 = vpow2.f32 %v1490_v19  ;;  %v1439_v27 = vsub.f32 0.0, %v1391_v7  ;;  %1835 = vst.msk [vmem:[%s3632_s8 + $0xa0] sm:$0xff] %vm1816_vm1, %v1279_v40  ;;  %v3347_v20 = vadd.f32 %v1111_v6, %v3268_v1  ;;  %v1113_v37 = vpop.f32.mrb[9].mxu1  ;;  %v1338_v7 = vmax.f32 %v3296_v48, 0.0 }
 0x348   :  { %2230 = vpow2.f32 %v1492_v14  ;;  %v1440_v13 = vsub.f32 0.0, %v1392_v46  ;;  %v3350_v0 = vadd.f32 %v1113_v37, %v3270_v35  ;;  %v2221_v34 = vpop.eup %2220  ;;  %v1340_v43 = vmax.f32 %v3311_v49, 0.0 }
 0x349   :  { %v1496_v17 = vmul.f32 1.442695, %v1439_v27  ;;  %v1394_v12 = vand.u32 2147483647, %v3347_v20  ;;  %v2223_v63 = vpop.eup %2222  ;;  %v1574_v10 = vadd.f32 1.0, %v2221_v34  ;;  %v1117_v36 = vpop.f32.mrb[10].mxu1 }
 0x34a   :  { %v1498_v26 = vmul.f32 1.442695, %v1440_v13  ;;  %v1395_v29 = vand.u32 2147483647, %v3350_v0  ;;  %v1575_v5 = vadd.f32 1.0, %v2223_v63  ;;  %v3355_v23 = vadd.f32 %v1117_v36, %v3268_v1  ;;  %v1119_v33 = vpop.f32.mrb[11].mxu1 }
 0x34b   :  { %2232 = vpow2.f32 %v1496_v17  ;;  %v1442_v21 = vsub.f32 0.0, %v1394_v12  ;;  %v3358_v11 = vadd.f32 %v1119_v33, %v3270_v35 }
 0x34c   :  { %2234 = vlog2.f32 %v1574_v10  ;;  %v1443_v15 = vsub.f32 0.0, %v1395_v29  ;;  %v2225_v54 = vpop.eup %2224  ;;  %v1397_v31 = vand.u32 2147483647, %v3355_v23 }
 0x34d   :  { %2236 = vlog2.f32 %v1575_v5  ;;  %v1502_v44 = vmul.f32 1.442695, %v1442_v21  ;;  %v2227_v39 = vpop.eup %2226  ;;  %v1577_v3 = vadd.f32 1.0, %v2225_v54  ;;  %v1123_v4 = vpop.f32.mrb[12].mxu1  ;;  %v1398_v50 = vand.u32 2147483647, %v3358_v11 }
 0x34e   :  { %2238 = vpow2.f32 %v1498_v26  ;;  %v1504_v47 = vmul.f32 1.442695, %v1443_v15  ;;  %v1578_v57 = vadd.f32 1.0, %v2227_v39  ;;  %v1125_v2 = vpop.f32.mrb[13].mxu1  ;;  %v3363_v25 = vadd.f32 %v1123_v4, %v3268_v1 }
 0x34f   :  { %2240 = vpow2.f32 %v1502_v44  ;;  %v1445_v61 = vsub.f32 0.0, %v1397_v31  ;;  %v3367_v32 = vadd.f32 %v1125_v2, %v3270_v35  ;;  %v1446_v42 = vsub.f32 0.0, %v1398_v50 }
 0x350   :  { %2242 = vlog2.f32 %v1577_v3  ;;  %v1400_v24 = vand.u32 2147483647, %v3363_v25  ;;  %v1341_v50 = vmax.f32 %v3314_v53, 0.0 }
 0x351   :  { %v2229_v16 = vpop.eup %2228  ;;  %2244 = vlog2.f32 %v1578_v57  ;;  %v1129_v52 = vpop.f32.mrb[14].mxu1  ;;  %v1508_v9 = vmul.f32 1.442695, %v1445_v61  ;;  %v1510_v59 = vmul.f32 1.442695, %v1446_v42 }
 0x352   :  { %v2231_v41 = vpop.eup %2230  ;;  %v1580_v56 = vadd.f32 1.0, %v2229_v16  ;;  %2246 = vpow2.f32 %v1504_v47  ;;  %v2032_v38 = vpop.f32.mrb[24].mxu0  ;;  %v1448_v40 = vsub.f32 0.0, %v1400_v24  ;;  %v1401_v14 = vand.u32 2147483647, %v3367_v32 }
 0x353   :  { %v1581_v28 = vadd.f32 1.0, %v2231_v41  ;;  %v1294_v55 = vadd.f32 %v2032_v38, %v3272_v58  ;;  %v1288_v18 = vpop.f32.mrb[25].mxu0  ;;  %v1131_v19 = vpop.f32.mrb[15].mxu1  ;;  %v3386_v27 = vadd.f32 %v1129_v52, %v3268_v1 }
 0x354   :  { %2248 = vlog2.f32 %v1580_v56  ;;  %v1289_v30 = vadd.f32 %v1288_v18, %v3272_v58  ;;  %v1514_v63 = vmul.f32 1.442695, %v1448_v40  ;;  %v1449_v21 = vsub.f32 0.0, %v1401_v14 }
 0x355   :  { %v2233_v62 = vpop.eup %2232  ;;  %2250 = vlog2.f32 %v1581_v28  ;;  %1844 = vst.msk [vmem:[%s3632_s8 + $0xe8] sm:$0xff] %vm1816_vm1, %v1294_v55  ;;  %v1135_v37 = vpop.f32.mrb[16].mxu1  ;;  %v3395_v54 = vadd.f32 %v1131_v19, %v3270_v35  ;;  %v1403_v57 = vand.u32 2147483647, %v3386_v27 }
 0x356   :  { %v2235_v46 = vpop.eup %2234  ;;  %v1583_v6 = vadd.f32 1.0, %v2233_v62  ;;  %1841 = vst.msk [vmem:[%s3632_s8 + $0xd0] sm:$0xff] %vm1816_vm1, %v1289_v30  ;;  %2252 = vpow2.f32 %v1508_v9  ;;  %v2035_v48 = vpop.f32.mrb[26].mxu0  ;;  %v1516_v47 = vmul.f32 1.442695, %v1449_v21 }
 0x357   :  { %v2237_v13 = vpop.eup %2236  ;;  %v1623_v34 = vmul.f32 0.6931472, %v2235_v46  ;;  %2254 = vpow2.f32 %v1510_v59  ;;  %v1304_v17 = vadd.f32 %v2035_v48, %v3272_v58  ;;  %v1298_v12 = vpop.f32.mrb[27].mxu0  ;;  %v1451_v38 = vsub.f32 0.0, %v1403_v57 }
 0x358   :  { %v1137_v10 = vpop.f32.mrb[17].mxu1  ;;  %v2239_v26 = vpop.eup %2238  ;;  %v1625_v29 = vmul.f32 0.6931472, %v2237_v13  ;;  %2256 = vlog2.f32 %v1583_v6  ;;  %v1299_v5 = vadd.f32 %v1298_v12, %v3272_v58  ;;  %v1404_v53 = vand.u32 2147483647, %v3395_v54 }
 0x359   :  { %v2241_v36 = vpop.eup %2240  ;;  %v1718_v15 = vadd.f32 %v1623_v34, %v1334_v22  ;;  %v1584_v33 = vadd.f32 1.0, %v2239_v26  ;;  %1850 = vst.msk [vmem:[%s3632_s8 + $0x118] sm:$0xff] %vm1816_vm1, %v1304_v17  ;;  %2258 = vpow2.f32 %v1514_v63  ;;  %v1141_v61 = vpop.f32.mrb[18].mxu1  ;;  %v1520_v9 = vmul.f32 1.442695, %v1451_v38 }
 0x35a   :  { %v2243_v44 = vpop.eup %2242  ;;  %v1719_v39 = vadd.f32 %v1625_v29, %v1335_v60  ;;  %v1586_v3 = vadd.f32 1.0, %v2241_v36  ;;  %1847 = vst.msk [vmem:[%s3632_s8 + $0x100] sm:$0xff] %vm1816_vm1, %v1299_v5  ;;  %v2038_v4 = vpop.f32.mrb[28].mxu0  ;;  %v3424_v30 = vadd.f32 %v1137_v10, %v3270_v35 }
 0x35b   :  { %v2245_v31 = vpop.eup %2244  ;;  %1814 = vst [vmem:[%s3632_s8] sm:$0xff] %v1718_v15  ;;  %v1629_v2 = vmul.f32 0.6931472, %v2243_v44  ;;  %2260 = vlog2.f32 %v1584_v33  ;;  %v1314_v16 = vadd.f32 %v2038_v4, %v3272_v58  ;;  %v1308_v22 = vpop.f32.mrb[29].mxu0  ;;  %v3454_v15 = vadd.f32 %v1141_v61, %v3268_v1 }
 0x35c   :  { %v2247_v41 = vpop.eup %2246  ;;  %1815 = vst [vmem:[%s3632_s8 + $0x8] sm:$0xff] %v1719_v39  ;;  %v1631_v60 = vmul.f32 0.6931472, %v2245_v31  ;;  %2262 = vlog2.f32 %v1586_v3  ;;  %v1309_v56 = vadd.f32 %v1308_v22, %v3272_v58  ;;  %v1143_v42 = vpop.f32.mrb[19].mxu1  ;;  %v1346_v4 = vmax.f32 %v3347_v20, 0.0 }
 0x35d   :  { %v1721_v52 = vadd.f32 %v1629_v2, %v1337_v45  ;;  %v1587_v28 = vadd.f32 1.0, %v2247_v41  ;;  %2264 = vpow2.f32 %v1516_v47  ;;  %1856 = vst.msk [vmem:[%s3632_s8 + $0x148] sm:$0xff] %vm1816_vm1, %v1314_v16  ;;  %v3421_v45 = vadd.f32 %v1135_v37, %v3268_v1  ;;  %v3426_v59 = vpop.f32.mrb[20].mxu1 }
 0x35e   :  { %v2249_v55 = vpop.eup %2248  ;;  %v1722_v18 = vadd.f32 %v1631_v60, %v1338_v7  ;;  %1853 = vst.msk [vmem:[%s3632_s8 + $0x130] sm:$0xff] %vm1816_vm1, %v1309_v56  ;;  %v2041_v24 = vpop.f32.mrb[30].mxu0  ;;  %v1452_v7 = vsub.f32 0.0, %v1404_v53  ;;  %v1343_v37 = vmax.f32 %v3329_v8, 0.0  ;;  %v1344_v8 = vmax.f32 %v3332_v51, 0.0 }
 0x35f   :  { %v2251_v19 = vpop.eup %2250  ;;  %1818 = vst [vmem:[%s3632_s8 + $0x18] sm:$0xff] %v1721_v52  ;;  %v1635_v62 = vmul.f32 0.6931472, %v2249_v55  ;;  %2266 = vlog2.f32 %v1587_v28  ;;  %v1324_v40 = vadd.f32 %v2041_v24, %v3272_v58  ;;  %v1318_v14 = vpop.f32.mrb[31].mxu0  ;;  %v1406_v10 = vand.u32 2147483647, %v3421_v45 }
 0x360   :  { %v1149_v46 = vpop.f32.mrb[21].mxu1  ;;  %v2253_v6 = vpop.eup %2252  ;;  %1819 = vst [vmem:[%s3632_s8 + $0x20] sm:$0xff] %v1722_v18  ;;  %v1637_v48 = vmul.f32 0.6931472, %v2251_v19  ;;  %2268 = vpow2.f32 %v1520_v9  ;;  %v1319_v13 = vadd.f32 %v1318_v14, %v3272_v58  ;;  %v1522_v63 = vmul.f32 1.442695, %v1452_v7 }
 0x361   :  { %v2255_v34 = vpop.eup %2254  ;;  %v1724_v17 = vadd.f32 %v1635_v62, %v1340_v43  ;;  %v1589_v12 = vadd.f32 1.0, %v2253_v6  ;;  %1862 = vst.msk [vmem:[%s3632_s8 + $0x178] sm:$0xff] %vm1816_vm1, %v1324_v40  ;;  %v1407_v58 = vand.u32 2147483647, %v3424_v30  ;;  %v1153_v49 = vpop.f32.mrb[22].mxu1  ;;  %v1454_v36 = vsub.f32 0.0, %v1406_v10 }
 0x362   :  { %v2257_v26 = vpop.eup %2256  ;;  %v1725_v29 = vadd.f32 %v1637_v48, %v1341_v50  ;;  %v1590_v5 = vadd.f32 1.0, %v2255_v34  ;;  %1859 = vst.msk [vmem:[%s3632_s8 + $0x160] sm:$0xff] %vm1816_vm1, %v1319_v13  ;;  %v1155_v51 = vpop.f32.mrb[23].mxu1  ;;  %v3460_v39 = vadd.f32 %v1143_v42, %v3270_v35  ;;  %v1409_v16 = vand.u32 2147483647, %v3454_v15 }
 0x363   :  { %v2259_v43 = vpop.eup %2258  ;;  %1821 = vst [vmem:[%s3632_s8 + $0x30] sm:$0xff] %v1724_v17  ;;  %v1641_v21 = vmul.f32 0.6931472, %v2257_v26  ;;  %2270 = vlog2.f32 %v1589_v12  ;;  %v1455_v44 = vsub.f32 0.0, %v1407_v58  ;;  %v1526_v57 = vmul.f32 1.442695, %v1454_v36 }
 0x364   :  { %1822 = vst [vmem:[%s3632_s8 + $0x38] sm:$0xff] %v1725_v29  ;;  %2272 = vlog2.f32 %v1590_v5  ;;  %v1592_v33 = vadd.f32 1.0, %v2259_v43  ;;  %v1347_v41 = vmax.f32 %v3350_v0, 0.0  ;;  %v1410_v60 = vand.u32 2147483647, %v3460_v39 }
 0x365   :  { %v2261_v3 = vpop.eup %2260  ;;  %v1727_v47 = vadd.f32 %v1641_v21, %v1343_v37  ;;  %2274 = vpow2.f32 %v1522_v63  ;;  %v1528_v50 = vmul.f32 1.442695, %v1455_v44  ;;  %v1159_v20 = vpop.f32.mrb[24].mxu1  ;;  %v1457_v42 = vsub.f32 0.0, %v1409_v16 }
 0x366   :  { %v2263_v31 = vpop.eup %2262  ;;  %v1643_v2 = vmul.f32 0.6931472, %v2261_v3  ;;  %2276 = vlog2.f32 %v1592_v33  ;;  %v3469_v52 = vpop.f32.mrb[25].mxu1  ;;  %v1458_v55 = vsub.f32 0.0, %v1410_v60  ;;  %v3473_v18 = vadd.f32 %v3426_v59, %v3268_v1 }
 0x367   :  { %v2265_v22 = vpop.eup %2264  ;;  %1824 = vst [vmem:[%s3632_s8 + $0x48] sm:$0xff] %v1727_v47  ;;  %v1647_v61 = vmul.f32 0.6931472, %v2263_v31  ;;  %2278 = vpow2.f32 %v1526_v57  ;;  %v3476_v9 = vadd.f32 %v1149_v46, %v3270_v35  ;;  %v1532_v19 = vmul.f32 1.442695, %v1457_v42 }
 0x368   :  { %v1728_v56 = vadd.f32 %v1643_v2, %v1344_v8  ;;  %v1593_v38 = vadd.f32 1.0, %v2265_v22  ;;  %2280 = vpow2.f32 %v1528_v50  ;;  %v3482_v62 = vadd.f32 %v1153_v49, %v3268_v1 }
 0x369   :  { %v2267_v28 = vpop.eup %2266  ;;  %v1730_v53 = vadd.f32 %v1647_v61, %v1346_v4  ;;  %v1165_v7 = vpop.f32.mrb[26].mxu1  ;;  %v1534_v40 = vmul.f32 1.442695, %v1458_v55  ;;  %v1412_v14 = vand.u32 2147483647, %v3473_v18  ;;  %v1349_v6 = vmax.f32 %v3355_v23, 0.0 }
 0x36a   :  { %v2269_v0 = vpop.eup %2268  ;;  %1825 = vst [vmem:[%s3632_s8 + $0x50] sm:$0xff] %v1728_v56  ;;  %v1649_v24 = vmul.f32 0.6931472, %v2267_v28  ;;  %2282 = vlog2.f32 %v1593_v38  ;;  %v1413_v48 = vand.u32 2147483647, %v3476_v9  ;;  %v1167_v37 = vpop.f32.mrb[27].mxu1  ;;  %v3496_v23 = vadd.f32 %v1155_v51, %v3270_v35 }
 0x36b   :  { %1827 = vst [vmem:[%s3632_s8 + $0x60] sm:$0xff] %v1730_v53  ;;  %v1595_v59 = vadd.f32 1.0, %v2269_v0  ;;  %2284 = vpow2.f32 %v1532_v19  ;;  %v1350_v34 = vmax.f32 %v3358_v11, 0.0  ;;  %v1460_v17 = vsub.f32 0.0, %v1412_v14 }
 0x36c   :  { %v1731_v46 = vadd.f32 %v1649_v24, %v1347_v41  ;;  %v1415_v12 = vand.u32 2147483647, %v3482_v62  ;;  %v1461_v26 = vsub.f32 0.0, %v1413_v48  ;;  %v3501_v49 = vadd.f32 %v1159_v20, %v3268_v1 }
 0x36d   :  { %v2271_v13 = vpop.eup %2270  ;;  %2286 = vlog2.f32 %v1595_v59  ;;  %v3498_v29 = vpop.f32.mrb[28].mxu1  ;;  %v1538_v11 = vmul.f32 1.442695, %v1460_v17  ;;  %v1352_v33 = vmax.f32 %v3363_v25, 0.0  ;;  %v1353_v57 = vmax.f32 %v3367_v32, 0.0 }
 0x36e   :  { %v2273_v63 = vpop.eup %2272  ;;  %1828 = vst [vmem:[%s3632_s8 + $0x68] sm:$0xff] %v1731_v46  ;;  %v1653_v10 = vmul.f32 0.6931472, %v2271_v13  ;;  %2288 = vpow2.f32 %v1534_v40  ;;  %v1463_v58 = vsub.f32 0.0, %v1415_v12  ;;  %v1173_v43 = vpop.f32.mrb[29].mxu1  ;;  %v3517_v56 = vadd.f32 %v3469_v52, %v3270_v35 }
 0x36f   :  { %v2275_v8 = vpop.eup %2274  ;;  %v1655_v5 = vmul.f32 0.6931472, %v2273_v63  ;;  %v1540_v3 = vmul.f32 1.442695, %v1461_v26  ;;  %2290 = vpow2.f32 %v1538_v11  ;;  %v1416_v16 = vand.u32 2147483647, %v3496_v23 }
 0x370   :  { %v2277_v21 = vpop.eup %2276  ;;  %v1733_v36 = vadd.f32 %v1653_v10, %v1349_v6  ;;  %v1596_v44 = vadd.f32 1.0, %v2275_v8  ;;  %v1544_v50 = vmul.f32 1.442695, %v1463_v58  ;;  %v1418_v32 = vand.u32 2147483647, %v3501_v49 }
 0x371   :  { %v2279_v47 = vpop.eup %2278  ;;  %v1734_v4 = vadd.f32 %v1655_v5, %v1350_v34  ;;  %v1659_v51 = vmul.f32 0.6931472, %v2277_v21  ;;  %v1177_v22 = vpop.f32.mrb[30].mxu1  ;;  %v1464_v20 = vsub.f32 0.0, %v1416_v16  ;;  %v3520_v38 = vadd.f32 %v1165_v7, %v3268_v1 }
 0x372   :  { %v2281_v31 = vpop.eup %2280  ;;  %1830 = vst [vmem:[%s3632_s8 + $0x78] sm:$0xff] %v1733_v36  ;;  %2292 = vlog2.f32 %v1596_v44  ;;  %v1598_v2 = vadd.f32 1.0, %v2279_v47  ;;  %v3513_v41 = vpop.f32.mrb[31].mxu1  ;;  %v1466_v28 = vsub.f32 0.0, %v1418_v32  ;;  %v3526_v53 = vadd.f32 %v1167_v37, %v3270_v35 }
 0x373   :  { %1831 = vst [vmem:[%s3632_s8 + $0x80] sm:$0xff] %v1734_v4  ;;  %v1736_v25 = vadd.f32 %v1659_v51, %v1352_v33  ;;  %v1599_v61 = vadd.f32 1.0, %v2281_v31  ;;  %2294 = vpow2.f32 %v1540_v3  ;;  %v1546_v0 = vmul.f32 1.442695, %v1464_v20 }
 0x374   :  { %v2283_v60 = vpop.eup %2282  ;;  %2296 = vlog2.f32 %v1598_v2  ;;  %v1419_v24 = vand.u32 2147483647, %v3517_v56  ;;  %v1355_v7 = vmax.f32 %v3386_v27, 0.0  ;;  %v1550_v40 = vmul.f32 1.442695, %v1466_v28 }
 0x375   :  { %1833 = vst [vmem:[%s3632_s8 + $0x90] sm:$0xff] %v1736_v25  ;;  %v1661_v42 = vmul.f32 0.6931472, %v2283_v60  ;;  %2298 = vlog2.f32 %v1599_v61  ;;  %v2285_v55 = vpop.eup %2284  ;;  %v1421_v48 = vand.u32 2147483647, %v3520_v38  ;;  %v3537_v10 = vadd.f32 %v3498_v29, %v3268_v1 }
 0x376   :  { %2300 = vpow2.f32 %v1544_v50  ;;  %v1601_v59 = vadd.f32 1.0, %v2285_v55  ;;  %v1467_v6 = vsub.f32 0.0, %v1419_v24  ;;  %v1422_v13 = vand.u32 2147483647, %v3526_v53 }
 0x377   :  { %v2287_v52 = vpop.eup %2286  ;;  %v1737_v19 = vadd.f32 %v1661_v42, %v1353_v57  ;;  %2302 = vpow2.f32 %v1546_v0  ;;  %v1469_v27 = vsub.f32 0.0, %v1421_v48  ;;  %v3540_v26 = vadd.f32 %v1173_v43, %v3270_v35 }
 0x378   :  { %v2289_v14 = vpop.eup %2288  ;;  %v1665_v46 = vmul.f32 0.6931472, %v2287_v52  ;;  %2304 = vlog2.f32 %v1601_v59  ;;  %v1552_v17 = vmul.f32 1.442695, %v1467_v6  ;;  %v1470_v63 = vsub.f32 0.0, %v1422_v13 }
 0x379   :  { %1834 = vst [vmem:[%s3632_s8 + $0x98] sm:$0xff] %v1737_v19  ;;  %v1602_v37 = vadd.f32 1.0, %v2289_v14  ;;  %2306 = vpow2.f32 %v1550_v40  ;;  %v2291_v12 = vpop.eup %2290  ;;  %v1356_v5 = vmax.f32 %v3395_v54, 0.0  ;;  %v1556_v58 = vmul.f32 1.442695, %v1469_v27 }
 0x37a   :  { %v1739_v34 = vadd.f32 %v1665_v46, %v1355_v7  ;;  %v1604_v11 = vadd.f32 1.0, %v2291_v12  ;;  %v1358_v33 = vmax.f32 %v3421_v45, 0.0  ;;  %v1558_v44 = vmul.f32 1.442695, %v1470_v63 }
 0x37b   :  { %2308 = vlog2.f32 %v1602_v37  ;;  %v3548_v29 = vadd.f32 %v1177_v22, %v3268_v1  ;;  %v1424_v47 = vand.u32 2147483647, %v3537_v10  ;;  %v1425_v4 = vand.u32 2147483647, %v3540_v26 }
 0x37c   :  { %v2293_v8 = vpop.eup %2292  ;;  %1836 = vst [vmem:[%s3632_s8 + $0xa8] sm:$0xff] %v1739_v34  ;;  %2310 = vpow2.f32 %v1552_v17  ;;  %v1359_v31 = vmax.f32 %v3424_v30, 0.0  ;;  %v3559_v30 = vadd.f32 %v3513_v41, %v3270_v35  ;;  %v1361_v24 = vmax.f32 %v3454_v15, 0.0 }
 0x37d   :  { %v2295_v21 = vpop.eup %2294  ;;  %v1667_v36 = vmul.f32 0.6931472, %v2293_v8  ;;  %2312 = vlog2.f32 %v1604_v11  ;;  %v1472_v45 = vsub.f32 0.0, %v1424_v47  ;;  %v1473_v16 = vsub.f32 0.0, %v1425_v4 }
 0x37e   :  { %v2297_v43 = vpop.eup %2296  ;;  %v1605_v3 = vadd.f32 1.0, %v2295_v21  ;;  %2314 = vpow2.f32 %v1556_v58  ;;  %v1427_v25 = vand.u32 2147483647, %v3548_v29  ;;  %v1428_v35 = vand.u32 2147483647, %v3559_v30 }
 0x37f   :  { %v2299_v51 = vpop.eup %2298  ;;  %v1740_v54 = vadd.f32 %v1667_v36, %v1356_v5  ;;  %v1671_v57 = vmul.f32 0.6931472, %v2297_v43  ;;  %v1562_v60 = vmul.f32 1.442695, %v1472_v45  ;;  %v1564_v20 = vmul.f32 1.442695, %v1473_v16 }
 0x380   :  { %v2301_v2 = vpop.eup %2300  ;;  %v1673_v50 = vmul.f32 0.6931472, %v2299_v51  ;;  %2316 = vlog2.f32 %v1605_v3  ;;  %v1475_v55 = vsub.f32 0.0, %v1427_v25  ;;  %v1362_v19 = vmax.f32 %v3460_v39, 0.0 }
 0x381   :  { %1837 = vst [vmem:[%s3632_s8 + $0xb0] sm:$0xff] %v1740_v54  ;;  %v1742_v1 = vadd.f32 %v1671_v57, %v1358_v33  ;;  %v1607_v22 = vadd.f32 1.0, %v2301_v2  ;;  %2318 = vpow2.f32 %v1558_v44  ;;  %v2303_v61 = vpop.eup %2302  ;;  %v1476_v6 = vsub.f32 0.0, %v1428_v35 }
 0x382   :  { %v1743_v32 = vadd.f32 %v1673_v50, %v1359_v31  ;;  %v2305_v42 = vpop.eup %2304  ;;  %v1608_v28 = vadd.f32 1.0, %v2303_v61  ;;  %v1568_v59 = vmul.f32 1.442695, %v1475_v55  ;;  %v1364_v39 = vmax.f32 %v3473_v18, 0.0 }
 0x383   :  { %1839 = vst [vmem:[%s3632_s8 + $0xc0] sm:$0xff] %v1742_v1  ;;  %2320 = vlog2.f32 %v1607_v22  ;;  %v2307_v0 = vpop.eup %2306  ;;  %v1677_v52 = vmul.f32 0.6931472, %v2305_v42  ;;  %v1570_v13 = vmul.f32 1.442695, %v1476_v6  ;;  %v1365_v5 = vmax.f32 %v3476_v9, 0.0 }
 0x384   :  { %1840 = vst [vmem:[%s3632_s8 + $0xc8] sm:$0xff] %v1743_v32  ;;  %2322 = vpow2.f32 %v1562_v60  ;;  %v1610_v7 = vadd.f32 1.0, %v2307_v0  ;;  %v1367_v33 = vmax.f32 %v3482_v62, 0.0  ;;  %v1368_v4 = vmax.f32 %v3496_v23, 0.0 }
 0x385   :  { %v2309_v41 = vpop.eup %2308  ;;  %2324 = vlog2.f32 %v1608_v28  ;;  %v1745_v14 = vadd.f32 %v1677_v52, %v1361_v24  ;;  %v1370_v2 = vmax.f32 %v3501_v49, 0.0  ;;  %v1371_v22 = vmax.f32 %v3517_v56, 0.0 }
 0x386   :  { %v2311_v40 = vpop.eup %2310  ;;  %v1679_v46 = vmul.f32 0.6931472, %v2309_v41  ;;  %2326 = vpow2.f32 %v1564_v20  ;;  %v1373_v60 = vmax.f32 %v3520_v38, 0.0  ;;  %v1374_v56 = vmax.f32 %v3526_v53, 0.0 }
 0x387   :  { %2328 = vlog2.f32 %v1610_v7  ;;  %v1611_v48 = vadd.f32 1.0, %v2311_v40  ;;  %v2313_v37 = vpop.eup %2312  ;;  %1842 = vst [vmem:[%s3632_s8 + $0xd8] sm:$0xff] %v1745_v14  ;;  %v1376_v52 = vmax.f32 %v3537_v10, 0.0  ;;  %v1379_v40 = vmax.f32 %v3548_v29, 0.0 }
 0x388   :  { %v1746_v15 = vadd.f32 %v1679_v46, %v1362_v19  ;;  %2330 = vpow2.f32 %v1568_v59  ;;  %v2315_v34 = vpop.eup %2314  ;;  %v1683_v17 = vmul.f32 0.6931472, %v2313_v37  ;;  %v1377_v19 = vmax.f32 %v3540_v26, 0.0 }
 0x389   :  { %2332 = vlog2.f32 %v1611_v48  ;;  %v1613_v12 = vadd.f32 1.0, %v2315_v34  ;;  %v1380_v6 = vmax.f32 %v3559_v30, 0.0 }
 0x38a   :  { %v2317_v27 = vpop.eup %2316  ;;  %1843 = vst [vmem:[%s3632_s8 + $0xe0] sm:$0xff] %v1746_v15  ;;  %2334 = vpow2.f32 %v1570_v13  ;;  %v1748_v8 = vadd.f32 %v1683_v17, %v1364_v39 }
 0x38b   :  { %v2319_v63 = vpop.eup %2318  ;;  %v1685_v11 = vmul.f32 0.6931472, %v2317_v27  ;;  %2336 = vlog2.f32 %v1613_v12 }
 0x38c   :  { %v1614_v58 = vadd.f32 1.0, %v2319_v63  ;;  %1845 = vst [vmem:[%s3632_s8 + $0xf0] sm:$0xff] %v1748_v8 }
 0x38d   :  { %v2321_v21 = vpop.eup %2320  ;;  %v1749_v18 = vadd.f32 %v1685_v11, %v1365_v5 }
 0x38e   :  { %v2323_v36 = vpop.eup %2322  ;;  %v1689_v44 = vmul.f32 0.6931472, %v2321_v21  ;;  %2338 = vlog2.f32 %v1614_v58 }
 0x38f   :  { %v2325_v43 = vpop.eup %2324  ;;  %1846 = vst [vmem:[%s3632_s8 + $0xf8] sm:$0xff] %v1749_v18  ;;  %v1616_v9 = vadd.f32 1.0, %v2323_v36 }
 0x390   :  { %v2327_v3 = vpop.eup %2326  ;;  %v1751_v47 = vadd.f32 %v1689_v44, %v1367_v33  ;;  %v1691_v51 = vmul.f32 0.6931472, %v2325_v43 }
 0x391   :  { %v2329_v54 = vpop.eup %2328  ;;  %2340 = vlog2.f32 %v1616_v9  ;;  %v1617_v57 = vadd.f32 1.0, %v2327_v3 }
 0x392   :  { %v2331_v31 = vpop.eup %2330  ;;  %1848 = vst [vmem:[%s3632_s8 + $0x108] sm:$0xff] %v1751_v47  ;;  %v1752_v62 = vadd.f32 %v1691_v51, %v1368_v4  ;;  %v1695_v50 = vmul.f32 0.6931472, %v2329_v54 }
 0x393   :  { %v2333_v45 = vpop.eup %2332  ;;  %2342 = vlog2.f32 %v1617_v57  ;;  %v1619_v16 = vadd.f32 1.0, %v2331_v31 }
 0x394   :  { %v2335_v1 = vpop.eup %2334  ;;  %1849 = vst [vmem:[%s3632_s8 + $0x110] sm:$0xff] %v1752_v62  ;;  %v1754_v23 = vadd.f32 %v1695_v50, %v1370_v2  ;;  %v1697_v25 = vmul.f32 0.6931472, %v2333_v45 }
 0x395   :  { %2344 = vlog2.f32 %v1619_v16  ;;  %v1620_v61 = vadd.f32 1.0, %v2335_v1  ;;  %v2337_v32 = vpop.eup %2336 }
 0x396   :  { %1851 = vst [vmem:[%s3632_s8 + $0x120] sm:$0xff] %v1754_v23  ;;  %v1755_v49 = vadd.f32 %v1697_v25, %v1371_v22  ;;  %v1701_v20 = vmul.f32 0.6931472, %v2337_v32 }
 0x397   :  { %2346 = vlog2.f32 %v1620_v61 }
 0x398   :  { %v2339_v42 = vpop.eup %2338  ;;  %1852 = vst [vmem:[%s3632_s8 + $0x128] sm:$0xff] %v1755_v49  ;;  %v1757_v28 = vadd.f32 %v1701_v20, %v1373_v60 }
 0x399   :  { %v1703_v55 = vmul.f32 0.6931472, %v2339_v42 }
 0x39a   :  { %1854 = vst [vmem:[%s3632_s8 + $0x138] sm:$0xff] %v1757_v28 }
 0x39b   :  { %v2341_v0 = vpop.eup %2340  ;;  %v1758_v24 = vadd.f32 %v1703_v55, %v1374_v56 }
 0x39c   :  { %v1707_v38 = vmul.f32 0.6931472, %v2341_v0 }
 0x39d   :  { %v2343_v35 = vpop.eup %2342  ;;  %1855 = vst [vmem:[%s3632_s8 + $0x140] sm:$0xff] %v1758_v24 }
 0x39e   :  { %v1760_v41 = vadd.f32 %v1707_v38, %v1376_v52  ;;  %v1709_v7 = vmul.f32 0.6931472, %v2343_v35 }
 0x39f   :  { %v2345_v53 = vpop.eup %2344 }
 0x3a0   :  { %1857 = vst [vmem:[%s3632_s8 + $0x150] sm:$0xff] %v1760_v41  ;;  %v1761_v59 = vadd.f32 %v1709_v7, %v1377_v19  ;;  %v1713_v14 = vmul.f32 0.6931472, %v2345_v53 }
 0x3a1   :  { %v2347_v10 = vpop.eup %2346 }
 0x3a2   :  { %1858 = vst [vmem:[%s3632_s8 + $0x158] sm:$0xff] %v1761_v59  ;;  %v1763_v46 = vadd.f32 %v1713_v14, %v1379_v40  ;;  %v1715_v48 = vmul.f32 0.6931472, %v2347_v10 }
 0x3a4   :  { %1860 = vst [vmem:[%s3632_s8 + $0x168] sm:$0xff] %v1763_v46  ;;  %v1764_v26 = vadd.f32 %v1715_v48, %v1380_v6 }
 0x3a6   :  { %1861 = vst [vmem:[%s3632_s8 + $0x170] sm:$0xff] %v1764_v26 }

</bundles_post_ra>
